<compile_context>
chip_gen: v5e
topology: v5e:2x2
jax: 0.10.0
libtpu: 0.0.40
codegen_flags: <defaults>
</compile_context>

<pallas_src>
import math

import jax
import jax.numpy as jnp
import numpy as np
from jax.experimental import pallas as pl
from jax.experimental.pallas import tpu as pltpu

# ----------------------------- model hyperparams -----------------------------
B, T, IDIM = 2, 32, 80
ODIM = 32
NUM_REPR = 4
DROPOUT_RATE = 0.1            # identity at inference

T1 = (T - 3) // 2 + 1         # 15   conv1 time
F1 = (IDIM - 3) // 2 + 1      # 39   conv1 freq
T2 = (T1 - 3) // 2 + 1        # 7    conv2 time
F2 = (F1 - 3) // 2 + 1        # 19   conv2 freq (== ((idim-1)//2-1)//2)
K1 = 81                       # combined im2col taps: 9 conv2 positions x 9 conv1 taps
K1P = 128                     # K1 zero-padded to a full lane width (review item)
KIN = NUM_REPR * K1P          # 512  conv1 contraction (all branches side by side)
N1 = NUM_REPR * 9 * ODIM      # 1152 conv1 output columns (branch-major)
N2 = NUM_REPR * ODIM          # 128  conv2 output columns -> lane-dense feature slab
MH = B * T2                   # 14   rows into the head linear
MHP = 16                      # padded to a multiple of 8 sublanes (2 sublanes exactly)
NROWS = F2 * MHP              # 304  conv rows: f2-major groups of MHP rows each
DLIN = NUM_REPR * ODIM * F2   # 2432 head input features (torch flatten order c*(R*F2)+r*F2+f2)


# ------------------------------ the fused kernel ------------------------------
def _fused_kernel(p_ref, w1_ref, b1_ref, w2_ref, b2_ref, wh_ref, add_ref, o_ref):
    """conv1 -> ReLU -> conv2 -> ReLU -> Linear head, entirely in VMEM.

    p_ref  : (NROWS, KIN)  bf16   combined-receptive-field patches, branch-major columns
    w1_ref : (KIN, N1)     bf16   block-diag over branches of kron(I9, w1_r) (81->128 rows padded)
    b1_ref : (1, N1)       f32
    w2_ref : (N1, N2)      bf16   block-diag over branches of conv2 (288, 32) blocks
    b2_ref : (1, N2)       f32
    wh_ref : (F2, N2, ODIM) f32   head weight, xscale folded, (f2, r, c) column order
    add_ref: (MHP, ODIM)   f32    pos-enc + bias*xscale, padded rows zero
    o_ref  : (MHP, ODIM)   f32
    """
    # conv1 (all branches in one MXU matmul; zero blocks are free on the bf16 MXU)
    h1 = jnp.dot(p_ref[...], w1_ref[...], preferred_element_type=jnp.float32)   # (NROWS, N1) f32
    h1 = jnp.maximum(h1 + b1_ref[...], 0.0)
    # conv2 (block-diag across branches) -> lane-dense (NROWS, 128) feature slab
    h2 = jnp.dot(h1.astype(jnp.bfloat16), w2_ref[...],
                 preferred_element_type=jnp.float32)                            # (NROWS, N2) f32
    h2 = jnp.maximum(h2 + b2_ref[...], 0.0)
    # head: rows are f2-major groups of MHP=16; contract over (f2, branch, channel)
    acc = add_ref[...]                                                          # (MHP, ODIM) f32
    for f in range(F2):
        acc = acc + jnp.dot(h2[f * MHP:(f + 1) * MHP, :], wh_ref[f],
                            preferred_element_type=jnp.float32)
    o_ref[...] = acc


def fused_forward(patches, prep):
    """patches: (NROWS, KIN) bf16 -> (MHP, ODIM) f32."""
    return pl.pallas_call(
        _fused_kernel,
        out_shape=jax.ShapeDtypeStruct((MHP, ODIM), jnp.float32),
        grid=(1,),
        in_specs=[
            pl.BlockSpec((NROWS, KIN), lambda i: (0, 0)),
            pl.BlockSpec((KIN, N1), lambda i: (0, 0)),
            pl.BlockSpec((1, N1), lambda i: (0, 0)),
            pl.BlockSpec((N1, N2), lambda i: (0, 0)),
            pl.BlockSpec((1, N2), lambda i: (0, 0)),
            pl.BlockSpec((F2, N2, ODIM), lambda i: (0, 0, 0)),
            pl.BlockSpec((MHP, ODIM), lambda i: (0, 0)),
        ],
        out_specs=pl.BlockSpec((MHP, ODIM), lambda i: (0, 0)),
        compiler_params=pltpu.CompilerParams(
            dimension_semantics=("arbitrary",),
            vmem_limit_bytes=32 * 1024 * 1024,   # ~6.5 MiB working set; safe on v5e/v6e/v7x
        ),
    )(patches, prep["W1"], prep["b1"], prep["W2"], prep["b2"], prep["WH"], prep["addend"])


# ------------------------------- host-side prep -------------------------------
def positional_encoding(length, d_model):
    """espnet PositionalEncoding table: (length, d_model)."""
    pos = jnp.arange(length, dtype=jnp.float32)[:, None]
    div = jnp.exp(jnp.arange(0, d_model, 2, dtype=jnp.float32) * (-math.log(10000.0) / d_model))
    pe = jnp.zeros((length, d_model), jnp.float32)
    pe = pe.at[:, 0::2].set(jnp.sin(pos * div))
    pe = pe.at[:, 1::2].set(jnp.cos(pos * div))
    return pe


def build_patches(x_all):
    """x_all: (R, B, T, IDIM) -> fused conv1+conv2 patches (NROWS, KIN) bf16.

    Row index      = f2*MHP + (b*T2 + t2)          (f2-major, each group padded 14->16)
    Column index   = r*K1P + (kh2*3+kw2)*9 + (kh1*3+kw1)   (81 real taps, padded to 128)
    """
    cols = []
    for kh2 in range(3):
        for kw2 in range(3):
            for kh1 in range(3):
                for kw1 in range(3):
                    dt = 2 * kh2 + kh1
                    df = 2 * kw2 + kw1
                    cols.append(x_all[:, :, dt:dt + 4 * T2:4, df:df + 4 * F2:4])
    p = jnp.stack(cols, axis=-1)                              # (R, B, T2, F2, 81)
    p = jnp.transpose(p, (0, 3, 1, 2, 4)).reshape(NUM_REPR, F2, MH, K1)
    p = jnp.pad(p, ((0, 0), (0, 0), (0, MHP - MH), (0, K1P - K1)))   # (R, F2, 16, 128)
    p = p.reshape(NUM_REPR, NROWS, K1P)
    p = jnp.transpose(p, (1, 0, 2)).reshape(NROWS, KIN)       # branch-major columns
    return p.astype(jnp.bfloat16)


def init_params(key):
    """Synthetic parameters in the PyTorch layouts."""
    keys = jax.random.split(key, NUM_REPR * 4 + 2)
    branches = []
    k = 0
    for _ in range(NUM_REPR):
        w1 = jax.random.normal(keys[k], (ODIM, 1, 3, 3), jnp.float32) / math.sqrt(9.0); k += 1
        b1 = jax.random.normal(keys[k], (ODIM,), jnp.float32) * 0.01; k += 1
        w2 = jax.random.normal(keys[k], (ODIM, ODIM, 3, 3), jnp.float32) / math.sqrt(9.0 * ODIM); k += 1
        b2 = jax.random.normal(keys[k], (ODIM,), jnp.float32) * 0.01; k += 1
        branches.append({"w1": w1, "b1": b1, "w2": w2, "b2": b2})
    lin_w = jax.random.normal(keys[k], (ODIM, DLIN), jnp.float32) / math.sqrt(DLIN)
    lin_b = jax.random.normal(keys[k + 1], (ODIM,), jnp.float32) * 0.01
    return {"branch": branches, "lin_w": lin_w, "lin_b": lin_b}


def prep_params(params):
    """One-time host-side repack into kernel-ready, block-diagonal, xscale-folded layouts."""
    xscale = math.sqrt(ODIM)
    C288 = 9 * ODIM
    W1 = np.zeros((KIN, N1), np.float32)
    W2 = np.zeros((N1, N2), np.float32)
    b1 = np.zeros((1, N1), np.float32)
    b2 = np.zeros((1, N2), np.float32)
    for r, p in enumerate(params["branch"]):
        w1r = np.asarray(p["w1"]).reshape(ODIM, 9).T                       # (9, 32), row = kh1*3+kw1
        blk = np.kron(np.eye(9, dtype=np.float32), w1r)                    # (81, 288) block-diagonal
        W1[r * K1P:r * K1P + K1, r * C288:(r + 1) * C288] = blk
        b1[0, r * C288:(r + 1) * C288] = np.tile(np.asarray(p["b1"]), 9)
        w2r = np.transpose(np.asarray(p["w2"]), (2, 3, 1, 0)).reshape(C288, ODIM)  # row=(kh2*3+kw2)*32+c
        W2[r * C288:(r + 1) * C288, r * ODIM:(r + 1) * ODIM] = w2r
        b2[0, r * ODIM:(r + 1) * ODIM] = np.asarray(p["b2"])
    # Head weight: torch flat input index = c*(R*F2) + r*F2 + f2  ->  ours = (f2, r, c); xscale folded.
    wl = np.asarray(params["lin_w"]).reshape(ODIM, ODIM, NUM_REPR, F2)     # (o, c, r, f)
    WH = np.transpose(wl, (3, 2, 1, 0)).reshape(F2, N2, ODIM) * xscale     # (19, 128, 32)
    pe = positional_encoding(T2, ODIM)                                     # (T2, ODIM)
    addend = jnp.tile(pe, (B, 1)) + jnp.asarray(params["lin_b"])[None, :] * xscale   # (MH, ODIM)
    addend = jnp.pad(addend, ((0, MHP - MH), (0, 0)))
    return {
        "W1": jnp.asarray(W1, jnp.bfloat16),
        "b1": jnp.asarray(b1, jnp.float32),
        "W2": jnp.asarray(W2, jnp.bfloat16),
        "b2": jnp.asarray(b2, jnp.float32),
        "WH": jnp.asarray(WH, jnp.float32),
        "addend": addend,
    }


# --------------------------------- forward ------------------------------------
@jax.jit
def forward_pallas(x_all, x_mask, prep):
    """Mirrors Conv2dSubsamplingFUSED.forward (eval mode).  x_all: (R, B, T, IDIM)."""
    patches = build_patches(x_all)                          # (304, 512) bf16, single XLA fusion
    y = fused_forward(patches, prep)                        # (MHP, ODIM) f32, one pallas_call
    y = y[:MH].reshape(B, T2, ODIM)
    mask = x_mask[:, :, :-2:2][:, :, :-2:2]
    return y, mask


# --------------------------- pure-JAX reference -------------------------------
def forward_reference(x_list, x_mask, params):
    xscale = math.sqrt(ODIM)
    outs = []
    for r in range(NUM_REPR):
        p = params["branch"][r]
        h = x_list[r][:, None, :, :]                                         # NCHW
        h = jax.lax.conv_general_dilated(h, p["w1"], (2, 2), "VALID",
                                         dimension_numbers=("NCHW", "OIHW", "NCHW"))
        h = jnp.maximum(h + p["b1"][None, :, None, None], 0.0)
        h = jax.lax.conv_general_dilated(h, p["w2"], (2, 2), "VALID",
                                         dimension_numbers=("NCHW", "OIHW", "NCHW"))
        h = jnp.maximum(h + p["b2"][None, :, None, None], 0.0)
        outs.append(h)                                                        # (B, C, T2, F2)
    x = jnp.concatenate(outs, axis=-1)                                        # (B, C, T2, R*F2)
    b, c, t, f = x.shape
    x = jnp.transpose(x, (0, 2, 1, 3)).reshape(b, t, c * f)
    y = x @ params["lin_w"].T + params["lin_b"]
    y = y * xscale + positional_encoding(t, ODIM)[None]
    mask = x_mask[:, :, :-2:2][:, :, :-2:2]
    return y, mask


# ----------------------------------- main --------------------------------------
if __name__ == "__main__":
    key = jax.random.PRNGKey(0)
    kp, kx = jax.random.split(key)
    params = init_params(kp)
    prep = prep_params(params)

    xkeys = jax.random.split(kx, NUM_REPR)
    x_list = [jax.random.normal(xkeys[i], (B, T, IDIM), jnp.float32) for i in range(NUM_REPR)]
    x_all = jnp.stack(x_list)                                                # (R, B, T, IDIM)
    x_mask = jnp.ones((B, 1, T), dtype=bool)

    y, mask = forward_pallas(x_all, x_mask, prep)
    jax.block_until_ready(y)
    jax.block_until_ready(mask)

    y_ref, mask_ref = forward_reference(x_list, x_mask, params)
    # bf16 conv-matmul operands (per the perf review) add ~2^-9 relative rounding per contraction;
    # after two conv stages and the xscale=sqrt(32) output scaling the expected absolute error is
    # ~1e-2 on outputs of rms ~2.8, hence the slightly looser tolerance than the pure-f32 version.
    np.testing.assert_allclose(np.asarray(y), np.asarray(y_ref), rtol=2e-2, atol=5e-2)
    np.testing.assert_array_equal(np.asarray(mask), np.asarray(mask_ref))
    assert y.shape == (B, T2, ODIM) and mask.shape == (B, 1, T2)

    print("KERNEL_OK")
</pallas_src>

<mosaic_0001>
module attributes {stable_mosaic.version = 11 : i64} {
  func.func @_fused_kernel(%arg0: i32, %arg1: memref<304x512xbf16, #tpu.memory_space<vmem>>, %arg2: memref<512x1152xbf16, #tpu.memory_space<vmem>>, %arg3: memref<1x1152xf32, #tpu.memory_space<vmem>>, %arg4: memref<1152x128xbf16, #tpu.memory_space<vmem>>, %arg5: memref<1x128xf32, #tpu.memory_space<vmem>>, %arg6: memref<19x128x32xf32, #tpu.memory_space<vmem>>, %arg7: memref<16x32xf32, #tpu.memory_space<vmem>>, %arg8: memref<16x32xf32, #tpu.memory_space<vmem>>) attributes {dimension_semantics = [#tpu.dimension_semantics<arbitrary>], iteration_bounds = array<i64: 1>, scalar_prefetch = 0 : i64, scratch_operands = 0 : i64, tpu.core_type = #tpu.core_type<tc>, window_params = [{pipeline_mode = #tpu.pipeline_mode<synchronous>, transform_indices = @transform_0, window_bounds = array<i64: 304, 512>}, {pipeline_mode = #tpu.pipeline_mode<synchronous>, transform_indices = @transform_1, window_bounds = array<i64: 512, 1152>}, {pipeline_mode = #tpu.pipeline_mode<synchronous>, transform_indices = @transform_2, window_bounds = array<i64: 1, 1152>}, {pipeline_mode = #tpu.pipeline_mode<synchronous>, transform_indices = @transform_3, window_bounds = array<i64: 1152, 128>}, {pipeline_mode = #tpu.pipeline_mode<synchronous>, transform_indices = @transform_4, window_bounds = array<i64: 1, 128>}, {pipeline_mode = #tpu.pipeline_mode<synchronous>, transform_indices = @transform_5, window_bounds = array<i64: 19, 128, 32>}, {pipeline_mode = #tpu.pipeline_mode<synchronous>, transform_indices = @transform_6, window_bounds = array<i64: 16, 32>}, {pipeline_mode = #tpu.pipeline_mode<synchronous>, transform_indices = @transform_7, window_bounds = array<i64: 16, 32>}]} {
    %c0 = arith.constant 0 : index
    %c0_0 = arith.constant 0 : index
    %0 = vector.load %arg1[%c0, %c0_0] : memref<304x512xbf16, #tpu.memory_space<vmem>>, vector<304x512xbf16>
    %c0_1 = arith.constant 0 : index
    %c0_2 = arith.constant 0 : index
    %1 = vector.load %arg2[%c0_1, %c0_2] : memref<512x1152xbf16, #tpu.memory_space<vmem>>, vector<512x1152xbf16>
    %cst = arith.constant dense<0.000000e+00> : vector<304x1152xf32>
    %2 = tpu.matmul %0, %1, %cst {dimension_numbers = #tpu.dot_dimension_numbers<[1], [0], [0], [1], [0, 0, 1, 1], [], []>} : vector<304x512xbf16>, vector<512x1152xbf16>, vector<304x1152xf32> -> vector<304x1152xf32>
    %c0_3 = arith.constant 0 : index
    %c0_4 = arith.constant 0 : index
    %3 = vector.load %arg3[%c0_3, %c0_4] : memref<1x1152xf32, #tpu.memory_space<vmem>>, vector<1x1152xf32>
    %4 = vector.broadcast %3 : vector<1x1152xf32> to vector<304x1152xf32>
    %5 = arith.addf %2, %4 : vector<304x1152xf32>
    %cst_5 = arith.constant 0.000000e+00 : f32
    %6 = vector.broadcast %cst_5 : f32 to vector<304x1152xf32>
    %7 = arith.maximumf %5, %6 : vector<304x1152xf32>
    %8 = arith.truncf %7 : vector<304x1152xf32> to vector<304x1152xbf16>
    %c0_6 = arith.constant 0 : index
    %c0_7 = arith.constant 0 : index
    %9 = vector.load %arg4[%c0_6, %c0_7] : memref<1152x128xbf16, #tpu.memory_space<vmem>>, vector<1152x128xbf16>
    %cst_8 = arith.constant dense<0.000000e+00> : vector<304x128xf32>
    %10 = tpu.matmul %8, %9, %cst_8 {dimension_numbers = #tpu.dot_dimension_numbers<[1], [0], [0], [1], [0, 0, 1, 1], [], []>} : vector<304x1152xbf16>, vector<1152x128xbf16>, vector<304x128xf32> -> vector<304x128xf32>
    %c0_9 = arith.constant 0 : index
    %c0_10 = arith.constant 0 : index
    %11 = vector.load %arg5[%c0_9, %c0_10] : memref<1x128xf32, #tpu.memory_space<vmem>>, vector<1x128xf32>
    %12 = vector.broadcast %11 : vector<1x128xf32> to vector<304x128xf32>
    %13 = arith.addf %10, %12 : vector<304x128xf32>
    %cst_11 = arith.constant 0.000000e+00 : f32
    %14 = vector.broadcast %cst_11 : f32 to vector<304x128xf32>
    %15 = arith.maximumf %13, %14 : vector<304x128xf32>
    %c0_12 = arith.constant 0 : index
    %c0_13 = arith.constant 0 : index
    %16 = vector.load %arg7[%c0_12, %c0_13] : memref<16x32xf32, #tpu.memory_space<vmem>>, vector<16x32xf32>
    %17 = vector.extract_strided_slice %15 {offsets = [0, 0], sizes = [16, 128], strides = [1, 1]} : vector<304x128xf32> to vector<16x128xf32>
    %c0_14 = arith.constant 0 : index
    %c0_15 = arith.constant 0 : index
    %c0_16 = arith.constant 0 : index
    %18 = vector.load %arg6[%c0_14, %c0_15, %c0_16] : memref<19x128x32xf32, #tpu.memory_space<vmem>>, vector<1x128x32xf32>
    %19 = vector.shape_cast %18 : vector<1x128x32xf32> to vector<128x32xf32>
    %cst_17 = arith.constant dense<0.000000e+00> : vector<16x32xf32>
    %20 = tpu.matmul %17, %19, %cst_17 {dimension_numbers = #tpu.dot_dimension_numbers<[1], [0], [0], [1], [0, 0, 1, 1], [], []>} : vector<16x128xf32>, vector<128x32xf32>, vector<16x32xf32> -> vector<16x32xf32>
    %21 = arith.addf %16, %20 : vector<16x32xf32>
    %22 = vector.extract_strided_slice %15 {offsets = [16, 0], sizes = [16, 128], strides = [1, 1]} : vector<304x128xf32> to vector<16x128xf32>
    %c1 = arith.constant 1 : index
    %c0_18 = arith.constant 0 : index
    %c0_19 = arith.constant 0 : index
    %23 = vector.load %arg6[%c1, %c0_18, %c0_19] : memref<19x128x32xf32, #tpu.memory_space<vmem>>, vector<1x128x32xf32>
    %24 = vector.shape_cast %23 : vector<1x128x32xf32> to vector<128x32xf32>
    %cst_20 = arith.constant dense<0.000000e+00> : vector<16x32xf32>
    %25 = tpu.matmul %22, %24, %cst_20 {dimension_numbers = #tpu.dot_dimension_numbers<[1], [0], [0], [1], [0, 0, 1, 1], [], []>} : vector<16x128xf32>, vector<128x32xf32>, vector<16x32xf32> -> vector<16x32xf32>
    %26 = arith.addf %21, %25 : vector<16x32xf32>
    %27 = vector.extract_strided_slice %15 {offsets = [32, 0], sizes = [16, 128], strides = [1, 1]} : vector<304x128xf32> to vector<16x128xf32>
    %c2 = arith.constant 2 : index
    %c0_21 = arith.constant 0 : index
    %c0_22 = arith.constant 0 : index
    %28 = vector.load %arg6[%c2, %c0_21, %c0_22] : memref<19x128x32xf32, #tpu.memory_space<vmem>>, vector<1x128x32xf32>
    %29 = vector.shape_cast %28 : vector<1x128x32xf32> to vector<128x32xf32>
    %cst_23 = arith.constant dense<0.000000e+00> : vector<16x32xf32>
    %30 = tpu.matmul %27, %29, %cst_23 {dimension_numbers = #tpu.dot_dimension_numbers<[1], [0], [0], [1], [0, 0, 1, 1], [], []>} : vector<16x128xf32>, vector<128x32xf32>, vector<16x32xf32> -> vector<16x32xf32>
    %31 = arith.addf %26, %30 : vector<16x32xf32>
    %32 = vector.extract_strided_slice %15 {offsets = [48, 0], sizes = [16, 128], strides = [1, 1]} : vector<304x128xf32> to vector<16x128xf32>
    %c3 = arith.constant 3 : index
    %c0_24 = arith.constant 0 : index
    %c0_25 = arith.constant 0 : index
    %33 = vector.load %arg6[%c3, %c0_24, %c0_25] : memref<19x128x32xf32, #tpu.memory_space<vmem>>, vector<1x128x32xf32>
    %34 = vector.shape_cast %33 : vector<1x128x32xf32> to vector<128x32xf32>
    %cst_26 = arith.constant dense<0.000000e+00> : vector<16x32xf32>
    %35 = tpu.matmul %32, %34, %cst_26 {dimension_numbers = #tpu.dot_dimension_numbers<[1], [0], [0], [1], [0, 0, 1, 1], [], []>} : vector<16x128xf32>, vector<128x32xf32>, vector<16x32xf32> -> vector<16x32xf32>
    %36 = arith.addf %31, %35 : vector<16x32xf32>
    %37 = vector.extract_strided_slice %15 {offsets = [64, 0], sizes = [16, 128], strides = [1, 1]} : vector<304x128xf32> to vector<16x128xf32>
    %c4 = arith.constant 4 : index
    %c0_27 = arith.constant 0 : index
    %c0_28 = arith.constant 0 : index
    %38 = vector.load %arg6[%c4, %c0_27, %c0_28] : memref<19x128x32xf32, #tpu.memory_space<vmem>>, vector<1x128x32xf32>
    %39 = vector.shape_cast %38 : vector<1x128x32xf32> to vector<128x32xf32>
    %cst_29 = arith.constant dense<0.000000e+00> : vector<16x32xf32>
    %40 = tpu.matmul %37, %39, %cst_29 {dimension_numbers = #tpu.dot_dimension_numbers<[1], [0], [0], [1], [0, 0, 1, 1], [], []>} : vector<16x128xf32>, vector<128x32xf32>, vector<16x32xf32> -> vector<16x32xf32>
    %41 = arith.addf %36, %40 : vector<16x32xf32>
    %42 = vector.extract_strided_slice %15 {offsets = [80, 0], sizes = [16, 128], strides = [1, 1]} : vector<304x128xf32> to vector<16x128xf32>
    %c5 = arith.constant 5 : index
    %c0_30 = arith.constant 0 : index
    %c0_31 = arith.constant 0 : index
    %43 = vector.load %arg6[%c5, %c0_30, %c0_31] : memref<19x128x32xf32, #tpu.memory_space<vmem>>, vector<1x128x32xf32>
    %44 = vector.shape_cast %43 : vector<1x128x32xf32> to vector<128x32xf32>
    %cst_32 = arith.constant dense<0.000000e+00> : vector<16x32xf32>
    %45 = tpu.matmul %42, %44, %cst_32 {dimension_numbers = #tpu.dot_dimension_numbers<[1], [0], [0], [1], [0, 0, 1, 1], [], []>} : vector<16x128xf32>, vector<128x32xf32>, vector<16x32xf32> -> vector<16x32xf32>
    %46 = arith.addf %41, %45 : vector<16x32xf32>
    %47 = vector.extract_strided_slice %15 {offsets = [96, 0], sizes = [16, 128], strides = [1, 1]} : vector<304x128xf32> to vector<16x128xf32>
    %c6 = arith.constant 6 : index
    %c0_33 = arith.constant 0 : index
    %c0_34 = arith.constant 0 : index
    %48 = vector.load %arg6[%c6, %c0_33, %c0_34] : memref<19x128x32xf32, #tpu.memory_space<vmem>>, vector<1x128x32xf32>
    %49 = vector.shape_cast %48 : vector<1x128x32xf32> to vector<128x32xf32>
    %cst_35 = arith.constant dense<0.000000e+00> : vector<16x32xf32>
    %50 = tpu.matmul %47, %49, %cst_35 {dimension_numbers = #tpu.dot_dimension_numbers<[1], [0], [0], [1], [0, 0, 1, 1], [], []>} : vector<16x128xf32>, vector<128x32xf32>, vector<16x32xf32> -> vector<16x32xf32>
    %51 = arith.addf %46, %50 : vector<16x32xf32>
    %52 = vector.extract_strided_slice %15 {offsets = [112, 0], sizes = [16, 128], strides = [1, 1]} : vector<304x128xf32> to vector<16x128xf32>
    %c7 = arith.constant 7 : index
    %c0_36 = arith.constant 0 : index
    %c0_37 = arith.constant 0 : index
    %53 = vector.load %arg6[%c7, %c0_36, %c0_37] : memref<19x128x32xf32, #tpu.memory_space<vmem>>, vector<1x128x32xf32>
    %54 = vector.shape_cast %53 : vector<1x128x32xf32> to vector<128x32xf32>
    %cst_38 = arith.constant dense<0.000000e+00> : vector<16x32xf32>
    %55 = tpu.matmul %52, %54, %cst_38 {dimension_numbers = #tpu.dot_dimension_numbers<[1], [0], [0], [1], [0, 0, 1, 1], [], []>} : vector<16x128xf32>, vector<128x32xf32>, vector<16x32xf32> -> vector<16x32xf32>
    %56 = arith.addf %51, %55 : vector<16x32xf32>
    %57 = vector.extract_strided_slice %15 {offsets = [128, 0], sizes = [16, 128], strides = [1, 1]} : vector<304x128xf32> to vector<16x128xf32>
    %c8 = arith.constant 8 : index
    %c0_39 = arith.constant 0 : index
    %c0_40 = arith.constant 0 : index
    %58 = vector.load %arg6[%c8, %c0_39, %c0_40] : memref<19x128x32xf32, #tpu.memory_space<vmem>>, vector<1x128x32xf32>
    %59 = vector.shape_cast %58 : vector<1x128x32xf32> to vector<128x32xf32>
    %cst_41 = arith.constant dense<0.000000e+00> : vector<16x32xf32>
    %60 = tpu.matmul %57, %59, %cst_41 {dimension_numbers = #tpu.dot_dimension_numbers<[1], [0], [0], [1], [0, 0, 1, 1], [], []>} : vector<16x128xf32>, vector<128x32xf32>, vector<16x32xf32> -> vector<16x32xf32>
    %61 = arith.addf %56, %60 : vector<16x32xf32>
    %62 = vector.extract_strided_slice %15 {offsets = [144, 0], sizes = [16, 128], strides = [1, 1]} : vector<304x128xf32> to vector<16x128xf32>
    %c9 = arith.constant 9 : index
    %c0_42 = arith.constant 0 : index
    %c0_43 = arith.constant 0 : index
    %63 = vector.load %arg6[%c9, %c0_42, %c0_43] : memref<19x128x32xf32, #tpu.memory_space<vmem>>, vector<1x128x32xf32>
    %64 = vector.shape_cast %63 : vector<1x128x32xf32> to vector<128x32xf32>
    %cst_44 = arith.constant dense<0.000000e+00> : vector<16x32xf32>
    %65 = tpu.matmul %62, %64, %cst_44 {dimension_numbers = #tpu.dot_dimension_numbers<[1], [0], [0], [1], [0, 0, 1, 1], [], []>} : vector<16x128xf32>, vector<128x32xf32>, vector<16x32xf32> -> vector<16x32xf32>
    %66 = arith.addf %61, %65 : vector<16x32xf32>
    %67 = vector.extract_strided_slice %15 {offsets = [160, 0], sizes = [16, 128], strides = [1, 1]} : vector<304x128xf32> to vector<16x128xf32>
    %c10 = arith.constant 10 : index
    %c0_45 = arith.constant 0 : index
    %c0_46 = arith.constant 0 : index
    %68 = vector.load %arg6[%c10, %c0_45, %c0_46] : memref<19x128x32xf32, #tpu.memory_space<vmem>>, vector<1x128x32xf32>
    %69 = vector.shape_cast %68 : vector<1x128x32xf32> to vector<128x32xf32>
    %cst_47 = arith.constant dense<0.000000e+00> : vector<16x32xf32>
    %70 = tpu.matmul %67, %69, %cst_47 {dimension_numbers = #tpu.dot_dimension_numbers<[1], [0], [0], [1], [0, 0, 1, 1], [], []>} : vector<16x128xf32>, vector<128x32xf32>, vector<16x32xf32> -> vector<16x32xf32>
    %71 = arith.addf %66, %70 : vector<16x32xf32>
    %72 = vector.extract_strided_slice %15 {offsets = [176, 0], sizes = [16, 128], strides = [1, 1]} : vector<304x128xf32> to vector<16x128xf32>
    %c11 = arith.constant 11 : index
    %c0_48 = arith.constant 0 : index
    %c0_49 = arith.constant 0 : index
    %73 = vector.load %arg6[%c11, %c0_48, %c0_49] : memref<19x128x32xf32, #tpu.memory_space<vmem>>, vector<1x128x32xf32>
    %74 = vector.shape_cast %73 : vector<1x128x32xf32> to vector<128x32xf32>
    %cst_50 = arith.constant dense<0.000000e+00> : vector<16x32xf32>
    %75 = tpu.matmul %72, %74, %cst_50 {dimension_numbers = #tpu.dot_dimension_numbers<[1], [0], [0], [1], [0, 0, 1, 1], [], []>} : vector<16x128xf32>, vector<128x32xf32>, vector<16x32xf32> -> vector<16x32xf32>
    %76 = arith.addf %71, %75 : vector<16x32xf32>
    %77 = vector.extract_strided_slice %15 {offsets = [192, 0], sizes = [16, 128], strides = [1, 1]} : vector<304x128xf32> to vector<16x128xf32>
    %c12 = arith.constant 12 : index
    %c0_51 = arith.constant 0 : index
    %c0_52 = arith.constant 0 : index
    %78 = vector.load %arg6[%c12, %c0_51, %c0_52] : memref<19x128x32xf32, #tpu.memory_space<vmem>>, vector<1x128x32xf32>
    %79 = vector.shape_cast %78 : vector<1x128x32xf32> to vector<128x32xf32>
    %cst_53 = arith.constant dense<0.000000e+00> : vector<16x32xf32>
    %80 = tpu.matmul %77, %79, %cst_53 {dimension_numbers = #tpu.dot_dimension_numbers<[1], [0], [0], [1], [0, 0, 1, 1], [], []>} : vector<16x128xf32>, vector<128x32xf32>, vector<16x32xf32> -> vector<16x32xf32>
    %81 = arith.addf %76, %80 : vector<16x32xf32>
    %82 = vector.extract_strided_slice %15 {offsets = [208, 0], sizes = [16, 128], strides = [1, 1]} : vector<304x128xf32> to vector<16x128xf32>
    %c13 = arith.constant 13 : index
    %c0_54 = arith.constant 0 : index
    %c0_55 = arith.constant 0 : index
    %83 = vector.load %arg6[%c13, %c0_54, %c0_55] : memref<19x128x32xf32, #tpu.memory_space<vmem>>, vector<1x128x32xf32>
    %84 = vector.shape_cast %83 : vector<1x128x32xf32> to vector<128x32xf32>
    %cst_56 = arith.constant dense<0.000000e+00> : vector<16x32xf32>
    %85 = tpu.matmul %82, %84, %cst_56 {dimension_numbers = #tpu.dot_dimension_numbers<[1], [0], [0], [1], [0, 0, 1, 1], [], []>} : vector<16x128xf32>, vector<128x32xf32>, vector<16x32xf32> -> vector<16x32xf32>
    %86 = arith.addf %81, %85 : vector<16x32xf32>
    %87 = vector.extract_strided_slice %15 {offsets = [224, 0], sizes = [16, 128], strides = [1, 1]} : vector<304x128xf32> to vector<16x128xf32>
    %c14 = arith.constant 14 : index
    %c0_57 = arith.constant 0 : index
    %c0_58 = arith.constant 0 : index
    %88 = vector.load %arg6[%c14, %c0_57, %c0_58] : memref<19x128x32xf32, #tpu.memory_space<vmem>>, vector<1x128x32xf32>
    %89 = vector.shape_cast %88 : vector<1x128x32xf32> to vector<128x32xf32>
    %cst_59 = arith.constant dense<0.000000e+00> : vector<16x32xf32>
    %90 = tpu.matmul %87, %89, %cst_59 {dimension_numbers = #tpu.dot_dimension_numbers<[1], [0], [0], [1], [0, 0, 1, 1], [], []>} : vector<16x128xf32>, vector<128x32xf32>, vector<16x32xf32> -> vector<16x32xf32>
    %91 = arith.addf %86, %90 : vector<16x32xf32>
    %92 = vector.extract_strided_slice %15 {offsets = [240, 0], sizes = [16, 128], strides = [1, 1]} : vector<304x128xf32> to vector<16x128xf32>
    %c15 = arith.constant 15 : index
    %c0_60 = arith.constant 0 : index
    %c0_61 = arith.constant 0 : index
    %93 = vector.load %arg6[%c15, %c0_60, %c0_61] : memref<19x128x32xf32, #tpu.memory_space<vmem>>, vector<1x128x32xf32>
    %94 = vector.shape_cast %93 : vector<1x128x32xf32> to vector<128x32xf32>
    %cst_62 = arith.constant dense<0.000000e+00> : vector<16x32xf32>
    %95 = tpu.matmul %92, %94, %cst_62 {dimension_numbers = #tpu.dot_dimension_numbers<[1], [0], [0], [1], [0, 0, 1, 1], [], []>} : vector<16x128xf32>, vector<128x32xf32>, vector<16x32xf32> -> vector<16x32xf32>
    %96 = arith.addf %91, %95 : vector<16x32xf32>
    %97 = vector.extract_strided_slice %15 {offsets = [256, 0], sizes = [16, 128], strides = [1, 1]} : vector<304x128xf32> to vector<16x128xf32>
    %c16 = arith.constant 16 : index
    %c0_63 = arith.constant 0 : index
    %c0_64 = arith.constant 0 : index
    %98 = vector.load %arg6[%c16, %c0_63, %c0_64] : memref<19x128x32xf32, #tpu.memory_space<vmem>>, vector<1x128x32xf32>
    %99 = vector.shape_cast %98 : vector<1x128x32xf32> to vector<128x32xf32>
    %cst_65 = arith.constant dense<0.000000e+00> : vector<16x32xf32>
    %100 = tpu.matmul %97, %99, %cst_65 {dimension_numbers = #tpu.dot_dimension_numbers<[1], [0], [0], [1], [0, 0, 1, 1], [], []>} : vector<16x128xf32>, vector<128x32xf32>, vector<16x32xf32> -> vector<16x32xf32>
    %101 = arith.addf %96, %100 : vector<16x32xf32>
    %102 = vector.extract_strided_slice %15 {offsets = [272, 0], sizes = [16, 128], strides = [1, 1]} : vector<304x128xf32> to vector<16x128xf32>
    %c17 = arith.constant 17 : index
    %c0_66 = arith.constant 0 : index
    %c0_67 = arith.constant 0 : index
    %103 = vector.load %arg6[%c17, %c0_66, %c0_67] : memref<19x128x32xf32, #tpu.memory_space<vmem>>, vector<1x128x32xf32>
    %104 = vector.shape_cast %103 : vector<1x128x32xf32> to vector<128x32xf32>
    %cst_68 = arith.constant dense<0.000000e+00> : vector<16x32xf32>
    %105 = tpu.matmul %102, %104, %cst_68 {dimension_numbers = #tpu.dot_dimension_numbers<[1], [0], [0], [1], [0, 0, 1, 1], [], []>} : vector<16x128xf32>, vector<128x32xf32>, vector<16x32xf32> -> vector<16x32xf32>
    %106 = arith.addf %101, %105 : vector<16x32xf32>
    %107 = vector.extract_strided_slice %15 {offsets = [288, 0], sizes = [16, 128], strides = [1, 1]} : vector<304x128xf32> to vector<16x128xf32>
    %c18 = arith.constant 18 : index
    %c0_69 = arith.constant 0 : index
    %c0_70 = arith.constant 0 : index
    %108 = vector.load %arg6[%c18, %c0_69, %c0_70] : memref<19x128x32xf32, #tpu.memory_space<vmem>>, vector<1x128x32xf32>
    %109 = vector.shape_cast %108 : vector<1x128x32xf32> to vector<128x32xf32>
    %cst_71 = arith.constant dense<0.000000e+00> : vector<16x32xf32>
    %110 = tpu.matmul %107, %109, %cst_71 {dimension_numbers = #tpu.dot_dimension_numbers<[1], [0], [0], [1], [0, 0, 1, 1], [], []>} : vector<16x128xf32>, vector<128x32xf32>, vector<16x32xf32> -> vector<16x32xf32>
    %111 = arith.addf %106, %110 : vector<16x32xf32>
    %c0_72 = arith.constant 0 : index
    %c0_73 = arith.constant 0 : index
    %112 = vector.load %arg8[%c0_72, %c0_73] : memref<16x32xf32, #tpu.memory_space<vmem>>, vector<16x32xf32>
    tpu.vector_store %arg8[%c0_72, %c0_73], %111 {strides = array<i32>} : memref<16x32xf32, #tpu.memory_space<vmem>>, vector<16x32xf32>,
    return
  }
  func.func @transform_0(%arg0: i32) -> (i32, i32) {
    %c0_i32 = arith.constant 0 : i32
    %c0_i32_0 = arith.constant 0 : i32
    %c0_i32_1 = arith.constant 0 : i32
    return %c0_i32, %c0_i32_0 : i32, i32
  }
  func.func @transform_1(%arg0: i32) -> (i32, i32) {
    %c0_i32 = arith.constant 0 : i32
    %c0_i32_0 = arith.constant 0 : i32
    %c0_i32_1 = arith.constant 0 : i32
    return %c0_i32, %c0_i32_0 : i32, i32
  }
  func.func @transform_2(%arg0: i32) -> (i32, i32) {
    %c0_i32 = arith.constant 0 : i32
    %c0_i32_0 = arith.constant 0 : i32
    %c0_i32_1 = arith.constant 0 : i32
    return %c0_i32, %c0_i32_0 : i32, i32
  }
  func.func @transform_3(%arg0: i32) -> (i32, i32) {
    %c0_i32 = arith.constant 0 : i32
    %c0_i32_0 = arith.constant 0 : i32
    %c0_i32_1 = arith.constant 0 : i32
    return %c0_i32, %c0_i32_0 : i32, i32
  }
  func.func @transform_4(%arg0: i32) -> (i32, i32) {
    %c0_i32 = arith.constant 0 : i32
    %c0_i32_0 = arith.constant 0 : i32
    %c0_i32_1 = arith.constant 0 : i32
    return %c0_i32, %c0_i32_0 : i32, i32
  }
  func.func @transform_5(%arg0: i32) -> (i32, i32, i32) {
    %c0_i32 = arith.constant 0 : i32
    %c0_i32_0 = arith.constant 0 : i32
    %c0_i32_1 = arith.constant 0 : i32
    %c0_i32_2 = arith.constant 0 : i32
    return %c0_i32, %c0_i32_0, %c0_i32_1 : i32, i32, i32
  }
  func.func @transform_6(%arg0: i32) -> (i32, i32) {
    %c0_i32 = arith.constant 0 : i32
    %c0_i32_0 = arith.constant 0 : i32
    %c0_i32_1 = arith.constant 0 : i32
    return %c0_i32, %c0_i32_0 : i32, i32
  }
  func.func @transform_7(%arg0: i32) -> (i32, i32) {
    %c0_i32 = arith.constant 0 : i32
    %c0_i32_0 = arith.constant 0 : i32
    %c0_i32_1 = arith.constant 0 : i32
    return %c0_i32, %c0_i32_0 : i32, i32
  }
}

</mosaic_0001>

<bundles_post_ra>
// kernel: forward_pallas.1
= control target key start
LH: loop header
LB: loop body
LE: loop exit
PB: predicated region body
PF: predicated region fallthrough
CT: control target
= control target key end

     0   :  { %vm8906_vm0 = vcmask 261120   ;;  %s18544_s1 = inlined_call_operand.vmem [shape: bf16[512,1152], index: 1, kind: input, shape index: {}]   ;;  %s18545_s2 = inlined_call_operand.vmem [shape: f32[1,1152], index: 2, kind: input, shape index: {}]   ;;  %s18546_s0 = inlined_call_operand.vmem [shape: bf16[304,512], index: 0, kind: input, shape index: {}]   ;;  %s18547_s3 = inlined_call_operand.vmem [shape: bf16[1152,128], index: 3, kind: input, shape index: {}]   ;;  %s18548_s4 = inlined_call_operand.vmem [shape: f32[1,128], index: 4, kind: input, shape index: {}]   ;;  %s18549_s5 = inlined_call_operand.vmem [shape: f32[19,128,32], index: 5, kind: input, shape index: {}]   ;;  %s18550_s6 = inlined_call_operand.vmem [shape: f32[16,32], index: 6, kind: input, shape index: {}]   ;;  %s18551_s7 = inlined_call_operand.vmem [shape: f32[16,32], index: 7, kind: output, shape index: {}]  }
   0x1   :  { %v9471_v0 = vld [vmem:[%s18544_s1 + $0x1f8] sm:$0xf]  ;;  %v11088_v1 = vld [vmem:[%s18544_s1 + $0x218] sm:$0xf0]  ;;  %v9435_v5 = vld [vmem:[%s18544_s1 + $0x1b0] sm:$0xf] }
   0x2   :  { %v9759_v2 = vld [vmem:[%s18544_s1 + $0x438] sm:$0xf]  ;;  %v9472_v3 = vor.u32 %v11088_v1, %v9471_v0  ;;  %v11160_v4 = vld [vmem:[%s18544_s1 + $0x458] sm:$0xf0]  ;;  %v11079_v6 = vld [vmem:[%s18544_s1 + $0x1d0] sm:$0xf0] }
   0x3   :  { %v9760_v7 = vor.u32 %v11160_v4, %v9759_v2  ;;  %v9723_v8 = vld [vmem:[%s18544_s1 + $0x3f0] sm:$0xf]  ;;  %v11151_v9 = vld [vmem:[%s18544_s1 + $0x410] sm:$0xf0]  ;;  %v9436_v10 = vor.u32 %v11079_v6, %v9435_v5  ;;  %v9399_v12 = vld [vmem:[%s18544_s1 + $0x168] sm:$0xf] }
   0x4   :  { %2296 = vmatpush.bf16.msra.mxu0 %v9472_v3  ;;  %11381 = vmatpush.bf16.msra.mxu2 %v9472_v3  ;;  %v9724_v11 = vor.u32 %v11151_v9, %v9723_v8  ;;  %v11070_v13 = vld [vmem:[%s18544_s1 + $0x188] sm:$0xf0]  ;;  %v9687_v14 = vld [vmem:[%s18544_s1 + $0x3a8] sm:$0xf]  ;;  %v9363_v18 = vld [vmem:[%s18544_s1 + $0x120] sm:$0xf] }
   0x5   :  { %11382 = vmatpush.bf16.msra.mxu3 %v9472_v3  ;;  %2400 = vmatpush.bf16.msra.mxu1 %v9760_v7  ;;  %v11142_v15 = vld [vmem:[%s18544_s1 + $0x3c8] sm:$0xf0]  ;;  %v9400_v16 = vor.u32 %v11070_v13, %v9399_v12  ;;  %v11061_v19 = vld [vmem:[%s18544_s1 + $0x140] sm:$0xf0]  ;;  %v9651_v20 = vld [vmem:[%s18544_s1 + $0x360] sm:$0xf] }
   0x6   :  { %v9688_v17 = vor.u32 %v11142_v15, %v9687_v14  ;;  %v11133_v21 = vld [vmem:[%s18544_s1 + $0x380] sm:$0xf0]  ;;  %v9364_v22 = vor.u32 %v11061_v19, %v9363_v18  ;;  %v9327_v24 = vld [vmem:[%s18544_s1 + $0xd8] sm:$0xf]  ;;  %v11052_v25 = vld [vmem:[%s18544_s1 + $0xf8] sm:$0xf0] }
   0x7   :  { %v9652_v23 = vor.u32 %v11133_v21, %v9651_v20  ;;  %v9615_v26 = vld [vmem:[%s18544_s1 + $0x318] sm:$0xf]  ;;  %v11124_v27 = vld [vmem:[%s18544_s1 + $0x338] sm:$0xf0]  ;;  %v9328_v28 = vor.u32 %v11052_v25, %v9327_v24  ;;  %v9291_v30 = vld [vmem:[%s18544_s1 + $0x90] sm:$0xf] }
   0x8   :  { %2297 = vmatpush.bf16.msra.mxu0 %v9436_v10  ;;  %11383 = vmatpush.bf16.msra.mxu2 %v9436_v10  ;;  %v9616_v29 = vor.u32 %v11124_v27, %v9615_v26  ;;  %v11043_v31 = vld [vmem:[%s18544_s1 + $0xb0] sm:$0xf0]  ;;  %v9579_v32 = vld [vmem:[%s18544_s1 + $0x2d0] sm:$0xf]  ;;  %v9255_v36 = vld [vmem:[%s18544_s1 + $0x48] sm:$0xf] }
   0x9   :  { %11384 = vmatpush.bf16.msra.mxu3 %v9436_v10  ;;  %2401 = vmatpush.bf16.msra.mxu1 %v9724_v11  ;;  %v11115_v33 = vld [vmem:[%s18544_s1 + $0x2f0] sm:$0xf0]  ;;  %v9292_v34 = vor.u32 %v11043_v31, %v9291_v30  ;;  %v11034_v37 = vld [vmem:[%s18544_s1 + $0x68] sm:$0xf0]  ;;  %v9543_v38 = vld [vmem:[%s18544_s1 + $0x288] sm:$0xf] }
   0xa   :  { %v9580_v35 = vor.u32 %v11115_v33, %v9579_v32  ;;  %v11106_v39 = vld [vmem:[%s18544_s1 + $0x2a8] sm:$0xf0]  ;;  %v9256_v40 = vor.u32 %v11034_v37, %v9255_v36  ;;  %v9219_v41 = vld [vmem:[%s18544_s1] sm:$0xf]  ;;  %v11025_v43 = vld [vmem:[%s18544_s1 + $0x20] sm:$0xf0] }
   0xb   :  { %v9544_v42 = vor.u32 %v11106_v39, %v9543_v38  ;;  %v9507_v44 = vld [vmem:[%s18544_s1 + $0x240] sm:$0xf]  ;;  %v11097_v45 = vld [vmem:[%s18544_s1 + $0x260] sm:$0xf0]  ;;  %v10947_v47 = vld [vmem:[%s18546_s0 + $0xc] sm:$0xf0]  ;;  %v9220_v52 = vor.u32 %v11025_v43, %v9219_v41 }
   0xc   :  { %2298 = vmatpush.bf16.msra.mxu0 %v9400_v16  ;;  %11385 = vmatpush.bf16.msra.mxu2 %v9400_v16  ;;  %v8915_v46 = vld [vmem:[%s18546_s0] sm:$0xf]  ;;  %v11084_v48 = vld [vmem:[%s18544_s1 + $0x1fc] sm:$0xf]  ;;  %v10047_v50 = vld [vmem:[%s18544_s1 + $0x678] sm:$0xf]  ;;  %v9508_v56 = vor.u32 %v11097_v45, %v9507_v44 }
   0xd   :  { %11386 = vmatpush.bf16.msra.mxu3 %v9400_v16  ;;  %2402 = vmatpush.bf16.msra.mxu1 %v9688_v17  ;;  %v9473_v49 = vld [vmem:[%s18544_s1 + $0x21c] sm:$0xf0]  ;;  %v11232_v51 = vld [vmem:[%s18544_s1 + $0x698] sm:$0xf0]  ;;  %v11003_v54 = vld [vmem:[%s18546_s0 + $0x1cc] sm:$0xf0]  ;;  %v11587_v1 = vor.u32 %v10947_v47, %v8915_v46 }
   0xe   :  { %v9139_v53 = vld [vmem:[%s18546_s0 + $0x1c0] sm:$0xf]  ;;  %v11011_v57 = vld [vmem:[%s18546_s0 + $0x20c] sm:$0xf0]  ;;  %v10945_v58 = vld [vmem:[%s18546_s0 + $0x4] sm:$0xf]  ;;  %v9476_v60 = vor.u32 %v11084_v48, %v9473_v49  ;;  %v10048_v61 = vor.u32 %v11232_v51, %v10047_v50 }
   0xf   :  { %v9171_v55 = vld [vmem:[%s18546_s0 + $0x200] sm:$0xf]  ;;  %v8917_v59 = vld [vmem:[%s18546_s0 + $0x10] sm:$0xf0]  ;;  %v10011_v62 = vld [vmem:[%s18544_s1 + $0x630] sm:$0xf]  ;;  %v11589_v2 = vor.u32 %v11003_v54, %v9139_v53 }
  0x10   :  { %2299 = vmatpush.bf16.msra.mxu0 %v9364_v22  ;;  %11387 = vmatpush.bf16.msra.mxu2 %v9364_v22  ;;  %v10335_v63 = vld [vmem:[%s18544_s1 + $0x8b8] sm:$0xf]  ;;  %v11304_v0 = vld [vmem:[%s18544_s1 + $0x8d8] sm:$0xf0]  ;;  %18671 = vst [vmem:[#allocation2_spill] sm:$0xff] %v11587_v1  ;;  %v11600_v6 = vor.u32 %v11011_v57, %v9171_v55  ;;  %v11602_v7 = vor.u32 %v10945_v58, %v8917_v59 }
  0x11   :  { %11388 = vmatpush.bf16.msra.mxu3 %v9364_v22  ;;  %2403 = vmatpush.bf16.msra.mxu1 %v9652_v23  ;;  %18672 = vst [vmem:[#allocation3_spill] sm:$0xff] %v11589_v2  ;;  %v11223_v3 = vld [vmem:[%s18544_s1 + $0x650] sm:$0xf0]  ;;  %v9437_v5 = vld [vmem:[%s18544_s1 + $0x1d4] sm:$0xf0]  ;;  %v10336_v8 = vor.u32 %v11304_v0, %v10335_v63 }
  0x12   :  { %v11075_v4 = vld [vmem:[%s18544_s1 + $0x1b4] sm:$0xf]  ;;  %18673 = vst [vmem:[#allocation4_spill] sm:$0xff] %v11600_v6  ;;  %v10012_v9 = vor.u32 %v11223_v3, %v10011_v62  ;;  %v10299_v10 = vld [vmem:[%s18544_s1 + $0x870] sm:$0xf] }
  0x13   :  { %18674 = vst [vmem:[#allocation5_spill] sm:$0xff] %v11602_v7  ;;  %v11295_v11 = vld [vmem:[%s18544_s1 + $0x890] sm:$0xf0]  ;;  %v9440_v12 = vor.u32 %v11075_v4, %v9437_v5  ;;  %v9975_v13 = vld [vmem:[%s18544_s1 + $0x5e8] sm:$0xf] }
  0x14   :  { %2300 = vmatpush.bf16.msra.mxu0 %v9328_v28  ;;  %11389 = vmatpush.bf16.msra.mxu2 %v9328_v28  ;;  %v11214_v14 = vld [vmem:[%s18544_s1 + $0x608] sm:$0xf0]  ;;  %v10300_v15 = vor.u32 %v11295_v11, %v10299_v10  ;;  %v10263_v17 = vld [vmem:[%s18544_s1 + $0x828] sm:$0xf]  ;;  %v9939_v19 = vld [vmem:[%s18544_s1 + $0x5a0] sm:$0xf] }
  0x15   :  { %11390 = vmatpush.bf16.msra.mxu3 %v9328_v28  ;;  %2404 = vmatpush.bf16.msra.mxu1 %v9616_v29  ;;  %v9976_v16 = vor.u32 %v11214_v14, %v9975_v13  ;;  %v11286_v18 = vld [vmem:[%s18544_s1 + $0x848] sm:$0xf0]  ;;  %v11205_v20 = vld [vmem:[%s18544_s1 + $0x5c0] sm:$0xf0]  ;;  %v8931_v23 = vld [vmem:[%s18546_s0 + $0x20] sm:$0xf] }
  0x16   :  { %v10264_v21 = vor.u32 %v11286_v18, %v10263_v17  ;;  %v9940_v22 = vor.u32 %v11205_v20, %v9939_v19  ;;  %v10227_v24 = vld [vmem:[%s18544_s1 + $0x7e0] sm:$0xf]  ;;  %v11277_v25 = vld [vmem:[%s18544_s1 + $0x800] sm:$0xf0]  ;;  %v10951_v26 = vld [vmem:[%s18546_s0 + $0x2c] sm:$0xf0] }
  0x17   :  { %v9903_v27 = vld [vmem:[%s18544_s1 + $0x558] sm:$0xf]  ;;  %v11196_v28 = vld [vmem:[%s18544_s1 + $0x578] sm:$0xf0]  ;;  %v9155_v29 = vld [vmem:[%s18546_s0 + $0x1e0] sm:$0xf]  ;;  %v11674_v39 = vor.u32 %v10951_v26, %v8931_v23 }
  0x18   :  { %2301 = vmatpush.bf16.msra.mxu0 %v9292_v34  ;;  %11391 = vmatpush.bf16.msra.mxu2 %v9292_v34  ;;  %v11007_v30 = vld [vmem:[%s18546_s0 + $0x1ec] sm:$0xf0]  ;;  %v9187_v31 = vld [vmem:[%s18546_s0 + $0x220] sm:$0xf]  ;;  %v10949_v33 = vld [vmem:[%s18546_s0 + $0x24] sm:$0xf]  ;;  %v9904_v36 = vor.u32 %v11196_v28, %v9903_v27 }
  0x19   :  { %11392 = vmatpush.bf16.msra.mxu3 %v9292_v34  ;;  %2405 = vmatpush.bf16.msra.mxu1 %v9580_v35  ;;  %v11015_v32 = vld [vmem:[%s18546_s0 + $0x22c] sm:$0xf0]  ;;  %v8933_v34 = vld [vmem:[%s18546_s0 + $0x30] sm:$0xf0]  ;;  %v10228_v35 = vor.u32 %v11277_v25, %v10227_v24  ;;  %v10191_v37 = vld [vmem:[%s18544_s1 + $0x798] sm:$0xf] }
  0x1a   :  { %v11268_v38 = vld [vmem:[%s18544_s1 + $0x7b8] sm:$0xf0]  ;;  %18675 = vst [vmem:[#allocation6_spill] sm:$0xff] %v11674_v39  ;;  %v9867_v41 = vld [vmem:[%s18544_s1 + $0x510] sm:$0xf]  ;;  %v11684_v43 = vor.u32 %v11015_v32, %v9187_v31  ;;  %v11686_v44 = vor.u32 %v10949_v33, %v8933_v34 }
  0x1b   :  { %v10192_v45 = vor.u32 %v11268_v38, %v10191_v37  ;;  %v10155_v47 = vld [vmem:[%s18544_s1 + $0x750] sm:$0xf]  ;;  %v11259_v48 = vld [vmem:[%s18544_s1 + $0x770] sm:$0xf0]  ;;  %v9831_v49 = vld [vmem:[%s18544_s1 + $0x4c8] sm:$0xf] }
  0x1c   :  { %2302 = vmatpush.bf16.msra.mxu0 %v9256_v40  ;;  %11393 = vmatpush.bf16.msra.mxu2 %v9256_v40  ;;  %18677 = vst [vmem:[#allocation8_spill] sm:$0xff] %v11684_v43  ;;  %v11178_v50 = vld [vmem:[%s18544_s1 + $0x4e8] sm:$0xf0]  ;;  %v10156_v53 = vor.u32 %v11259_v48, %v10155_v47  ;;  %v9795_v58 = vld [vmem:[%s18544_s1 + $0x480] sm:$0xf] }
  0x1d   :  { %11394 = vmatpush.bf16.msra.mxu3 %v9256_v40  ;;  %2406 = vmatpush.bf16.msra.mxu1 %v9544_v42  ;;  %v11676_v40 = vor.u32 %v11007_v30, %v9155_v29  ;;  %v11187_v42 = vld [vmem:[%s18544_s1 + $0x530] sm:$0xf0]  ;;  %18678 = vst [vmem:[#allocation9_spill] sm:$0xff] %v11686_v44  ;;  %v11066_v51 = vld [vmem:[%s18544_s1 + $0x16c] sm:$0xf]  ;;  %v9832_v55 = vor.u32 %v11178_v50, %v9831_v49 }
  0x1e   :  { %v9868_v46 = vor.u32 %v11187_v42, %v9867_v41  ;;  %v11250_v57 = vld [vmem:[%s18544_s1 + $0x728] sm:$0xf0]  ;;  %v11169_v59 = vld [vmem:[%s18544_s1 + $0x4a0] sm:$0xf0]  ;;  %v10083_v62 = vld [vmem:[%s18544_s1 + $0x6c0] sm:$0xf] }
  0x1f   :  { %18676 = vst [vmem:[#allocation7_spill] sm:$0xff] %v11676_v40  ;;  %v11241_v63 = vld [vmem:[%s18544_s1 + $0x6e0] sm:$0xf0]  ;;  %v8947_v0 = vld [vmem:[%s18546_s0 + $0x40] sm:$0xf] }
  0x20   :  { %2303 = vmatpush.bf16.msra.mxu0 %v9220_v52  ;;  %11395 = vmatpush.bf16.msra.mxu2 %v9220_v52  ;;  %v10955_v3 = vld [vmem:[%s18546_s0 + $0x4c] sm:$0xf0]  ;;  %v9203_v4 = vld [vmem:[%s18546_s0 + $0x240] sm:$0xf]  ;;  %v8923_v5 = vld [vmem:[%s18546_s0 + $0x8] sm:$0xf] }
  0x21   :  { %11396 = vmatpush.bf16.msra.mxu3 %v9220_v52  ;;  %2407 = vmatpush.bf16.msra.mxu1 %v9508_v56  ;;  %v9401_v52 = vld [vmem:[%s18544_s1 + $0x18c] sm:$0xf0]  ;;  %v10119_v56 = vld [vmem:[%s18544_s1 + $0x708] sm:$0xf]  ;;  %v10953_v10 = vld [vmem:[%s18546_s0 + $0x44] sm:$0xf]  ;;  %v11752_v13 = vor.u32 %v10955_v3, %v8947_v0 }
  0x22   :  { %v9404_v54 = vor.u32 %v11066_v51, %v9401_v52  ;;  %v8949_v11 = vld [vmem:[%s18546_s0 + $0x50] sm:$0xf0]  ;;  %v8963_v17 = vld [vmem:[%s18546_s0 + $0x60] sm:$0xf]  ;;  %v10959_v18 = vld [vmem:[%s18546_s0 + $0x6c] sm:$0xf0] }
  0x23   :  { %2304 = vmatmul.bf16.vlgmr.msra.gmra.mxu0 %v11587_v1  ;;  %2374 = vmatmul.bf16.vlgmr.msra.gmra.mxu2 %v11589_v2  ;;  %18679 = vst [vmem:[#allocation10_spill] sm:$0xff] %v11752_v13  ;;  %v10957_v19 = vld [vmem:[%s18546_s0 + $0x64] sm:$0xf]  ;;  %v8939_v20 = vld [vmem:[%s18546_s0 + $0x28] sm:$0xf]  ;;  %v11788_v25 = vor.u32 %v10959_v18, %v8963_v17 }
  0x24   :  { %2712 = vmatpush.bf16.msrb.mxu0 %v9476_v60  ;;  %2504 = vmatpush.bf16.msrb.mxu2 %v10048_v61  ;;  %v10120_v60 = vor.u32 %v11250_v57, %v10119_v56  ;;  %v9796_v61 = vor.u32 %v11169_v59, %v9795_v58  ;;  %v10946_v23 = vld [vmem:[%s18546_s0 + $0xc] sm:$0xf]  ;;  %v8925_v24 = vld [vmem:[%s18546_s0 + $0x18] sm:$0xf0]  ;;  %v11057_v29 = vld [vmem:[%s18544_s1 + $0x124] sm:$0xf] }
  0x25   :  { %2384 = vmatmul.bf16.vlgmr.msra.gmra.mxu3 %v11600_v6  ;;  %2408 = vmatmul.bf16.vlgmr.msra.gmra.mxu1 %v11602_v7  ;;  %18681 = vst [vmem:[#allocation12_spill] sm:$0xff] %v11788_v25  ;;  %v11794_v28 = vor.u32 %v10946_v23, %v8925_v24  ;;  %v9365_v30 = vld [vmem:[%s18544_s1 + $0x144] sm:$0xf0]  ;;  %v8979_v32 = vld [vmem:[%s18546_s0 + $0x80] sm:$0xf] }
  0x26   :  { %2608 = vmatpush.bf16.msrb.mxu3 %v10336_v8  ;;  %v10948_v8 = vld [vmem:[%s18546_s0 + $0x14] sm:$0xf0]  ;;  %v9368_v31 = vor.u32 %v11057_v29, %v9365_v30  ;;  %v10963_v33 = vld [vmem:[%s18546_s0 + $0x8c] sm:$0xf0]  ;;  %v10961_v34 = vld [vmem:[%s18546_s0 + $0x84] sm:$0xf] }
  0x27   :  { %v11754_v14 = vor.u32 %v10948_v8, %v8923_v5  ;;  %v8981_v37 = vld [vmem:[%s18546_s0 + $0x90] sm:$0xf0]  ;;  %v10950_v38 = vld [vmem:[%s18546_s0 + $0x2c] sm:$0xf]  ;;  %v8941_v41 = vld [vmem:[%s18546_s0 + $0x38] sm:$0xf0]  ;;  %v11830_v42 = vor.u32 %v10963_v33, %v8979_v32 }
  0x28   :  { %2505 = vmatpush.bf16.msrb.mxu2 %v10012_v9  ;;  %2713 = vmatpush.bf16.msrb.mxu0 %v9440_v12  ;;  %v11019_v9 = vld [vmem:[%s18546_s0 + $0x24c] sm:$0xf0]  ;;  %v10084_v12 = vor.u32 %v11241_v63, %v10083_v62  ;;  %v11836_v47 = vor.u32 %v10950_v38, %v8941_v41  ;;  %v8995_v48 = vld [vmem:[%s18546_s0 + $0xa0] sm:$0xf]  ;;  %v10965_v50 = vld [vmem:[%s18546_s0 + $0xa4] sm:$0xf] }
  0x29   :  { %v10967_v49 = vld [vmem:[%s18546_s0 + $0xac] sm:$0xf0]  ;;  %v8971_v51 = vld [vmem:[%s18546_s0 + $0x68] sm:$0xf]  ;;  %v10960_v52 = vld [vmem:[%s18546_s0 + $0x74] sm:$0xf0] }
  0x2a   :  { %2609 = vmatpush.bf16.msrb.mxu3 %v10300_v15  ;;  %v11756_v15 = vor.u32 %v11019_v9, %v9203_v4  ;;  %18682 = vst [vmem:[#allocation13_spill] sm:$0xff] %v11836_v47  ;;  %v11866_v56 = vor.u32 %v10967_v49, %v8995_v48  ;;  %v11868_v57 = vor.u32 %v10960_v52, %v8971_v51  ;;  %v9011_v63 = vld [vmem:[%s18546_s0 + $0xc0] sm:$0xf]  ;;  %v10971_v0 = vld [vmem:[%s18546_s0 + $0xcc] sm:$0xf0] }
  0x2b   :  { %v10969_v3 = vld [vmem:[%s18546_s0 + $0xc4] sm:$0xf]  ;;  %v8987_v4 = vld [vmem:[%s18546_s0 + $0x88] sm:$0xf]  ;;  %v10964_v5 = vld [vmem:[%s18546_s0 + $0x94] sm:$0xf0] }
  0x2c   :  { %2506 = vmatpush.bf16.msrb.mxu2 %v9976_v16  ;;  %2714 = vmatpush.bf16.msrb.mxu0 %v9404_v54  ;;  %18680 = vst [vmem:[#allocation11_spill] sm:$0xff] %v11756_v15  ;;  %v11758_v16 = vor.u32 %v10953_v10, %v8949_v11  ;;  %v10954_v54 = vld [vmem:[%s18546_s0 + $0x4c] sm:$0xf]  ;;  %v9013_v8 = vld [vmem:[%s18546_s0 + $0xd0] sm:$0xf0]  ;;  %v11908_v11 = vor.u32 %v10971_v0, %v9011_v63  ;;  %v422_v38 = vld [vmem:[%s18545_s2] sm:$0xff] }
  0x2d   :  { %18683 = vst [vmem:[#allocation14_spill] sm:$0xff] %v11866_v56  ;;  %v10958_v9 = vld [vmem:[%s18546_s0 + $0x6c] sm:$0xf]  ;;  %v8973_v10 = vld [vmem:[%s18546_s0 + $0x78] sm:$0xf0]  ;;  %v11912_v17 = vor.u32 %v10969_v3, %v9013_v8  ;;  %v11965_v41 = vperm.slane %v422_v38, 0 }
  0x2e   :  { %2610 = vmatpush.bf16.msrb.mxu3 %v10264_v21  ;;  %v10952_v21 = vld [vmem:[%s18546_s0 + $0x34] sm:$0xf0]  ;;  %18684 = vst [vmem:[#allocation15_spill] sm:$0xff] %v11868_v57  ;;  %v11914_v18 = vor.u32 %v10958_v9, %v8973_v10  ;;  %v9029_v24 = vld [vmem:[%s18546_s0 + $0xf0] sm:$0xf0] }
  0x2f   :  { %v11790_v26 = vor.u32 %v10952_v21, %v8939_v20  ;;  %18687 = vst [vmem:[#allocation18_spill] sm:$0xff] %v11908_v11  ;;  %v10975_v20 = vld [vmem:[%s18546_s0 + $0xec] sm:$0xf0]  ;;  %v10973_v21 = vld [vmem:[%s18546_s0 + $0xe4] sm:$0xf] }
  0x30   :  { %2507 = vmatpush.bf16.msrb.mxu2 %v9940_v22  ;;  %v8965_v22 = vld [vmem:[%s18546_s0 + $0x70] sm:$0xf0]  ;;  %2715 = vmatpush.bf16.msrb.mxu0 %v9368_v31  ;;  %18689 = vst [vmem:[#allocation20_spill] sm:$0xff] %v11912_v17  ;;  %v10968_v23 = vld [vmem:[%s18546_s0 + $0xb4] sm:$0xf0]  ;;  %v11948_v33 = vor.u32 %v10973_v21, %v9029_v24 }
  0x31   :  { %v11792_v27 = vor.u32 %v10957_v19, %v8965_v22  ;;  %18690 = vst [vmem:[#allocation21_spill] sm:$0xff] %v11914_v18  ;;  %v9027_v19 = vld [vmem:[%s18546_s0 + $0xe0] sm:$0xf]  ;;  %v9003_v22 = vld [vmem:[%s18546_s0 + $0xa8] sm:$0xf] }
  0x32   :  { %2611 = vmatpush.bf16.msrb.mxu3 %v10228_v35  ;;  %v8955_v35 = vld [vmem:[%s18546_s0 + $0x48] sm:$0xf]  ;;  %v10962_v29 = vld [vmem:[%s18546_s0 + $0x8c] sm:$0xf]  ;;  %v8989_v30 = vld [vmem:[%s18546_s0 + $0x98] sm:$0xf0]  ;;  %v11944_v31 = vor.u32 %v10975_v20, %v9027_v19  ;;  %v11946_v32 = vor.u32 %v10968_v23, %v9003_v22 }
  0x33   :  { %2309 = vmatmul.bf16.gmra.mxu0 %v11674_v39  ;;  %2379 = vmatmul.bf16.gmra.mxu2 %v11676_v40  ;;  %18692 = vst [vmem:[#allocation23_spill] sm:$0xff] %v11948_v33  ;;  %v9043_v48 = vld [vmem:[%s18546_s0 + $0x100] sm:$0xf]  ;;  %v10979_v49 = vld [vmem:[%s18546_s0 + $0x10c] sm:$0xf0] }
  0x34   :  { %2508 = vmatpush.bf16.msrb.mxu2 %v9904_v36  ;;  %v10956_v36 = vld [vmem:[%s18546_s0 + $0x54] sm:$0xf0]  ;;  %18691 = vst [vmem:[#allocation22_spill] sm:$0xff] %v11946_v32  ;;  %v9019_v51 = vld [vmem:[%s18546_s0 + $0xc8] sm:$0xf] }
  0x35   :  { %2389 = vmatmul.bf16.gmra.mxu3 %v11684_v43  ;;  %2413 = vmatmul.bf16.gmra.mxu1 %v11686_v44  ;;  %v10972_v52 = vld [vmem:[%s18546_s0 + $0xd4] sm:$0xf0]  ;;  %v9059_v21 = vld [vmem:[%s18546_s0 + $0x120] sm:$0xf]  ;;  %v10983_v23 = vld [vmem:[%s18546_s0 + $0x12c] sm:$0xf0] }
  0x36   :  { %2612 = vmatpush.bf16.msrb.mxu3 %v10192_v45  ;;  %v11832_v45 = vor.u32 %v10956_v36, %v8955_v35  ;;  %v11039_v35 = vld [vmem:[%s18544_s1 + $0x94] sm:$0xf]  ;;  %v9293_v36 = vld [vmem:[%s18544_s1 + $0xb4] sm:$0xf0]  ;;  %v11030_v24 = vld [vmem:[%s18544_s1 + $0x4c] sm:$0xf] }
  0x37   :  { %v9061_v38 = vld [vmem:[%s18546_s0 + $0x130] sm:$0xf0] }
  0x38   :  { %2509 = vmatpush.bf16.msrb.mxu2 %v9868_v46  ;;  %v11834_v46 = vor.u32 %v10961_v34, %v8981_v37  ;;  %v11950_v34 = vor.u32 %v10962_v29, %v8989_v30  ;;  %v9296_v37 = vor.u32 %v11039_v35, %v9293_v36  ;;  %v9257_v29 = vld [vmem:[%s18544_s1 + $0x6c] sm:$0xf0]  ;;  %v10981_v30 = vld [vmem:[%s18546_s0 + $0x124] sm:$0xf]  ;;  %v9035_v35 = vld [vmem:[%s18546_s0 + $0xe8] sm:$0xf] }
  0x39   :  { %v10976_v36 = vld [vmem:[%s18546_s0 + $0xf4] sm:$0xf0] }
  0x3a   :  { %2613 = vmatpush.bf16.msrb.mxu3 %v10156_v53  ;;  %v8997_v53 = vld [vmem:[%s18546_s0 + $0xb0] sm:$0xf0]  ;;  %18693 = vst [vmem:[#allocation24_spill] sm:$0xff] %v11950_v34 }
  0x3b   :  { %v11870_v58 = vor.u32 %v10965_v50, %v8997_v53  ;;  %v10977_v50 = vld [vmem:[%s18546_s0 + $0x104] sm:$0xf]  ;;  %v9045_v53 = vld [vmem:[%s18546_s0 + $0x110] sm:$0xf0] }
  0x3c   :  { %2510 = vmatpush.bf16.msrb.mxu2 %v9832_v55  ;;  %v8957_v55 = vld [vmem:[%s18546_s0 + $0x58] sm:$0xf0]  ;;  %v11995_v63 = vor.u32 %v10977_v50, %v9045_v53  ;;  %v12049_v53 = vor.u32 %v10976_v36, %v9035_v35  ;;  %v10987_v35 = vld [vmem:[%s18546_s0 + $0x14c] sm:$0xf0]  ;;  %v10985_v36 = vld [vmem:[%s18546_s0 + $0x144] sm:$0xf] }
  0x3d   :  { %18685 = vst [vmem:[#allocation16_spill] sm:$0xff] %v11870_v58  ;;  %v11872_v59 = vor.u32 %v10954_v54, %v8957_v55  ;;  %v10966_v54 = vld [vmem:[%s18546_s0 + $0xac] sm:$0xf]  ;;  %v9005_v55 = vld [vmem:[%s18546_s0 + $0xb8] sm:$0xf0] }
  0x3e   :  { %2614 = vmatpush.bf16.msrb.mxu3 %v10120_v60  ;;  %v11048_v60 = vld [vmem:[%s18544_s1 + $0xdc] sm:$0xf]  ;;  %18695 = vst [vmem:[#allocation26_spill] sm:$0xff] %v11995_v63  ;;  %v11997_v0 = vor.u32 %v10966_v54, %v9005_v55  ;;  %v12051_v55 = vor.u32 %v10981_v30, %v9061_v38  ;;  %v9075_v30 = vld [vmem:[%s18546_s0 + $0x140] sm:$0xf] }
  0x3f   :  { %18686 = vst [vmem:[#allocation17_spill] sm:$0xff] %v11872_v59  ;;  %v10980_v38 = vld [vmem:[%s18546_s0 + $0x114] sm:$0xf0] }
  0x40   :  { %2511 = vmatpush.bf16.msrb.mxu2 %v9796_v61  ;;  %v9329_v61 = vld [vmem:[%s18544_s1 + $0xfc] sm:$0xf0]  ;;  %18696 = vst [vmem:[#allocation27_spill] sm:$0xff] %v11997_v0 }
  0x41   :  { %v9332_v62 = vor.u32 %v11048_v60, %v9329_v61  ;;  %v11991_v60 = vor.u32 %v10979_v49, %v9043_v48  ;;  %v11993_v61 = vor.u32 %v10972_v52, %v9019_v51  ;;  %v10970_v48 = vld [vmem:[%s18546_s0 + $0xcc] sm:$0xf]  ;;  %v9021_v49 = vld [vmem:[%s18546_s0 + $0xd8] sm:$0xf0]  ;;  %v12047_v52 = vor.u32 %v10983_v23, %v9059_v21  ;;  %18697 = vst [vmem:[#allocation28_spill] sm:$0xff] %v12049_v53 }
  0x42   :  { %2615 = vmatpush.bf16.msrb.mxu3 %v10084_v12  ;;  %v11910_v12 = vor.u32 %v10964_v5, %v8987_v4  ;;  %18698 = vst [vmem:[#allocation29_spill] sm:$0xff] %v12051_v55 }
  0x43   :  { %2314 = vmatmul.bf16.gmra.mxu0 %v11752_v13  ;;  %2512 = vmatmul.bf16.vlgmr.msrb.gmra.mxu2 %v11754_v14  ;;  %18694 = vst [vmem:[#allocation25_spill] sm:$0xff] %v11993_v61 }
  0x44   :  { %2716 = vmatpush.bf16.msrb.mxu0 %v9332_v62  ;;  %18688 = vst [vmem:[#allocation19_spill] sm:$0xff] %v11910_v12 }
  0x45   :  { %2394 = vmatmul.bf16.gmra.mxu3 %v11756_v15  ;;  %2418 = vmatmul.bf16.gmra.mxu1 %v11758_v16 }
  0x48   :  { %2717 = vmatpush.bf16.msrb.mxu0 %v9296_v37  ;;  %v9260_v37 = vor.u32 %v11030_v24, %v9257_v29 }
  0x4c   :  { %2718 = vmatpush.bf16.msrb.mxu0 %v9260_v37  ;;  %v9051_v37 = vld [vmem:[%s18546_s0 + $0x108] sm:$0xf] }
  0x53   :  { %2319 = vmatmul.bf16.gmra.mxu0 %v11788_v25  ;;  %2517 = vmatmul.bf16.gmra.mxu2 %v11790_v26 }
  0x55   :  { %2423 = vmatmul.bf16.gmra.mxu1 %v11792_v27  ;;  %2616 = vmatmul.bf16.vlgmr.msrb.gmra.mxu3 %v11794_v28 }
  0x63   :  { %2324 = vmatmul.bf16.gmra.mxu0 %v11830_v42  ;;  %2522 = vmatmul.bf16.gmra.mxu2 %v11832_v45 }
  0x65   :  { %2428 = vmatmul.bf16.gmra.mxu1 %v11834_v46  ;;  %2621 = vmatmul.bf16.gmra.mxu3 %v11836_v47 }
  0x73   :  { %2329 = vmatmul.bf16.gmra.mxu0 %v11866_v56  ;;  %2527 = vmatmul.bf16.gmra.mxu2 %v11868_v57 }
  0x75   :  { %2433 = vmatmul.bf16.gmra.mxu1 %v11870_v58  ;;  %2626 = vmatmul.bf16.gmra.mxu3 %v11872_v59 }
  0x83   :  { %2334 = vmatmul.bf16.gmra.mxu0 %v11908_v11  ;;  %2532 = vmatmul.bf16.gmra.mxu2 %v11910_v12 }
  0x85   :  { %2438 = vmatmul.bf16.gmra.mxu1 %v11912_v17  ;;  %2631 = vmatmul.bf16.gmra.mxu3 %v11914_v18 }
  0x93   :  { %2339 = vmatmul.bf16.gmra.mxu0 %v11944_v31  ;;  %2537 = vmatmul.bf16.gmra.mxu2 %v11946_v32 }
  0x95   :  { %2443 = vmatmul.bf16.gmra.mxu1 %v11948_v33  ;;  %2636 = vmatmul.bf16.gmra.mxu3 %v11950_v34 }
  0xa0   :  { %v2305_v62 = vpop.f32.mrf.mxu0 }
  0xa1   :  { %v2306_v3 = vadd.f32 %v2305_v62, %v11965_v41  ;;  %v12053_v62 = vor.u32 %v10970_v48, %v9021_v49  ;;  %v9077_v48 = vld [vmem:[%s18546_s0 + $0x150] sm:$0xf0]  ;;  %v10974_v49 = vld [vmem:[%s18546_s0 + $0xec] sm:$0xf] }
  0xa2   :  { %v2409_v4 = vpop.f32.mrf.mxu1  ;;  %v12101_v15 = vor.u32 %v10985_v36, %v9077_v48 }
  0xa3   :  { %v12000_v5 = vadd.f32 %v2409_v4, %v2306_v3  ;;  %2344 = vmatmul.bf16.gmra.mxu0 %v11991_v60  ;;  %2542 = vmatmul.bf16.gmra.mxu2 %v11993_v61  ;;  %18699 = vst [vmem:[#allocation30_spill] sm:$0xff] %v12053_v62 }
  0xa4   :  { %18703 = vst [vmem:[#allocation34_spill] sm:$0xff] %v12101_v15 }
  0xa5   :  { %2448 = vmatmul.bf16.gmra.mxu1 %v11995_v63  ;;  %2641 = vmatmul.bf16.gmra.mxu3 %v11997_v0 }
  0xa6   :  { %v12006_v8 = vpop.f32.mrf.mxu2 }
  0xa8   :  { %v12008_v9 = vpop.f32.mrf.mxu3  ;;  %v2307_v10 = vpop.f32.mrf.mxu0 }
  0xa9   :  { %v2308_v19 = vadd.f32 %v2307_v10, %v11965_v41 }
  0xaa   :  { %v2411_v20 = vpop.f32.mrf.mxu1 }
  0xab   :  { %v12014_v22 = vadd.f32 %v2411_v20, %v2308_v19 }
  0xae   :  { %v12043_v50 = vpop.f32.mrf.mxu2 }
  0xb0   :  { %v12045_v51 = vpop.f32.mrf.mxu3  ;;  %v2310_v54 = vpop.f32.mrf.mxu0 }
  0xb1   :  { %v2311_v3 = vadd.f32 %v2310_v54, %v11965_v41  ;;  %v9037_v54 = vld [vmem:[%s18546_s0 + $0xf8] sm:$0xf0] }
  0xb2   :  { %v2414_v4 = vpop.f32.mrf.mxu1  ;;  %v12103_v43 = vor.u32 %v10974_v49, %v9037_v54  ;;  %v9091_v54 = vld [vmem:[%s18546_s0 + $0x160] sm:$0xf] }
  0xb3   :  { %v12056_v10 = vadd.f32 %v2414_v4, %v2311_v3  ;;  %2349 = vmatmul.bf16.gmra.mxu0 %v12047_v52  ;;  %2547 = vmatmul.bf16.gmra.mxu2 %v12049_v53 }
  0xb4   :  { %18704 = vst [vmem:[#allocation35_spill] sm:$0xff] %v12103_v43 }
  0xb5   :  { %2453 = vmatmul.bf16.gmra.mxu1 %v12051_v55  ;;  %2646 = vmatmul.bf16.gmra.mxu3 %v12053_v62 }
  0xb6   :  { %v12062_v19 = vpop.f32.mrf.mxu2 }
  0xb8   :  { %v12064_v20 = vpop.f32.mrf.mxu3  ;;  %v2312_v21 = vpop.f32.mrf.mxu0 }
  0xb9   :  { %v2313_v23 = vadd.f32 %v2312_v21, %v11965_v41  ;;  %v12097_v21 = vor.u32 %v10987_v35, %v9075_v30 }
  0xba   :  { %v2416_v24 = vpop.f32.mrf.mxu1 }
  0xbb   :  { %v12067_v29 = vadd.f32 %v2416_v24, %v2313_v23  ;;  %18701 = vst [vmem:[#allocation32_spill] sm:$0xff] %v12097_v21  ;;  %v12099_v23 = vor.u32 %v10980_v38, %v9051_v37 }
  0xbd   :  { %18702 = vst [vmem:[#allocation33_spill] sm:$0xff] %v12099_v23 }
  0xbe   :  { %v12093_v3 = vpop.f32.mrf.mxu2 }
  0xc0   :  { %v12095_v4 = vpop.f32.mrf.mxu3  ;;  %v2315_v24 = vpop.f32.mrf.mxu0 }
  0xc1   :  { %18700 = vst [vmem:[#allocation31_spill] sm:$0xff] %v12095_v4  ;;  %v2316_v6 = vadd.f32 %v2315_v24, %v11965_v41 }
  0xc2   :  { %v2419_v40 = vpop.f32.mrf.mxu1 }
  0xc3   :  { %v12106_v62 = vadd.f32 %v2419_v40, %v2316_v6  ;;  %2354 = vmatmul.bf16.gmra.mxu0 %v12097_v21  ;;  %2552 = vmatmul.bf16.gmra.mxu2 %v12099_v23  ;;  %v11021_v6 = vld [vmem:[%s18544_s1 + $0x4] sm:$0xf]  ;;  %v9221_v40 = vld [vmem:[%s18544_s1 + $0x24] sm:$0xf0] }
  0xc4   :  { %v9224_v24 = vor.u32 %v11021_v6, %v9221_v40  ;;  %v10978_v6 = vld [vmem:[%s18546_s0 + $0x10c] sm:$0xf]  ;;  %v9053_v40 = vld [vmem:[%s18546_s0 + $0x118] sm:$0xf0] }
  0xc5   :  { %2458 = vmatmul.bf16.gmra.mxu1 %v12101_v15  ;;  %2651 = vmatmul.bf16.gmra.mxu3 %v12103_v43  ;;  %v12157_v63 = vor.u32 %v10978_v6, %v9053_v40  ;;  %v10049_v6 = vld [vmem:[%s18544_s1 + $0x69c] sm:$0xf0]  ;;  %v11300_v40 = vld [vmem:[%s18544_s1 + $0x8bc] sm:$0xf] }
  0xc6   :  { %v2513_v30 = vpop.f32.mrf.mxu2  ;;  %2719 = vmatpush.bf16.msrb.mxu0 %v9224_v24 }
  0xc7   :  { %v2514_v36 = vadd.f32 %v2513_v30, %v12000_v5  ;;  %v10991_v5 = vld [vmem:[%s18546_s0 + $0x16c] sm:$0xf0]  ;;  %v10989_v30 = vld [vmem:[%s18546_s0 + $0x164] sm:$0xf]  ;;  %18710 = vst [vmem:[#allocation41_spill] sm:$0xff] %v12157_v63 }
  0xc8   :  { %v12112_v35 = vpop.f32.mrf.mxu3  ;;  %v2317_v37 = vpop.f32.mrf.mxu0  ;;  %v12151_v55 = vor.u32 %v10991_v5, %v9091_v54 }
  0xc9   :  { %18705 = vst [vmem:[#allocation36_spill] sm:$0xff] %v12112_v35  ;;  %v2318_v38 = vadd.f32 %v2317_v37, %v11965_v41  ;;  %v9067_v37 = vld [vmem:[%s18546_s0 + $0x128] sm:$0xf] }
  0xca   :  { %v2421_v48 = vpop.f32.mrf.mxu1  ;;  %18707 = vst [vmem:[#allocation38_spill] sm:$0xff] %v12151_v55 }
  0xcb   :  { %v12122_v49 = vadd.f32 %v2421_v48, %v2318_v38  ;;  %v10984_v38 = vld [vmem:[%s18546_s0 + $0x134] sm:$0xf0]  ;;  %v9093_v48 = vld [vmem:[%s18546_s0 + $0x170] sm:$0xf0] }
  0xcc   :  { %v12153_v53 = vor.u32 %v10984_v38, %v9067_v37  ;;  %v12155_v0 = vor.u32 %v10989_v30, %v9093_v48  ;;  %v9083_v37 = vld [vmem:[%s18546_s0 + $0x148] sm:$0xf]  ;;  %v10993_v38 = vld [vmem:[%s18546_s0 + $0x184] sm:$0xf]  ;;  %v11228_v48 = vld [vmem:[%s18544_s1 + $0x67c] sm:$0xf] }
  0xce   :  { %v2515_v43 = vpop.f32.mrf.mxu2  ;;  %18708 = vst [vmem:[#allocation39_spill] sm:$0xff] %v12153_v53 }
  0xcf   :  { %v2516_v23 = vadd.f32 %v2515_v43, %v12014_v22  ;;  %18709 = vst [vmem:[#allocation40_spill] sm:$0xff] %v12155_v0 }
  0xd0   :  { %v12148_v15 = vpop.f32.mrf.mxu3  ;;  %v2320_v2 = vpop.f32.mrf.mxu0 }
  0xd1   :  { %18706 = vst [vmem:[#allocation37_spill] sm:$0xff] %v12148_v15  ;;  %v2321_v61 = vadd.f32 %v2320_v2, %v11965_v41 }
  0xd2   :  { %v2424_v34 = vpop.f32.mrf.mxu1 }
  0xd3   :  { %v12160_v33 = vadd.f32 %v2424_v34, %v2321_v61  ;;  %2359 = vmatmul.bf16.gmra.mxu0 %v12151_v55  ;;  %2557 = vmatmul.bf16.gmra.mxu2 %v12153_v53  ;;  %v9107_v34 = vld [vmem:[%s18546_s0 + $0x180] sm:$0xf]  ;;  %v10995_v61 = vld [vmem:[%s18546_s0 + $0x18c] sm:$0xf0] }
  0xd4   :  { %v12213_v35 = vor.u32 %v10995_v61, %v9107_v34 }
  0xd5   :  { %2463 = vmatmul.bf16.gmra.mxu1 %v12155_v0  ;;  %2656 = vmatmul.bf16.gmra.mxu3 %v12157_v63 }
  0xd6   :  { %v2518_v43 = vpop.f32.mrf.mxu2  ;;  %18711 = vst [vmem:[#allocation42_spill] sm:$0xff] %v12213_v35 }
  0xd7   :  { %v2519_v22 = vadd.f32 %v2518_v43, %v12056_v10  ;;  %v10988_v10 = vld [vmem:[%s18546_s0 + $0x154] sm:$0xf0]  ;;  %v10052_v43 = vor.u32 %v11228_v48, %v10049_v6  ;;  %v10982_v48 = vld [vmem:[%s18546_s0 + $0x12c] sm:$0xf]  ;;  %v9069_v6 = vld [vmem:[%s18546_s0 + $0x138] sm:$0xf0] }
  0xd8   :  { %v2617_v54 = vpop.f32.mrf.mxu3  ;;  %v2322_v24 = vpop.f32.mrf.mxu0  ;;  %v12215_v4 = vor.u32 %v10988_v10, %v9083_v37  ;;  %v12219_v55 = vor.u32 %v10982_v48, %v9069_v6  ;;  %v9123_v10 = vld [vmem:[%s18546_s0 + $0x1a0] sm:$0xf]  ;;  %v9125_v48 = vld [vmem:[%s18546_s0 + $0x1b0] sm:$0xf0]  ;;  %v10986_v6 = vld [vmem:[%s18546_s0 + $0x14c] sm:$0xf] }
  0xd9   :  { %v2618_v5 = vadd.f32 %v2617_v54, %v2514_v36  ;;  %v2323_v30 = vadd.f32 %v2322_v24, %v11965_v41  ;;  %v10337_v54 = vld [vmem:[%s18544_s1 + $0x8dc] sm:$0xf0]  ;;  %v11156_v24 = vld [vmem:[%s18544_s1 + $0x43c] sm:$0xf]  ;;  %2920 = vmatpush.bf16.msra.mxu2 %v10052_v43 }
  0xda   :  { %v2426_v2 = vpop.f32.mrf.mxu1  ;;  %v10340_v63 = vor.u32 %v11300_v40, %v10337_v54  ;;  %18713 = vst [vmem:[#allocation44_spill] sm:$0xff] %v12219_v55 }
  0xdb   :  { %v12180_v36 = vadd.f32 %v2426_v2, %v2323_v30  ;;  %v9761_v30 = vld [vmem:[%s18544_s1 + $0x45c] sm:$0xf0]  ;;  %v9109_v2 = vld [vmem:[%s18546_s0 + $0x190] sm:$0xf0] }
  0xdc   :  { %v9764_v0 = vor.u32 %v11156_v24, %v9761_v30  ;;  %3024 = vmatpush.bf16.msra.mxu3 %v10340_v63  ;;  %v12217_v12 = vor.u32 %v10993_v38, %v9109_v2  ;;  %v6040_v24 = vmax.f32 %v2618_v5, 0.0  ;;  %v10999_v38 = vld [vmem:[%s18546_s0 + $0x1ac] sm:$0xf0]  ;;  %v10992_v2 = vld [vmem:[%s18546_s0 + $0x174] sm:$0xf0] }
  0xde   :  { %v2520_v53 = vpop.f32.mrf.mxu2  ;;  %2816 = vmatpush.bf16.msrb.mxu1 %v9764_v0  ;;  %18712 = vst [vmem:[#allocation43_spill] sm:$0xff] %v12217_v12 }
  0xdf   :  { %v2521_v15 = vadd.f32 %v2520_v53, %v12067_v29 }
  0xe0   :  { %v2619_v32 = vpop.f32.mrf.mxu3  ;;  %v2325_v17 = vpop.f32.mrf.mxu0 }
  0xe1   :  { %v2620_v18 = vadd.f32 %v2619_v32, %v2516_v23  ;;  %v2326_v40 = vadd.f32 %v2325_v17, %v11965_v41  ;;  %v9479_v32 = vld [vmem:[%s18544_s1 + $0x200] sm:$0xf]  ;;  %v11089_v17 = vld [vmem:[%s18544_s1 + $0x220] sm:$0xf0] }
  0xe2   :  { %v2429_v54 = vpop.f32.mrf.mxu1 }
  0xe3   :  { %v6049_v43 = vmax.f32 %v2620_v18, 0.0  ;;  %v12222_v30 = vadd.f32 %v2429_v54, %v2326_v40  ;;  %2364 = vmatmul.bf16.gmra.mxu0 %v12213_v35  ;;  %2562 = vmatmul.bf16.gmra.mxu2 %v12215_v4  ;;  %v9480_v18 = vor.u32 %v11089_v17, %v9479_v32  ;;  %v9085_v40 = vld [vmem:[%s18546_s0 + $0x158] sm:$0xf0]  ;;  %v12265_v32 = vor.u32 %v10999_v38, %v9123_v10 }
  0xe5   :  { %v12226_v53 = vpack.c.bf16 %v6049_v43, %v6040_v24  ;;  %2468 = vmatmul.bf16.gmra.mxu1 %v12217_v12  ;;  %2661 = vmatmul.bf16.gmra.mxu3 %v12219_v55  ;;  %18715 = vst [vmem:[#allocation46_spill] sm:$0xff] %v12265_v32 }
  0xe6   :  { %v2523_v63 = vpop.f32.mrf.mxu2  ;;  %3128 = vmatpush.bf16.msra.mxu0 %v9480_v18 }
  0xe7   :  { %18714 = vst [vmem:[#allocation45_spill] sm:$0xff] %v12226_v53  ;;  %v2524_v0 = vadd.f32 %v2523_v63, %v12106_v62  ;;  %v10997_v62 = vld [vmem:[%s18546_s0 + $0x1a4] sm:$0xf] }
  0xe8   :  { %v2622_v29 = vpop.f32.mrf.mxu3  ;;  %v2327_v5 = vpop.f32.mrf.mxu0 }
  0xe9   :  { %v2623_v23 = vadd.f32 %v2622_v29, %v2519_v22  ;;  %v2328_v34 = vadd.f32 %v2327_v5, %v11965_v41  ;;  %v9099_v22 = vld [vmem:[%s18546_s0 + $0x168] sm:$0xf]  ;;  %v12269_v29 = vor.u32 %v10997_v62, %v9125_v48  ;;  %v12271_v5 = vor.u32 %v10986_v6, %v9085_v40  ;;  %v11001_v6 = vld [vmem:[%s18546_s0 + $0x1c4] sm:$0xf]  ;;  %v9101_v40 = vld [vmem:[%s18546_s0 + $0x178] sm:$0xf0] }
  0xea   :  { %v2431_v61 = vpop.f32.mrf.mxu1  ;;  %v12267_v17 = vor.u32 %v10992_v2, %v9099_v22 }
  0xeb   :  { %v12238_v37 = vadd.f32 %v2431_v61, %v2328_v34  ;;  %18717 = vst [vmem:[#allocation48_spill] sm:$0xff] %v12269_v29  ;;  %v6058_v53 = vmax.f32 %v2623_v23, 0.0 }
  0xec   :  { %18716 = vst [vmem:[#allocation47_spill] sm:$0xff] %v12267_v17 }
  0xed   :  { %18718 = vst [vmem:[#allocation49_spill] sm:$0xff] %v12271_v5 }
  0xee   :  { %v2525_v54 = vpop.f32.mrf.mxu2 }
  0xef   :  { %v2526_v24 = vadd.f32 %v2525_v54, %v12122_v49 }
  0xf0   :  { %v2624_v43 = vpop.f32.mrf.mxu3  ;;  %v2330_v63 = vpop.f32.mrf.mxu0 }
  0xf1   :  { %v2625_v18 = vadd.f32 %v2624_v43, %v2521_v15  ;;  %v2331_v34 = vadd.f32 %v2330_v63, %v11965_v41 }
  0xf2   :  { %v2434_v61 = vpop.f32.mrf.mxu1 }
  0xf3   :  { %v6067_v55 = vmax.f32 %v2625_v18, 0.0  ;;  %v12274_v12 = vadd.f32 %v2434_v61, %v2331_v34  ;;  %2369 = vmatmul.bf16.gmra.mxu0 %v12265_v32  ;;  %2567 = vmatmul.bf16.gmra.mxu2 %v12267_v17 }
  0xf5   :  { %2473 = vmatmul.bf16.gmra.mxu1 %v12269_v29  ;;  %2666 = vmatmul.bf16.gmra.mxu3 %v12271_v5  ;;  %v12280_v15 = vpack.c.bf16 %v6067_v55, %v6058_v53  ;;  %v9115_v55 = vld [vmem:[%s18546_s0 + $0x188] sm:$0xf]  ;;  %v9141_v53 = vld [vmem:[%s18546_s0 + $0x1d0] sm:$0xf0] }
  0xf6   :  { %v2528_v49 = vpop.f32.mrf.mxu2  ;;  %v11219_v5 = vld [vmem:[%s18544_s1 + $0x634] sm:$0xf] }
  0xf7   :  { %18719 = vst [vmem:[#allocation50_spill] sm:$0xff] %v12280_v15  ;;  %v2529_v10 = vadd.f32 %v2528_v49, %v12160_v33  ;;  %v10996_v33 = vld [vmem:[%s18546_s0 + $0x194] sm:$0xf0]  ;;  %v12307_v49 = vor.u32 %v11001_v6, %v9141_v53  ;;  %v11147_v53 = vld [vmem:[%s18544_s1 + $0x3f4] sm:$0xf] }
  0xf8   :  { %v2627_v38 = vpop.f32.mrf.mxu3  ;;  %v2332_v22 = vpop.f32.mrf.mxu0  ;;  %v12305_v63 = vor.u32 %v10996_v33, %v9115_v55  ;;  %v10301_v6 = vld [vmem:[%s18544_s1 + $0x894] sm:$0xf0] }
  0xf9   :  { %v2628_v62 = vadd.f32 %v2627_v38, %v2524_v0  ;;  %v2333_v23 = vadd.f32 %v2332_v22, %v11965_v41  ;;  %v10990_v0 = vld [vmem:[%s18546_s0 + $0x16c] sm:$0xf]  ;;  %18721 = vst [vmem:[#allocation52_spill] sm:$0xff] %v12307_v49 }
  0xfa   :  { %v2436_v2 = vpop.f32.mrf.mxu1  ;;  %18720 = vst [vmem:[#allocation51_spill] sm:$0xff] %v12305_v63  ;;  %v12309_v38 = vor.u32 %v10990_v0, %v9101_v40 }
  0xfb   :  { %v12284_v48 = vadd.f32 %v2436_v2, %v2333_v23  ;;  %v6076_v2 = vmax.f32 %v2628_v62, 0.0  ;;  %v11291_v62 = vld [vmem:[%s18544_s1 + $0x874] sm:$0xf] }
  0xfc   :  { %18722 = vst [vmem:[#allocation53_spill] sm:$0xff] %v12309_v38  ;;  %v10304_v33 = vor.u32 %v11291_v62, %v10301_v6 }
  0xfe   :  { %v2530_v54 = vpop.f32.mrf.mxu2  ;;  %3025 = vmatpush.bf16.msra.mxu3 %v10304_v33  ;;  %v9157_v33 = vld [vmem:[%s18546_s0 + $0x1f0] sm:$0xf0] }
  0xff   :  { %v2531_v43 = vadd.f32 %v2530_v54, %v12180_v36  ;;  %v10013_v36 = vld [vmem:[%s18544_s1 + $0x654] sm:$0xf0] }
 0x100   :  { %v2629_v18 = vpop.f32.mrf.mxu3  ;;  %v2335_v61 = vpop.f32.mrf.mxu0 }
 0x101   :  { %v2630_v34 = vadd.f32 %v2629_v18, %v2526_v24  ;;  %v2336_v22 = vadd.f32 %v2335_v61, %v11965_v41  ;;  %v10016_v24 = vor.u32 %v11219_v5, %v10013_v36  ;;  %v9725_v5 = vld [vmem:[%s18544_s1 + $0x414] sm:$0xf0] }
 0x102   :  { %v2439_v23 = vpop.f32.mrf.mxu1  ;;  %v9728_v54 = vor.u32 %v11147_v53, %v9725_v5  ;;  %v10994_v53 = vld [vmem:[%s18546_s0 + $0x18c] sm:$0xf]  ;;  %v9117_v5 = vld [vmem:[%s18546_s0 + $0x198] sm:$0xf0] }
 0x103   :  { %v6085_v15 = vmax.f32 %v2630_v34, 0.0  ;;  %v12318_v55 = vadd.f32 %v2439_v23, %v2336_v22  ;;  %2572 = vmatmul.bf16.gmra.mxu2 %v12305_v63  ;;  %2720 = vmatmul.bf16.vlgmr.msrb.gmra.mxu0 %v11587_v1 }
 0x104   :  { %2921 = vmatpush.bf16.msra.mxu2 %v10016_v24  ;;  %2817 = vmatpush.bf16.msrb.mxu1 %v9728_v54  ;;  %v11000_v24 = vld [vmem:[%s18546_s0 + $0x1b4] sm:$0xf0] }
 0x105   :  { %2478 = vmatmul.bf16.gmra.mxu1 %v12307_v49  ;;  %2671 = vmatmul.bf16.gmra.mxu3 %v12309_v38  ;;  %v12333_v0 = vpack.c.bf16 %v6085_v15, %v6076_v2  ;;  %v9443_v15 = vld [vmem:[%s18544_s1 + $0x1b8] sm:$0xf]  ;;  %v11080_v2 = vld [vmem:[%s18544_s1 + $0x1d8] sm:$0xf0] }
 0x106   :  { %v2533_v40 = vpop.f32.mrf.mxu2  ;;  %v9444_v6 = vor.u32 %v11080_v2, %v9443_v15  ;;  %v12371_v2 = vor.u32 %v10994_v53, %v9117_v5  ;;  %v9173_v5 = vld [vmem:[%s18546_s0 + $0x210] sm:$0xf0] }
 0x107   :  { %18723 = vst [vmem:[#allocation54_spill] sm:$0xff] %v12333_v0  ;;  %v2534_v18 = vadd.f32 %v2533_v40, %v12222_v30  ;;  %v11005_v30 = vld [vmem:[%s18546_s0 + $0x1e4] sm:$0xf] }
 0x108   :  { %v2632_v34 = vpop.f32.mrf.mxu3  ;;  %v2337_v22 = vpop.f32.mrf.mxu0  ;;  %3129 = vmatpush.bf16.msra.mxu0 %v9444_v6  ;;  %v12369_v15 = vor.u32 %v11005_v30, %v9157_v33  ;;  %18726 = vst [vmem:[#allocation57_spill] sm:$0xff] %v12371_v2  ;;  %v9689_v33 = vld [vmem:[%s18544_s1 + $0x3cc] sm:$0xf0] }
 0x109   :  { %v2633_v61 = vadd.f32 %v2632_v34, %v2529_v10  ;;  %v2338_v23 = vadd.f32 %v2337_v22, %v11965_v41  ;;  %v9131_v10 = vld [vmem:[%s18546_s0 + $0x1a8] sm:$0xf] }
 0x10a   :  { %v2441_v36 = vpop.f32.mrf.mxu1  ;;  %v12367_v22 = vor.u32 %v11000_v24, %v9131_v10  ;;  %18725 = vst [vmem:[#allocation56_spill] sm:$0xff] %v12369_v15 }
 0x10b   :  { %v12340_v62 = vadd.f32 %v2441_v36, %v2338_v23  ;;  %v6094_v49 = vmax.f32 %v2633_v61, 0.0 }
 0x10c   :  { %18724 = vst [vmem:[#allocation55_spill] sm:$0xff] %v12367_v22 }
 0x10e   :  { %v2535_v40 = vpop.f32.mrf.mxu2 }
 0x10f   :  { %v2536_v54 = vadd.f32 %v2535_v40, %v12238_v37  ;;  %v10998_v40 = vld [vmem:[%s18546_s0 + $0x1ac] sm:$0xf] }
 0x110   :  { %v2634_v34 = vpop.f32.mrf.mxu3  ;;  %v2340_v36 = vpop.f32.mrf.mxu0 }
 0x111   :  { %v2635_v23 = vadd.f32 %v2634_v34, %v2531_v43  ;;  %v2341_v0 = vadd.f32 %v2340_v36, %v11965_v41  ;;  %v9133_v34 = vld [vmem:[%s18546_s0 + $0x1b8] sm:$0xf0]  ;;  %v11129_v36 = vld [vmem:[%s18544_s1 + $0x364] sm:$0xf] }
 0x112   :  { %v2444_v38 = vpop.f32.mrf.mxu1 }
 0x113   :  { %v6103_v1 = vmax.f32 %v2635_v23, 0.0  ;;  %v12374_v63 = vadd.f32 %v2444_v38, %v2341_v0  ;;  %2577 = vmatmul.bf16.gmra.mxu2 %v12367_v22  ;;  %2725 = vmatmul.bf16.gmra.mxu0 %v11674_v39  ;;  %v11138_v0 = vld [vmem:[%s18544_s1 + $0x3ac] sm:$0xf] }
 0x115   :  { %2483 = vmatmul.bf16.gmra.mxu1 %v12369_v15  ;;  %2676 = vmatmul.bf16.gmra.mxu3 %v12371_v2  ;;  %v12380_v37 = vpack.c.bf16 %v6103_v1, %v6094_v49  ;;  %v9692_v1 = vor.u32 %v11138_v0, %v9689_v33  ;;  %v9147_v49 = vld [vmem:[%s18546_s0 + $0x1c8] sm:$0xf] }
 0x116   :  { %v2538_v43 = vpop.f32.mrf.mxu2 }
 0x117   :  { %18727 = vst [vmem:[#allocation58_spill] sm:$0xff] %v12380_v37  ;;  %v2539_v30 = vadd.f32 %v2538_v43, %v12274_v12  ;;  %v11009_v12 = vld [vmem:[%s18546_s0 + $0x204] sm:$0xf]  ;;  %2818 = vmatpush.bf16.msrb.mxu1 %v9692_v1  ;;  %v9653_v43 = vld [vmem:[%s18544_s1 + $0x384] sm:$0xf0]  ;;  %v12421_v1 = vor.u32 %v10998_v40, %v9133_v34 }
 0x118   :  { %v2637_v10 = vpop.f32.mrf.mxu3  ;;  %v2342_v6 = vpop.f32.mrf.mxu0  ;;  %v12419_v37 = vor.u32 %v11009_v12, %v9173_v5  ;;  %v11111_v5 = vld [vmem:[%s18544_s1 + $0x2d4] sm:$0xf]  ;;  %v9581_v40 = vld [vmem:[%s18544_s1 + $0x2f4] sm:$0xf0] }
 0x119   :  { %v2638_v24 = vadd.f32 %v2637_v10, %v2534_v18  ;;  %v2343_v61 = vadd.f32 %v2342_v6, %v11965_v41  ;;  %v11004_v18 = vld [vmem:[%s18546_s0 + $0x1d4] sm:$0xf0]  ;;  %18729 = vst [vmem:[#allocation60_spill] sm:$0xff] %v12421_v1 }
 0x11a   :  { %v2446_v38 = vpop.f32.mrf.mxu1  ;;  %18728 = vst [vmem:[#allocation59_spill] sm:$0xff] %v12419_v37 }
 0x11b   :  { %v12390_v53 = vadd.f32 %v2446_v38, %v2343_v61  ;;  %v12417_v61 = vor.u32 %v11004_v18, %v9147_v49  ;;  %v9656_v38 = vor.u32 %v11129_v36, %v9653_v43  ;;  %v6112_v39 = vmax.f32 %v2638_v24, 0.0 }
 0x11c   :  { %v9584_v36 = vor.u32 %v11111_v5, %v9581_v40  ;;  %v9149_v5 = vld [vmem:[%s18546_s0 + $0x1d8] sm:$0xf0] }
 0x11d   :  { %2819 = vmatpush.bf16.msrb.mxu1 %v9656_v38  ;;  %v11282_v38 = vld [vmem:[%s18544_s1 + $0x82c] sm:$0xf] }
 0x11e   :  { %v2540_v23 = vpop.f32.mrf.mxu2 }
 0x11f   :  { %v2541_v10 = vadd.f32 %v2540_v23, %v12284_v48  ;;  %v11120_v48 = vld [vmem:[%s18544_s1 + $0x31c] sm:$0xf] }
 0x120   :  { %v2639_v6 = vpop.f32.mrf.mxu3  ;;  %v2345_v33 = vpop.f32.mrf.mxu0 }
 0x121   :  { %v2640_v0 = vadd.f32 %v2639_v6, %v2536_v54  ;;  %v2346_v2 = vadd.f32 %v2345_v33, %v11965_v41  ;;  %v9617_v54 = vld [vmem:[%s18544_s1 + $0x33c] sm:$0xf0] }
 0x122   :  { %v2449_v15 = vpop.f32.mrf.mxu1  ;;  %v9620_v24 = vor.u32 %v11120_v48, %v9617_v54  ;;  %v9545_v48 = vld [vmem:[%s18544_s1 + $0x2ac] sm:$0xf0]  ;;  %v11013_v54 = vld [vmem:[%s18546_s0 + $0x224] sm:$0xf] }
 0x123   :  { %v6121_v22 = vmax.f32 %v2640_v0, 0.0  ;;  %v12424_v29 = vadd.f32 %v2449_v15, %v2346_v2  ;;  %2582 = vmatmul.bf16.gmra.mxu2 %v12417_v61  ;;  %2730 = vmatmul.bf16.gmra.mxu0 %v11752_v13  ;;  %v11210_v15 = vld [vmem:[%s18544_s1 + $0x5ec] sm:$0xf]  ;;  %v9977_v2 = vld [vmem:[%s18544_s1 + $0x60c] sm:$0xf0] }
 0x124   :  { %v9980_v49 = vor.u32 %v11210_v15, %v9977_v2  ;;  %2820 = vmatpush.bf16.msrb.mxu1 %v9620_v24  ;;  %v10265_v0 = vld [vmem:[%s18544_s1 + $0x84c] sm:$0xf0]  ;;  %v9163_v24 = vld [vmem:[%s18546_s0 + $0x1e8] sm:$0xf]  ;;  %v11008_v15 = vld [vmem:[%s18546_s0 + $0x1f4] sm:$0xf0] }
 0x125   :  { %2488 = vmatmul.bf16.gmra.mxu1 %v12419_v37  ;;  %2681 = vmatmul.bf16.gmra.mxu3 %v12421_v1  ;;  %v12442_v12 = vpack.c.bf16 %v6121_v22, %v6112_v39  ;;  %v9407_v13 = vld [vmem:[%s18544_s1 + $0x170] sm:$0xf] }
 0x126   :  { %v2543_v18 = vpop.f32.mrf.mxu2  ;;  %2922 = vmatpush.bf16.msra.mxu2 %v9980_v49  ;;  %v9189_v49 = vld [vmem:[%s18546_s0 + $0x230] sm:$0xf0] }
 0x127   :  { %18730 = vst [vmem:[#allocation61_spill] sm:$0xff] %v12442_v12  ;;  %v2544_v34 = vadd.f32 %v2543_v18, %v12318_v55  ;;  %v10268_v55 = vor.u32 %v11282_v38, %v10265_v0  ;;  %v11002_v18 = vld [vmem:[%s18546_s0 + $0x1cc] sm:$0xf] }
 0x128   :  { %v2642_v23 = vpop.f32.mrf.mxu3  ;;  %v2347_v6 = vpop.f32.mrf.mxu0  ;;  %2821 = vmatpush.bf16.msrb.mxu1 %v9584_v36  ;;  %v9509_v36 = vld [vmem:[%s18544_s1 + $0x264] sm:$0xf0] }
 0x129   :  { %v2643_v43 = vadd.f32 %v2642_v23, %v2539_v30  ;;  %v2348_v39 = vadd.f32 %v2347_v6, %v11965_v41  ;;  %v11102_v30 = vld [vmem:[%s18544_s1 + $0x28c] sm:$0xf]  ;;  %3026 = vmatpush.bf16.msra.mxu3 %v10268_v55  ;;  %v11093_v23 = vld [vmem:[%s18544_s1 + $0x244] sm:$0xf]  ;;  %v12495_v55 = vor.u32 %v11002_v18, %v9149_v5 }
 0x12a   :  { %v2451_v22 = vpop.f32.mrf.mxu1  ;;  %v9548_v2 = vor.u32 %v11102_v30, %v9545_v48  ;;  %v9512_v38 = vor.u32 %v11093_v23, %v9509_v36  ;;  %v12493_v48 = vor.u32 %v11013_v54, %v9189_v49  ;;  %v9165_v36 = vld [vmem:[%s18546_s0 + $0x1f8] sm:$0xf0] }
 0x12b   :  { %v12458_v33 = vadd.f32 %v2451_v22, %v2348_v39  ;;  %v12491_v22 = vor.u32 %v11008_v15, %v9163_v24  ;;  %18732 = vst [vmem:[#allocation63_spill] sm:$0xff] %v12495_v55  ;;  %v6130_v1 = vmax.f32 %v2643_v43, 0.0 }
 0x12c   :  { %2822 = vmatpush.bf16.msrb.mxu1 %v9548_v2  ;;  %18731 = vst [vmem:[#allocation62_spill] sm:$0xff] %v12493_v48 }
 0x12e   :  { %v2545_v40 = vpop.f32.mrf.mxu2 }
 0x12f   :  { %v2546_v6 = vadd.f32 %v2545_v40, %v12340_v62  ;;  %v11071_v62 = vld [vmem:[%s18544_s1 + $0x190] sm:$0xf0] }
 0x130   :  { %v2644_v39 = vpop.f32.mrf.mxu3  ;;  %v2350_v30 = vpop.f32.mrf.mxu0  ;;  %2823 = vmatpush.bf16.msrb.mxu1 %v9512_v38  ;;  %v9408_v54 = vor.u32 %v11071_v62, %v9407_v13  ;;  %v11017_v13 = vld [vmem:[%s18546_s0 + $0x244] sm:$0xf] }
 0x131   :  { %v2645_v0 = vadd.f32 %v2644_v39, %v2541_v10  ;;  %v2351_v2 = vadd.f32 %v2350_v30, %v11965_v41  ;;  %v11201_v38 = vld [vmem:[%s18544_s1 + $0x5a4] sm:$0xf] }
 0x132   :  { %v2454_v12 = vpop.f32.mrf.mxu1  ;;  %3130 = vmatpush.bf16.msra.mxu0 %v9408_v54 }
 0x133   :  { %v6139_v37 = vmax.f32 %v2645_v0, 0.0  ;;  %v12504_v10 = vadd.f32 %v2454_v12, %v2351_v2  ;;  %2587 = vmatmul.bf16.gmra.mxu2 %v12491_v22  ;;  %2735 = vmatmul.bf16.gmra.mxu0 %v11788_v25  ;;  %v9941_v0 = vld [vmem:[%s18544_s1 + $0x5c4] sm:$0xf0] }
 0x134   :  { %v9944_v54 = vor.u32 %v11201_v38, %v9941_v0 }
 0x135   :  { %2493 = vmatmul.bf16.gmra.mxu1 %v12493_v48  ;;  %2686 = vmatmul.bf16.gmra.mxu3 %v12495_v55  ;;  %v12510_v43 = vpack.c.bf16 %v6139_v37, %v6130_v1  ;;  %v9179_v37 = vld [vmem:[%s18546_s0 + $0x208] sm:$0xf]  ;;  %v9205_v1 = vld [vmem:[%s18546_s0 + $0x250] sm:$0xf0] }
 0x136   :  { %v2548_v24 = vpop.f32.mrf.mxu2  ;;  %2923 = vmatpush.bf16.msra.mxu2 %v9944_v54  ;;  %v9833_v54 = vld [vmem:[%s18544_s1 + $0x4ec] sm:$0xf0] }
 0x137   :  { %18733 = vst [vmem:[#allocation64_spill] sm:$0xff] %v12510_v43  ;;  %v2549_v15 = vadd.f32 %v2548_v24, %v12374_v63  ;;  %v11012_v63 = vld [vmem:[%s18546_s0 + $0x214] sm:$0xf0] }
 0x138   :  { %v2647_v49 = vpop.f32.mrf.mxu3  ;;  %v2352_v5 = vpop.f32.mrf.mxu0  ;;  %v12541_v62 = vor.u32 %v11012_v63, %v9179_v37  ;;  %v9869_v63 = vld [vmem:[%s18544_s1 + $0x534] sm:$0xf0] }
 0x139   :  { %v2648_v18 = vadd.f32 %v2647_v49, %v2544_v34  ;;  %v2353_v12 = vadd.f32 %v2352_v5, %v11965_v41  ;;  %v11006_v34 = vld [vmem:[%s18546_s0 + $0x1ec] sm:$0xf]  ;;  %v12543_v5 = vor.u32 %v11017_v13, %v9205_v1 }
 0x13a   :  { %v2456_v40 = vpop.f32.mrf.mxu1 }
 0x13b   :  { %v12514_v23 = vadd.f32 %v2456_v40, %v2353_v12  ;;  %18734 = vst [vmem:[#allocation65_spill] sm:$0xff] %v12543_v5  ;;  %v12545_v12 = vor.u32 %v11006_v34, %v9165_v36  ;;  %v6148_v55 = vmax.f32 %v2648_v18, 0.0 }
 0x13d   :  { %18735 = vst [vmem:[#allocation66_spill] sm:$0xff] %v12545_v12 }
 0x13e   :  { %v2550_v39 = vpop.f32.mrf.mxu2 }
 0x13f   :  { %v2551_v30 = vadd.f32 %v2550_v39, %v12390_v53  ;;  %v11192_v53 = vld [vmem:[%s18544_s1 + $0x55c] sm:$0xf] }
 0x140   :  { %v2649_v2 = vpop.f32.mrf.mxu3  ;;  %v2355_v49 = vpop.f32.mrf.mxu0 }
 0x141   :  { %v2650_v24 = vadd.f32 %v2649_v2, %v2546_v6  ;;  %v2356_v40 = vadd.f32 %v2355_v49, %v11965_v41  ;;  %v9905_v6 = vld [vmem:[%s18544_s1 + $0x57c] sm:$0xf0] }
 0x142   :  { %v2459_v43 = vpop.f32.mrf.mxu1  ;;  %v9908_v18 = vor.u32 %v11192_v53, %v9905_v6  ;;  %v11016_v53 = vld [vmem:[%s18546_s0 + $0x234] sm:$0xf0] }
 0x143   :  { %v6157_v48 = vmax.f32 %v2650_v24, 0.0  ;;  %v12551_v39 = vadd.f32 %v2459_v43, %v2356_v40  ;;  %2592 = vmatmul.bf16.gmra.mxu2 %v12541_v62  ;;  %2740 = vmatmul.bf16.gmra.mxu0 %v11830_v42  ;;  %v11183_v43 = vld [vmem:[%s18544_s1 + $0x514] sm:$0xf]  ;;  %v9195_v40 = vld [vmem:[%s18546_s0 + $0x228] sm:$0xf] }
 0x144   :  { %2924 = vmatpush.bf16.msra.mxu2 %v9908_v18  ;;  %v9872_v36 = vor.u32 %v11183_v43, %v9869_v63  ;;  %v11010_v18 = vld [vmem:[%s18546_s0 + $0x20c] sm:$0xf]  ;;  %v11165_v63 = vld [vmem:[%s18544_s1 + $0x484] sm:$0xf] }
 0x145   :  { %2498 = vmatmul.bf16.gmra.mxu1 %v12543_v5  ;;  %2691 = vmatmul.bf16.gmra.mxu3 %v12545_v12  ;;  %v12560_v13 = vpack.c.bf16 %v6157_v48, %v6148_v55  ;;  %v11174_v55 = vld [vmem:[%s18544_s1 + $0x4cc] sm:$0xf]  ;;  %v11264_v12 = vld [vmem:[%s18544_s1 + $0x79c] sm:$0xf] }
 0x146   :  { %v2553_v37 = vpop.f32.mrf.mxu2  ;;  %v9836_v49 = vor.u32 %v11174_v55, %v9833_v54 }
 0x147   :  { %18736 = vst [vmem:[#allocation67_spill] sm:$0xff] %v12560_v13  ;;  %v2554_v1 = vadd.f32 %v2553_v37, %v12424_v29  ;;  %v11273_v29 = vld [vmem:[%s18544_s1 + $0x7e4] sm:$0xf]  ;;  %v9181_v37 = vld [vmem:[%s18546_s0 + $0x218] sm:$0xf0] }
 0x148   :  { %v2652_v34 = vpop.f32.mrf.mxu3  ;;  %v2357_v0 = vpop.f32.mrf.mxu0  ;;  %2925 = vmatpush.bf16.msra.mxu2 %v9872_v36 }
 0x149   :  { %v2653_v38 = vadd.f32 %v2652_v34, %v2549_v15  ;;  %v2358_v2 = vadd.f32 %v2357_v0, %v11965_v41  ;;  %v10229_v15 = vld [vmem:[%s18544_s1 + $0x804] sm:$0xf0] }
 0x14a   :  { %v2461_v48 = vpop.f32.mrf.mxu1  ;;  %v10232_v6 = vor.u32 %v11273_v29, %v10229_v15  ;;  %v9797_v34 = vld [vmem:[%s18544_s1 + $0x4a4] sm:$0xf0]  ;;  %v12605_v29 = vor.u32 %v11010_v18, %v9181_v37 }
 0x14b   :  { %v12576_v24 = vadd.f32 %v2461_v48, %v2358_v2  ;;  %v12603_v2 = vor.u32 %v11016_v53, %v9195_v40  ;;  %v9800_v48 = vor.u32 %v11165_v63, %v9797_v34  ;;  %v11062_v53 = vld [vmem:[%s18544_s1 + $0x148] sm:$0xf0]  ;;  %v10157_v63 = vld [vmem:[%s18544_s1 + $0x774] sm:$0xf0] }
 0x14c   :  { %2926 = vmatpush.bf16.msra.mxu2 %v9836_v49  ;;  %3027 = vmatpush.bf16.msra.mxu3 %v10232_v6  ;;  %18738 = vst [vmem:[#allocation69_spill] sm:$0xff] %v12605_v29  ;;  %v6166_v6 = vmax.f32 %v2653_v38, 0.0  ;;  %v9371_v38 = vld [vmem:[%s18544_s1 + $0x128] sm:$0xf] }
 0x14d   :  { %18737 = vst [vmem:[#allocation68_spill] sm:$0xff] %v12603_v2  ;;  %v9372_v37 = vor.u32 %v11062_v53, %v9371_v38  ;;  %v11014_v38 = vld [vmem:[%s18546_s0 + $0x22c] sm:$0xf]  ;;  %v9197_v53 = vld [vmem:[%s18546_s0 + $0x238] sm:$0xf0] }
 0x14e   :  { %v2555_v43 = vpop.f32.mrf.mxu2 }
 0x14f   :  { %v2556_v36 = vadd.f32 %v2555_v43, %v12458_v33  ;;  %v10193_v33 = vld [vmem:[%s18544_s1 + $0x7bc] sm:$0xf0]  ;;  %3131 = vmatpush.bf16.msra.mxu0 %v9372_v37 }
 0x150   :  { %v2654_v0 = vpop.f32.mrf.mxu3  ;;  %v2360_v54 = vpop.f32.mrf.mxu0  ;;  %2927 = vmatpush.bf16.msra.mxu2 %v9800_v48 }
 0x151   :  { %v2655_v55 = vadd.f32 %v2654_v0, %v2551_v30  ;;  %v2361_v49 = vadd.f32 %v2360_v54, %v11965_v41  ;;  %v10196_v30 = vor.u32 %v11264_v12, %v10193_v33  ;;  %v11255_v12 = vld [vmem:[%s18544_s1 + $0x754] sm:$0xf] }
 0x152   :  { %v2464_v15 = vpop.f32.mrf.mxu1  ;;  %v10160_v48 = vor.u32 %v11255_v12, %v10157_v63  ;;  %v10085_v12 = vld [vmem:[%s18544_s1 + $0x6e4] sm:$0xf0] }
 0x153   :  { %v6175_v13 = vmax.f32 %v2655_v55, 0.0  ;;  %v12614_v40 = vadd.f32 %v2464_v15, %v2361_v49  ;;  %2597 = vmatmul.bf16.gmra.mxu2 %v12603_v2  ;;  %2745 = vmatmul.bf16.gmra.mxu0 %v11866_v56  ;;  %v11246_v15 = vld [vmem:[%s18544_s1 + $0x70c] sm:$0xf] }
 0x154   :  { %3028 = vmatpush.bf16.msra.mxu3 %v10196_v30  ;;  %v11020_v30 = vld [vmem:[%s18546_s0 + $0x254] sm:$0xf0] }
 0x155   :  { %2696 = vmatmul.bf16.gmra.mxu3 %v12605_v29  ;;  %2824 = vmatmul.bf16.vlgmr.msrb.gmra.mxu1 %v11602_v7  ;;  %v12626_v18 = vpack.c.bf16 %v6175_v13, %v6166_v6  ;;  %v10121_v6 = vld [vmem:[%s18544_s1 + $0x72c] sm:$0xf0] }
 0x156   :  { %v2558_v43 = vpop.f32.mrf.mxu2 }
 0x157   :  { %18739 = vst [vmem:[#allocation70_spill] sm:$0xff] %v12626_v18  ;;  %v2559_v34 = vadd.f32 %v2558_v43, %v12504_v10  ;;  %v10124_v10 = vor.u32 %v11246_v15, %v10121_v6  ;;  %v11237_v43 = vld [vmem:[%s18544_s1 + $0x6c4] sm:$0xf]  ;;  %v12665_v15 = vor.u32 %v11014_v38, %v9197_v53 }
 0x158   :  { %v2657_v0 = vpop.f32.mrf.mxu3  ;;  %v2362_v54 = vpop.f32.mrf.mxu0  ;;  %3029 = vmatpush.bf16.msra.mxu3 %v10160_v48 }
 0x159   :  { %v2658_v55 = vadd.f32 %v2657_v0, %v2554_v1  ;;  %v2363_v13 = vadd.f32 %v2362_v54, %v11965_v41  ;;  %v9211_v1 = vld [vmem:[%s18546_s0 + $0x248] sm:$0xf]  ;;  %v10088_v54 = vor.u32 %v11237_v43, %v10085_v12  ;;  %18740 = vst [vmem:[#allocation71_spill] sm:$0xff] %v12665_v15  ;;  %v11018_v12 = vld [vmem:[%s18546_s0 + $0x24c] sm:$0xf] }
 0x15a   :  { %v2466_v49 = vpop.f32.mrf.mxu1  ;;  %v12663_v48 = vor.u32 %v11020_v30, %v9211_v1 }
 0x15b   :  { %v12642_v33 = vadd.f32 %v2466_v49, %v2363_v13  ;;  %v6184_v18 = vmax.f32 %v2658_v55, 0.0 }
 0x15c   :  { %3030 = vmatpush.bf16.msra.mxu3 %v10124_v10 }
 0x15e   :  { %v2560_v37 = vpop.f32.mrf.mxu2 }
 0x15f   :  { %v2561_v63 = vadd.f32 %v2560_v37, %v12514_v23 }
 0x160   :  { %v2659_v0 = vpop.f32.mrf.mxu3  ;;  %v2365_v49 = vpop.f32.mrf.mxu0  ;;  %3031 = vmatpush.bf16.msra.mxu3 %v10088_v54 }
 0x161   :  { %v2660_v13 = vadd.f32 %v2659_v0, %v2556_v36  ;;  %v2366_v6 = vadd.f32 %v2365_v49, %v11965_v41  ;;  %v9213_v0 = vld [vmem:[%s18546_s0 + $0x258] sm:$0xf0] }
 0x162   :  { %v2469_v10 = vpop.f32.mrf.mxu1 }
 0x163   :  { %v6193_v7 = vmax.f32 %v2660_v13, 0.0  ;;  %v2470_v29 = vadd.f32 %v2469_v10, %v2366_v6  ;;  %2602 = vmatmul.bf16.gmra.mxu2 %v12663_v48  ;;  %2750 = vmatmul.bf16.gmra.mxu0 %v11908_v11 }
 0x165   :  { %2701 = vmatmul.bf16.gmra.mxu3 %v12665_v15  ;;  %2829 = vmatmul.bf16.gmra.mxu1 %v11686_v44  ;;  %v12672_v23 = vpack.c.bf16 %v6193_v7, %v6184_v18 }
 0x166   :  { %v2563_v36 = vpop.f32.mrf.mxu2 }
 0x167   :  { %18741 = vst [vmem:[#allocation72_spill] sm:$0xff] %v12672_v23  ;;  %v2564_v1 = vadd.f32 %v2563_v36, %v12551_v39  ;;  %v18746_v23 = vld [vmem:[#allocation38_spill] sm:$0xff] }
 0x168   :  { %v2662_v30 = vpop.f32.mrf.mxu3  ;;  %v2367_v53 = vpop.f32.mrf.mxu0 }
 0x169   :  { %v2663_v38 = vadd.f32 %v2662_v30, %v2559_v34  ;;  %v2368_v55 = vadd.f32 %v2367_v53, %v11965_v41  ;;  %v12683_v34 = vor.u32 %v11018_v12, %v9213_v0 }
 0x16a   :  { %v2471_v37 = vpop.f32.mrf.mxu1 }
 0x16b   :  { %v2472_v43 = vadd.f32 %v2471_v37, %v2368_v55  ;;  %v6202_v10 = vmax.f32 %v2663_v38, 0.0 }
 0x16e   :  { %v2565_v7 = vpop.f32.mrf.mxu2 }
 0x16f   :  { %v2566_v18 = vadd.f32 %v2565_v7, %v12576_v24  ;;  %v9335_v7 = vld [vmem:[%s18544_s1 + $0xe0] sm:$0xf] }
 0x170   :  { %v2664_v54 = vpop.f32.mrf.mxu3  ;;  %v2370_v13 = vpop.f32.mrf.mxu0 }
 0x171   :  { %v2665_v39 = vadd.f32 %v2664_v54, %v2561_v63  ;;  %v2371_v49 = vadd.f32 %v2370_v13, %v11965_v41  ;;  %v11053_v54 = vld [vmem:[%s18544_s1 + $0x100] sm:$0xf0] }
 0x172   :  { %v2474_v6 = vpop.f32.mrf.mxu1  ;;  %v9336_v13 = vor.u32 %v11053_v54, %v9335_v7 }
 0x173   :  { %v6211_v36 = vmax.f32 %v2665_v39, 0.0  ;;  %v2475_v30 = vadd.f32 %v2474_v6, %v2371_v49  ;;  %2755 = vmatmul.bf16.gmra.mxu0 %v11944_v31  ;;  %2928 = vmatmul.bf16.vlgmr.msra.gmra.mxu2 %v11754_v14 }
 0x174   :  { %3132 = vmatpush.bf16.msra.mxu0 %v9336_v13 }
 0x175   :  { %2706 = vmatmul.bf16.gmra.mxu3 %v12683_v34  ;;  %2834 = vmatmul.bf16.gmra.mxu1 %v11758_v16  ;;  %v12690_v24 = vpack.c.bf16 %v6211_v36, %v6202_v10 }
 0x176   :  { %v2568_v63 = vpop.f32.mrf.mxu2 }
 0x177   :  { %18742 = vst [vmem:[#allocation73_spill] sm:$0xff] %v12690_v24  ;;  %v2569_v53 = vadd.f32 %v2568_v63, %v12614_v40 }
 0x178   :  { %v2667_v55 = vpop.f32.mrf.mxu3  ;;  %v2372_v12 = vpop.f32.mrf.mxu0 }
 0x179   :  { %v2668_v37 = vadd.f32 %v2667_v55, %v2564_v1  ;;  %v2373_v38 = vadd.f32 %v2372_v12, %v11965_v41  ;;  %v2376_v1 = vadd.f32 %v12006_v8, %v11965_v41 }
 0x17a   :  { %v2476_v0 = vpop.f32.mrf.mxu1 }
 0x17b   :  { %v2477_v39 = vadd.f32 %v2476_v0, %v2373_v38  ;;  %v6220_v55 = vmax.f32 %v2668_v37, 0.0 }
 0x17e   :  { %v2570_v49 = vpop.f32.mrf.mxu2 }
 0x17f   :  { %v2571_v40 = vadd.f32 %v2570_v49, %v12642_v33 }
 0x180   :  { %v2669_v6 = vpop.f32.mrf.mxu3  ;;  %v12703_v36 = vpop.f32.mrf.mxu0 }
 0x181   :  { %v2670_v10 = vadd.f32 %v2669_v6, %v2566_v18  ;;  %v2378_v18 = vadd.f32 %v12043_v50, %v11965_v41 }
 0x182   :  { %v2479_v63 = vpop.f32.mrf.mxu1 }
 0x183   :  { %v6229_v12 = vmax.f32 %v2670_v10, 0.0  ;;  %v2480_v24 = vadd.f32 %v2479_v63, %v2376_v1  ;;  %2760 = vmatmul.bf16.gmra.mxu0 %v11991_v60  ;;  %2933 = vmatmul.bf16.gmra.mxu2 %v11790_v26  ;;  %v2381_v10 = vadd.f32 %v12062_v19, %v11965_v41 }
 0x185   :  { %2839 = vmatmul.bf16.gmra.mxu1 %v11792_v27  ;;  %3032 = vmatmul.bf16.vlgmr.msra.gmra.mxu3 %v11794_v28  ;;  %v12709_v33 = vpack.c.bf16 %v6229_v12, %v6220_v55 }
 0x186   :  { %v2573_v38 = vpop.f32.mrf.mxu2 }
 0x187   :  { %18743 = vst [vmem:[#allocation74_spill] sm:$0xff] %v12709_v33  ;;  %v2574_v0 = vadd.f32 %v2573_v38, %v2470_v29 }
 0x188   :  { %v2672_v8 = vpop.f32.mrf.mxu3  ;;  %v12713_v37 = vpop.f32.mrf.mxu0 }
 0x189   :  { %v2673_v7 = vadd.f32 %v2672_v8, %v2569_v53 }
 0x18a   :  { %v2481_v54 = vpop.f32.mrf.mxu1 }
 0x18b   :  { %v2482_v13 = vadd.f32 %v2481_v54, %v2378_v18  ;;  %v6238_v29 = vmax.f32 %v2673_v7, 0.0 }
 0x18e   :  { %v2575_v49 = vpop.f32.mrf.mxu2 }
 0x18f   :  { %v2576_v6 = vadd.f32 %v2575_v49, %v2472_v43 }
 0x190   :  { %v2674_v1 = vpop.f32.mrf.mxu3  ;;  %v12717_v55 = vpop.f32.mrf.mxu0 }
 0x191   :  { %v2675_v63 = vadd.f32 %v2674_v1, %v2571_v40  ;;  %v2383_v40 = vadd.f32 %v12093_v3, %v11965_v41  ;;  %v9299_v3 = vld [vmem:[%s18544_s1 + $0x98] sm:$0xf] }
 0x192   :  { %v2484_v12 = vpop.f32.mrf.mxu1 }
 0x193   :  { %v6247_v38 = vmax.f32 %v2675_v63, 0.0  ;;  %v2485_v33 = vadd.f32 %v2484_v12, %v2381_v10  ;;  %2765 = vmatmul.bf16.gmra.mxu0 %v12047_v52  ;;  %2938 = vmatmul.bf16.gmra.mxu2 %v11832_v45  ;;  %v2386_v63 = vadd.f32 %v12008_v9, %v11965_v41 }
 0x195   :  { %2844 = vmatmul.bf16.gmra.mxu1 %v11834_v46  ;;  %3037 = vmatmul.bf16.gmra.mxu3 %v11836_v47  ;;  %v12723_v50 = vpack.c.bf16 %v6247_v38, %v6238_v29 }
 0x196   :  { %v2578_v43 = vpop.f32.mrf.mxu2 }
 0x197   :  { %18744 = vst [vmem:[#allocation75_spill] sm:$0xff] %v12723_v50  ;;  %v2579_v53 = vadd.f32 %v2578_v43, %v2475_v30 }
 0x198   :  { %v2677_v19 = vpop.f32.mrf.mxu3  ;;  %v12727_v18 = vpop.f32.mrf.mxu0 }
 0x199   :  { %v2678_v8 = vadd.f32 %v2677_v19, %v2574_v0  ;;  %v11044_v0 = vld [vmem:[%s18544_s1 + $0xb8] sm:$0xf0] }
 0x19a   :  { %v2486_v7 = vpop.f32.mrf.mxu1  ;;  %v9300_v9 = vor.u32 %v11044_v0, %v9299_v3  ;;  %v2391_v0 = vadd.f32 %v12064_v20, %v11965_v41 }
 0x19b   :  { %v2487_v54 = vadd.f32 %v2486_v7, %v2383_v40  ;;  %v6256_v30 = vmax.f32 %v2678_v8, 0.0  ;;  %v2388_v8 = vadd.f32 %v12045_v51, %v11965_v41  ;;  %v18747_v51 = vld [vmem:[#allocation19_spill] sm:$0xff] }
 0x19c   :  { %3133 = vmatpush.bf16.msra.mxu0 %v9300_v9 }
 0x19e   :  { %v2580_v49 = vpop.f32.mrf.mxu2 }
 0x19f   :  { %v2581_v1 = vadd.f32 %v2580_v49, %v2477_v39 }
 0x1a0   :  { %v2679_v10 = vpop.f32.mrf.mxu3  ;;  %v12731_v29 = vpop.f32.mrf.mxu0 }
 0x1a1   :  { %v2680_v12 = vadd.f32 %v2679_v10, %v2576_v6 }
 0x1a2   :  { %v2489_v38 = vpop.f32.mrf.mxu1 }
 0x1a3   :  { %v6265_v43 = vmax.f32 %v2680_v12, 0.0  ;;  %v2490_v50 = vadd.f32 %v2489_v38, %v2386_v63  ;;  %2770 = vmatmul.bf16.gmra.mxu0 %v12097_v21  ;;  %2943 = vmatmul.bf16.gmra.mxu2 %v11868_v57 }
 0x1a5   :  { %2849 = vmatmul.bf16.gmra.mxu1 %v11870_v58  ;;  %3042 = vmatmul.bf16.gmra.mxu3 %v11872_v59  ;;  %v12743_v39 = vpack.c.bf16 %v6265_v43, %v6256_v30 }
 0x1a6   :  { %v2583_v6 = vpop.f32.mrf.mxu2 }
 0x1a7   :  { %18745 = vst [vmem:[#allocation76_spill] sm:$0xff] %v12743_v39  ;;  %v2584_v19 = vadd.f32 %v2583_v6, %v2480_v24 }
 0x1a8   :  { %v2682_v40 = vpop.f32.mrf.mxu3  ;;  %v12747_v49 = vpop.f32.mrf.mxu0 }
 0x1a9   :  { %v2683_v7 = vadd.f32 %v2682_v40, %v2579_v53  ;;  %v18748_v53 = vld [vmem:[#allocation20_spill] sm:$0xff]  ;;  %v18749_v40 = vld [vmem:[#allocation21_spill] sm:$0xff] }
 0x1aa   :  { %v2491_v10 = vpop.f32.mrf.mxu1 }
 0x1ab   :  { %v2492_v63 = vadd.f32 %v2491_v10, %v2388_v8  ;;  %v6274_v24 = vmax.f32 %v2683_v7, 0.0 }
 0x1ae   :  { %v2585_v12 = vpop.f32.mrf.mxu2 }
 0x1af   :  { %v2586_v38 = vadd.f32 %v2585_v12, %v2482_v13 }
 0x1b0   :  { %v2684_v3 = vpop.f32.mrf.mxu3  ;;  %v12751_v43 = vpop.f32.mrf.mxu0 }
 0x1b1   :  { %v2685_v30 = vadd.f32 %v2684_v3, %v2581_v1  ;;  %v18751_v1 = vld [vmem:[#allocation31_spill] sm:$0xff] }
 0x1b2   :  { %v2494_v9 = vpop.f32.mrf.mxu1  ;;  %v2393_v12 = vadd.f32 %v18751_v1, %v11965_v41  ;;  %v18755_v1 = vld [vmem:[#allocation24_spill] sm:$0xff] }
 0x1b3   :  { %v6283_v6 = vmax.f32 %v2685_v30, 0.0  ;;  %v2495_v39 = vadd.f32 %v2494_v9, %v2391_v0  ;;  %2775 = vmatmul.bf16.gmra.mxu0 %v18746_v23  ;;  %2948 = vmatmul.bf16.gmra.mxu2 %v18747_v51 }
 0x1b5   :  { %2854 = vmatmul.bf16.gmra.mxu1 %v18748_v53  ;;  %3047 = vmatmul.bf16.gmra.mxu3 %v18749_v40  ;;  %v12757_v13 = vpack.c.bf16 %v6283_v6, %v6274_v24  ;;  %v18752_v53 = vld [vmem:[#allocation36_spill] sm:$0xff] }
 0x1b6   :  { %v2588_v8 = vpop.f32.mrf.mxu2  ;;  %v2396_v59 = vadd.f32 %v18752_v53, %v11965_v41 }
 0x1b7   :  { %18750 = vst [vmem:[#allocation77_spill] sm:$0xff] %v12757_v13  ;;  %v2589_v10 = vadd.f32 %v2588_v8, %v2485_v33 }
 0x1b8   :  { %v2687_v20 = vpop.f32.mrf.mxu3  ;;  %v12761_v7 = vpop.f32.mrf.mxu0 }
 0x1b9   :  { %v2688_v3 = vadd.f32 %v2687_v20, %v2584_v19  ;;  %v18753_v19 = vld [vmem:[#allocation22_spill] sm:$0xff]  ;;  %v18754_v20 = vld [vmem:[#allocation23_spill] sm:$0xff] }
 0x1ba   :  { %v2496_v0 = vpop.f32.mrf.mxu1 }
 0x1bb   :  { %v2497_v30 = vadd.f32 %v2496_v0, %v2393_v12  ;;  %v6292_v33 = vmax.f32 %v2688_v3, 0.0 }
 0x1be   :  { %v2590_v9 = vpop.f32.mrf.mxu2 }
 0x1bf   :  { %v2591_v23 = vadd.f32 %v2590_v9, %v2487_v54 }
 0x1c0   :  { %v2689_v51 = vpop.f32.mrf.mxu3  ;;  %v12765_v24 = vpop.f32.mrf.mxu0 }
 0x1c1   :  { %v2690_v40 = vadd.f32 %v2689_v51, %v2586_v38  ;;  %v18757_v38 = vld [vmem:[#allocation37_spill] sm:$0xff] }
 0x1c2   :  { %v2499_v6 = vpop.f32.mrf.mxu1  ;;  %v2398_v51 = vadd.f32 %v18757_v38, %v11965_v41 }
 0x1c3   :  { %v6301_v8 = vmax.f32 %v2690_v40, 0.0  ;;  %v2500_v13 = vadd.f32 %v2499_v6, %v2396_v59  ;;  %2780 = vmatmul.bf16.gmra.mxu0 %v12213_v35  ;;  %2953 = vmatmul.bf16.gmra.mxu2 %v18753_v19  ;;  %v9263_v6 = vld [vmem:[%s18544_s1 + $0x50] sm:$0xf]  ;;  %v18762_v35 = vld [vmem:[#allocation3_spill] sm:$0xff] }
 0x1c5   :  { %2859 = vmatmul.bf16.gmra.mxu1 %v18754_v20  ;;  %3052 = vmatmul.bf16.gmra.mxu3 %v18755_v1  ;;  %v12771_v54 = vpack.c.bf16 %v6301_v8, %v6292_v33  ;;  %v11035_v33 = vld [vmem:[%s18544_s1 + $0x70] sm:$0xf0] }
 0x1c6   :  { %v2593_v12 = vpop.f32.mrf.mxu2  ;;  %v9264_v8 = vor.u32 %v11035_v33, %v9263_v6  ;;  %v18758_v33 = vld [vmem:[#allocation25_spill] sm:$0xff] }
 0x1c7   :  { %18756 = vst [vmem:[#allocation31_spill] sm:$0xff] %v12771_v54  ;;  %v2594_v0 = vadd.f32 %v2593_v12, %v2490_v50  ;;  %v11399_v50 = vld [vmem:[%s18545_s2] sm:$0xff] }
 0x1c8   :  { %v2692_v53 = vpop.f32.mrf.mxu3  ;;  %v12775_v3 = vpop.f32.mrf.mxu0  ;;  %v12786_v12 = vperm.slane %v11399_v50, 1  ;;  %3134 = vmatpush.bf16.msra.mxu0 %v9264_v8  ;;  %v18759_v50 = vld [vmem:[#allocation26_spill] sm:$0xff]  ;;  %v18760_v8 = vld [vmem:[#allocation27_spill] sm:$0xff] }
 0x1c9   :  { %v2693_v9 = vadd.f32 %v2692_v53, %v2589_v10 }
 0x1ca   :  { %v2501_v59 = vpop.f32.mrf.mxu1  ;;  %v2722_v38 = vadd.f32 %v12703_v36, %v12786_v12 }
 0x1cb   :  { %v2502_v40 = vadd.f32 %v2501_v59, %v2398_v51  ;;  %v6310_v1 = vmax.f32 %v2693_v9, 0.0 }
 0x1ce   :  { %v2595_v41 = vpop.f32.mrf.mxu2 }
 0x1cf   :  { %v2596_v10 = vadd.f32 %v2595_v41, %v2492_v63 }
 0x1d0   :  { %v2694_v53 = vpop.f32.mrf.mxu3  ;;  %v12790_v59 = vpop.f32.mrf.mxu0 }
 0x1d1   :  { %v2695_v51 = vadd.f32 %v2694_v53, %v2591_v23  ;;  %v2724_v23 = vadd.f32 %v12713_v37, %v12786_v12  ;;  %v18763_v37 = vld [vmem:[#allocation28_spill] sm:$0xff] }
 0x1d2   :  { %v2825_v54 = vpop.f32.mrf.mxu1 }
 0x1d3   :  { %v6319_v20 = vmax.f32 %v2695_v51, 0.0  ;;  %v2826_v6 = vadd.f32 %v2825_v54, %v2722_v38  ;;  %2785 = vmatmul.bf16.gmra.mxu0 %v12265_v32  ;;  %2958 = vmatmul.bf16.gmra.mxu2 %v18758_v33 }
 0x1d5   :  { %2864 = vmatmul.bf16.gmra.mxu1 %v18759_v50  ;;  %3057 = vmatmul.bf16.gmra.mxu3 %v18760_v8  ;;  %v12796_v63 = vpack.c.bf16 %v6319_v20, %v6310_v1  ;;  %v2727_v50 = vadd.f32 %v12717_v55, %v12786_v12 }
 0x1d6   :  { %v2598_v41 = vpop.f32.mrf.mxu2 }
 0x1d7   :  { %18761 = vst [vmem:[#allocation36_spill] sm:$0xff] %v12796_v63  ;;  %v2599_v19 = vadd.f32 %v2598_v41, %v2495_v39 }
 0x1d8   :  { %v2697_v36 = vpop.f32.mrf.mxu3  ;;  %v12800_v9 = vpop.f32.mrf.mxu0 }
 0x1d9   :  { %v2698_v53 = vadd.f32 %v2697_v36, %v2594_v0  ;;  %v18764_v0 = vld [vmem:[#allocation29_spill] sm:$0xff]  ;;  %v18765_v36 = vld [vmem:[#allocation30_spill] sm:$0xff] }
 0x1da   :  { %v2827_v54 = vpop.f32.mrf.mxu1 }
 0x1db   :  { %v2828_v38 = vadd.f32 %v2827_v54, %v2724_v23  ;;  %v6328_v39 = vmax.f32 %v2698_v53, 0.0 }
 0x1de   :  { %v2600_v51 = vpop.f32.mrf.mxu2 }
 0x1df   :  { %v2601_v32 = vadd.f32 %v2600_v51, %v2497_v30  ;;  %v9227_v51 = vld [vmem:[%s18544_s1 + $0x8] sm:$0xf] }
 0x1e0   :  { %v2699_v33 = vpop.f32.mrf.mxu3  ;;  %v12804_v20 = vpop.f32.mrf.mxu0 }
 0x1e1   :  { %v2700_v8 = vadd.f32 %v2699_v33, %v2596_v10  ;;  %v2729_v10 = vadd.f32 %v12727_v18, %v12786_v12  ;;  %v2732_v18 = vadd.f32 %v12731_v29, %v12786_v12 }
 0x1e2   :  { %v2830_v1 = vpop.f32.mrf.mxu1 }
 0x1e3   :  { %v6337_v41 = vmax.f32 %v2700_v8, 0.0  ;;  %v2831_v63 = vadd.f32 %v2830_v1, %v2727_v50  ;;  %2790 = vmatmul.bf16.gmra.mxu0 %v18762_v35  ;;  %2963 = vmatmul.bf16.gmra.mxu2 %v18763_v37  ;;  %v11026_v1 = vld [vmem:[%s18544_s1 + $0x28] sm:$0xf0]  ;;  %v18768_v37 = vld [vmem:[#allocation33_spill] sm:$0xff]  ;;  %v18777_v35 = vld [vmem:[#allocation8_spill] sm:$0xff] }
 0x1e5   :  { %2869 = vmatmul.bf16.gmra.mxu1 %v18764_v0  ;;  %3062 = vmatmul.bf16.gmra.mxu3 %v18765_v36  ;;  %v12810_v30 = vpack.c.bf16 %v6337_v41, %v6328_v39  ;;  %v9228_v39 = vor.u32 %v11026_v1, %v9227_v51  ;;  %v18767_v0 = vld [vmem:[#allocation7_spill] sm:$0xff]  ;;  %v18769_v51 = vld [vmem:[#allocation34_spill] sm:$0xff] }
 0x1e6   :  { %v2603_v23 = vpop.f32.mrf.mxu2  ;;  %v18770_v1 = vld [vmem:[#allocation35_spill] sm:$0xff] }
 0x1e7   :  { %18766 = vst [vmem:[#allocation37_spill] sm:$0xff] %v12810_v30  ;;  %v2604_v54 = vadd.f32 %v2603_v23, %v2500_v13  ;;  %3135 = vmatpush.bf16.msra.mxu0 %v9228_v39 }
 0x1e8   :  { %v2702_v55 = vpop.f32.mrf.mxu3  ;;  %v12814_v53 = vpop.f32.mrf.mxu0 }
 0x1e9   :  { %v2703_v33 = vadd.f32 %v2702_v55, %v2599_v19 }
 0x1ea   :  { %v2832_v50 = vpop.f32.mrf.mxu1 }
 0x1eb   :  { %v12816_v8 = vadd.f32 %v2832_v50, %v2729_v10  ;;  %v6346_v50 = vmax.f32 %v2703_v33, 0.0 }
 0x1ee   :  { %v2605_v13 = vpop.f32.mrf.mxu2 }
 0x1ef   :  { %v2606_v41 = vadd.f32 %v2605_v13, %v2502_v40  ;;  %v2734_v13 = vadd.f32 %v12747_v49, %v12786_v12  ;;  %v18772_v49 = vld [vmem:[#allocation4_spill] sm:$0xff] }
 0x1f0   :  { %v2704_v23 = vpop.f32.mrf.mxu3  ;;  %v12826_v55 = vpop.f32.mrf.mxu0 }
 0x1f1   :  { %v2705_v19 = vadd.f32 %v2704_v23, %v2601_v32 }
 0x1f2   :  { %v2835_v10 = vpop.f32.mrf.mxu1 }
 0x1f3   :  { %v6355_v30 = vmax.f32 %v2705_v19, 0.0  ;;  %v12828_v36 = vadd.f32 %v2835_v10, %v2732_v18  ;;  %2795 = vmatmul.bf16.gmra.mxu0 %v18767_v0  ;;  %2968 = vmatmul.bf16.gmra.mxu2 %v18768_v37 }
 0x1f5   :  { %2874 = vmatmul.bf16.gmra.mxu1 %v18769_v51  ;;  %3067 = vmatmul.bf16.gmra.mxu3 %v18770_v1  ;;  %v12834_v40 = vpack.c.bf16 %v6355_v30, %v6346_v50  ;;  %v2737_v1 = vadd.f32 %v12751_v43, %v12786_v12 }
 0x1f6   :  { %v2929_v39 = vpop.f32.mrf.mxu2 }
 0x1f7   :  { %18771 = vst [vmem:[#allocation78_spill] sm:$0xff] %v12834_v40  ;;  %v2930_v32 = vadd.f32 %v2929_v39, %v2826_v6 }
 0x1f8   :  { %v2707_v29 = vpop.f32.mrf.mxu3  ;;  %v12838_v23 = vpop.f32.mrf.mxu0 }
 0x1f9   :  { %v2708_v33 = vadd.f32 %v2707_v29, %v2604_v54  ;;  %v18773_v54 = vld [vmem:[#allocation39_spill] sm:$0xff]  ;;  %v18774_v29 = vld [vmem:[#allocation40_spill] sm:$0xff] }
 0x1fa   :  { %v2837_v18 = vpop.f32.mrf.mxu1 }
 0x1fb   :  { %v12840_v19 = vadd.f32 %v2837_v18, %v2734_v13  ;;  %v6364_v6 = vmax.f32 %v2708_v33, 0.0  ;;  %v18775_v13 = vld [vmem:[#allocation41_spill] sm:$0xff] }
 0x1fe   :  { %v2931_v10 = vpop.f32.mrf.mxu2 }
 0x1ff   :  { %v2932_v0 = vadd.f32 %v2931_v10, %v2828_v38 }
 0x200   :  { %v2709_v37 = vpop.f32.mrf.mxu3  ;;  %v12844_v50 = vpop.f32.mrf.mxu0 }
 0x201   :  { %v2710_v30 = vadd.f32 %v2709_v37, %v2606_v41  ;;  %v2739_v41 = vadd.f32 %v12761_v7, %v12786_v12  ;;  %v11305_v7 = vld [vmem:[%s18544_s1 + $0x8e0] sm:$0xf0] }
 0x202   :  { %v2840_v40 = vpop.f32.mrf.mxu1 }
 0x203   :  { %v6373_v39 = vmax.f32 %v2710_v30, 0.0  ;;  %v12846_v51 = vadd.f32 %v2840_v40, %v2737_v1  ;;  %2800 = vmatmul.bf16.gmra.mxu0 %v18772_v49  ;;  %2973 = vmatmul.bf16.gmra.mxu2 %v18773_v54  ;;  %v10055_v30 = vld [vmem:[%s18544_s1 + $0x680] sm:$0xf] }
 0x205   :  { %2879 = vmatmul.bf16.gmra.mxu1 %v18774_v29  ;;  %3072 = vmatmul.bf16.gmra.mxu3 %v18775_v13  ;;  %v12852_v38 = vpack.c.bf16 %v6373_v39, %v6364_v6  ;;  %v11233_v6 = vld [vmem:[%s18544_s1 + $0x6a0] sm:$0xf0] }
 0x206   :  { %v2934_v18 = vpop.f32.mrf.mxu2  ;;  %v10056_v39 = vor.u32 %v11233_v6, %v10055_v30 }
 0x207   :  { %18776 = vst [vmem:[#allocation79_spill] sm:$0xff] %v12852_v38  ;;  %v2935_v43 = vadd.f32 %v2934_v18, %v2831_v63  ;;  %v10343_v63 = vld [vmem:[%s18544_s1 + $0x8c0] sm:$0xf]  ;;  %v2742_v38 = vadd.f32 %v12765_v24, %v12786_v12  ;;  %v11085_v24 = vld [vmem:[%s18544_s1 + $0x204] sm:$0xf] }
 0x208   :  { %v3033_v37 = vpop.f32.mrf.mxu3  ;;  %v12856_v10 = vpop.f32.mrf.mxu0  ;;  %v10344_v18 = vor.u32 %v11305_v7, %v10343_v63  ;;  %3336 = vmatpush.bf16.msrb.mxu2 %v10056_v39 }
 0x209   :  { %v3034_v33 = vadd.f32 %v3033_v37, %v2930_v32  ;;  %v9767_v32 = vld [vmem:[%s18544_s1 + $0x440] sm:$0xf]  ;;  %v11161_v37 = vld [vmem:[%s18544_s1 + $0x460] sm:$0xf0] }
 0x20a   :  { %v2842_v1 = vpop.f32.mrf.mxu1  ;;  %3440 = vmatpush.bf16.msrb.mxu3 %v10344_v18  ;;  %v2744_v18 = vadd.f32 %v12775_v3, %v12786_v12 }
 0x20b   :  { %v12858_v40 = vadd.f32 %v2842_v1, %v2739_v41  ;;  %v9768_v41 = vor.u32 %v11161_v37, %v9767_v32  ;;  %v6041_v63 = vmax.f32 %v3034_v33, 0.0  ;;  %v18780_v32 = vld [vmem:[#allocation44_spill] sm:$0xff] }
 0x20d   :  { %3232 = vmatpush.bf16.msra.mxu1 %v9768_v41 }
 0x20e   :  { %v2936_v1 = vpop.f32.mrf.mxu2 }
 0x20f   :  { %v2937_v30 = vadd.f32 %v2936_v1, %v12816_v8  ;;  %v18779_v8 = vld [vmem:[#allocation43_spill] sm:$0xff] }
 0x210   :  { %v3035_v6 = vpop.f32.mrf.mxu3  ;;  %v12881_v29 = vpop.f32.mrf.mxu0 }
 0x211   :  { %v3036_v13 = vadd.f32 %v3035_v6, %v2932_v0  ;;  %v9481_v0 = vld [vmem:[%s18544_s1 + $0x224] sm:$0xf0] }
 0x212   :  { %v2845_v54 = vpop.f32.mrf.mxu1 }
 0x213   :  { %v6050_v7 = vmax.f32 %v3036_v13, 0.0  ;;  %v12883_v49 = vadd.f32 %v2845_v54, %v2742_v38  ;;  %2805 = vmatmul.bf16.gmra.mxu0 %v18777_v35  ;;  %2978 = vmatmul.bf16.gmra.mxu2 %v12215_v4  ;;  %v9484_v54 = vor.u32 %v11085_v24, %v9481_v0  ;;  %v2747_v24 = vadd.f32 %v12790_v59, %v12786_v12 }
 0x215   :  { %v12887_v39 = vpack.c.bf16 %v6050_v7, %v6041_v63  ;;  %2884 = vmatmul.bf16.gmra.mxu1 %v18779_v8  ;;  %3077 = vmatmul.bf16.gmra.mxu3 %v18780_v32 }
 0x216   :  { %v2939_v13 = vpop.f32.mrf.mxu2  ;;  %3544 = vmatpush.bf16.msrb.mxu0 %v9484_v54 }
 0x217   :  { %18778 = vst [vmem:[#allocation8_spill] sm:$0xff] %v12887_v39  ;;  %v2940_v38 = vadd.f32 %v2939_v13, %v12828_v36 }
 0x218   :  { %v3038_v33 = vpop.f32.mrf.mxu3  ;;  %v12900_v41 = vpop.f32.mrf.mxu0 }
 0x219   :  { %v3039_v37 = vadd.f32 %v3038_v33, %v2935_v43  ;;  %v18781_v43 = vld [vmem:[#allocation11_spill] sm:$0xff]  ;;  %v18782_v33 = vld [vmem:[#allocation48_spill] sm:$0xff] }
 0x21a   :  { %v2847_v1 = vpop.f32.mrf.mxu1 }
 0x21b   :  { %v12902_v6 = vadd.f32 %v2847_v1, %v2744_v18  ;;  %v6059_v13 = vmax.f32 %v3039_v37, 0.0  ;;  %v18783_v18 = vld [vmem:[#allocation49_spill] sm:$0xff] }
 0x21e   :  { %v2941_v63 = vpop.f32.mrf.mxu2 }
 0x21f   :  { %v2942_v7 = vadd.f32 %v2941_v63, %v12840_v19 }
 0x220   :  { %v3040_v39 = vpop.f32.mrf.mxu3  ;;  %v12907_v36 = vpop.f32.mrf.mxu0 }
 0x221   :  { %v3041_v0 = vadd.f32 %v3040_v39, %v2937_v30  ;;  %v2749_v39 = vadd.f32 %v12800_v9, %v12786_v12 }
 0x222   :  { %v2850_v54 = vpop.f32.mrf.mxu1 }
 0x223   :  { %v6068_v32 = vmax.f32 %v3041_v0, 0.0  ;;  %v12909_v3 = vadd.f32 %v2850_v54, %v2747_v24  ;;  %2810 = vmatmul.bf16.gmra.mxu0 %v18781_v43  ;;  %2983 = vmatmul.bf16.gmra.mxu2 %v12267_v17 }
 0x225   :  { %2889 = vmatmul.bf16.gmra.mxu1 %v18782_v33  ;;  %3082 = vmatmul.bf16.gmra.mxu3 %v18783_v18  ;;  %v12915_v19 = vpack.c.bf16 %v6068_v32, %v6059_v13  ;;  %v2752_v32 = vadd.f32 %v12804_v20, %v12786_v12  ;;  %v10307_v20 = vld [vmem:[%s18544_s1 + $0x878] sm:$0xf] }
 0x226   :  { %v2944_v1 = vpop.f32.mrf.mxu2 }
 0x227   :  { %18784 = vst [vmem:[#allocation43_spill] sm:$0xff] %v12915_v19  ;;  %v2945_v59 = vadd.f32 %v2944_v1, %v12846_v51 }
 0x228   :  { %v3043_v30 = vpop.f32.mrf.mxu3  ;;  %v12920_v63 = vpop.f32.mrf.mxu0 }
 0x229   :  { %v3044_v37 = vadd.f32 %v3043_v30, %v2940_v38  ;;  %v10019_v38 = vld [vmem:[%s18544_s1 + $0x638] sm:$0xf]  ;;  %v18785_v30 = vld [vmem:[#allocation51_spill] sm:$0xff] }
 0x22a   :  { %v2852_v24 = vpop.f32.mrf.mxu1 }
 0x22b   :  { %v12922_v0 = vadd.f32 %v2852_v24, %v2749_v39  ;;  %v6077_v1 = vmax.f32 %v3044_v37, 0.0  ;;  %v18786_v39 = vld [vmem:[#allocation2_spill] sm:$0xff]  ;;  %v18787_v37 = vld [vmem:[#allocation52_spill] sm:$0xff]  ;;  %v18788_v24 = vld [vmem:[#allocation53_spill] sm:$0xff] }
 0x22e   :  { %v2946_v54 = vpop.f32.mrf.mxu2 }
 0x22f   :  { %v2947_v33 = vadd.f32 %v2946_v54, %v12858_v40  ;;  %v11224_v40 = vld [vmem:[%s18544_s1 + $0x658] sm:$0xf0] }
 0x230   :  { %v3045_v17 = vpop.f32.mrf.mxu3  ;;  %v12927_v19 = vpop.f32.mrf.mxu0 }
 0x231   :  { %v3046_v13 = vadd.f32 %v3045_v17, %v2942_v7  ;;  %v10020_v17 = vor.u32 %v11224_v40, %v10019_v38  ;;  %v11296_v7 = vld [vmem:[%s18544_s1 + $0x898] sm:$0xf0] }
 0x232   :  { %v2855_v51 = vpop.f32.mrf.mxu1  ;;  %v10308_v54 = vor.u32 %v11296_v7, %v10307_v20  ;;  %v2754_v20 = vadd.f32 %v12814_v53, %v12786_v12 }
 0x233   :  { %v6086_v18 = vmax.f32 %v3046_v13, 0.0  ;;  %v12929_v9 = vadd.f32 %v2855_v51, %v2752_v32  ;;  %2988 = vmatmul.bf16.gmra.mxu2 %v18785_v30  ;;  %3136 = vmatmul.bf16.vlgmr.msra.gmra.mxu0 %v18786_v39  ;;  %v9731_v32 = vld [vmem:[%s18544_s1 + $0x3f8] sm:$0xf]  ;;  %v11152_v13 = vld [vmem:[%s18544_s1 + $0x418] sm:$0xf0] }
 0x234   :  { %3337 = vmatpush.bf16.msrb.mxu2 %v10020_v17  ;;  %v9732_v38 = vor.u32 %v11152_v13, %v9731_v32  ;;  %3441 = vmatpush.bf16.msrb.mxu3 %v10308_v54 }
 0x235   :  { %2894 = vmatmul.bf16.gmra.mxu1 %v18787_v37  ;;  %3087 = vmatmul.bf16.gmra.mxu3 %v18788_v24  ;;  %v12953_v51 = vpack.c.bf16 %v6086_v18, %v6077_v1  ;;  %v11076_v18 = vld [vmem:[%s18544_s1 + $0x1bc] sm:$0xf]  ;;  %v9445_v1 = vld [vmem:[%s18544_s1 + $0x1dc] sm:$0xf0] }
 0x236   :  { %v2949_v40 = vpop.f32.mrf.mxu2  ;;  %3233 = vmatpush.bf16.msra.mxu1 %v9732_v38 }
 0x237   :  { %18789 = vst [vmem:[#allocation80_spill] sm:$0xff] %v12953_v51  ;;  %v2950_v39 = vadd.f32 %v2949_v40, %v12883_v49  ;;  %v9448_v49 = vor.u32 %v11076_v18, %v9445_v1  ;;  %v18791_v51 = vld [vmem:[#allocation6_spill] sm:$0xff]  ;;  %v18792_v18 = vld [vmem:[#allocation56_spill] sm:$0xff]  ;;  %v18793_v1 = vld [vmem:[#allocation57_spill] sm:$0xff] }
 0x238   :  { %v3048_v37 = vpop.f32.mrf.mxu3  ;;  %v12958_v24 = vpop.f32.mrf.mxu0 }
 0x239   :  { %v3049_v7 = vadd.f32 %v3048_v37, %v2945_v59  ;;  %3545 = vmatpush.bf16.msrb.mxu0 %v9448_v49  ;;  %v2757_v59 = vadd.f32 %v12826_v55, %v12786_v12 }
 0x23a   :  { %v2857_v30 = vpop.f32.mrf.mxu1 }
 0x23b   :  { %v12960_v43 = vadd.f32 %v2857_v30, %v2754_v20  ;;  %v6095_v13 = vmax.f32 %v3049_v7, 0.0  ;;  %v18790_v20 = vld [vmem:[#allocation55_spill] sm:$0xff]  ;;  %v2759_v7 = vadd.f32 %v12838_v23, %v12786_v12 }
 0x23c   :  { %v9659_v23 = vld [vmem:[%s18544_s1 + $0x368] sm:$0xf] }
 0x23e   :  { %v2951_v17 = vpop.f32.mrf.mxu2 }
 0x23f   :  { %v2952_v54 = vadd.f32 %v2951_v17, %v12902_v6 }
 0x240   :  { %v3050_v53 = vpop.f32.mrf.mxu3  ;;  %v12971_v30 = vpop.f32.mrf.mxu0 }
 0x241   :  { %v3051_v37 = vadd.f32 %v3050_v53, %v2947_v33 }
 0x242   :  { %v2860_v32 = vpop.f32.mrf.mxu1 }
 0x243   :  { %v6104_v38 = vmax.f32 %v3051_v37, 0.0  ;;  %v12973_v40 = vadd.f32 %v2860_v32, %v2757_v59  ;;  %2993 = vmatmul.bf16.gmra.mxu2 %v18790_v20  ;;  %3141 = vmatmul.bf16.gmra.mxu0 %v18791_v51  ;;  %v9695_v32 = vld [vmem:[%s18544_s1 + $0x3b0] sm:$0xf]  ;;  %v9623_v51 = vld [vmem:[%s18544_s1 + $0x320] sm:$0xf] }
 0x245   :  { %2899 = vmatmul.bf16.gmra.mxu1 %v18792_v18  ;;  %3092 = vmatmul.bf16.gmra.mxu3 %v18793_v1  ;;  %v12979_v6 = vpack.c.bf16 %v6104_v38, %v6095_v13  ;;  %v11143_v13 = vld [vmem:[%s18544_s1 + $0x3d0] sm:$0xf0] }
 0x246   :  { %v2954_v49 = vpop.f32.mrf.mxu2  ;;  %v9696_v38 = vor.u32 %v11143_v13, %v9695_v32 }
 0x247   :  { %18794 = vst [vmem:[#allocation55_spill] sm:$0xff] %v12979_v6  ;;  %v2955_v55 = vadd.f32 %v2954_v49, %v12909_v3 }
 0x248   :  { %v3053_v33 = vpop.f32.mrf.mxu3  ;;  %v12984_v53 = vpop.f32.mrf.mxu0  ;;  %3234 = vmatpush.bf16.msra.mxu1 %v9696_v38 }
 0x249   :  { %v3054_v17 = vadd.f32 %v3053_v33, %v2950_v39  ;;  %v11134_v39 = vld [vmem:[%s18544_s1 + $0x388] sm:$0xf0] }
 0x24a   :  { %v2862_v59 = vpop.f32.mrf.mxu1 }
 0x24b   :  { %v12986_v37 = vadd.f32 %v2862_v59, %v2759_v7  ;;  %v9660_v7 = vor.u32 %v11134_v39, %v9659_v23  ;;  %v2762_v59 = vadd.f32 %v12844_v50, %v12786_v12  ;;  %v6113_v13 = vmax.f32 %v3054_v17, 0.0  ;;  %v18795_v50 = vld [vmem:[#allocation10_spill] sm:$0xff]  ;;  %v18797_v23 = vld [vmem:[#allocation60_spill] sm:$0xff] }
 0x24c   :  { %v11215_v17 = vld [vmem:[%s18544_s1 + $0x610] sm:$0xf0] }
 0x24d   :  { %3235 = vmatpush.bf16.msra.mxu1 %v9660_v7 }
 0x24e   :  { %v2956_v3 = vpop.f32.mrf.mxu2 }
 0x24f   :  { %v2957_v49 = vadd.f32 %v2956_v3, %v12922_v0  ;;  %v11125_v0 = vld [vmem:[%s18544_s1 + $0x340] sm:$0xf0]  ;;  %v18796_v3 = vld [vmem:[#allocation59_spill] sm:$0xff] }
 0x250   :  { %v3055_v33 = vpop.f32.mrf.mxu3  ;;  %v13003_v1 = vpop.f32.mrf.mxu0 }
 0x251   :  { %v3056_v6 = vadd.f32 %v3055_v33, %v2952_v54  ;;  %v9624_v54 = vor.u32 %v11125_v0, %v9623_v51  ;;  %v9587_v51 = vld [vmem:[%s18544_s1 + $0x2d8] sm:$0xf] }
 0x252   :  { %v2865_v32 = vpop.f32.mrf.mxu1 }
 0x253   :  { %v6122_v38 = vmax.f32 %v3056_v6, 0.0  ;;  %v13005_v18 = vadd.f32 %v2865_v32, %v2762_v59  ;;  %2998 = vmatmul.bf16.gmra.mxu2 %v12417_v61  ;;  %3146 = vmatmul.bf16.gmra.mxu0 %v18795_v50  ;;  %v9983_v6 = vld [vmem:[%s18544_s1 + $0x5f0] sm:$0xf]  ;;  %v11116_v59 = vld [vmem:[%s18544_s1 + $0x2f8] sm:$0xf0] }
 0x254   :  { %3236 = vmatpush.bf16.msra.mxu1 %v9624_v54  ;;  %v9984_v33 = vor.u32 %v11215_v17, %v9983_v6  ;;  %v11067_v50 = vld [vmem:[%s18544_s1 + $0x174] sm:$0xf] }
 0x255   :  { %2904 = vmatmul.bf16.gmra.mxu1 %v18796_v3  ;;  %3097 = vmatmul.bf16.gmra.mxu3 %v18797_v23  ;;  %v13023_v39 = vpack.c.bf16 %v6122_v38, %v6113_v13  ;;  %v9588_v23 = vor.u32 %v11116_v59, %v9587_v51  ;;  %v2764_v13 = vadd.f32 %v12856_v10, %v12786_v12  ;;  %v9551_v10 = vld [vmem:[%s18544_s1 + $0x290] sm:$0xf]  ;;  %v9515_v51 = vld [vmem:[%s18544_s1 + $0x248] sm:$0xf] }
 0x256   :  { %v2959_v7 = vpop.f32.mrf.mxu2  ;;  %3338 = vmatpush.bf16.msrb.mxu2 %v9984_v33 }
 0x257   :  { %18798 = vst [vmem:[#allocation81_spill] sm:$0xff] %v13023_v39  ;;  %v2960_v32 = vadd.f32 %v2959_v7, %v12929_v9  ;;  %v10271_v39 = vld [vmem:[%s18544_s1 + $0x830] sm:$0xf]  ;;  %v11287_v9 = vld [vmem:[%s18544_s1 + $0x850] sm:$0xf0] }
 0x258   :  { %v3058_v0 = vpop.f32.mrf.mxu3  ;;  %v13034_v54 = vpop.f32.mrf.mxu0  ;;  %3237 = vmatpush.bf16.msra.mxu1 %v9588_v23  ;;  %v10272_v33 = vor.u32 %v11287_v9, %v10271_v39  ;;  %v11098_v39 = vld [vmem:[%s18544_s1 + $0x268] sm:$0xf0] }
 0x259   :  { %v3059_v38 = vadd.f32 %v3058_v0, %v2955_v55  ;;  %v11107_v55 = vld [vmem:[%s18544_s1 + $0x2b0] sm:$0xf0] }
 0x25a   :  { %v2867_v6 = vpop.f32.mrf.mxu1  ;;  %v9552_v23 = vor.u32 %v11107_v55, %v9551_v10  ;;  %3442 = vmatpush.bf16.msrb.mxu3 %v10272_v33 }
 0x25b   :  { %v13036_v17 = vadd.f32 %v2867_v6, %v2764_v13  ;;  %v9516_v13 = vor.u32 %v11098_v39, %v9515_v51  ;;  %v2767_v6 = vadd.f32 %v12881_v29, %v12786_v12  ;;  %v6131_v55 = vmax.f32 %v3059_v38, 0.0  ;;  %v18800_v38 = vld [vmem:[#allocation63_spill] sm:$0xff] }
 0x25c   :  { %3238 = vmatpush.bf16.msra.mxu1 %v9552_v23 }
 0x25e   :  { %v2961_v7 = vpop.f32.mrf.mxu2 }
 0x25f   :  { %v2962_v59 = vadd.f32 %v2961_v7, %v12960_v43  ;;  %v9409_v43 = vld [vmem:[%s18544_s1 + $0x194] sm:$0xf0] }
 0x260   :  { %v3060_v0 = vpop.f32.mrf.mxu3  ;;  %v13059_v10 = vpop.f32.mrf.mxu0  ;;  %3239 = vmatpush.bf16.msra.mxu1 %v9516_v13  ;;  %v9412_v29 = vor.u32 %v11067_v50, %v9409_v43 }
 0x261   :  { %v3061_v9 = vadd.f32 %v3060_v0, %v2957_v49  ;;  %v18799_v49 = vld [vmem:[#allocation62_spill] sm:$0xff] }
 0x262   :  { %v2870_v33 = vpop.f32.mrf.mxu1  ;;  %3546 = vmatpush.bf16.msrb.mxu0 %v9412_v29 }
 0x263   :  { %v6140_v23 = vmax.f32 %v3061_v9, 0.0  ;;  %v13061_v3 = vadd.f32 %v2870_v33, %v2767_v6  ;;  %3003 = vmatmul.bf16.gmra.mxu2 %v12491_v22  ;;  %3151 = vmatmul.bf16.gmra.mxu0 %v11788_v25  ;;  %v2769_v6 = vadd.f32 %v12900_v41, %v12786_v12  ;;  %v2772_v41 = vadd.f32 %v12907_v36, %v12786_v12 }
 0x265   :  { %2909 = vmatmul.bf16.gmra.mxu1 %v18799_v49  ;;  %3102 = vmatmul.bf16.gmra.mxu3 %v18800_v38  ;;  %v13073_v7 = vpack.c.bf16 %v6140_v23, %v6131_v55  ;;  %v9947_v55 = vld [vmem:[%s18544_s1 + $0x5a8] sm:$0xf]  ;;  %v11206_v23 = vld [vmem:[%s18544_s1 + $0x5c8] sm:$0xf0]  ;;  %v9911_v38 = vld [vmem:[%s18544_s1 + $0x560] sm:$0xf] }
 0x266   :  { %v2964_v51 = vpop.f32.mrf.mxu2  ;;  %v9948_v29 = vor.u32 %v11206_v23, %v9947_v55  ;;  %v9875_v55 = vld [vmem:[%s18544_s1 + $0x518] sm:$0xf]  ;;  %v11188_v23 = vld [vmem:[%s18544_s1 + $0x538] sm:$0xf0] }
 0x267   :  { %18801 = vst [vmem:[#allocation62_spill] sm:$0xff] %v13073_v7  ;;  %v2965_v39 = vadd.f32 %v2964_v51, %v12973_v40 }
 0x268   :  { %v3063_v0 = vpop.f32.mrf.mxu3  ;;  %v13078_v9 = vpop.f32.mrf.mxu0  ;;  %3339 = vmatpush.bf16.msrb.mxu2 %v9948_v29 }
 0x269   :  { %v3064_v13 = vadd.f32 %v3063_v0, %v2960_v32 }
 0x26a   :  { %v2872_v33 = vpop.f32.mrf.mxu1 }
 0x26b   :  { %v13080_v25 = vadd.f32 %v2872_v33, %v2769_v6  ;;  %v6149_v6 = vmax.f32 %v3064_v13, 0.0 }
 0x26e   :  { %v2966_v50 = vpop.f32.mrf.mxu2 }
 0x26f   :  { %v2967_v40 = vadd.f32 %v2966_v50, %v12986_v37  ;;  %v11197_v37 = vld [vmem:[%s18544_s1 + $0x580] sm:$0xf0] }
 0x270   :  { %v3065_v43 = vpop.f32.mrf.mxu3  ;;  %v13091_v51 = vpop.f32.mrf.mxu0  ;;  %v9912_v36 = vor.u32 %v11197_v37, %v9911_v38  ;;  %v9876_v38 = vor.u32 %v11188_v23, %v9875_v55  ;;  %v9839_v37 = vld [vmem:[%s18544_s1 + $0x4d0] sm:$0xf]  ;;  %v9803_v23 = vld [vmem:[%s18544_s1 + $0x488] sm:$0xf] }
 0x271   :  { %v3066_v32 = vadd.f32 %v3065_v43, %v2962_v59  ;;  %v18802_v59 = vld [vmem:[#allocation66_spill] sm:$0xff] }
 0x272   :  { %v2875_v0 = vpop.f32.mrf.mxu1  ;;  %3340 = vmatpush.bf16.msrb.mxu2 %v9912_v36 }
 0x273   :  { %v6158_v33 = vmax.f32 %v3066_v32, 0.0  ;;  %v13093_v7 = vadd.f32 %v2875_v0, %v2772_v41  ;;  %3008 = vmatmul.bf16.gmra.mxu2 %v12541_v62  ;;  %3156 = vmatmul.bf16.gmra.mxu0 %v11830_v42  ;;  %v2774_v41 = vadd.f32 %v12920_v63, %v12786_v12  ;;  %v10235_v63 = vld [vmem:[%s18544_s1 + $0x7e8] sm:$0xf] }
 0x275   :  { %2914 = vmatmul.bf16.gmra.mxu1 %v12543_v5  ;;  %3107 = vmatmul.bf16.gmra.mxu3 %v18802_v59  ;;  %v13105_v13 = vpack.c.bf16 %v6158_v33, %v6149_v6  ;;  %v10199_v59 = vld [vmem:[%s18544_s1 + $0x7a0] sm:$0xf] }
 0x276   :  { %v2969_v50 = vpop.f32.mrf.mxu2  ;;  %3341 = vmatpush.bf16.msrb.mxu2 %v9876_v38 }
 0x277   :  { %18803 = vst [vmem:[#allocation82_spill] sm:$0xff] %v13105_v13  ;;  %v2970_v43 = vadd.f32 %v2969_v50, %v13005_v18  ;;  %v11179_v18 = vld [vmem:[%s18544_s1 + $0x4f0] sm:$0xf0] }
 0x278   :  { %v3068_v29 = vpop.f32.mrf.mxu3  ;;  %v13116_v0 = vpop.f32.mrf.mxu0  ;;  %v9840_v36 = vor.u32 %v11179_v18, %v9839_v37  ;;  %v2777_v37 = vadd.f32 %v12927_v19, %v12786_v12 }
 0x279   :  { %v3069_v32 = vadd.f32 %v3068_v29, %v2965_v39  ;;  %v11278_v39 = vld [vmem:[%s18544_s1 + $0x808] sm:$0xf0] }
 0x27a   :  { %v2877_v6 = vpop.f32.mrf.mxu1  ;;  %v10236_v50 = vor.u32 %v11278_v39, %v10235_v63  ;;  %3342 = vmatpush.bf16.msrb.mxu2 %v9840_v36  ;;  %v11170_v29 = vld [vmem:[%s18544_s1 + $0x4a8] sm:$0xf0] }
 0x27b   :  { %v13118_v33 = vadd.f32 %v2877_v6, %v2774_v41  ;;  %v9804_v6 = vor.u32 %v11170_v29, %v9803_v23  ;;  %v6167_v39 = vmax.f32 %v3069_v32, 0.0  ;;  %v11058_v32 = vld [vmem:[%s18544_s1 + $0x12c] sm:$0xf]  ;;  %v9373_v23 = vld [vmem:[%s18544_s1 + $0x14c] sm:$0xf0] }
 0x27c   :  { %3443 = vmatpush.bf16.msrb.mxu3 %v10236_v50 }
 0x27e   :  { %v2971_v55 = vpop.f32.mrf.mxu2  ;;  %3343 = vmatpush.bf16.msrb.mxu2 %v9804_v6 }
 0x27f   :  { %v2972_v38 = vadd.f32 %v2971_v55, %v13036_v17  ;;  %v11269_v17 = vld [vmem:[%s18544_s1 + $0x7c0] sm:$0xf0]  ;;  %v18805_v55 = vld [vmem:[#allocation5_spill] sm:$0xff] }
 0x280   :  { %v3070_v41 = vpop.f32.mrf.mxu3  ;;  %v13141_v63 = vpop.f32.mrf.mxu0  ;;  %v10200_v19 = vor.u32 %v11269_v17, %v10199_v59  ;;  %v10163_v59 = vld [vmem:[%s18544_s1 + $0x758] sm:$0xf] }
 0x281   :  { %v3071_v18 = vadd.f32 %v3070_v41, %v2967_v40  ;;  %v18804_v40 = vld [vmem:[#allocation69_spill] sm:$0xff]  ;;  %v9376_v41 = vor.u32 %v11058_v32, %v9373_v23 }
 0x282   :  { %v2880_v36 = vpop.f32.mrf.mxu1  ;;  %3444 = vmatpush.bf16.msrb.mxu3 %v10200_v19 }
 0x283   :  { %v6176_v50 = vmax.f32 %v3071_v18, 0.0  ;;  %v13143_v13 = vadd.f32 %v2880_v36, %v2777_v37  ;;  %3013 = vmatmul.bf16.gmra.mxu2 %v12603_v2  ;;  %3161 = vmatmul.bf16.gmra.mxu0 %v11866_v56  ;;  %v11260_v37 = vld [vmem:[%s18544_s1 + $0x778] sm:$0xf0] }
 0x284   :  { %3547 = vmatpush.bf16.msrb.mxu0 %v9376_v41  ;;  %v10164_v17 = vor.u32 %v11260_v37, %v10163_v59 }
 0x285   :  { %3112 = vmatmul.bf16.gmra.mxu3 %v18804_v40  ;;  %3240 = vmatmul.bf16.vlgmr.msra.gmra.mxu1 %v18805_v55  ;;  %v13161_v29 = vpack.c.bf16 %v6176_v50, %v6167_v39  ;;  %v2779_v39 = vadd.f32 %v12958_v24, %v12786_v12  ;;  %v10091_v24 = vld [vmem:[%s18544_s1 + $0x6c8] sm:$0xf] }
 0x286   :  { %v2974_v6 = vpop.f32.mrf.mxu2  ;;  %3445 = vmatpush.bf16.msrb.mxu3 %v10164_v17  ;;  %v2782_v17 = vadd.f32 %v12971_v30, %v12786_v12 }
 0x287   :  { %18806 = vst [vmem:[#allocation83_spill] sm:$0xff] %v13161_v29  ;;  %v2975_v18 = vadd.f32 %v2974_v6, %v13061_v3  ;;  %v10127_v29 = vld [vmem:[%s18544_s1 + $0x710] sm:$0xf]  ;;  %v11251_v3 = vld [vmem:[%s18544_s1 + $0x730] sm:$0xf0] }
 0x288   :  { %v3073_v36 = vpop.f32.mrf.mxu3  ;;  %v13172_v19 = vpop.f32.mrf.mxu0  ;;  %v10128_v6 = vor.u32 %v11251_v3, %v10127_v29 }
 0x289   :  { %v3074_v50 = vadd.f32 %v3073_v36, %v2970_v43  ;;  %v11242_v43 = vld [vmem:[%s18544_s1 + $0x6e8] sm:$0xf0] }
 0x28a   :  { %v2882_v32 = vpop.f32.mrf.mxu1  ;;  %3446 = vmatpush.bf16.msrb.mxu3 %v10128_v6  ;;  %v10092_v36 = vor.u32 %v11242_v43, %v10091_v24  ;;  %v2784_v24 = vadd.f32 %v12984_v53, %v12786_v12 }
 0x28b   :  { %v2883_v23 = vadd.f32 %v2882_v32, %v2779_v39  ;;  %v6185_v3 = vmax.f32 %v3074_v50, 0.0 }
 0x28e   :  { %v2976_v41 = vpop.f32.mrf.mxu2  ;;  %3447 = vmatpush.bf16.msrb.mxu3 %v10092_v36 }
 0x28f   :  { %v2977_v59 = vadd.f32 %v2976_v41, %v13080_v25 }
 0x290   :  { %v3075_v37 = vpop.f32.mrf.mxu3  ;;  %v13189_v32 = vpop.f32.mrf.mxu0 }
 0x291   :  { %v3076_v39 = vadd.f32 %v3075_v37, %v2972_v38 }
 0x292   :  { %v2885_v29 = vpop.f32.mrf.mxu1 }
 0x293   :  { %v6194_v6 = vmax.f32 %v3076_v39, 0.0  ;;  %v2886_v55 = vadd.f32 %v2885_v29, %v2782_v17  ;;  %3018 = vmatmul.bf16.gmra.mxu2 %v12663_v48  ;;  %3166 = vmatmul.bf16.gmra.mxu0 %v11908_v11 }
 0x295   :  { %3117 = vmatmul.bf16.gmra.mxu3 %v12665_v15  ;;  %3245 = vmatmul.bf16.gmra.mxu1 %v11686_v44  ;;  %v13195_v25 = vpack.c.bf16 %v6194_v6, %v6185_v3  ;;  %v2787_v3 = vadd.f32 %v13003_v1, %v12786_v12 }
 0x296   :  { %v2979_v41 = vpop.f32.mrf.mxu2 }
 0x297   :  { %18807 = vst [vmem:[#allocation84_spill] sm:$0xff] %v13195_v25  ;;  %v2980_v30 = vadd.f32 %v2979_v41, %v13093_v7 }
 0x298   :  { %v3078_v38 = vpop.f32.mrf.mxu3  ;;  %v13200_v43 = vpop.f32.mrf.mxu0 }
 0x299   :  { %v3079_v50 = vadd.f32 %v3078_v38, %v2975_v18 }
 0x29a   :  { %v2887_v37 = vpop.f32.mrf.mxu1 }
 0x29b   :  { %v2888_v36 = vadd.f32 %v2887_v37, %v2784_v24  ;;  %v6203_v41 = vmax.f32 %v3079_v50, 0.0 }
 0x29e   :  { %v2981_v17 = vpop.f32.mrf.mxu2 }
 0x29f   :  { %v2982_v39 = vadd.f32 %v2981_v17, %v13118_v33  ;;  %v11049_v17 = vld [vmem:[%s18544_s1 + $0xe4] sm:$0xf] }
 0x2a0   :  { %v3080_v29 = vpop.f32.mrf.mxu3  ;;  %v13205_v25 = vpop.f32.mrf.mxu0 }
 0x2a1   :  { %v3081_v6 = vadd.f32 %v3080_v29, %v2977_v59  ;;  %v2789_v59 = vadd.f32 %v13034_v54, %v12786_v12  ;;  %v2792_v54 = vadd.f32 %v13059_v10, %v12786_v12 }
 0x2a2   :  { %v2890_v7 = vpop.f32.mrf.mxu1 }
 0x2a3   :  { %v6212_v44 = vmax.f32 %v3081_v6, 0.0  ;;  %v2891_v15 = vadd.f32 %v2890_v7, %v2787_v3  ;;  %3171 = vmatmul.bf16.gmra.mxu0 %v11944_v31  ;;  %3344 = vmatmul.bf16.vlgmr.msrb.gmra.mxu2 %v11754_v14 }
 0x2a5   :  { %3122 = vmatmul.bf16.gmra.mxu3 %v12683_v34  ;;  %3250 = vmatmul.bf16.gmra.mxu1 %v11758_v16  ;;  %v13211_v53 = vpack.c.bf16 %v6212_v44, %v6203_v41  ;;  %v9337_v44 = vld [vmem:[%s18544_s1 + $0x104] sm:$0xf0] }
 0x2a6   :  { %v2984_v33 = vpop.f32.mrf.mxu2  ;;  %v9340_v29 = vor.u32 %v11049_v17, %v9337_v44 }
 0x2a7   :  { %18808 = vst [vmem:[#allocation85_spill] sm:$0xff] %v13211_v53  ;;  %v2985_v1 = vadd.f32 %v2984_v33, %v13143_v13 }
 0x2a8   :  { %v3083_v18 = vpop.f32.mrf.mxu3  ;;  %v13216_v24 = vpop.f32.mrf.mxu0  ;;  %3548 = vmatpush.bf16.msrb.mxu0 %v9340_v29 }
 0x2a9   :  { %v3084_v38 = vadd.f32 %v3083_v18, %v2980_v30 }
 0x2aa   :  { %v2892_v50 = vpop.f32.mrf.mxu1 }
 0x2ab   :  { %v2893_v37 = vadd.f32 %v2892_v50, %v2789_v59  ;;  %v6221_v33 = vmax.f32 %v3084_v38, 0.0 }
 0x2ae   :  { %v2986_v13 = vpop.f32.mrf.mxu2 }
 0x2af   :  { %v2987_v3 = vadd.f32 %v2986_v13, %v2883_v23 }
 0x2b0   :  { %v3085_v6 = vpop.f32.mrf.mxu3  ;;  %v13226_v7 = vpop.f32.mrf.mxu0 }
 0x2b1   :  { %v3086_v30 = vadd.f32 %v3085_v6, %v2982_v39  ;;  %v2794_v39 = vadd.f32 %v13078_v9, %v12786_v12 }
 0x2b2   :  { %v2895_v41 = vpop.f32.mrf.mxu1 }
 0x2b3   :  { %v6230_v18 = vmax.f32 %v3086_v30, 0.0  ;;  %v2896_v59 = vadd.f32 %v2895_v41, %v2792_v54  ;;  %3176 = vmatmul.bf16.gmra.mxu0 %v11991_v60  ;;  %3349 = vmatmul.bf16.gmra.mxu2 %v11790_v26  ;;  %v2797_v41 = vadd.f32 %v13091_v51, %v12786_v12 }
 0x2b5   :  { %3255 = vmatmul.bf16.gmra.mxu1 %v11792_v27  ;;  %3448 = vmatmul.bf16.vlgmr.msrb.gmra.mxu3 %v11794_v28  ;;  %v13232_v23 = vpack.c.bf16 %v6230_v18, %v6221_v33 }
 0x2b6   :  { %v2989_v50 = vpop.f32.mrf.mxu2 }
 0x2b7   :  { %18809 = vst [vmem:[#allocation86_spill] sm:$0xff] %v13232_v23  ;;  %v2990_v17 = vadd.f32 %v2989_v50, %v2886_v55 }
 0x2b8   :  { %v3088_v10 = vpop.f32.mrf.mxu3  ;;  %v13236_v38 = vpop.f32.mrf.mxu0 }
 0x2b9   :  { %v3089_v44 = vadd.f32 %v3088_v10, %v2985_v1 }
 0x2ba   :  { %v2897_v29 = vpop.f32.mrf.mxu1 }
 0x2bb   :  { %v2898_v13 = vadd.f32 %v2897_v29, %v2794_v39  ;;  %v6239_v55 = vmax.f32 %v3089_v44, 0.0 }
 0x2be   :  { %v2991_v6 = vpop.f32.mrf.mxu2 }
 0x2bf   :  { %v2992_v54 = vadd.f32 %v2991_v6, %v2888_v36 }
 0x2c0   :  { %v3090_v30 = vpop.f32.mrf.mxu3  ;;  %v13240_v33 = vpop.f32.mrf.mxu0 }
 0x2c1   :  { %v3091_v53 = vadd.f32 %v3090_v30, %v2987_v3  ;;  %v2799_v3 = vadd.f32 %v13116_v0, %v12786_v12  ;;  %v11040_v0 = vld [vmem:[%s18544_s1 + $0x9c] sm:$0xf] }
 0x2c2   :  { %v2900_v18 = vpop.f32.mrf.mxu1 }
 0x2c3   :  { %v6248_v50 = vmax.f32 %v3091_v53, 0.0  ;;  %v2901_v23 = vadd.f32 %v2900_v18, %v2797_v41  ;;  %3181 = vmatmul.bf16.gmra.mxu0 %v12047_v52  ;;  %3354 = vmatmul.bf16.gmra.mxu2 %v11832_v45  ;;  %v2802_v41 = vadd.f32 %v13141_v63, %v12786_v12 }
 0x2c5   :  { %3260 = vmatmul.bf16.gmra.mxu1 %v11834_v46  ;;  %3453 = vmatmul.bf16.gmra.mxu3 %v11836_v47  ;;  %v13246_v9 = vpack.c.bf16 %v6248_v50, %v6239_v55 }
 0x2c6   :  { %v2994_v36 = vpop.f32.mrf.mxu2 }
 0x2c7   :  { %18810 = vst [vmem:[#allocation87_spill] sm:$0xff] %v13246_v9  ;;  %v2995_v1 = vadd.f32 %v2994_v36, %v2891_v15 }
 0x2c8   :  { %v3093_v51 = vpop.f32.mrf.mxu3  ;;  %v13250_v39 = vpop.f32.mrf.mxu0 }
 0x2c9   :  { %v3094_v10 = vadd.f32 %v3093_v51, %v2990_v17  ;;  %v9301_v17 = vld [vmem:[%s18544_s1 + $0xbc] sm:$0xf0] }
 0x2ca   :  { %v2902_v53 = vpop.f32.mrf.mxu1  ;;  %v9304_v63 = vor.u32 %v11040_v0, %v9301_v17 }
 0x2cb   :  { %v2903_v44 = vadd.f32 %v2902_v53, %v2799_v3  ;;  %v6257_v15 = vmax.f32 %v3094_v10, 0.0  ;;  %v2804_v53 = vadd.f32 %v13172_v19, %v12786_v12  ;;  %v18814_v19 = vld [vmem:[#allocation19_spill] sm:$0xff] }
 0x2cc   :  { %3549 = vmatpush.bf16.msrb.mxu0 %v9304_v63 }
 0x2ce   :  { %v2996_v29 = vpop.f32.mrf.mxu2 }
 0x2cf   :  { %v2997_v6 = vadd.f32 %v2996_v29, %v2893_v37  ;;  %v18811_v37 = vld [vmem:[#allocation17_spill] sm:$0xff] }
 0x2d0   :  { %v3095_v30 = vpop.f32.mrf.mxu3  ;;  %v13254_v55 = vpop.f32.mrf.mxu0 }
 0x2d1   :  { %v3096_v18 = vadd.f32 %v3095_v30, %v2992_v54 }
 0x2d2   :  { %v2905_v50 = vpop.f32.mrf.mxu1 }
 0x2d3   :  { %v6266_v36 = vmax.f32 %v3096_v18, 0.0  ;;  %v2906_v9 = vadd.f32 %v2905_v50, %v2802_v41  ;;  %3186 = vmatmul.bf16.gmra.mxu0 %v12097_v21  ;;  %3359 = vmatmul.bf16.gmra.mxu2 %v11868_v57 }
 0x2d5   :  { %3265 = vmatmul.bf16.gmra.mxu1 %v11870_v58  ;;  %3458 = vmatmul.bf16.gmra.mxu3 %v18811_v37  ;;  %v13266_v54 = vpack.c.bf16 %v6266_v36, %v6257_v15  ;;  %v2807_v37 = vadd.f32 %v13189_v32, %v12786_v12  ;;  %v18813_v58 = vld [vmem:[#allocation38_spill] sm:$0xff] }
 0x2d6   :  { %v2999_v51 = vpop.f32.mrf.mxu2 }
 0x2d7   :  { %18812 = vst [vmem:[#allocation88_spill] sm:$0xff] %v13266_v54  ;;  %v3000_v3 = vadd.f32 %v2999_v51, %v2896_v59 }
 0x2d8   :  { %v3098_v10 = vpop.f32.mrf.mxu3  ;;  %v13270_v30 = vpop.f32.mrf.mxu0 }
 0x2d9   :  { %v3099_v29 = vadd.f32 %v3098_v10, %v2995_v1  ;;  %v18815_v1 = vld [vmem:[#allocation20_spill] sm:$0xff]  ;;  %v18816_v10 = vld [vmem:[#allocation21_spill] sm:$0xff] }
 0x2da   :  { %v2907_v41 = vpop.f32.mrf.mxu1 }
 0x2db   :  { %v2908_v18 = vadd.f32 %v2907_v41, %v2804_v53  ;;  %v6275_v59 = vmax.f32 %v3099_v29, 0.0 }
 0x2de   :  { %v3001_v50 = vpop.f32.mrf.mxu2 }
 0x2df   :  { %v3002_v0 = vadd.f32 %v3001_v50, %v2898_v13 }
 0x2e0   :  { %v3100_v17 = vpop.f32.mrf.mxu3  ;;  %v13274_v36 = vpop.f32.mrf.mxu0 }
 0x2e1   :  { %v3101_v15 = vadd.f32 %v3100_v17, %v2997_v6  ;;  %v2809_v6 = vadd.f32 %v13200_v43, %v12786_v12  ;;  %v18819_v43 = vld [vmem:[#allocation22_spill] sm:$0xff] }
 0x2e2   :  { %v2910_v63 = vpop.f32.mrf.mxu1 }
 0x2e3   :  { %v6284_v51 = vmax.f32 %v3101_v15, 0.0  ;;  %v2911_v54 = vadd.f32 %v2910_v63, %v2807_v37  ;;  %3191 = vmatmul.bf16.gmra.mxu0 %v18813_v58  ;;  %3364 = vmatmul.bf16.gmra.mxu2 %v18814_v19  ;;  %v18818_v58 = vld [vmem:[#allocation42_spill] sm:$0xff] }
 0x2e5   :  { %3270 = vmatmul.bf16.gmra.mxu1 %v18815_v1  ;;  %3463 = vmatmul.bf16.gmra.mxu3 %v18816_v10  ;;  %v13280_v13 = vpack.c.bf16 %v6284_v51, %v6275_v59  ;;  %v2812_v1 = vadd.f32 %v13205_v25, %v12786_v12 }
 0x2e6   :  { %v3004_v53 = vpop.f32.mrf.mxu2 }
 0x2e7   :  { %18817 = vst [vmem:[#allocation89_spill] sm:$0xff] %v13280_v13  ;;  %v3005_v41 = vadd.f32 %v3004_v53, %v2901_v23 }
 0x2e8   :  { %v3103_v32 = vpop.f32.mrf.mxu3  ;;  %v13284_v29 = vpop.f32.mrf.mxu0 }
 0x2e9   :  { %v3104_v50 = vadd.f32 %v3103_v32, %v3000_v3  ;;  %v18820_v3 = vld [vmem:[#allocation23_spill] sm:$0xff]  ;;  %v18821_v32 = vld [vmem:[#allocation24_spill] sm:$0xff] }
 0x2ea   :  { %v2912_v37 = vpop.f32.mrf.mxu1 }
 0x2eb   :  { %v2913_v17 = vadd.f32 %v2912_v37, %v2809_v6  ;;  %v6293_v23 = vmax.f32 %v3104_v50, 0.0 }
 0x2ee   :  { %v3006_v15 = vpop.f32.mrf.mxu2 }
 0x2ef   :  { %v3007_v63 = vadd.f32 %v3006_v15, %v2903_v44  ;;  %v11031_v15 = vld [vmem:[%s18544_s1 + $0x54] sm:$0xf] }
 0x2f0   :  { %v3105_v19 = vpop.f32.mrf.mxu3  ;;  %v13288_v59 = vpop.f32.mrf.mxu0 }
 0x2f1   :  { %v3106_v10 = vadd.f32 %v3105_v19, %v3002_v0  ;;  %v2814_v0 = vadd.f32 %v13216_v24, %v12786_v12 }
 0x2f2   :  { %v2915_v51 = vpop.f32.mrf.mxu1 }
 0x2f3   :  { %v6302_v53 = vmax.f32 %v3106_v10, 0.0  ;;  %v2916_v13 = vadd.f32 %v2915_v51, %v2812_v1  ;;  %3196 = vmatmul.bf16.gmra.mxu0 %v18818_v58  ;;  %3369 = vmatmul.bf16.gmra.mxu2 %v18819_v43  ;;  %v9265_v51 = vld [vmem:[%s18544_s1 + $0x74] sm:$0xf0]  ;;  %v18828_v58 = vld [vmem:[#allocation3_spill] sm:$0xff] }
 0x2f5   :  { %3275 = vmatmul.bf16.gmra.mxu1 %v18820_v3  ;;  %3468 = vmatmul.bf16.gmra.mxu3 %v18821_v32  ;;  %v13294_v44 = vpack.c.bf16 %v6302_v53, %v6293_v23  ;;  %v9268_v23 = vor.u32 %v11031_v15, %v9265_v51  ;;  %v18823_v51 = vld [vmem:[#allocation46_spill] sm:$0xff]  ;;  %v18824_v3 = vld [vmem:[#allocation25_spill] sm:$0xff] }
 0x2f6   :  { %v3009_v6 = vpop.f32.mrf.mxu2 }
 0x2f7   :  { %18822 = vst [vmem:[#allocation90_spill] sm:$0xff] %v13294_v44  ;;  %v3010_v37 = vadd.f32 %v3009_v6, %v2906_v9  ;;  %v11400_v9 = vld [vmem:[%s18545_s2] sm:$0xff]  ;;  %3550 = vmatpush.bf16.msrb.mxu0 %v9268_v23  ;;  %v18826_v23 = vld [vmem:[#allocation27_spill] sm:$0xff] }
 0x2f8   :  { %v3108_v25 = vpop.f32.mrf.mxu3  ;;  %v13298_v50 = vpop.f32.mrf.mxu0  ;;  %v13309_v53 = vperm.slane %v11400_v9, 2  ;;  %v18825_v9 = vld [vmem:[#allocation26_spill] sm:$0xff] }
 0x2f9   :  { %v3109_v19 = vadd.f32 %v3108_v25, %v3005_v41 }
 0x2fa   :  { %v2917_v1 = vpop.f32.mrf.mxu1  ;;  %v3138_v6 = vadd.f32 %v13226_v7, %v13309_v53 }
 0x2fb   :  { %v2918_v10 = vadd.f32 %v2917_v1, %v2814_v0  ;;  %v6311_v44 = vmax.f32 %v3109_v19, 0.0 }
 0x2fe   :  { %v3011_v12 = vpop.f32.mrf.mxu2 }
 0x2ff   :  { %v3012_v24 = vadd.f32 %v3011_v12, %v2908_v18 }
 0x300   :  { %v3110_v41 = vpop.f32.mrf.mxu3  ;;  %v13313_v0 = vpop.f32.mrf.mxu0 }
 0x301   :  { %v3111_v25 = vadd.f32 %v3110_v41, %v3007_v63  ;;  %v3140_v63 = vadd.f32 %v13236_v38, %v13309_v53  ;;  %v18829_v38 = vld [vmem:[#allocation28_spill] sm:$0xff] }
 0x302   :  { %v3241_v1 = vpop.f32.mrf.mxu1 }
 0x303   :  { %v6320_v32 = vmax.f32 %v3111_v25, 0.0  ;;  %v3242_v15 = vadd.f32 %v3241_v1, %v3138_v6  ;;  %3201 = vmatmul.bf16.gmra.mxu0 %v18823_v51  ;;  %3374 = vmatmul.bf16.gmra.mxu2 %v18824_v3 }
 0x305   :  { %3280 = vmatmul.bf16.gmra.mxu1 %v18825_v9  ;;  %3473 = vmatmul.bf16.gmra.mxu3 %v18826_v23  ;;  %v13319_v18 = vpack.c.bf16 %v6320_v32, %v6311_v44  ;;  %v3143_v9 = vadd.f32 %v13240_v33, %v13309_v53 }
 0x306   :  { %v3014_v12 = vpop.f32.mrf.mxu2 }
 0x307   :  { %18827 = vst [vmem:[#allocation91_spill] sm:$0xff] %v13319_v18  ;;  %v3015_v43 = vadd.f32 %v3014_v12, %v2911_v54 }
 0x308   :  { %v3113_v7 = vpop.f32.mrf.mxu3  ;;  %v13323_v19 = vpop.f32.mrf.mxu0 }
 0x309   :  { %v3114_v41 = vadd.f32 %v3113_v7, %v3010_v37  ;;  %v18830_v37 = vld [vmem:[#allocation29_spill] sm:$0xff]  ;;  %v18831_v7 = vld [vmem:[#allocation30_spill] sm:$0xff] }
 0x30a   :  { %v3243_v6 = vpop.f32.mrf.mxu1 }
 0x30b   :  { %v3244_v25 = vadd.f32 %v3243_v6, %v3140_v63  ;;  %v6329_v54 = vmax.f32 %v3114_v41, 0.0 }
 0x30e   :  { %v3016_v1 = vpop.f32.mrf.mxu2 }
 0x30f   :  { %v3017_v51 = vadd.f32 %v3016_v1, %v2913_v17  ;;  %v11022_v1 = vld [vmem:[%s18544_s1 + $0xc] sm:$0xf] }
 0x310   :  { %v3115_v3 = vpop.f32.mrf.mxu3  ;;  %v13327_v32 = vpop.f32.mrf.mxu0 }
 0x311   :  { %v3116_v23 = vadd.f32 %v3115_v3, %v3012_v24  ;;  %v3145_v3 = vadd.f32 %v13250_v39, %v13309_v53  ;;  %v3148_v39 = vadd.f32 %v13254_v55, %v13309_v53 }
 0x312   :  { %v3246_v44 = vpop.f32.mrf.mxu1 }
 0x313   :  { %v6338_v12 = vmax.f32 %v3116_v23, 0.0  ;;  %v3247_v18 = vadd.f32 %v3246_v44, %v3143_v9  ;;  %3206 = vmatmul.bf16.gmra.mxu0 %v18828_v58  ;;  %3379 = vmatmul.bf16.gmra.mxu2 %v18829_v38  ;;  %v9229_v44 = vld [vmem:[%s18544_s1 + $0x2c] sm:$0xf0]  ;;  %v18834_v38 = vld [vmem:[#allocation33_spill] sm:$0xff] }
 0x315   :  { %3285 = vmatmul.bf16.gmra.mxu1 %v18830_v37  ;;  %3478 = vmatmul.bf16.gmra.mxu3 %v18831_v7  ;;  %v13333_v17 = vpack.c.bf16 %v6338_v12, %v6329_v54  ;;  %v9232_v54 = vor.u32 %v11022_v1, %v9229_v44  ;;  %v18833_v37 = vld [vmem:[#allocation7_spill] sm:$0xff]  ;;  %v18835_v1 = vld [vmem:[#allocation34_spill] sm:$0xff] }
 0x316   :  { %v3019_v63 = vpop.f32.mrf.mxu2  ;;  %v18836_v44 = vld [vmem:[#allocation35_spill] sm:$0xff] }
 0x317   :  { %18832 = vst [vmem:[#allocation3_spill] sm:$0xff] %v13333_v17  ;;  %v3020_v6 = vadd.f32 %v3019_v63, %v2916_v13  ;;  %3551 = vmatpush.bf16.msrb.mxu0 %v9232_v54 }
 0x318   :  { %v3118_v33 = vpop.f32.mrf.mxu3  ;;  %v13337_v41 = vpop.f32.mrf.mxu0 }
 0x319   :  { %v3119_v24 = vadd.f32 %v3118_v33, %v3015_v43 }
 0x31a   :  { %v3248_v9 = vpop.f32.mrf.mxu1 }
 0x31b   :  { %v13339_v23 = vadd.f32 %v3248_v9, %v3145_v3  ;;  %v6347_v9 = vmax.f32 %v3119_v24, 0.0 }
 0x31e   :  { %v3021_v13 = vpop.f32.mrf.mxu2 }
 0x31f   :  { %v3022_v12 = vadd.f32 %v3021_v13, %v2918_v10  ;;  %v3150_v13 = vadd.f32 %v13270_v30, %v13309_v53  ;;  %v18838_v30 = vld [vmem:[#allocation4_spill] sm:$0xff] }
 0x320   :  { %v3120_v63 = vpop.f32.mrf.mxu3  ;;  %v13349_v33 = vpop.f32.mrf.mxu0 }
 0x321   :  { %v3121_v43 = vadd.f32 %v3120_v63, %v3017_v51 }
 0x322   :  { %v3251_v3 = vpop.f32.mrf.mxu1 }
 0x323   :  { %v6356_v17 = vmax.f32 %v3121_v43, 0.0  ;;  %v13351_v7 = vadd.f32 %v3251_v3, %v3148_v39  ;;  %3211 = vmatmul.bf16.gmra.mxu0 %v18833_v37  ;;  %3384 = vmatmul.bf16.gmra.mxu2 %v18834_v38 }
 0x325   :  { %3290 = vmatmul.bf16.gmra.mxu1 %v18835_v1  ;;  %3483 = vmatmul.bf16.gmra.mxu3 %v18836_v44  ;;  %v13357_v10 = vpack.c.bf16 %v6356_v17, %v6347_v9  ;;  %v3153_v44 = vadd.f32 %v13274_v36, %v13309_v53 }
 0x326   :  { %v3345_v54 = vpop.f32.mrf.mxu2 }
 0x327   :  { %18837 = vst [vmem:[#allocation92_spill] sm:$0xff] %v13357_v10  ;;  %v3346_v51 = vadd.f32 %v3345_v54, %v3242_v15 }
 0x328   :  { %v3123_v55 = vpop.f32.mrf.mxu3  ;;  %v13361_v63 = vpop.f32.mrf.mxu0 }
 0x329   :  { %v3124_v24 = vadd.f32 %v3123_v55, %v3020_v6  ;;  %v18839_v6 = vld [vmem:[#allocation39_spill] sm:$0xff]  ;;  %v18840_v55 = vld [vmem:[#allocation40_spill] sm:$0xff] }
 0x32a   :  { %v3253_v39 = vpop.f32.mrf.mxu1 }
 0x32b   :  { %v13363_v43 = vadd.f32 %v3253_v39, %v3150_v13  ;;  %v6365_v15 = vmax.f32 %v3124_v24, 0.0  ;;  %v18841_v13 = vld [vmem:[#allocation41_spill] sm:$0xff] }
 0x32e   :  { %v3347_v3 = vpop.f32.mrf.mxu2 }
 0x32f   :  { %v3348_v37 = vadd.f32 %v3347_v3, %v3244_v25 }
 0x330   :  { %v3125_v38 = vpop.f32.mrf.mxu3  ;;  %v13367_v9 = vpop.f32.mrf.mxu0 }
 0x331   :  { %v3126_v17 = vadd.f32 %v3125_v38, %v3022_v12  ;;  %v3155_v12 = vadd.f32 %v13284_v29, %v13309_v53  ;;  %v10345_v29 = vld [vmem:[%s18544_s1 + $0x8e4] sm:$0xf0] }
 0x332   :  { %v3256_v10 = vpop.f32.mrf.mxu1 }
 0x333   :  { %v6374_v54 = vmax.f32 %v3126_v17, 0.0  ;;  %v13369_v1 = vadd.f32 %v3256_v10, %v3153_v44  ;;  %3216 = vmatmul.bf16.gmra.mxu0 %v18838_v30  ;;  %3389 = vmatmul.bf16.gmra.mxu2 %v18839_v6  ;;  %v11229_v17 = vld [vmem:[%s18544_s1 + $0x684] sm:$0xf] }
 0x335   :  { %3295 = vmatmul.bf16.gmra.mxu1 %v18840_v55  ;;  %3488 = vmatmul.bf16.gmra.mxu3 %v18841_v13  ;;  %v13375_v25 = vpack.c.bf16 %v6374_v54, %v6365_v15  ;;  %v10057_v15 = vld [vmem:[%s18544_s1 + $0x6a4] sm:$0xf0] }
 0x336   :  { %v3350_v39 = vpop.f32.mrf.mxu2  ;;  %v10060_v54 = vor.u32 %v11229_v17, %v10057_v15 }
 0x337   :  { %18842 = vst [vmem:[#allocation93_spill] sm:$0xff] %v13375_v25  ;;  %v3351_v36 = vadd.f32 %v3350_v39, %v3247_v18  ;;  %v11301_v18 = vld [vmem:[%s18544_s1 + $0x8c4] sm:$0xf]  ;;  %v3158_v25 = vadd.f32 %v13288_v59, %v13309_v53  ;;  %v9487_v59 = vld [vmem:[%s18544_s1 + $0x208] sm:$0xf] }
 0x338   :  { %v3449_v38 = vpop.f32.mrf.mxu3  ;;  %v13379_v3 = vpop.f32.mrf.mxu0  ;;  %v10348_v39 = vor.u32 %v11301_v18, %v10345_v29  ;;  %3752 = vmatpush.bf16.msra.mxu2 %v10060_v54 }
 0x339   :  { %v3450_v24 = vadd.f32 %v3449_v38, %v3346_v51  ;;  %v11157_v51 = vld [vmem:[%s18544_s1 + $0x444] sm:$0xf]  ;;  %v9769_v38 = vld [vmem:[%s18544_s1 + $0x464] sm:$0xf0] }
 0x33a   :  { %v3258_v44 = vpop.f32.mrf.mxu1  ;;  %3856 = vmatpush.bf16.msra.mxu3 %v10348_v39 }
 0x33b   :  { %v13381_v10 = vadd.f32 %v3258_v44, %v3155_v12  ;;  %v9772_v12 = vor.u32 %v11157_v51, %v9769_v38  ;;  %v6042_v18 = vmax.f32 %v3450_v24, 0.0  ;;  %v3160_v51 = vadd.f32 %v13298_v50, %v13309_v53 }
 0x33d   :  { %3648 = vmatpush.bf16.msrb.mxu1 %v9772_v12 }
 0x33e   :  { %v3352_v44 = vpop.f32.mrf.mxu2 }
 0x33f   :  { %v3353_v17 = vadd.f32 %v3352_v44, %v13339_v23  ;;  %v18844_v23 = vld [vmem:[#allocation44_spill] sm:$0xff] }
 0x340   :  { %v3451_v15 = vpop.f32.mrf.mxu3  ;;  %v13404_v55 = vpop.f32.mrf.mxu0 }
 0x341   :  { %v3452_v13 = vadd.f32 %v3451_v15, %v3348_v37  ;;  %v11090_v37 = vld [vmem:[%s18544_s1 + $0x228] sm:$0xf0] }
 0x342   :  { %v3261_v6 = vpop.f32.mrf.mxu1 }
 0x343   :  { %v6051_v29 = vmax.f32 %v3452_v13, 0.0  ;;  %v13406_v30 = vadd.f32 %v3261_v6, %v3158_v25  ;;  %3221 = vmatmul.bf16.gmra.mxu0 %v18777_v35  ;;  %3394 = vmatmul.bf16.gmra.mxu2 %v12215_v4  ;;  %v9488_v6 = vor.u32 %v11090_v37, %v9487_v59  ;;  %v3163_v59 = vadd.f32 %v13313_v0, %v13309_v53 }
 0x345   :  { %v13410_v54 = vpack.c.bf16 %v6051_v29, %v6042_v18  ;;  %3300 = vmatmul.bf16.gmra.mxu1 %v18779_v8  ;;  %3493 = vmatmul.bf16.gmra.mxu3 %v18844_v23 }
 0x346   :  { %v3355_v13 = vpop.f32.mrf.mxu2  ;;  %3960 = vmatpush.bf16.msra.mxu0 %v9488_v6 }
 0x347   :  { %18843 = vst [vmem:[#allocation94_spill] sm:$0xff] %v13410_v54  ;;  %v3356_v25 = vadd.f32 %v3355_v13, %v13351_v7 }
 0x348   :  { %v3454_v24 = vpop.f32.mrf.mxu3  ;;  %v13423_v38 = vpop.f32.mrf.mxu0 }
 0x349   :  { %v3455_v39 = vadd.f32 %v3454_v24, %v3351_v36  ;;  %v18845_v36 = vld [vmem:[#allocation11_spill] sm:$0xff] }
 0x34a   :  { %v3263_v12 = vpop.f32.mrf.mxu1  ;;  %v18846_v24 = vld [vmem:[#allocation47_spill] sm:$0xff] }
 0x34b   :  { %v13425_v44 = vadd.f32 %v3263_v12, %v3160_v51  ;;  %v6060_v13 = vmax.f32 %v3455_v39, 0.0  ;;  %v18847_v51 = vld [vmem:[#allocation48_spill] sm:$0xff]  ;;  %v18848_v12 = vld [vmem:[#allocation49_spill] sm:$0xff]  ;;  %v3165_v39 = vadd.f32 %v13323_v19, %v13309_v53 }
 0x34e   :  { %v3357_v15 = vpop.f32.mrf.mxu2 }
 0x34f   :  { %v3358_v18 = vadd.f32 %v3357_v15, %v13363_v43 }
 0x350   :  { %v3456_v29 = vpop.f32.mrf.mxu3  ;;  %v13430_v7 = vpop.f32.mrf.mxu0 }
 0x351   :  { %v3457_v37 = vadd.f32 %v3456_v29, %v3353_v17 }
 0x352   :  { %v3266_v6 = vpop.f32.mrf.mxu1 }
 0x353   :  { %v6069_v54 = vmax.f32 %v3457_v37, 0.0  ;;  %v13432_v50 = vadd.f32 %v3266_v6, %v3163_v59  ;;  %3226 = vmatmul.bf16.gmra.mxu0 %v18845_v36  ;;  %3399 = vmatmul.bf16.gmra.mxu2 %v18846_v24 }
 0x355   :  { %3305 = vmatmul.bf16.gmra.mxu1 %v18847_v51  ;;  %3498 = vmatmul.bf16.gmra.mxu3 %v18848_v12  ;;  %v13438_v43 = vpack.c.bf16 %v6069_v54, %v6060_v13  ;;  %v3168_v54 = vadd.f32 %v13327_v32, %v13309_v53 }
 0x356   :  { %v3360_v15 = vpop.f32.mrf.mxu2 }
 0x357   :  { %18849 = vst [vmem:[#allocation95_spill] sm:$0xff] %v13438_v43  ;;  %v3361_v0 = vadd.f32 %v3360_v15, %v13369_v1 }
 0x358   :  { %v3459_v17 = vpop.f32.mrf.mxu3  ;;  %v13443_v59 = vpop.f32.mrf.mxu0 }
 0x359   :  { %v3460_v29 = vadd.f32 %v3459_v17, %v3356_v25  ;;  %v11220_v25 = vld [vmem:[%s18544_s1 + $0x63c] sm:$0xf]  ;;  %v18851_v17 = vld [vmem:[#allocation2_spill] sm:$0xff] }
 0x35a   :  { %v3268_v37 = vpop.f32.mrf.mxu1 }
 0x35b   :  { %v13445_v6 = vadd.f32 %v3268_v37, %v3165_v39  ;;  %v6078_v15 = vmax.f32 %v3460_v29, 0.0  ;;  %v18852_v39 = vld [vmem:[#allocation52_spill] sm:$0xff]  ;;  %v18853_v29 = vld [vmem:[#allocation53_spill] sm:$0xff] }
 0x35e   :  { %v3362_v24 = vpop.f32.mrf.mxu2 }
 0x35f   :  { %v3363_v51 = vadd.f32 %v3362_v24, %v13381_v10  ;;  %v10021_v10 = vld [vmem:[%s18544_s1 + $0x65c] sm:$0xf0]  ;;  %v18850_v24 = vld [vmem:[#allocation51_spill] sm:$0xff] }
 0x360   :  { %v3461_v36 = vpop.f32.mrf.mxu3  ;;  %v13450_v43 = vpop.f32.mrf.mxu0  ;;  %v10024_v32 = vor.u32 %v11220_v25, %v10021_v10 }
 0x361   :  { %v3462_v13 = vadd.f32 %v3461_v36, %v3358_v18  ;;  %v11292_v18 = vld [vmem:[%s18544_s1 + $0x87c] sm:$0xf]  ;;  %v10309_v36 = vld [vmem:[%s18544_s1 + $0x89c] sm:$0xf0] }
 0x362   :  { %v3271_v1 = vpop.f32.mrf.mxu1  ;;  %v10312_v37 = vor.u32 %v11292_v18, %v10309_v36  ;;  %3753 = vmatpush.bf16.msra.mxu2 %v10024_v32  ;;  %v3170_v18 = vadd.f32 %v13337_v41, %v13309_v53 }
 0x363   :  { %v6087_v12 = vmax.f32 %v3462_v13, 0.0  ;;  %v13452_v19 = vadd.f32 %v3271_v1, %v3168_v54  ;;  %3404 = vmatmul.bf16.gmra.mxu2 %v18850_v24  ;;  %3552 = vmatmul.bf16.vlgmr.msrb.gmra.mxu0 %v18851_v17  ;;  %v11148_v54 = vld [vmem:[%s18544_s1 + $0x3fc] sm:$0xf]  ;;  %v9733_v13 = vld [vmem:[%s18544_s1 + $0x41c] sm:$0xf0] }
 0x364   :  { %v9736_v25 = vor.u32 %v11148_v54, %v9733_v13  ;;  %3857 = vmatpush.bf16.msra.mxu3 %v10312_v37 }
 0x365   :  { %3310 = vmatmul.bf16.gmra.mxu1 %v18852_v39  ;;  %3503 = vmatmul.bf16.gmra.mxu3 %v18853_v29  ;;  %v13476_v1 = vpack.c.bf16 %v6087_v12, %v6078_v15  ;;  %v9451_v12 = vld [vmem:[%s18544_s1 + $0x1c0] sm:$0xf]  ;;  %v11081_v15 = vld [vmem:[%s18544_s1 + $0x1e0] sm:$0xf0] }
 0x366   :  { %v3365_v10 = vpop.f32.mrf.mxu2  ;;  %3649 = vmatpush.bf16.msrb.mxu1 %v9736_v25 }
 0x367   :  { %18854 = vst [vmem:[#allocation96_spill] sm:$0xff] %v13476_v1  ;;  %v3366_v17 = vadd.f32 %v3365_v10, %v13406_v30  ;;  %v9452_v30 = vor.u32 %v11081_v15, %v9451_v12  ;;  %v18856_v12 = vld [vmem:[#allocation56_spill] sm:$0xff]  ;;  %v18857_v15 = vld [vmem:[#allocation57_spill] sm:$0xff] }
 0x368   :  { %v3464_v39 = vpop.f32.mrf.mxu3  ;;  %v13481_v29 = vpop.f32.mrf.mxu0 }
 0x369   :  { %v3465_v36 = vadd.f32 %v3464_v39, %v3361_v0  ;;  %3961 = vmatpush.bf16.msra.mxu0 %v9452_v30  ;;  %v3173_v0 = vadd.f32 %v13349_v33, %v13309_v53 }
 0x36a   :  { %v3273_v24 = vpop.f32.mrf.mxu1 }
 0x36b   :  { %v13483_v23 = vadd.f32 %v3273_v24, %v3170_v18  ;;  %v6096_v13 = vmax.f32 %v3465_v36, 0.0  ;;  %v18855_v18 = vld [vmem:[#allocation6_spill] sm:$0xff]  ;;  %v3175_v36 = vadd.f32 %v13361_v63, %v13309_v53  ;;  %v11130_v63 = vld [vmem:[%s18544_s1 + $0x36c] sm:$0xf] }
 0x36e   :  { %v3367_v32 = vpop.f32.mrf.mxu2 }
 0x36f   :  { %v3368_v37 = vadd.f32 %v3367_v32, %v13425_v44 }
 0x370   :  { %v3466_v41 = vpop.f32.mrf.mxu3  ;;  %v13494_v24 = vpop.f32.mrf.mxu0 }
 0x371   :  { %v3467_v39 = vadd.f32 %v3466_v41, %v3363_v51 }
 0x372   :  { %v3276_v54 = vpop.f32.mrf.mxu1 }
 0x373   :  { %v6105_v25 = vmax.f32 %v3467_v39, 0.0  ;;  %v13496_v10 = vadd.f32 %v3276_v54, %v3173_v0  ;;  %3409 = vmatmul.bf16.gmra.mxu2 %v18790_v20  ;;  %3557 = vmatmul.bf16.gmra.mxu0 %v18855_v18  ;;  %v11139_v54 = vld [vmem:[%s18544_s1 + $0x3b4] sm:$0xf] }
 0x375   :  { %3315 = vmatmul.bf16.gmra.mxu1 %v18856_v12  ;;  %3508 = vmatmul.bf16.gmra.mxu3 %v18857_v15  ;;  %v13502_v44 = vpack.c.bf16 %v6105_v25, %v6096_v13  ;;  %v9697_v13 = vld [vmem:[%s18544_s1 + $0x3d4] sm:$0xf0]  ;;  %v11121_v12 = vld [vmem:[%s18544_s1 + $0x324] sm:$0xf] }
 0x376   :  { %v3370_v30 = vpop.f32.mrf.mxu2  ;;  %v9700_v25 = vor.u32 %v11139_v54, %v9697_v13 }
 0x377   :  { %18858 = vst [vmem:[#allocation6_spill] sm:$0xff] %v13502_v44  ;;  %v3371_v33 = vadd.f32 %v3370_v30, %v13432_v50 }
 0x378   :  { %v3469_v51 = vpop.f32.mrf.mxu3  ;;  %v13507_v41 = vpop.f32.mrf.mxu0  ;;  %3650 = vmatpush.bf16.msrb.mxu1 %v9700_v25 }
 0x379   :  { %v3470_v32 = vadd.f32 %v3469_v51, %v3366_v17  ;;  %v9661_v17 = vld [vmem:[%s18544_s1 + $0x38c] sm:$0xf0] }
 0x37a   :  { %v3278_v0 = vpop.f32.mrf.mxu1 }
 0x37b   :  { %v13509_v39 = vadd.f32 %v3278_v0, %v3175_v36  ;;  %v9664_v36 = vor.u32 %v11130_v63, %v9661_v17  ;;  %v3178_v0 = vadd.f32 %v13367_v9, %v13309_v53  ;;  %v6114_v13 = vmax.f32 %v3470_v32, 0.0  ;;  %v18859_v9 = vld [vmem:[#allocation10_spill] sm:$0xff]  ;;  %v18861_v63 = vld [vmem:[#allocation60_spill] sm:$0xff]  ;;  %v9985_v32 = vld [vmem:[%s18544_s1 + $0x614] sm:$0xf0] }
 0x37d   :  { %3651 = vmatpush.bf16.msrb.mxu1 %v9664_v36 }
 0x37e   :  { %v3372_v50 = vpop.f32.mrf.mxu2 }
 0x37f   :  { %v3373_v30 = vadd.f32 %v3372_v50, %v13445_v6  ;;  %v9625_v6 = vld [vmem:[%s18544_s1 + $0x344] sm:$0xf0] }
 0x380   :  { %v3471_v51 = vpop.f32.mrf.mxu3  ;;  %v13526_v1 = vpop.f32.mrf.mxu0  ;;  %v18860_v50 = vld [vmem:[#allocation59_spill] sm:$0xff] }
 0x381   :  { %v3472_v44 = vadd.f32 %v3471_v51, %v3368_v37  ;;  %v9628_v37 = vor.u32 %v11121_v12, %v9625_v6  ;;  %v11112_v12 = vld [vmem:[%s18544_s1 + $0x2dc] sm:$0xf] }
 0x382   :  { %v3281_v54 = vpop.f32.mrf.mxu1 }
 0x383   :  { %v6123_v25 = vmax.f32 %v3472_v44, 0.0  ;;  %v13528_v15 = vadd.f32 %v3281_v54, %v3178_v0  ;;  %3414 = vmatmul.bf16.gmra.mxu2 %v12417_v61  ;;  %3562 = vmatmul.bf16.gmra.mxu0 %v18859_v9  ;;  %v11211_v44 = vld [vmem:[%s18544_s1 + $0x5f4] sm:$0xf]  ;;  %v9589_v0 = vld [vmem:[%s18544_s1 + $0x2fc] sm:$0xf0] }
 0x384   :  { %3652 = vmatpush.bf16.msrb.mxu1 %v9628_v37  ;;  %v9988_v51 = vor.u32 %v11211_v44, %v9985_v32  ;;  %v9415_v9 = vld [vmem:[%s18544_s1 + $0x178] sm:$0xf] }
 0x385   :  { %3320 = vmatmul.bf16.gmra.mxu1 %v18860_v50  ;;  %3513 = vmatmul.bf16.gmra.mxu3 %v18861_v63  ;;  %v13546_v17 = vpack.c.bf16 %v6123_v25, %v6114_v13  ;;  %v9592_v63 = vor.u32 %v11112_v12, %v9589_v0  ;;  %v3180_v13 = vadd.f32 %v13379_v3, %v13309_v53  ;;  %v11103_v3 = vld [vmem:[%s18544_s1 + $0x294] sm:$0xf]  ;;  %v11094_v12 = vld [vmem:[%s18544_s1 + $0x24c] sm:$0xf] }
 0x386   :  { %v3375_v36 = vpop.f32.mrf.mxu2  ;;  %3754 = vmatpush.bf16.msra.mxu2 %v9988_v51 }
 0x387   :  { %18862 = vst [vmem:[#allocation97_spill] sm:$0xff] %v13546_v17  ;;  %v3376_v54 = vadd.f32 %v3375_v36, %v13452_v19  ;;  %v11283_v17 = vld [vmem:[%s18544_s1 + $0x834] sm:$0xf]  ;;  %v10273_v19 = vld [vmem:[%s18544_s1 + $0x854] sm:$0xf0] }
 0x388   :  { %v3474_v6 = vpop.f32.mrf.mxu3  ;;  %v13557_v37 = vpop.f32.mrf.mxu0  ;;  %3653 = vmatpush.bf16.msrb.mxu1 %v9592_v63  ;;  %v10276_v51 = vor.u32 %v11283_v17, %v10273_v19  ;;  %v9517_v17 = vld [vmem:[%s18544_s1 + $0x26c] sm:$0xf0] }
 0x389   :  { %v3475_v25 = vadd.f32 %v3474_v6, %v3371_v33  ;;  %v9553_v33 = vld [vmem:[%s18544_s1 + $0x2b4] sm:$0xf0] }
 0x38a   :  { %v3283_v44 = vpop.f32.mrf.mxu1  ;;  %v9556_v63 = vor.u32 %v11103_v3, %v9553_v33  ;;  %3858 = vmatpush.bf16.msra.mxu3 %v10276_v51 }
 0x38b   :  { %v13559_v32 = vadd.f32 %v3283_v44, %v3180_v13  ;;  %v9520_v13 = vor.u32 %v11094_v12, %v9517_v17  ;;  %v3183_v44 = vadd.f32 %v13404_v55, %v13309_v53  ;;  %v6132_v33 = vmax.f32 %v3475_v25, 0.0  ;;  %v18863_v55 = vld [vmem:[#allocation12_spill] sm:$0xff]  ;;  %v18864_v25 = vld [vmem:[#allocation63_spill] sm:$0xff] }
 0x38c   :  { %3654 = vmatpush.bf16.msrb.mxu1 %v9556_v63 }
 0x38e   :  { %v3377_v36 = vpop.f32.mrf.mxu2 }
 0x38f   :  { %v3378_v0 = vadd.f32 %v3377_v36, %v13483_v23  ;;  %v11072_v23 = vld [vmem:[%s18544_s1 + $0x198] sm:$0xf0] }
 0x390   :  { %v3476_v6 = vpop.f32.mrf.mxu3  ;;  %v13582_v3 = vpop.f32.mrf.mxu0  ;;  %3655 = vmatpush.bf16.msrb.mxu1 %v9520_v13 }
 0x391   :  { %v3477_v19 = vadd.f32 %v3476_v6, %v3373_v30  ;;  %v9416_v30 = vor.u32 %v11072_v23, %v9415_v9 }
 0x392   :  { %v3286_v51 = vpop.f32.mrf.mxu1 }
 0x393   :  { %v6141_v63 = vmax.f32 %v3477_v19, 0.0  ;;  %v13584_v50 = vadd.f32 %v3286_v51, %v3183_v44  ;;  %3419 = vmatmul.bf16.gmra.mxu2 %v12491_v22  ;;  %3567 = vmatmul.bf16.gmra.mxu0 %v18863_v55  ;;  %v3185_v44 = vadd.f32 %v13423_v38, %v13309_v53  ;;  %v3188_v38 = vadd.f32 %v13430_v7, %v13309_v53 }
 0x394   :  { %3962 = vmatpush.bf16.msra.mxu0 %v9416_v30 }
 0x395   :  { %3325 = vmatmul.bf16.gmra.mxu1 %v18799_v49  ;;  %3518 = vmatmul.bf16.gmra.mxu3 %v18864_v25  ;;  %v13596_v36 = vpack.c.bf16 %v6141_v63, %v6132_v33  ;;  %v11202_v33 = vld [vmem:[%s18544_s1 + $0x5ac] sm:$0xf]  ;;  %v9949_v63 = vld [vmem:[%s18544_s1 + $0x5cc] sm:$0xf0]  ;;  %v11193_v25 = vld [vmem:[%s18544_s1 + $0x564] sm:$0xf] }
 0x396   :  { %v3380_v12 = vpop.f32.mrf.mxu2  ;;  %v9952_v30 = vor.u32 %v11202_v33, %v9949_v63  ;;  %v11184_v33 = vld [vmem:[%s18544_s1 + $0x51c] sm:$0xf]  ;;  %v9877_v63 = vld [vmem:[%s18544_s1 + $0x53c] sm:$0xf0] }
 0x397   :  { %18865 = vst [vmem:[#allocation98_spill] sm:$0xff] %v13596_v36  ;;  %v3381_v17 = vadd.f32 %v3380_v12, %v13496_v10 }
 0x398   :  { %v3479_v6 = vpop.f32.mrf.mxu3  ;;  %v13601_v19 = vpop.f32.mrf.mxu0  ;;  %3755 = vmatpush.bf16.msra.mxu2 %v9952_v30 }
 0x399   :  { %v3480_v13 = vadd.f32 %v3479_v6, %v3376_v54 }
 0x39a   :  { %v3288_v51 = vpop.f32.mrf.mxu1 }
 0x39b   :  { %v13603_v55 = vadd.f32 %v3288_v51, %v3185_v44  ;;  %v6150_v44 = vmax.f32 %v3480_v13, 0.0 }
 0x39e   :  { %v3382_v9 = vpop.f32.mrf.mxu2 }
 0x39f   :  { %v3383_v10 = vadd.f32 %v3382_v9, %v13509_v39  ;;  %v9913_v39 = vld [vmem:[%s18544_s1 + $0x584] sm:$0xf0] }
 0x3a0   :  { %v3481_v23 = vpop.f32.mrf.mxu3  ;;  %v13614_v12 = vpop.f32.mrf.mxu0  ;;  %v9916_v7 = vor.u32 %v11193_v25, %v9913_v39  ;;  %v9880_v25 = vor.u32 %v11184_v33, %v9877_v63  ;;  %v11175_v39 = vld [vmem:[%s18544_s1 + $0x4d4] sm:$0xf]  ;;  %v11166_v63 = vld [vmem:[%s18544_s1 + $0x48c] sm:$0xf] }
 0x3a1   :  { %v3482_v54 = vadd.f32 %v3481_v23, %v3378_v0  ;;  %v18866_v0 = vld [vmem:[#allocation66_spill] sm:$0xff] }
 0x3a2   :  { %v3291_v6 = vpop.f32.mrf.mxu1  ;;  %3756 = vmatpush.bf16.msra.mxu2 %v9916_v7 }
 0x3a3   :  { %v6159_v51 = vmax.f32 %v3482_v54, 0.0  ;;  %v13616_v36 = vadd.f32 %v3291_v6, %v3188_v38  ;;  %3424 = vmatmul.bf16.gmra.mxu2 %v12541_v62  ;;  %3572 = vmatmul.bf16.gmra.mxu0 %v11830_v42  ;;  %v3190_v38 = vadd.f32 %v13443_v59, %v13309_v53  ;;  %v11274_v59 = vld [vmem:[%s18544_s1 + $0x7ec] sm:$0xf] }
 0x3a5   :  { %3330 = vmatmul.bf16.gmra.mxu1 %v12543_v5  ;;  %3523 = vmatmul.bf16.gmra.mxu3 %v18866_v0  ;;  %v13628_v13 = vpack.c.bf16 %v6159_v51, %v6150_v44  ;;  %v11265_v0 = vld [vmem:[%s18544_s1 + $0x7a4] sm:$0xf] }
 0x3a6   :  { %v3385_v9 = vpop.f32.mrf.mxu2  ;;  %3757 = vmatpush.bf16.msra.mxu2 %v9880_v25 }
 0x3a7   :  { %18867 = vst [vmem:[#allocation99_spill] sm:$0xff] %v13628_v13  ;;  %v3386_v23 = vadd.f32 %v3385_v9, %v13528_v15  ;;  %v9841_v15 = vld [vmem:[%s18544_s1 + $0x4f4] sm:$0xf0] }
 0x3a8   :  { %v3484_v30 = vpop.f32.mrf.mxu3  ;;  %v13639_v6 = vpop.f32.mrf.mxu0  ;;  %v9844_v7 = vor.u32 %v11175_v39, %v9841_v15  ;;  %v3193_v39 = vadd.f32 %v13450_v43, %v13309_v53 }
 0x3a9   :  { %v3485_v54 = vadd.f32 %v3484_v30, %v3381_v17  ;;  %v10237_v17 = vld [vmem:[%s18544_s1 + $0x80c] sm:$0xf0] }
 0x3aa   :  { %v3293_v44 = vpop.f32.mrf.mxu1  ;;  %v10240_v9 = vor.u32 %v11274_v59, %v10237_v17  ;;  %3758 = vmatpush.bf16.msra.mxu2 %v9844_v7  ;;  %v9805_v30 = vld [vmem:[%s18544_s1 + $0x4ac] sm:$0xf0] }
 0x3ab   :  { %v13641_v51 = vadd.f32 %v3293_v44, %v3190_v38  ;;  %v9808_v44 = vor.u32 %v11166_v63, %v9805_v30  ;;  %v6168_v17 = vmax.f32 %v3485_v54, 0.0  ;;  %v9379_v54 = vld [vmem:[%s18544_s1 + $0x130] sm:$0xf] }
 0x3ac   :  { %3859 = vmatpush.bf16.msra.mxu3 %v10240_v9 }
 0x3ae   :  { %v3387_v33 = vpop.f32.mrf.mxu2  ;;  %3759 = vmatpush.bf16.msra.mxu2 %v9808_v44  ;;  %v10165_v44 = vld [vmem:[%s18544_s1 + $0x77c] sm:$0xf0] }
 0x3af   :  { %v3388_v25 = vadd.f32 %v3387_v33, %v13559_v32  ;;  %v10201_v32 = vld [vmem:[%s18544_s1 + $0x7c4] sm:$0xf0]  ;;  %v11063_v33 = vld [vmem:[%s18544_s1 + $0x150] sm:$0xf0] }
 0x3b0   :  { %v3486_v38 = vpop.f32.mrf.mxu3  ;;  %v13664_v59 = vpop.f32.mrf.mxu0  ;;  %v10204_v43 = vor.u32 %v11265_v0, %v10201_v32  ;;  %v9380_v30 = vor.u32 %v11063_v33, %v9379_v54  ;;  %v11256_v0 = vld [vmem:[%s18544_s1 + $0x75c] sm:$0xf]  ;;  %v11247_v33 = vld [vmem:[%s18544_s1 + $0x714] sm:$0xf] }
 0x3b1   :  { %v3487_v15 = vadd.f32 %v3486_v38, %v3383_v10  ;;  %v18868_v10 = vld [vmem:[#allocation5_spill] sm:$0xff] }
 0x3b2   :  { %v3296_v7 = vpop.f32.mrf.mxu1  ;;  %3860 = vmatpush.bf16.msra.mxu3 %v10204_v43  ;;  %3963 = vmatpush.bf16.msra.mxu0 %v9380_v30 }
 0x3b3   :  { %v6177_v9 = vmax.f32 %v3487_v15, 0.0  ;;  %v13666_v13 = vadd.f32 %v3296_v7, %v3193_v39  ;;  %3429 = vmatmul.bf16.gmra.mxu2 %v12603_v2  ;;  %3577 = vmatmul.bf16.gmra.mxu0 %v11866_v56  ;;  %v10168_v7 = vor.u32 %v11256_v0, %v10165_v44 }
 0x3b5   :  { %3528 = vmatmul.bf16.gmra.mxu3 %v18804_v40  ;;  %3656 = vmatmul.bf16.vlgmr.msrb.gmra.mxu1 %v18868_v10  ;;  %v13684_v63 = vpack.c.bf16 %v6177_v9, %v6168_v17  ;;  %v3195_v17 = vadd.f32 %v13481_v29, %v13309_v53  ;;  %v11238_v29 = vld [vmem:[%s18544_s1 + $0x6cc] sm:$0xf] }
 0x3b6   :  { %v3390_v38 = vpop.f32.mrf.mxu2  ;;  %3861 = vmatpush.bf16.msra.mxu3 %v10168_v7  ;;  %v3198_v7 = vadd.f32 %v13494_v24, %v13309_v53  ;;  %v18870_v10 = vld [vmem:[#allocation71_spill] sm:$0xff] }
 0x3b7   :  { %18869 = vst [vmem:[#allocation100_spill] sm:$0xff] %v13684_v63  ;;  %v3391_v39 = vadd.f32 %v3390_v38, %v13584_v50  ;;  %v10129_v50 = vld [vmem:[%s18544_s1 + $0x734] sm:$0xf0] }
 0x3b8   :  { %v3489_v15 = vpop.f32.mrf.mxu3  ;;  %v13695_v32 = vpop.f32.mrf.mxu0  ;;  %v10132_v38 = vor.u32 %v11247_v33, %v10129_v50 }
 0x3b9   :  { %v3490_v9 = vadd.f32 %v3489_v15, %v3386_v23  ;;  %v10093_v23 = vld [vmem:[%s18544_s1 + $0x6ec] sm:$0xf0] }
 0x3ba   :  { %v3298_v43 = vpop.f32.mrf.mxu1  ;;  %3862 = vmatpush.bf16.msra.mxu3 %v10132_v38  ;;  %v10096_v15 = vor.u32 %v11238_v29, %v10093_v23  ;;  %v3200_v23 = vadd.f32 %v13507_v41, %v13309_v53 }
 0x3bb   :  { %v3299_v54 = vadd.f32 %v3298_v43, %v3195_v17  ;;  %v6186_v50 = vmax.f32 %v3490_v9, 0.0 }
 0x3be   :  { %v3392_v30 = vpop.f32.mrf.mxu2  ;;  %3863 = vmatpush.bf16.msra.mxu3 %v10096_v15 }
 0x3bf   :  { %v3393_v0 = vadd.f32 %v3392_v30, %v13603_v55  ;;  %v18871_v55 = vld [vmem:[#allocation9_spill] sm:$0xff] }
 0x3c0   :  { %v3491_v44 = vpop.f32.mrf.mxu3  ;;  %v13712_v43 = vpop.f32.mrf.mxu0 }
 0x3c1   :  { %v3492_v17 = vadd.f32 %v3491_v44, %v3388_v25 }
 0x3c2   :  { %v3301_v33 = vpop.f32.mrf.mxu1 }
 0x3c3   :  { %v6195_v38 = vmax.f32 %v3492_v17, 0.0  ;;  %v3302_v63 = vadd.f32 %v3301_v33, %v3198_v7  ;;  %3434 = vmatmul.bf16.gmra.mxu2 %v12663_v48  ;;  %3582 = vmatmul.bf16.gmra.mxu0 %v11908_v11 }
 0x3c5   :  { %3533 = vmatmul.bf16.gmra.mxu3 %v18870_v10  ;;  %3661 = vmatmul.bf16.gmra.mxu1 %v18871_v55  ;;  %v13718_v30 = vpack.c.bf16 %v6195_v38, %v6186_v50  ;;  %v3203_v50 = vadd.f32 %v13526_v1, %v13309_v53 }
 0x3c6   :  { %v3395_v29 = vpop.f32.mrf.mxu2 }
 0x3c7   :  { %18872 = vst [vmem:[#allocation101_spill] sm:$0xff] %v13718_v30  ;;  %v3396_v24 = vadd.f32 %v3395_v29, %v13616_v36 }
 0x3c8   :  { %v3494_v25 = vpop.f32.mrf.mxu3  ;;  %v13723_v44 = vpop.f32.mrf.mxu0 }
 0x3c9   :  { %v3495_v9 = vadd.f32 %v3494_v25, %v3391_v39  ;;  %v3205_v39 = vadd.f32 %v13557_v37, %v13309_v53  ;;  %v3208_v37 = vadd.f32 %v13582_v3, %v13309_v53 }
 0x3ca   :  { %v3303_v15 = vpop.f32.mrf.mxu1 }
 0x3cb   :  { %v3304_v7 = vadd.f32 %v3303_v15, %v3200_v23  ;;  %v6204_v29 = vmax.f32 %v3495_v9, 0.0  ;;  %v9343_v15 = vld [vmem:[%s18544_s1 + $0xe8] sm:$0xf] }
 0x3ce   :  { %v3397_v17 = vpop.f32.mrf.mxu2 }
 0x3cf   :  { %v3398_v33 = vadd.f32 %v3397_v17, %v13641_v51 }
 0x3d0   :  { %v3496_v10 = vpop.f32.mrf.mxu3  ;;  %v13728_v30 = vpop.f32.mrf.mxu0 }
 0x3d1   :  { %v3497_v38 = vadd.f32 %v3496_v10, %v3393_v0 }
 0x3d2   :  { %v3306_v36 = vpop.f32.mrf.mxu1 }
 0x3d3   :  { %v6213_v55 = vmax.f32 %v3497_v38, 0.0  ;;  %v3307_v11 = vadd.f32 %v3306_v36, %v3203_v50  ;;  %3587 = vmatmul.bf16.gmra.mxu0 %v11944_v31  ;;  %3760 = vmatmul.bf16.vlgmr.msra.gmra.mxu2 %v11754_v14 }
 0x3d5   :  { %3538 = vmatmul.bf16.gmra.mxu3 %v12683_v34  ;;  %3666 = vmatmul.bf16.gmra.mxu1 %v11758_v16  ;;  %v13734_v41 = vpack.c.bf16 %v6213_v55, %v6204_v29  ;;  %v11054_v55 = vld [vmem:[%s18544_s1 + $0x108] sm:$0xf0] }
 0x3d6   :  { %v3400_v51 = vpop.f32.mrf.mxu2  ;;  %v9344_v17 = vor.u32 %v11054_v55, %v9343_v15 }
 0x3d7   :  { %18873 = vst [vmem:[#allocation102_spill] sm:$0xff] %v13734_v41  ;;  %v3401_v1 = vadd.f32 %v3400_v51, %v13666_v13 }
 0x3d8   :  { %v3499_v10 = vpop.f32.mrf.mxu3  ;;  %v13739_v25 = vpop.f32.mrf.mxu0  ;;  %3964 = vmatpush.bf16.msra.mxu0 %v9344_v17 }
 0x3d9   :  { %v3500_v0 = vadd.f32 %v3499_v10, %v3396_v24 }
 0x3da   :  { %v3308_v23 = vpop.f32.mrf.mxu1 }
 0x3db   :  { %v3309_v9 = vadd.f32 %v3308_v23, %v3205_v39  ;;  %v6222_v51 = vmax.f32 %v3500_v0, 0.0 }
 0x3de   :  { %v3402_v13 = vpop.f32.mrf.mxu2 }
 0x3df   :  { %v3403_v50 = vadd.f32 %v3402_v13, %v3299_v54 }
 0x3e0   :  { %v3501_v38 = vpop.f32.mrf.mxu3  ;;  %v13749_v36 = vpop.f32.mrf.mxu0 }
 0x3e1   :  { %v3502_v24 = vadd.f32 %v3501_v38, %v3398_v33  ;;  %v3210_v33 = vadd.f32 %v13601_v19, %v13309_v53 }
 0x3e2   :  { %v3311_v29 = vpop.f32.mrf.mxu1 }
 0x3e3   :  { %v6231_v10 = vmax.f32 %v3502_v24, 0.0  ;;  %v3312_v39 = vadd.f32 %v3311_v29, %v3208_v37  ;;  %3592 = vmatmul.bf16.gmra.mxu0 %v11991_v60  ;;  %3765 = vmatmul.bf16.gmra.mxu2 %v11790_v26  ;;  %v3213_v29 = vadd.f32 %v13614_v12, %v13309_v53 }
 0x3e5   :  { %3671 = vmatmul.bf16.gmra.mxu1 %v11792_v27  ;;  %3864 = vmatmul.bf16.vlgmr.msra.gmra.mxu3 %v11794_v28  ;;  %v13755_v54 = vpack.c.bf16 %v6231_v10, %v6222_v51 }
 0x3e6   :  { %v3405_v23 = vpop.f32.mrf.mxu2 }
 0x3e7   :  { %18874 = vst [vmem:[#allocation103_spill] sm:$0xff] %v13755_v54  ;;  %v3406_v15 = vadd.f32 %v3405_v23, %v3302_v63 }
 0x3e8   :  { %v3504_v3 = vpop.f32.mrf.mxu3  ;;  %v13759_v0 = vpop.f32.mrf.mxu0 }
 0x3e9   :  { %v3505_v55 = vadd.f32 %v3504_v3, %v3401_v1 }
 0x3ea   :  { %v3313_v17 = vpop.f32.mrf.mxu1 }
 0x3eb   :  { %v3314_v13 = vadd.f32 %v3313_v17, %v3210_v33  ;;  %v6240_v63 = vmax.f32 %v3505_v55, 0.0 }
 0x3ee   :  { %v3407_v38 = vpop.f32.mrf.mxu2 }
 0x3ef   :  { %v3408_v37 = vadd.f32 %v3407_v38, %v3304_v7 }
 0x3f0   :  { %v3506_v24 = vpop.f32.mrf.mxu3  ;;  %v13763_v51 = vpop.f32.mrf.mxu0 }
 0x3f1   :  { %v3507_v41 = vadd.f32 %v3506_v24, %v3403_v50  ;;  %v3215_v50 = vadd.f32 %v13639_v6, %v13309_v53  ;;  %v9307_v6 = vld [vmem:[%s18544_s1 + $0xa0] sm:$0xf] }
 0x3f2   :  { %v3316_v10 = vpop.f32.mrf.mxu1 }
 0x3f3   :  { %v6249_v23 = vmax.f32 %v3507_v41, 0.0  ;;  %v3317_v54 = vadd.f32 %v3316_v10, %v3213_v29  ;;  %3597 = vmatmul.bf16.gmra.mxu0 %v12047_v52  ;;  %3770 = vmatmul.bf16.gmra.mxu2 %v11832_v45  ;;  %v3218_v29 = vadd.f32 %v13664_v59, %v13309_v53 }
 0x3f5   :  { %3676 = vmatmul.bf16.gmra.mxu1 %v11834_v46  ;;  %3869 = vmatmul.bf16.gmra.mxu3 %v11836_v47  ;;  %v13769_v19 = vpack.c.bf16 %v6249_v23, %v6240_v63 }
 0x3f6   :  { %v3410_v7 = vpop.f32.mrf.mxu2 }
 0x3f7   :  { %18875 = vst [vmem:[#allocation104_spill] sm:$0xff] %v13769_v19  ;;  %v3411_v1 = vadd.f32 %v3410_v7, %v3307_v11 }
 0x3f8   :  { %v3509_v12 = vpop.f32.mrf.mxu3  ;;  %v13773_v33 = vpop.f32.mrf.mxu0 }
 0x3f9   :  { %v3510_v3 = vadd.f32 %v3509_v12, %v3406_v15  ;;  %v11045_v15 = vld [vmem:[%s18544_s1 + $0xc0] sm:$0xf0] }
 0x3fa   :  { %v3318_v41 = vpop.f32.mrf.mxu1  ;;  %v9308_v59 = vor.u32 %v11045_v15, %v9307_v6 }
 0x3fb   :  { %v3319_v55 = vadd.f32 %v3318_v41, %v3215_v50  ;;  %v6258_v11 = vmax.f32 %v3510_v3, 0.0 }
 0x3fc   :  { %3965 = vmatpush.bf16.msra.mxu0 %v9308_v59 }
 0x3fe   :  { %v3412_v17 = vpop.f32.mrf.mxu2 }
 0x3ff   :  { %v3413_v38 = vadd.f32 %v3412_v17, %v3309_v9  ;;  %v18876_v9 = vld [vmem:[#allocation16_spill] sm:$0xff]  ;;  %v3220_v17 = vadd.f32 %v13695_v32, %v13309_v53  ;;  %v18880_v32 = vld [vmem:[#allocation19_spill] sm:$0xff] }
 0x400   :  { %v3511_v24 = vpop.f32.mrf.mxu3  ;;  %v13777_v63 = vpop.f32.mrf.mxu0 }
 0x401   :  { %v3512_v10 = vadd.f32 %v3511_v24, %v3408_v37  ;;  %v18877_v37 = vld [vmem:[#allocation17_spill] sm:$0xff] }
 0x402   :  { %v3321_v23 = vpop.f32.mrf.mxu1 }
 0x403   :  { %v6267_v7 = vmax.f32 %v3512_v10, 0.0  ;;  %v3322_v19 = vadd.f32 %v3321_v23, %v3218_v29  ;;  %3602 = vmatmul.bf16.gmra.mxu0 %v12097_v21  ;;  %3775 = vmatmul.bf16.gmra.mxu2 %v11868_v57 }
 0x405   :  { %3681 = vmatmul.bf16.gmra.mxu1 %v18876_v9  ;;  %3874 = vmatmul.bf16.gmra.mxu3 %v18877_v37  ;;  %v13789_v12 = vpack.c.bf16 %v6267_v7, %v6258_v11  ;;  %v3223_v37 = vadd.f32 %v13712_v43, %v13309_v53  ;;  %v18879_v9 = vld [vmem:[#allocation38_spill] sm:$0xff] }
 0x406   :  { %v3415_v50 = vpop.f32.mrf.mxu2 }
 0x407   :  { %18878 = vst [vmem:[#allocation105_spill] sm:$0xff] %v13789_v12  ;;  %v3416_v3 = vadd.f32 %v3415_v50, %v3312_v39 }
 0x408   :  { %v3514_v41 = vpop.f32.mrf.mxu3  ;;  %v13793_v29 = vpop.f32.mrf.mxu0 }
 0x409   :  { %v3515_v24 = vadd.f32 %v3514_v41, %v3411_v1  ;;  %v18881_v1 = vld [vmem:[#allocation20_spill] sm:$0xff]  ;;  %v18882_v41 = vld [vmem:[#allocation21_spill] sm:$0xff] }
 0x40a   :  { %v3323_v10 = vpop.f32.mrf.mxu1 }
 0x40b   :  { %v3324_v23 = vadd.f32 %v3323_v10, %v3220_v17  ;;  %v6276_v39 = vmax.f32 %v3515_v24, 0.0 }
 0x40e   :  { %v3417_v57 = vpop.f32.mrf.mxu2 }
 0x40f   :  { %v3418_v6 = vadd.f32 %v3417_v57, %v3314_v13 }
 0x410   :  { %v3516_v15 = vpop.f32.mrf.mxu3  ;;  %v13797_v7 = vpop.f32.mrf.mxu0 }
 0x411   :  { %v3517_v11 = vadd.f32 %v3516_v15, %v3413_v38  ;;  %v3225_v38 = vadd.f32 %v13723_v44, %v13309_v53  ;;  %v18885_v44 = vld [vmem:[#allocation22_spill] sm:$0xff] }
 0x412   :  { %v3326_v59 = vpop.f32.mrf.mxu1 }
 0x413   :  { %v6285_v50 = vmax.f32 %v3517_v11, 0.0  ;;  %v3327_v12 = vadd.f32 %v3326_v59, %v3223_v37  ;;  %3607 = vmatmul.bf16.gmra.mxu0 %v18879_v9  ;;  %3780 = vmatmul.bf16.gmra.mxu2 %v18880_v32  ;;  %v18884_v9 = vld [vmem:[#allocation42_spill] sm:$0xff] }
 0x415   :  { %3686 = vmatmul.bf16.gmra.mxu1 %v18881_v1  ;;  %3879 = vmatmul.bf16.gmra.mxu3 %v18882_v41  ;;  %v13803_v57 = vpack.c.bf16 %v6285_v50, %v6276_v39  ;;  %v3228_v1 = vadd.f32 %v13728_v30, %v13309_v53 }
 0x416   :  { %v3420_v13 = vpop.f32.mrf.mxu2 }
 0x417   :  { %18883 = vst [vmem:[#allocation106_spill] sm:$0xff] %v13803_v57  ;;  %v3421_v17 = vadd.f32 %v3420_v13, %v3317_v54 }
 0x418   :  { %v3519_v43 = vpop.f32.mrf.mxu3  ;;  %v13807_v24 = vpop.f32.mrf.mxu0 }
 0x419   :  { %v3520_v10 = vadd.f32 %v3519_v43, %v3416_v3  ;;  %v18886_v3 = vld [vmem:[#allocation23_spill] sm:$0xff]  ;;  %v18887_v43 = vld [vmem:[#allocation24_spill] sm:$0xff] }
 0x41a   :  { %v3328_v37 = vpop.f32.mrf.mxu1 }
 0x41b   :  { %v3329_v15 = vadd.f32 %v3328_v37, %v3225_v38  ;;  %v6294_v54 = vmax.f32 %v3520_v10, 0.0 }
 0x41e   :  { %v3422_v11 = vpop.f32.mrf.mxu2 }
 0x41f   :  { %v3423_v59 = vadd.f32 %v3422_v11, %v3319_v55  ;;  %v9271_v11 = vld [vmem:[%s18544_s1 + $0x58] sm:$0xf] }
 0x420   :  { %v3521_v32 = vpop.f32.mrf.mxu3  ;;  %v13811_v39 = vpop.f32.mrf.mxu0 }
 0x421   :  { %v3522_v41 = vadd.f32 %v3521_v32, %v3418_v6  ;;  %v3230_v6 = vadd.f32 %v13739_v25, %v13309_v53 }
 0x422   :  { %v3331_v50 = vpop.f32.mrf.mxu1 }
 0x423   :  { %v6303_v13 = vmax.f32 %v3522_v41, 0.0  ;;  %v3332_v57 = vadd.f32 %v3331_v50, %v3228_v1  ;;  %3612 = vmatmul.bf16.gmra.mxu0 %v18884_v9  ;;  %3785 = vmatmul.bf16.gmra.mxu2 %v18885_v44  ;;  %v11036_v50 = vld [vmem:[%s18544_s1 + $0x78] sm:$0xf0] }
 0x425   :  { %3691 = vmatmul.bf16.gmra.mxu1 %v18886_v3  ;;  %3884 = vmatmul.bf16.gmra.mxu3 %v18887_v43  ;;  %v13817_v55 = vpack.c.bf16 %v6303_v13, %v6294_v54  ;;  %v9272_v54 = vor.u32 %v11036_v50, %v9271_v11  ;;  %v18889_v50 = vld [vmem:[#allocation46_spill] sm:$0xff]  ;;  %v18890_v3 = vld [vmem:[#allocation25_spill] sm:$0xff] }
 0x426   :  { %v3425_v38 = vpop.f32.mrf.mxu2 }
 0x427   :  { %18888 = vst [vmem:[#allocation42_spill] sm:$0xff] %v13817_v55  ;;  %v3426_v37 = vadd.f32 %v3425_v38, %v3322_v19  ;;  %v11401_v19 = vld [vmem:[%s18545_s2] sm:$0xff]  ;;  %3966 = vmatpush.bf16.msra.mxu0 %v9272_v54  ;;  %v18892_v54 = vld [vmem:[#allocation27_spill] sm:$0xff] }
 0x428   :  { %v3524_v30 = vpop.f32.mrf.mxu3  ;;  %v13821_v10 = vpop.f32.mrf.mxu0  ;;  %v13832_v13 = vperm.slane %v11401_v19, 3  ;;  %v18891_v19 = vld [vmem:[#allocation26_spill] sm:$0xff] }
 0x429   :  { %v3525_v32 = vadd.f32 %v3524_v30, %v3421_v17 }
 0x42a   :  { %v3333_v1 = vpop.f32.mrf.mxu1  ;;  %v3554_v38 = vadd.f32 %v13749_v36, %v13832_v13 }
 0x42b   :  { %v3334_v41 = vadd.f32 %v3333_v1, %v3230_v6  ;;  %v6312_v55 = vmax.f32 %v3525_v32, 0.0 }
 0x42e   :  { %v3427_v53 = vpop.f32.mrf.mxu2 }
 0x42f   :  { %v3428_v25 = vadd.f32 %v3427_v53, %v3324_v23 }
 0x430   :  { %v3526_v17 = vpop.f32.mrf.mxu3  ;;  %v13836_v6 = vpop.f32.mrf.mxu0 }
 0x431   :  { %v3527_v30 = vadd.f32 %v3526_v17, %v3423_v59  ;;  %v3556_v59 = vadd.f32 %v13759_v0, %v13832_v13  ;;  %v18894_v0 = vld [vmem:[#allocation28_spill] sm:$0xff] }
 0x432   :  { %v3657_v1 = vpop.f32.mrf.mxu1 }
 0x433   :  { %v6321_v43 = vmax.f32 %v3527_v30, 0.0  ;;  %v3658_v11 = vadd.f32 %v3657_v1, %v3554_v38  ;;  %3617 = vmatmul.bf16.gmra.mxu0 %v18889_v50  ;;  %3790 = vmatmul.bf16.gmra.mxu2 %v18890_v3 }
 0x435   :  { %3696 = vmatmul.bf16.gmra.mxu1 %v18891_v19  ;;  %3889 = vmatmul.bf16.gmra.mxu3 %v18892_v54  ;;  %v13842_v23 = vpack.c.bf16 %v6321_v43, %v6312_v55  ;;  %v3559_v19 = vadd.f32 %v13763_v51, %v13832_v13 }
 0x436   :  { %v3430_v53 = vpop.f32.mrf.mxu2 }
 0x437   :  { %18893 = vst [vmem:[#allocation107_spill] sm:$0xff] %v13842_v23  ;;  %v3431_v44 = vadd.f32 %v3430_v53, %v3327_v12 }
 0x438   :  { %v3529_v36 = vpop.f32.mrf.mxu3  ;;  %v13846_v32 = vpop.f32.mrf.mxu0 }
 0x439   :  { %v3530_v17 = vadd.f32 %v3529_v36, %v3426_v37  ;;  %v18895_v37 = vld [vmem:[#allocation29_spill] sm:$0xff]  ;;  %v18896_v36 = vld [vmem:[#allocation30_spill] sm:$0xff] }
 0x43a   :  { %v3659_v38 = vpop.f32.mrf.mxu1 }
 0x43b   :  { %v3660_v30 = vadd.f32 %v3659_v38, %v3556_v59  ;;  %v6330_v12 = vmax.f32 %v3530_v17, 0.0 }
 0x43e   :  { %v3432_v1 = vpop.f32.mrf.mxu2 }
 0x43f   :  { %v3433_v50 = vadd.f32 %v3432_v1, %v3329_v15  ;;  %v9235_v1 = vld [vmem:[%s18544_s1 + $0x10] sm:$0xf] }
 0x440   :  { %v3531_v3 = vpop.f32.mrf.mxu3  ;;  %v13850_v43 = vpop.f32.mrf.mxu0 }
 0x441   :  { %v3532_v54 = vadd.f32 %v3531_v3, %v3428_v25  ;;  %v3561_v3 = vadd.f32 %v13773_v33, %v13832_v13  ;;  %v3564_v33 = vadd.f32 %v13777_v63, %v13832_v13 }
 0x442   :  { %v3662_v55 = vpop.f32.mrf.mxu1 }
 0x443   :  { %v6339_v53 = vmax.f32 %v3532_v54, 0.0  ;;  %v3663_v23 = vadd.f32 %v3662_v55, %v3559_v19  ;;  %3622 = vmatmul.bf16.gmra.mxu0 %v18828_v58  ;;  %3795 = vmatmul.bf16.gmra.mxu2 %v18894_v0  ;;  %v11027_v55 = vld [vmem:[%s18544_s1 + $0x30] sm:$0xf0]  ;;  %v18899_v0 = vld [vmem:[#allocation33_spill] sm:$0xff] }
 0x445   :  { %3701 = vmatmul.bf16.gmra.mxu1 %v18895_v37  ;;  %3894 = vmatmul.bf16.gmra.mxu3 %v18896_v36  ;;  %v13856_v15 = vpack.c.bf16 %v6339_v53, %v6330_v12  ;;  %v9236_v12 = vor.u32 %v11027_v55, %v9235_v1  ;;  %v18898_v37 = vld [vmem:[#allocation7_spill] sm:$0xff]  ;;  %v18900_v1 = vld [vmem:[#allocation34_spill] sm:$0xff] }
 0x446   :  { %v3435_v59 = vpop.f32.mrf.mxu2  ;;  %v18901_v55 = vld [vmem:[#allocation35_spill] sm:$0xff] }
 0x447   :  { %18897 = vst [vmem:[#allocation108_spill] sm:$0xff] %v13856_v15  ;;  %v3436_v38 = vadd.f32 %v3435_v59, %v3332_v57  ;;  %3967 = vmatpush.bf16.msra.mxu0 %v9236_v12 }
 0x448   :  { %v3534_v51 = vpop.f32.mrf.mxu3  ;;  %v13860_v17 = vpop.f32.mrf.mxu0 }
 0x449   :  { %v3535_v25 = vadd.f32 %v3534_v51, %v3431_v44 }
 0x44a   :  { %v3664_v19 = vpop.f32.mrf.mxu1 }
 0x44b   :  { %v13862_v54 = vadd.f32 %v3664_v19, %v3561_v3  ;;  %v6348_v19 = vmax.f32 %v3535_v25, 0.0 }
 0x44e   :  { %v3437_v57 = vpop.f32.mrf.mxu2 }
 0x44f   :  { %v3438_v53 = vadd.f32 %v3437_v57, %v3334_v41  ;;  %v3566_v57 = vadd.f32 %v13793_v29, %v13832_v13  ;;  %v18903_v29 = vld [vmem:[#allocation4_spill] sm:$0xff] }
 0x450   :  { %v3536_v59 = vpop.f32.mrf.mxu3  ;;  %v13872_v51 = vpop.f32.mrf.mxu0 }
 0x451   :  { %v3537_v44 = vadd.f32 %v3536_v59, %v3433_v50 }
 0x452   :  { %v3667_v3 = vpop.f32.mrf.mxu1 }
 0x453   :  { %v6357_v15 = vmax.f32 %v3537_v44, 0.0  ;;  %v13874_v36 = vadd.f32 %v3667_v3, %v3564_v33  ;;  %3627 = vmatmul.bf16.gmra.mxu0 %v18898_v37  ;;  %3800 = vmatmul.bf16.gmra.mxu2 %v18899_v0 }
 0x455   :  { %3706 = vmatmul.bf16.gmra.mxu1 %v18900_v1  ;;  %3899 = vmatmul.bf16.gmra.mxu3 %v18901_v55  ;;  %v13880_v41 = vpack.c.bf16 %v6357_v15, %v6348_v19  ;;  %v3569_v55 = vadd.f32 %v13797_v7, %v13832_v13 }
 0x456   :  { %v3761_v12 = vpop.f32.mrf.mxu2 }
 0x457   :  { %18902 = vst [vmem:[#allocation109_spill] sm:$0xff] %v13880_v41  ;;  %v3762_v50 = vadd.f32 %v3761_v12, %v3658_v11 }
 0x458   :  { %v3539_v63 = vpop.f32.mrf.mxu3  ;;  %v13884_v59 = vpop.f32.mrf.mxu0 }
 0x459   :  { %v3540_v25 = vadd.f32 %v3539_v63, %v3436_v38  ;;  %v18904_v38 = vld [vmem:[#allocation39_spill] sm:$0xff]  ;;  %v18905_v63 = vld [vmem:[#allocation40_spill] sm:$0xff] }
 0x45a   :  { %v3669_v33 = vpop.f32.mrf.mxu1 }
 0x45b   :  { %v13886_v44 = vadd.f32 %v3669_v33, %v3566_v57  ;;  %v6366_v11 = vmax.f32 %v3540_v25, 0.0  ;;  %v18906_v57 = vld [vmem:[#allocation41_spill] sm:$0xff] }
 0x45e   :  { %v3763_v3 = vpop.f32.mrf.mxu2 }
 0x45f   :  { %v3764_v37 = vadd.f32 %v3763_v3, %v3660_v30 }
 0x460   :  { %v3541_v0 = vpop.f32.mrf.mxu3  ;;  %v13890_v19 = vpop.f32.mrf.mxu0 }
 0x461   :  { %v3542_v15 = vadd.f32 %v3541_v0, %v3438_v53  ;;  %v3571_v53 = vadd.f32 %v13807_v24, %v13832_v13  ;;  %v11306_v24 = vld [vmem:[%s18544_s1 + $0x8e8] sm:$0xf0] }
 0x462   :  { %v3672_v41 = vpop.f32.mrf.mxu1 }
 0x463   :  { %v6375_v12 = vmax.f32 %v3542_v15, 0.0  ;;  %v13892_v1 = vadd.f32 %v3672_v41, %v3569_v55  ;;  %3632 = vmatmul.bf16.gmra.mxu0 %v18903_v29  ;;  %3805 = vmatmul.bf16.gmra.mxu2 %v18904_v38  ;;  %v10063_v15 = vld [vmem:[%s18544_s1 + $0x688] sm:$0xf] }
 0x465   :  { %3711 = vmatmul.bf16.gmra.mxu1 %v18905_v63  ;;  %3904 = vmatmul.bf16.gmra.mxu3 %v18906_v57  ;;  %v13898_v30 = vpack.c.bf16 %v6375_v12, %v6366_v11  ;;  %v11234_v11 = vld [vmem:[%s18544_s1 + $0x6a8] sm:$0xf0] }
 0x466   :  { %v3766_v33 = vpop.f32.mrf.mxu2  ;;  %v10064_v12 = vor.u32 %v11234_v11, %v10063_v15 }
 0x467   :  { %18907 = vst [vmem:[#allocation110_spill] sm:$0xff] %v13898_v30  ;;  %v3767_v7 = vadd.f32 %v3766_v33, %v3663_v23  ;;  %v10351_v23 = vld [vmem:[%s18544_s1 + $0x8c8] sm:$0xf]  ;;  %v3574_v30 = vadd.f32 %v13811_v39, %v13832_v13  ;;  %v11086_v39 = vld [vmem:[%s18544_s1 + $0x20c] sm:$0xf] }
 0x468   :  { %v3865_v0 = vpop.f32.mrf.mxu3  ;;  %v13902_v3 = vpop.f32.mrf.mxu0  ;;  %v10352_v33 = vor.u32 %v11306_v24, %v10351_v23  ;;  %4168 = vmatpush.bf16.msrb.mxu2 %v10064_v12 }
 0x469   :  { %v3866_v25 = vadd.f32 %v3865_v0, %v3762_v50  ;;  %v9775_v50 = vld [vmem:[%s18544_s1 + $0x448] sm:$0xf]  ;;  %v11162_v0 = vld [vmem:[%s18544_s1 + $0x468] sm:$0xf0] }
 0x46a   :  { %v3674_v55 = vpop.f32.mrf.mxu1  ;;  %4272 = vmatpush.bf16.msrb.mxu3 %v10352_v33 }
 0x46b   :  { %v13904_v41 = vadd.f32 %v3674_v55, %v3571_v53  ;;  %v9776_v53 = vor.u32 %v11162_v0, %v9775_v50  ;;  %v6043_v23 = vmax.f32 %v3866_v25, 0.0  ;;  %v3576_v50 = vadd.f32 %v13821_v10, %v13832_v13 }
 0x46d   :  { %4064 = vmatpush.bf16.msra.mxu1 %v9776_v53 }
 0x46e   :  { %v3768_v55 = vpop.f32.mrf.mxu2 }
 0x46f   :  { %v3769_v15 = vadd.f32 %v3768_v55, %v13862_v54  ;;  %v18909_v54 = vld [vmem:[#allocation44_spill] sm:$0xff] }
 0x470   :  { %v3867_v11 = vpop.f32.mrf.mxu3  ;;  %v13927_v63 = vpop.f32.mrf.mxu0 }
 0x471   :  { %v3868_v57 = vadd.f32 %v3867_v11, %v3764_v37  ;;  %v9489_v37 = vld [vmem:[%s18544_s1 + $0x22c] sm:$0xf0] }
 0x472   :  { %v3677_v38 = vpop.f32.mrf.mxu1 }
 0x473   :  { %v6052_v24 = vmax.f32 %v3868_v57, 0.0  ;;  %v13929_v29 = vadd.f32 %v3677_v38, %v3574_v30  ;;  %3637 = vmatmul.bf16.gmra.mxu0 %v18777_v35  ;;  %3810 = vmatmul.bf16.gmra.mxu2 %v12215_v4  ;;  %v9492_v38 = vor.u32 %v11086_v39, %v9489_v37  ;;  %v3579_v39 = vadd.f32 %v13836_v6, %v13832_v13 }
 0x475   :  { %v13933_v12 = vpack.c.bf16 %v6052_v24, %v6043_v23  ;;  %3716 = vmatmul.bf16.gmra.mxu1 %v18779_v8  ;;  %3909 = vmatmul.bf16.gmra.mxu3 %v18909_v54 }
 0x476   :  { %v3771_v57 = vpop.f32.mrf.mxu2  ;;  %4376 = vmatpush.bf16.msrb.mxu0 %v9492_v38 }
 0x477   :  { %18908 = vst [vmem:[#allocation111_spill] sm:$0xff] %v13933_v12  ;;  %v3772_v30 = vadd.f32 %v3771_v57, %v13874_v36 }
 0x478   :  { %v3870_v25 = vpop.f32.mrf.mxu3  ;;  %v13946_v0 = vpop.f32.mrf.mxu0 }
 0x479   :  { %v3871_v33 = vadd.f32 %v3870_v25, %v3767_v7  ;;  %v18910_v7 = vld [vmem:[#allocation11_spill] sm:$0xff] }
 0x47a   :  { %v3679_v53 = vpop.f32.mrf.mxu1  ;;  %v18911_v25 = vld [vmem:[#allocation47_spill] sm:$0xff] }
 0x47b   :  { %v13948_v55 = vadd.f32 %v3679_v53, %v3576_v50  ;;  %v6061_v57 = vmax.f32 %v3871_v33, 0.0  ;;  %v18912_v50 = vld [vmem:[#allocation48_spill] sm:$0xff]  ;;  %v18913_v53 = vld [vmem:[#allocation49_spill] sm:$0xff]  ;;  %v3581_v33 = vadd.f32 %v13846_v32, %v13832_v13 }
 0x47e   :  { %v3773_v11 = vpop.f32.mrf.mxu2 }
 0x47f   :  { %v3774_v23 = vadd.f32 %v3773_v11, %v13886_v44 }
 0x480   :  { %v3872_v24 = vpop.f32.mrf.mxu3  ;;  %v13953_v36 = vpop.f32.mrf.mxu0 }
 0x481   :  { %v3873_v37 = vadd.f32 %v3872_v24, %v3769_v15 }
 0x482   :  { %v3682_v38 = vpop.f32.mrf.mxu1 }
 0x483   :  { %v6070_v12 = vmax.f32 %v3873_v37, 0.0  ;;  %v13955_v10 = vadd.f32 %v3682_v38, %v3579_v39  ;;  %3642 = vmatmul.bf16.gmra.mxu0 %v18910_v7  ;;  %3815 = vmatmul.bf16.gmra.mxu2 %v18911_v25 }
 0x485   :  { %3721 = vmatmul.bf16.gmra.mxu1 %v18912_v50  ;;  %3914 = vmatmul.bf16.gmra.mxu3 %v18913_v53  ;;  %v13961_v44 = vpack.c.bf16 %v6070_v12, %v6061_v57  ;;  %v3584_v12 = vadd.f32 %v13850_v43, %v13832_v13 }
 0x486   :  { %v3776_v11 = vpop.f32.mrf.mxu2 }
 0x487   :  { %18914 = vst [vmem:[#allocation112_spill] sm:$0xff] %v13961_v44  ;;  %v3777_v6 = vadd.f32 %v3776_v11, %v13892_v1 }
 0x488   :  { %v3875_v15 = vpop.f32.mrf.mxu3  ;;  %v13966_v39 = vpop.f32.mrf.mxu0 }
 0x489   :  { %v3876_v24 = vadd.f32 %v3875_v15, %v3772_v30  ;;  %v10027_v30 = vld [vmem:[%s18544_s1 + $0x640] sm:$0xf] }
 0x48a   :  { %v3684_v37 = vpop.f32.mrf.mxu1  ;;  %v18916_v15 = vld [vmem:[#allocation2_spill] sm:$0xff] }
 0x48b   :  { %v13968_v38 = vadd.f32 %v3684_v37, %v3581_v33  ;;  %v6079_v11 = vmax.f32 %v3876_v24, 0.0  ;;  %v18917_v33 = vld [vmem:[#allocation52_spill] sm:$0xff]  ;;  %v18918_v24 = vld [vmem:[#allocation53_spill] sm:$0xff] }
 0x48e   :  { %v3778_v25 = vpop.f32.mrf.mxu2 }
 0x48f   :  { %v3779_v50 = vadd.f32 %v3778_v25, %v13904_v41  ;;  %v11225_v41 = vld [vmem:[%s18544_s1 + $0x660] sm:$0xf0]  ;;  %v18915_v25 = vld [vmem:[#allocation51_spill] sm:$0xff] }
 0x490   :  { %v3877_v7 = vpop.f32.mrf.mxu3  ;;  %v13973_v44 = vpop.f32.mrf.mxu0  ;;  %v10028_v43 = vor.u32 %v11225_v41, %v10027_v30 }
 0x491   :  { %v3878_v57 = vadd.f32 %v3877_v7, %v3774_v23  ;;  %v10315_v23 = vld [vmem:[%s18544_s1 + $0x880] sm:$0xf]  ;;  %v11297_v7 = vld [vmem:[%s18544_s1 + $0x8a0] sm:$0xf0] }
 0x492   :  { %v3687_v1 = vpop.f32.mrf.mxu1  ;;  %v10316_v37 = vor.u32 %v11297_v7, %v10315_v23  ;;  %4169 = vmatpush.bf16.msrb.mxu2 %v10028_v43  ;;  %v3586_v23 = vadd.f32 %v13860_v17, %v13832_v13 }
 0x493   :  { %v6088_v53 = vmax.f32 %v3878_v57, 0.0  ;;  %v13975_v32 = vadd.f32 %v3687_v1, %v3584_v12  ;;  %3820 = vmatmul.bf16.gmra.mxu2 %v18915_v25  ;;  %3968 = vmatmul.bf16.vlgmr.msra.gmra.mxu0 %v18916_v15  ;;  %v9739_v12 = vld [vmem:[%s18544_s1 + $0x400] sm:$0xf]  ;;  %v11153_v57 = vld [vmem:[%s18544_s1 + $0x420] sm:$0xf0] }
 0x494   :  { %v9740_v30 = vor.u32 %v11153_v57, %v9739_v12  ;;  %4273 = vmatpush.bf16.msrb.mxu3 %v10316_v37 }
 0x495   :  { %3726 = vmatmul.bf16.gmra.mxu1 %v18917_v33  ;;  %3919 = vmatmul.bf16.gmra.mxu3 %v18918_v24  ;;  %v13999_v1 = vpack.c.bf16 %v6088_v53, %v6079_v11  ;;  %v11077_v53 = vld [vmem:[%s18544_s1 + $0x1c4] sm:$0xf]  ;;  %v9453_v11 = vld [vmem:[%s18544_s1 + $0x1e4] sm:$0xf0] }
 0x496   :  { %v3781_v41 = vpop.f32.mrf.mxu2  ;;  %4065 = vmatpush.bf16.msra.mxu1 %v9740_v30 }
 0x497   :  { %18919 = vst [vmem:[#allocation113_spill] sm:$0xff] %v13999_v1  ;;  %v3782_v15 = vadd.f32 %v3781_v41, %v13929_v29  ;;  %v9456_v29 = vor.u32 %v11077_v53, %v9453_v11  ;;  %v18921_v53 = vld [vmem:[#allocation57_spill] sm:$0xff] }
 0x498   :  { %v3880_v33 = vpop.f32.mrf.mxu3  ;;  %v14004_v24 = vpop.f32.mrf.mxu0 }
 0x499   :  { %v3881_v7 = vadd.f32 %v3880_v33, %v3777_v6  ;;  %4377 = vmatpush.bf16.msrb.mxu0 %v9456_v29  ;;  %v3589_v6 = vadd.f32 %v13872_v51, %v13832_v13 }
 0x49a   :  { %v3689_v25 = vpop.f32.mrf.mxu1 }
 0x49b   :  { %v14006_v54 = vadd.f32 %v3689_v25, %v3586_v23  ;;  %v6097_v57 = vmax.f32 %v3881_v7, 0.0  ;;  %v18920_v23 = vld [vmem:[#allocation56_spill] sm:$0xff]  ;;  %v3591_v7 = vadd.f32 %v13884_v59, %v13832_v13 }
 0x49c   :  { %v9667_v59 = vld [vmem:[%s18544_s1 + $0x370] sm:$0xf] }
 0x49e   :  { %v3783_v43 = vpop.f32.mrf.mxu2 }
 0x49f   :  { %v3784_v37 = vadd.f32 %v3783_v43, %v13948_v55 }
 0x4a0   :  { %v3882_v17 = vpop.f32.mrf.mxu3  ;;  %v14017_v25 = vpop.f32.mrf.mxu0 }
 0x4a1   :  { %v3883_v33 = vadd.f32 %v3882_v17, %v3779_v50 }
 0x4a2   :  { %v3692_v12 = vpop.f32.mrf.mxu1 }
 0x4a3   :  { %v6106_v30 = vmax.f32 %v3883_v33, 0.0  ;;  %v14019_v41 = vadd.f32 %v3692_v12, %v3589_v6  ;;  %3825 = vmatmul.bf16.gmra.mxu2 %v18790_v20  ;;  %3973 = vmatmul.bf16.gmra.mxu0 %v18855_v18  ;;  %v9703_v33 = vld [vmem:[%s18544_s1 + $0x3b8] sm:$0xf]  ;;  %v11144_v12 = vld [vmem:[%s18544_s1 + $0x3d8] sm:$0xf0] }
 0x4a5   :  { %3731 = vmatmul.bf16.gmra.mxu1 %v18920_v23  ;;  %3924 = vmatmul.bf16.gmra.mxu3 %v18921_v53  ;;  %v14025_v55 = vpack.c.bf16 %v6106_v30, %v6097_v57  ;;  %v9704_v57 = vor.u32 %v11144_v12, %v9703_v33  ;;  %v9631_v53 = vld [vmem:[%s18544_s1 + $0x328] sm:$0xf] }
 0x4a6   :  { %v3786_v11 = vpop.f32.mrf.mxu2 }
 0x4a7   :  { %18922 = vst [vmem:[#allocation56_spill] sm:$0xff] %v14025_v55  ;;  %v3787_v51 = vadd.f32 %v3786_v11, %v13955_v10  ;;  %4066 = vmatpush.bf16.msra.mxu1 %v9704_v57 }
 0x4a8   :  { %v3885_v50 = vpop.f32.mrf.mxu3  ;;  %v14030_v43 = vpop.f32.mrf.mxu0 }
 0x4a9   :  { %v3886_v29 = vadd.f32 %v3885_v50, %v3782_v15  ;;  %v11135_v15 = vld [vmem:[%s18544_s1 + $0x390] sm:$0xf0] }
 0x4aa   :  { %v3694_v17 = vpop.f32.mrf.mxu1  ;;  %v9668_v50 = vor.u32 %v11135_v15, %v9667_v59  ;;  %v18925_v59 = vld [vmem:[#allocation60_spill] sm:$0xff]  ;;  %v11216_v15 = vld [vmem:[%s18544_s1 + $0x618] sm:$0xf0] }
 0x4ab   :  { %v14032_v6 = vadd.f32 %v3694_v17, %v3591_v7  ;;  %v3594_v7 = vadd.f32 %v13890_v19, %v13832_v13  ;;  %v6115_v12 = vmax.f32 %v3886_v29, 0.0  ;;  %v18923_v19 = vld [vmem:[#allocation10_spill] sm:$0xff]  ;;  %v9991_v29 = vld [vmem:[%s18544_s1 + $0x5f8] sm:$0xf] }
 0x4ac   :  { %4067 = vmatpush.bf16.msra.mxu1 %v9668_v50  ;;  %v9992_v50 = vor.u32 %v11216_v15, %v9991_v29 }
 0x4ae   :  { %v3788_v10 = vpop.f32.mrf.mxu2  ;;  %4170 = vmatpush.bf16.msrb.mxu2 %v9992_v50 }
 0x4af   :  { %v3789_v30 = vadd.f32 %v3788_v10, %v13968_v38  ;;  %v11126_v38 = vld [vmem:[%s18544_s1 + $0x348] sm:$0xf0] }
 0x4b0   :  { %v3887_v11 = vpop.f32.mrf.mxu3  ;;  %v14049_v55 = vpop.f32.mrf.mxu0  ;;  %v18924_v10 = vld [vmem:[#allocation59_spill] sm:$0xff] }
 0x4b1   :  { %v3888_v17 = vadd.f32 %v3887_v11, %v3784_v37  ;;  %v9632_v37 = vor.u32 %v11126_v38, %v9631_v53  ;;  %v9595_v53 = vld [vmem:[%s18544_s1 + $0x2e0] sm:$0xf] }
 0x4b2   :  { %v3697_v33 = vpop.f32.mrf.mxu1 }
 0x4b3   :  { %v6124_v57 = vmax.f32 %v3888_v17, 0.0  ;;  %v14051_v1 = vadd.f32 %v3697_v33, %v3594_v7  ;;  %3830 = vmatmul.bf16.gmra.mxu2 %v12417_v61  ;;  %3978 = vmatmul.bf16.gmra.mxu0 %v18923_v19  ;;  %v11117_v17 = vld [vmem:[%s18544_s1 + $0x300] sm:$0xf0]  ;;  %v11068_v19 = vld [vmem:[%s18544_s1 + $0x17c] sm:$0xf] }
 0x4b4   :  { %4068 = vmatpush.bf16.msra.mxu1 %v9632_v37 }
 0x4b5   :  { %3736 = vmatmul.bf16.gmra.mxu1 %v18924_v10  ;;  %3929 = vmatmul.bf16.gmra.mxu3 %v18925_v59  ;;  %v14069_v11 = vpack.c.bf16 %v6124_v57, %v6115_v12  ;;  %v9596_v59 = vor.u32 %v11117_v17, %v9595_v53  ;;  %v3596_v12 = vadd.f32 %v13902_v3, %v13832_v13  ;;  %v9559_v3 = vld [vmem:[%s18544_s1 + $0x298] sm:$0xf]  ;;  %v9523_v53 = vld [vmem:[%s18544_s1 + $0x250] sm:$0xf] }
 0x4b6   :  { %v3791_v7 = vpop.f32.mrf.mxu2 }
 0x4b7   :  { %18926 = vst [vmem:[#allocation114_spill] sm:$0xff] %v14069_v11  ;;  %v3792_v33 = vadd.f32 %v3791_v7, %v13975_v32  ;;  %v10279_v11 = vld [vmem:[%s18544_s1 + $0x838] sm:$0xf]  ;;  %v11288_v32 = vld [vmem:[%s18544_s1 + $0x858] sm:$0xf0] }
 0x4b8   :  { %v3890_v38 = vpop.f32.mrf.mxu3  ;;  %v14080_v37 = vpop.f32.mrf.mxu0  ;;  %4069 = vmatpush.bf16.msra.mxu1 %v9596_v59  ;;  %v10280_v50 = vor.u32 %v11288_v32, %v10279_v11  ;;  %v11099_v11 = vld [vmem:[%s18544_s1 + $0x270] sm:$0xf0] }
 0x4b9   :  { %v3891_v57 = vadd.f32 %v3890_v38, %v3787_v51  ;;  %v11108_v51 = vld [vmem:[%s18544_s1 + $0x2b8] sm:$0xf0] }
 0x4ba   :  { %v3699_v29 = vpop.f32.mrf.mxu1  ;;  %v9560_v59 = vor.u32 %v11108_v51, %v9559_v3  ;;  %4274 = vmatpush.bf16.msrb.mxu3 %v10280_v50 }
 0x4bb   :  { %v14082_v15 = vadd.f32 %v3699_v29, %v3596_v12  ;;  %v9524_v12 = vor.u32 %v11099_v11, %v9523_v53  ;;  %v3599_v29 = vadd.f32 %v13927_v63, %v13832_v13  ;;  %v6133_v51 = vmax.f32 %v3891_v57, 0.0  ;;  %v18927_v63 = vld [vmem:[#allocation12_spill] sm:$0xff]  ;;  %v18928_v57 = vld [vmem:[#allocation63_spill] sm:$0xff] }
 0x4bc   :  { %4070 = vmatpush.bf16.msra.mxu1 %v9560_v59 }
 0x4be   :  { %v3793_v7 = vpop.f32.mrf.mxu2 }
 0x4bf   :  { %v3794_v17 = vadd.f32 %v3793_v7, %v14006_v54  ;;  %v9417_v54 = vld [vmem:[%s18544_s1 + $0x19c] sm:$0xf0] }
 0x4c0   :  { %v3892_v38 = vpop.f32.mrf.mxu3  ;;  %v14105_v3 = vpop.f32.mrf.mxu0  ;;  %4071 = vmatpush.bf16.msra.mxu1 %v9524_v12 }
 0x4c1   :  { %v3893_v32 = vadd.f32 %v3892_v38, %v3789_v30  ;;  %v9420_v30 = vor.u32 %v11068_v19, %v9417_v54 }
 0x4c2   :  { %v3702_v50 = vpop.f32.mrf.mxu1 }
 0x4c3   :  { %v6142_v59 = vmax.f32 %v3893_v32, 0.0  ;;  %v14107_v10 = vadd.f32 %v3702_v50, %v3599_v29  ;;  %3835 = vmatmul.bf16.gmra.mxu2 %v12491_v22  ;;  %3983 = vmatmul.bf16.gmra.mxu0 %v18927_v63  ;;  %v3601_v29 = vadd.f32 %v13946_v0, %v13832_v13  ;;  %v3604_v0 = vadd.f32 %v13953_v36, %v13832_v13 }
 0x4c4   :  { %4378 = vmatpush.bf16.msrb.mxu0 %v9420_v30 }
 0x4c5   :  { %3741 = vmatmul.bf16.gmra.mxu1 %v18799_v49  ;;  %3934 = vmatmul.bf16.gmra.mxu3 %v18928_v57  ;;  %v14119_v7 = vpack.c.bf16 %v6142_v59, %v6133_v51  ;;  %v9955_v51 = vld [vmem:[%s18544_s1 + $0x5b0] sm:$0xf]  ;;  %v11207_v59 = vld [vmem:[%s18544_s1 + $0x5d0] sm:$0xf0]  ;;  %v9919_v57 = vld [vmem:[%s18544_s1 + $0x568] sm:$0xf] }
 0x4c6   :  { %v3796_v53 = vpop.f32.mrf.mxu2  ;;  %v9956_v30 = vor.u32 %v11207_v59, %v9955_v51  ;;  %v9883_v51 = vld [vmem:[%s18544_s1 + $0x520] sm:$0xf]  ;;  %v11189_v59 = vld [vmem:[%s18544_s1 + $0x540] sm:$0xf0] }
 0x4c7   :  { %18929 = vst [vmem:[#allocation115_spill] sm:$0xff] %v14119_v7  ;;  %v3797_v11 = vadd.f32 %v3796_v53, %v14019_v41 }
 0x4c8   :  { %v3895_v38 = vpop.f32.mrf.mxu3  ;;  %v14124_v32 = vpop.f32.mrf.mxu0  ;;  %4171 = vmatpush.bf16.msrb.mxu2 %v9956_v30 }
 0x4c9   :  { %v3896_v12 = vadd.f32 %v3895_v38, %v3792_v33 }
 0x4ca   :  { %v3704_v50 = vpop.f32.mrf.mxu1 }
 0x4cb   :  { %v14126_v63 = vadd.f32 %v3704_v50, %v3601_v29  ;;  %v6151_v29 = vmax.f32 %v3896_v12, 0.0 }
 0x4ce   :  { %v3798_v19 = vpop.f32.mrf.mxu2 }
 0x4cf   :  { %v3799_v41 = vadd.f32 %v3798_v19, %v14032_v6  ;;  %v11198_v6 = vld [vmem:[%s18544_s1 + $0x588] sm:$0xf0] }
 0x4d0   :  { %v3897_v54 = vpop.f32.mrf.mxu3  ;;  %v14137_v53 = vpop.f32.mrf.mxu0  ;;  %v9920_v36 = vor.u32 %v11198_v6, %v9919_v57  ;;  %v9884_v57 = vor.u32 %v11189_v59, %v9883_v51  ;;  %v9847_v6 = vld [vmem:[%s18544_s1 + $0x4d8] sm:$0xf]  ;;  %v9811_v59 = vld [vmem:[%s18544_s1 + $0x490] sm:$0xf] }
 0x4d1   :  { %v3898_v33 = vadd.f32 %v3897_v54, %v3794_v17  ;;  %v18930_v17 = vld [vmem:[#allocation66_spill] sm:$0xff] }
 0x4d2   :  { %v3707_v38 = vpop.f32.mrf.mxu1  ;;  %4172 = vmatpush.bf16.msrb.mxu2 %v9920_v36 }
 0x4d3   :  { %v6160_v50 = vmax.f32 %v3898_v33, 0.0  ;;  %v14139_v7 = vadd.f32 %v3707_v38, %v3604_v0  ;;  %3840 = vmatmul.bf16.gmra.mxu2 %v12541_v62  ;;  %3988 = vmatmul.bf16.gmra.mxu0 %v11830_v42  ;;  %v3606_v0 = vadd.f32 %v13966_v39, %v13832_v13  ;;  %v10243_v39 = vld [vmem:[%s18544_s1 + $0x7f0] sm:$0xf] }
 0x4d5   :  { %3746 = vmatmul.bf16.gmra.mxu1 %v12543_v5  ;;  %3939 = vmatmul.bf16.gmra.mxu3 %v18930_v17  ;;  %v14151_v12 = vpack.c.bf16 %v6160_v50, %v6151_v29  ;;  %v10207_v17 = vld [vmem:[%s18544_s1 + $0x7a8] sm:$0xf] }
 0x4d6   :  { %v3801_v19 = vpop.f32.mrf.mxu2  ;;  %4173 = vmatpush.bf16.msrb.mxu2 %v9884_v57 }
 0x4d7   :  { %18931 = vst [vmem:[#allocation116_spill] sm:$0xff] %v14151_v12  ;;  %v3802_v54 = vadd.f32 %v3801_v19, %v14051_v1  ;;  %v11180_v1 = vld [vmem:[%s18544_s1 + $0x4f8] sm:$0xf0] }
 0x4d8   :  { %v3900_v30 = vpop.f32.mrf.mxu3  ;;  %v14162_v38 = vpop.f32.mrf.mxu0  ;;  %v9848_v36 = vor.u32 %v11180_v1, %v9847_v6  ;;  %v3609_v6 = vadd.f32 %v13973_v44, %v13832_v13 }
 0x4d9   :  { %v3901_v33 = vadd.f32 %v3900_v30, %v3797_v11  ;;  %v11279_v11 = vld [vmem:[%s18544_s1 + $0x810] sm:$0xf0] }
 0x4da   :  { %v3709_v29 = vpop.f32.mrf.mxu1  ;;  %v10244_v19 = vor.u32 %v11279_v11, %v10243_v39  ;;  %4174 = vmatpush.bf16.msrb.mxu2 %v9848_v36  ;;  %v11171_v30 = vld [vmem:[%s18544_s1 + $0x4b0] sm:$0xf0] }
 0x4db   :  { %v14164_v50 = vadd.f32 %v3709_v29, %v3606_v0  ;;  %v9812_v29 = vor.u32 %v11171_v30, %v9811_v59  ;;  %v6169_v11 = vmax.f32 %v3901_v33, 0.0  ;;  %v11059_v33 = vld [vmem:[%s18544_s1 + $0x134] sm:$0xf] }
 0x4dc   :  { %4275 = vmatpush.bf16.msrb.mxu3 %v10244_v19 }
 0x4de   :  { %v3803_v51 = vpop.f32.mrf.mxu2  ;;  %4175 = vmatpush.bf16.msrb.mxu2 %v9812_v29  ;;  %v11261_v29 = vld [vmem:[%s18544_s1 + $0x780] sm:$0xf0] }
 0x4df   :  { %v3804_v57 = vadd.f32 %v3803_v51, %v14082_v15  ;;  %v11270_v15 = vld [vmem:[%s18544_s1 + $0x7c8] sm:$0xf0]  ;;  %v9381_v51 = vld [vmem:[%s18544_s1 + $0x154] sm:$0xf0] }
 0x4e0   :  { %v3902_v0 = vpop.f32.mrf.mxu3  ;;  %v14187_v39 = vpop.f32.mrf.mxu0  ;;  %v10208_v44 = vor.u32 %v11270_v15, %v10207_v17  ;;  %v9384_v30 = vor.u32 %v11059_v33, %v9381_v51  ;;  %v10171_v17 = vld [vmem:[%s18544_s1 + $0x760] sm:$0xf]  ;;  %v10135_v51 = vld [vmem:[%s18544_s1 + $0x718] sm:$0xf] }
 0x4e1   :  { %v3903_v1 = vadd.f32 %v3902_v0, %v3799_v41  ;;  %v18932_v41 = vld [vmem:[#allocation5_spill] sm:$0xff] }
 0x4e2   :  { %v3712_v36 = vpop.f32.mrf.mxu1  ;;  %4276 = vmatpush.bf16.msrb.mxu3 %v10208_v44  ;;  %4379 = vmatpush.bf16.msrb.mxu0 %v9384_v30 }
 0x4e3   :  { %v6178_v19 = vmax.f32 %v3903_v1, 0.0  ;;  %v14189_v12 = vadd.f32 %v3712_v36, %v3609_v6  ;;  %3845 = vmatmul.bf16.gmra.mxu2 %v12603_v2  ;;  %3993 = vmatmul.bf16.gmra.mxu0 %v11866_v56  ;;  %v10172_v36 = vor.u32 %v11261_v29, %v10171_v17 }
 0x4e5   :  { %3944 = vmatmul.bf16.gmra.mxu3 %v18804_v40  ;;  %4072 = vmatmul.bf16.vlgmr.msra.gmra.mxu1 %v18932_v41  ;;  %v14207_v59 = vpack.c.bf16 %v6178_v19, %v6169_v11  ;;  %v3611_v11 = vadd.f32 %v14004_v24, %v13832_v13  ;;  %v10099_v24 = vld [vmem:[%s18544_s1 + $0x6d0] sm:$0xf]  ;;  %v18934_v41 = vld [vmem:[#allocation18_spill] sm:$0xff]  ;;  %v18935_v40 = vld [vmem:[#allocation71_spill] sm:$0xff] }
 0x4e6   :  { %v3806_v0 = vpop.f32.mrf.mxu2  ;;  %4277 = vmatpush.bf16.msrb.mxu3 %v10172_v36  ;;  %v3614_v36 = vadd.f32 %v14017_v25, %v13832_v13 }
 0x4e7   :  { %18933 = vst [vmem:[#allocation117_spill] sm:$0xff] %v14207_v59  ;;  %v3807_v6 = vadd.f32 %v3806_v0, %v14107_v10  ;;  %v11252_v10 = vld [vmem:[%s18544_s1 + $0x738] sm:$0xf0] }
 0x4e8   :  { %v3905_v1 = vpop.f32.mrf.mxu3  ;;  %v14218_v15 = vpop.f32.mrf.mxu0  ;;  %v10136_v0 = vor.u32 %v11252_v10, %v10135_v51 }
 0x4e9   :  { %v3906_v19 = vadd.f32 %v3905_v1, %v3802_v54  ;;  %v11243_v54 = vld [vmem:[%s18544_s1 + $0x6f0] sm:$0xf0] }
 0x4ea   :  { %v3714_v44 = vpop.f32.mrf.mxu1  ;;  %4278 = vmatpush.bf16.msrb.mxu3 %v10136_v0  ;;  %v10100_v1 = vor.u32 %v11243_v54, %v10099_v24  ;;  %v3616_v54 = vadd.f32 %v14030_v43, %v13832_v13 }
 0x4eb   :  { %v3715_v33 = vadd.f32 %v3714_v44, %v3611_v11  ;;  %v6187_v10 = vmax.f32 %v3906_v19, 0.0 }
 0x4ee   :  { %v3808_v30 = vpop.f32.mrf.mxu2  ;;  %4279 = vmatpush.bf16.msrb.mxu3 %v10100_v1 }
 0x4ef   :  { %v3809_v17 = vadd.f32 %v3808_v30, %v14126_v63  ;;  %v18936_v63 = vld [vmem:[#allocation9_spill] sm:$0xff] }
 0x4f0   :  { %v3907_v29 = vpop.f32.mrf.mxu3  ;;  %v14235_v44 = vpop.f32.mrf.mxu0 }
 0x4f1   :  { %v3908_v11 = vadd.f32 %v3907_v29, %v3804_v57 }
 0x4f2   :  { %v3717_v51 = vpop.f32.mrf.mxu1 }
 0x4f3   :  { %v6196_v0 = vmax.f32 %v3908_v11, 0.0  ;;  %v3718_v59 = vadd.f32 %v3717_v51, %v3614_v36  ;;  %3850 = vmatmul.bf16.gmra.mxu2 %v12663_v48  ;;  %3998 = vmatmul.bf16.gmra.mxu0 %v18934_v41 }
 0x4f5   :  { %3949 = vmatmul.bf16.gmra.mxu3 %v18935_v40  ;;  %4077 = vmatmul.bf16.gmra.mxu1 %v18936_v63  ;;  %v14241_v30 = vpack.c.bf16 %v6196_v0, %v6187_v10  ;;  %v3619_v10 = vadd.f32 %v14049_v55, %v13832_v13 }
 0x4f6   :  { %v3811_v24 = vpop.f32.mrf.mxu2 }
 0x4f7   :  { %18937 = vst [vmem:[#allocation118_spill] sm:$0xff] %v14241_v30  ;;  %v3812_v25 = vadd.f32 %v3811_v24, %v14139_v7 }
 0x4f8   :  { %v3910_v57 = vpop.f32.mrf.mxu3  ;;  %v14246_v29 = vpop.f32.mrf.mxu0 }
 0x4f9   :  { %v3911_v19 = vadd.f32 %v3910_v57, %v3807_v6  ;;  %v3621_v6 = vadd.f32 %v14080_v37, %v13832_v13  ;;  %v3624_v37 = vadd.f32 %v14105_v3, %v13832_v13 }
 0x4fa   :  { %v3719_v1 = vpop.f32.mrf.mxu1 }
 0x4fb   :  { %v3720_v36 = vadd.f32 %v3719_v1, %v3616_v54  ;;  %v6205_v24 = vmax.f32 %v3911_v19, 0.0  ;;  %v11050_v1 = vld [vmem:[%s18544_s1 + $0xec] sm:$0xf] }
 0x4fe   :  { %v3813_v11 = vpop.f32.mrf.mxu2 }
 0x4ff   :  { %v3814_v51 = vadd.f32 %v3813_v11, %v14164_v50 }
 0x500   :  { %v3912_v40 = vpop.f32.mrf.mxu3  ;;  %v14251_v30 = vpop.f32.mrf.mxu0 }
 0x501   :  { %v3913_v0 = vadd.f32 %v3912_v40, %v3809_v17 }
 0x502   :  { %v3722_v7 = vpop.f32.mrf.mxu1 }
 0x503   :  { %v6214_v63 = vmax.f32 %v3913_v0, 0.0  ;;  %v3723_v41 = vadd.f32 %v3722_v7, %v3619_v10  ;;  %4003 = vmatmul.bf16.gmra.mxu0 %v11944_v31  ;;  %4176 = vmatmul.bf16.vlgmr.msrb.gmra.mxu2 %v11754_v14 }
 0x505   :  { %3954 = vmatmul.bf16.gmra.mxu3 %v12683_v34  ;;  %4082 = vmatmul.bf16.gmra.mxu1 %v11758_v16  ;;  %v14257_v43 = vpack.c.bf16 %v6214_v63, %v6205_v24  ;;  %v9345_v63 = vld [vmem:[%s18544_s1 + $0x10c] sm:$0xf0] }
 0x506   :  { %v3816_v50 = vpop.f32.mrf.mxu2  ;;  %v9348_v11 = vor.u32 %v11050_v1, %v9345_v63 }
 0x507   :  { %18938 = vst [vmem:[#allocation119_spill] sm:$0xff] %v14257_v43  ;;  %v3817_v55 = vadd.f32 %v3816_v50, %v14189_v12 }
 0x508   :  { %v3915_v40 = vpop.f32.mrf.mxu3  ;;  %v14262_v57 = vpop.f32.mrf.mxu0  ;;  %4380 = vmatpush.bf16.msrb.mxu0 %v9348_v11 }
 0x509   :  { %v3916_v17 = vadd.f32 %v3915_v40, %v3812_v25 }
 0x50a   :  { %v3724_v54 = vpop.f32.mrf.mxu1 }
 0x50b   :  { %v3725_v19 = vadd.f32 %v3724_v54, %v3621_v6  ;;  %v6223_v50 = vmax.f32 %v3916_v17, 0.0 }
 0x50e   :  { %v3818_v12 = vpop.f32.mrf.mxu2 }
 0x50f   :  { %v3819_v10 = vadd.f32 %v3818_v12, %v3715_v33 }
 0x510   :  { %v3917_v0 = vpop.f32.mrf.mxu3  ;;  %v14272_v7 = vpop.f32.mrf.mxu0 }
 0x511   :  { %v3918_v25 = vadd.f32 %v3917_v0, %v3814_v51  ;;  %v3626_v51 = vadd.f32 %v14124_v32, %v13832_v13 }
 0x512   :  { %v3727_v24 = vpop.f32.mrf.mxu1 }
 0x513   :  { %v6232_v40 = vmax.f32 %v3918_v25, 0.0  ;;  %v3728_v6 = vadd.f32 %v3727_v24, %v3624_v37  ;;  %4008 = vmatmul.bf16.gmra.mxu0 %v11991_v60  ;;  %4181 = vmatmul.bf16.gmra.mxu2 %v11790_v26  ;;  %v3629_v24 = vadd.f32 %v14137_v53, %v13832_v13 }
 0x515   :  { %4087 = vmatmul.bf16.gmra.mxu1 %v11792_v27  ;;  %4280 = vmatmul.bf16.vlgmr.msrb.gmra.mxu3 %v11794_v28  ;;  %v14278_v33 = vpack.c.bf16 %v6232_v40, %v6223_v50 }
 0x516   :  { %v3821_v54 = vpop.f32.mrf.mxu2 }
 0x517   :  { %18939 = vst [vmem:[#allocation120_spill] sm:$0xff] %v14278_v33  ;;  %v3822_v1 = vadd.f32 %v3821_v54, %v3718_v59 }
 0x518   :  { %v3920_v3 = vpop.f32.mrf.mxu3  ;;  %v14282_v17 = vpop.f32.mrf.mxu0 }
 0x519   :  { %v3921_v63 = vadd.f32 %v3920_v3, %v3817_v55 }
 0x51a   :  { %v3729_v11 = vpop.f32.mrf.mxu1 }
 0x51b   :  { %v3730_v12 = vadd.f32 %v3729_v11, %v3626_v51  ;;  %v6241_v59 = vmax.f32 %v3921_v63, 0.0 }
 0x51e   :  { %v3823_v0 = vpop.f32.mrf.mxu2 }
 0x51f   :  { %v3824_v37 = vadd.f32 %v3823_v0, %v3720_v36 }
 0x520   :  { %v3922_v25 = vpop.f32.mrf.mxu3  ;;  %v14286_v50 = vpop.f32.mrf.mxu0 }
 0x521   :  { %v3923_v43 = vadd.f32 %v3922_v25, %v3819_v10  ;;  %v3631_v10 = vadd.f32 %v14162_v38, %v13832_v13  ;;  %v11041_v38 = vld [vmem:[%s18544_s1 + $0xa4] sm:$0xf] }
 0x522   :  { %v3732_v40 = vpop.f32.mrf.mxu1 }
 0x523   :  { %v6250_v54 = vmax.f32 %v3923_v43, 0.0  ;;  %v3733_v33 = vadd.f32 %v3732_v40, %v3629_v24  ;;  %4013 = vmatmul.bf16.gmra.mxu0 %v12047_v52  ;;  %4186 = vmatmul.bf16.gmra.mxu2 %v11832_v45  ;;  %v3634_v24 = vadd.f32 %v14187_v39, %v13832_v13 }
 0x525   :  { %4092 = vmatmul.bf16.gmra.mxu1 %v11834_v46  ;;  %4285 = vmatmul.bf16.gmra.mxu3 %v11836_v47  ;;  %v14292_v32 = vpack.c.bf16 %v6250_v54, %v6241_v59 }
 0x526   :  { %v3826_v36 = vpop.f32.mrf.mxu2 }
 0x527   :  { %18940 = vst [vmem:[#allocation121_spill] sm:$0xff] %v14292_v32  ;;  %v3827_v55 = vadd.f32 %v3826_v36, %v3723_v41 }
 0x528   :  { %v3925_v53 = vpop.f32.mrf.mxu3  ;;  %v14296_v51 = vpop.f32.mrf.mxu0 }
 0x529   :  { %v3926_v3 = vadd.f32 %v3925_v53, %v3822_v1  ;;  %v9309_v1 = vld [vmem:[%s18544_s1 + $0xc4] sm:$0xf0]  ;;  %v18943_v53 = vld [vmem:[#allocation17_spill] sm:$0xff] }
 0x52a   :  { %v3734_v43 = vpop.f32.mrf.mxu1  ;;  %v9312_v39 = vor.u32 %v11041_v38, %v9309_v1 }
 0x52b   :  { %v3735_v63 = vadd.f32 %v3734_v43, %v3631_v10  ;;  %v6259_v41 = vmax.f32 %v3926_v3, 0.0 }
 0x52c   :  { %4381 = vmatpush.bf16.msrb.mxu0 %v9312_v39 }
 0x52e   :  { %v3828_v11 = vpop.f32.mrf.mxu2 }
 0x52f   :  { %v3829_v0 = vadd.f32 %v3828_v11, %v3725_v19  ;;  %v18941_v19 = vld [vmem:[#allocation15_spill] sm:$0xff] }
 0x530   :  { %v3927_v25 = vpop.f32.mrf.mxu3  ;;  %v14300_v59 = vpop.f32.mrf.mxu0 }
 0x531   :  { %v3928_v40 = vadd.f32 %v3927_v25, %v3824_v37  ;;  %v18942_v37 = vld [vmem:[#allocation16_spill] sm:$0xff]  ;;  %v3636_v25 = vadd.f32 %v14218_v15, %v13832_v13  ;;  %v18946_v15 = vld [vmem:[#allocation19_spill] sm:$0xff] }
 0x532   :  { %v3737_v54 = vpop.f32.mrf.mxu1 }
 0x533   :  { %v6268_v36 = vmax.f32 %v3928_v40, 0.0  ;;  %v3738_v32 = vadd.f32 %v3737_v54, %v3634_v24  ;;  %4018 = vmatmul.bf16.gmra.mxu0 %v12097_v21  ;;  %4191 = vmatmul.bf16.gmra.mxu2 %v18941_v19 }
 0x535   :  { %4097 = vmatmul.bf16.gmra.mxu1 %v18942_v37  ;;  %4290 = vmatmul.bf16.gmra.mxu3 %v18943_v53  ;;  %v14312_v10 = vpack.c.bf16 %v6268_v36, %v6259_v41  ;;  %v3639_v53 = vadd.f32 %v14235_v44, %v13832_v13  ;;  %v18945_v37 = vld [vmem:[#allocation38_spill] sm:$0xff] }
 0x536   :  { %v3831_v3 = vpop.f32.mrf.mxu2 }
 0x537   :  { %18944 = vst [vmem:[#allocation122_spill] sm:$0xff] %v14312_v10  ;;  %v3832_v43 = vadd.f32 %v3831_v3, %v3728_v6 }
 0x538   :  { %v3930_v11 = vpop.f32.mrf.mxu3  ;;  %v14316_v40 = vpop.f32.mrf.mxu0 }
 0x539   :  { %v3931_v24 = vadd.f32 %v3930_v11, %v3827_v55  ;;  %v18947_v55 = vld [vmem:[#allocation20_spill] sm:$0xff]  ;;  %v18948_v11 = vld [vmem:[#allocation21_spill] sm:$0xff] }
 0x53a   :  { %v3739_v54 = vpop.f32.mrf.mxu1 }
 0x53b   :  { %v3740_v21 = vadd.f32 %v3739_v54, %v3636_v25  ;;  %v6277_v6 = vmax.f32 %v3931_v24, 0.0 }
 0x53e   :  { %v3833_v19 = vpop.f32.mrf.mxu2 }
 0x53f   :  { %v3834_v38 = vadd.f32 %v3833_v19, %v3730_v12 }
 0x540   :  { %v3932_v1 = vpop.f32.mrf.mxu3  ;;  %v14320_v36 = vpop.f32.mrf.mxu0 }
 0x541   :  { %v3933_v41 = vadd.f32 %v3932_v1, %v3829_v0  ;;  %v3641_v0 = vadd.f32 %v14246_v29, %v13832_v13  ;;  %v18950_v29 = vld [vmem:[#allocation22_spill] sm:$0xff] }
 0x542   :  { %v3742_v39 = vpop.f32.mrf.mxu1 }
 0x543   :  { %v6286_v3 = vmax.f32 %v3933_v41, 0.0  ;;  %v3743_v10 = vadd.f32 %v3742_v39, %v3639_v53  ;;  %4023 = vmatmul.bf16.gmra.mxu0 %v18945_v37  ;;  %4196 = vmatmul.bf16.gmra.mxu2 %v18946_v15 }
 0x545   :  { %4102 = vmatmul.bf16.gmra.mxu1 %v18947_v55  ;;  %4295 = vmatmul.bf16.gmra.mxu3 %v18948_v11  ;;  %v14326_v12 = vpack.c.bf16 %v6286_v3, %v6277_v6  ;;  %v3644_v55 = vadd.f32 %v14251_v30, %v13832_v13 }
 0x546   :  { %v3836_v19 = vpop.f32.mrf.mxu2 }
 0x547   :  { %18949 = vst [vmem:[#allocation38_spill] sm:$0xff] %v14326_v12  ;;  %v3837_v25 = vadd.f32 %v3836_v19, %v3733_v33 }
 0x548   :  { %v3935_v44 = vpop.f32.mrf.mxu3  ;;  %v14330_v24 = vpop.f32.mrf.mxu0 }
 0x549   :  { %v3936_v54 = vadd.f32 %v3935_v44, %v3832_v43  ;;  %v18951_v43 = vld [vmem:[#allocation23_spill] sm:$0xff]  ;;  %v18952_v44 = vld [vmem:[#allocation24_spill] sm:$0xff] }
 0x54a   :  { %v3744_v53 = vpop.f32.mrf.mxu1 }
 0x54b   :  { %v3745_v1 = vadd.f32 %v3744_v53, %v3641_v0  ;;  %v6295_v33 = vmax.f32 %v3936_v54, 0.0 }
 0x54e   :  { %v3838_v41 = vpop.f32.mrf.mxu2 }
 0x54f   :  { %v3839_v39 = vadd.f32 %v3838_v41, %v3735_v63  ;;  %v11032_v41 = vld [vmem:[%s18544_s1 + $0x5c] sm:$0xf] }
 0x550   :  { %v3937_v15 = vpop.f32.mrf.mxu3  ;;  %v14334_v6 = vpop.f32.mrf.mxu0 }
 0x551   :  { %v3938_v11 = vadd.f32 %v3937_v15, %v3834_v38  ;;  %v3646_v38 = vadd.f32 %v14262_v57, %v13832_v13 }
 0x552   :  { %v3747_v3 = vpop.f32.mrf.mxu1 }
 0x553   :  { %v6304_v19 = vmax.f32 %v3938_v11, 0.0  ;;  %v3748_v12 = vadd.f32 %v3747_v3, %v3644_v55  ;;  %4028 = vmatmul.bf16.gmra.mxu0 %v18884_v9  ;;  %4201 = vmatmul.bf16.gmra.mxu2 %v18950_v29  ;;  %v9273_v3 = vld [vmem:[%s18544_s1 + $0x7c] sm:$0xf0] }
 0x555   :  { %4107 = vmatmul.bf16.gmra.mxu1 %v18951_v43  ;;  %4300 = vmatmul.bf16.gmra.mxu3 %v18952_v44  ;;  %v14340_v63 = vpack.c.bf16 %v6304_v19, %v6295_v33  ;;  %v9276_v33 = vor.u32 %v11032_v41, %v9273_v3  ;;  %v18954_v3 = vld [vmem:[#allocation46_spill] sm:$0xff]  ;;  %v18955_v43 = vld [vmem:[#allocation25_spill] sm:$0xff] }
 0x556   :  { %v3841_v0 = vpop.f32.mrf.mxu2 }
 0x557   :  { %18953 = vst [vmem:[#allocation123_spill] sm:$0xff] %v14340_v63  ;;  %v3842_v53 = vadd.f32 %v3841_v0, %v3738_v32  ;;  %v11402_v32 = vld [vmem:[%s18545_s2] sm:$0xff]  ;;  %4382 = vmatpush.bf16.msrb.mxu0 %v9276_v33  ;;  %v18957_v33 = vld [vmem:[#allocation27_spill] sm:$0xff] }
 0x558   :  { %v3940_v30 = vpop.f32.mrf.mxu3  ;;  %v14344_v54 = vpop.f32.mrf.mxu0  ;;  %v14355_v19 = vperm.slane %v11402_v32, 4  ;;  %v18956_v32 = vld [vmem:[#allocation26_spill] sm:$0xff] }
 0x559   :  { %v3941_v15 = vadd.f32 %v3940_v30, %v3837_v25 }
 0x55a   :  { %v3749_v55 = vpop.f32.mrf.mxu1  ;;  %v3970_v0 = vadd.f32 %v14272_v7, %v14355_v19 }
 0x55b   :  { %v3750_v11 = vadd.f32 %v3749_v55, %v3646_v38  ;;  %v6313_v63 = vmax.f32 %v3941_v15, 0.0 }
 0x55e   :  { %v3843_v13 = vpop.f32.mrf.mxu2 }
 0x55f   :  { %v3844_v57 = vadd.f32 %v3843_v13, %v3740_v21 }
 0x560   :  { %v3942_v25 = vpop.f32.mrf.mxu3  ;;  %v14359_v38 = vpop.f32.mrf.mxu0 }
 0x561   :  { %v3943_v30 = vadd.f32 %v3942_v25, %v3839_v39  ;;  %v3972_v39 = vadd.f32 %v14282_v17, %v14355_v19  ;;  %v18959_v17 = vld [vmem:[#allocation28_spill] sm:$0xff] }
 0x562   :  { %v4073_v55 = vpop.f32.mrf.mxu1 }
 0x563   :  { %v6322_v44 = vmax.f32 %v3943_v30, 0.0  ;;  %v4074_v41 = vadd.f32 %v4073_v55, %v3970_v0  ;;  %4033 = vmatmul.bf16.gmra.mxu0 %v18954_v3  ;;  %4206 = vmatmul.bf16.gmra.mxu2 %v18955_v43 }
 0x565   :  { %4112 = vmatmul.bf16.gmra.mxu1 %v18956_v32  ;;  %4305 = vmatmul.bf16.gmra.mxu3 %v18957_v33  ;;  %v14365_v21 = vpack.c.bf16 %v6322_v44, %v6313_v63  ;;  %v3975_v32 = vadd.f32 %v14286_v50, %v14355_v19 }
 0x566   :  { %v3846_v13 = vpop.f32.mrf.mxu2 }
 0x567   :  { %18958 = vst [vmem:[#allocation124_spill] sm:$0xff] %v14365_v21  ;;  %v3847_v29 = vadd.f32 %v3846_v13, %v3743_v10 }
 0x568   :  { %v3945_v7 = vpop.f32.mrf.mxu3  ;;  %v14369_v15 = vpop.f32.mrf.mxu0 }
 0x569   :  { %v3946_v25 = vadd.f32 %v3945_v7, %v3842_v53  ;;  %v18960_v53 = vld [vmem:[#allocation29_spill] sm:$0xff]  ;;  %v18961_v7 = vld [vmem:[#allocation30_spill] sm:$0xff] }
 0x56a   :  { %v4075_v0 = vpop.f32.mrf.mxu1 }
 0x56b   :  { %v4076_v30 = vadd.f32 %v4075_v0, %v3972_v39  ;;  %v6331_v10 = vmax.f32 %v3946_v25, 0.0 }
 0x56e   :  { %v3848_v55 = vpop.f32.mrf.mxu2 }
 0x56f   :  { %v3849_v3 = vadd.f32 %v3848_v55, %v3745_v1  ;;  %v11023_v55 = vld [vmem:[%s18544_s1 + $0x14] sm:$0xf] }
 0x570   :  { %v3947_v43 = vpop.f32.mrf.mxu3  ;;  %v14373_v44 = vpop.f32.mrf.mxu0 }
 0x571   :  { %v3948_v33 = vadd.f32 %v3947_v43, %v3844_v57  ;;  %v3977_v43 = vadd.f32 %v14296_v51, %v14355_v19  ;;  %v3980_v51 = vadd.f32 %v14300_v59, %v14355_v19 }
 0x572   :  { %v4078_v63 = vpop.f32.mrf.mxu1 }
 0x573   :  { %v6340_v13 = vmax.f32 %v3948_v33, 0.0  ;;  %v4079_v21 = vadd.f32 %v4078_v63, %v3975_v32  ;;  %4038 = vmatmul.bf16.gmra.mxu0 %v18828_v58  ;;  %4211 = vmatmul.bf16.gmra.mxu2 %v18959_v17  ;;  %v9237_v63 = vld [vmem:[%s18544_s1 + $0x34] sm:$0xf0] }
 0x574   :  { %v18964_v17 = vld [vmem:[#allocation33_spill] sm:$0xff] }
 0x575   :  { %4117 = vmatmul.bf16.gmra.mxu1 %v18960_v53  ;;  %4310 = vmatmul.bf16.gmra.mxu3 %v18961_v7  ;;  %v14379_v1 = vpack.c.bf16 %v6340_v13, %v6331_v10  ;;  %v9240_v10 = vor.u32 %v11023_v55, %v9237_v63  ;;  %v18963_v53 = vld [vmem:[#allocation7_spill] sm:$0xff]  ;;  %v18965_v55 = vld [vmem:[#allocation34_spill] sm:$0xff] }
 0x576   :  { %v3851_v39 = vpop.f32.mrf.mxu2  ;;  %v18966_v63 = vld [vmem:[#allocation35_spill] sm:$0xff] }
 0x577   :  { %18962 = vst [vmem:[#allocation125_spill] sm:$0xff] %v14379_v1  ;;  %v3852_v0 = vadd.f32 %v3851_v39, %v3748_v12  ;;  %4383 = vmatpush.bf16.msrb.mxu0 %v9240_v10 }
 0x578   :  { %v3950_v50 = vpop.f32.mrf.mxu3  ;;  %v14383_v25 = vpop.f32.mrf.mxu0 }
 0x579   :  { %v3951_v57 = vadd.f32 %v3950_v50, %v3847_v29 }
 0x57a   :  { %v4080_v32 = vpop.f32.mrf.mxu1 }
 0x57b   :  { %v14385_v33 = vadd.f32 %v4080_v32, %v3977_v43  ;;  %v6349_v32 = vmax.f32 %v3951_v57, 0.0 }
 0x57e   :  { %v3853_v12 = vpop.f32.mrf.mxu2 }
 0x57f   :  { %v3854_v13 = vadd.f32 %v3853_v12, %v3750_v11  ;;  %v3982_v12 = vadd.f32 %v14316_v40, %v14355_v19  ;;  %v18968_v40 = vld [vmem:[#allocation4_spill] sm:$0xff] }
 0x580   :  { %v3952_v39 = vpop.f32.mrf.mxu3  ;;  %v14395_v50 = vpop.f32.mrf.mxu0 }
 0x581   :  { %v3953_v29 = vadd.f32 %v3952_v39, %v3849_v3 }
 0x582   :  { %v4083_v43 = vpop.f32.mrf.mxu1 }
 0x583   :  { %v6358_v1 = vmax.f32 %v3953_v29, 0.0  ;;  %v14397_v7 = vadd.f32 %v4083_v43, %v3980_v51  ;;  %4043 = vmatmul.bf16.gmra.mxu0 %v18963_v53  ;;  %4216 = vmatmul.bf16.gmra.mxu2 %v18964_v17 }
 0x585   :  { %4122 = vmatmul.bf16.gmra.mxu1 %v18965_v55  ;;  %4315 = vmatmul.bf16.gmra.mxu3 %v18966_v63  ;;  %v14403_v11 = vpack.c.bf16 %v6358_v1, %v6349_v32  ;;  %v3985_v63 = vadd.f32 %v14320_v36, %v14355_v19 }
 0x586   :  { %v4177_v10 = vpop.f32.mrf.mxu2 }
 0x587   :  { %18967 = vst [vmem:[#allocation126_spill] sm:$0xff] %v14403_v11  ;;  %v4178_v3 = vadd.f32 %v4177_v10, %v4074_v41 }
 0x588   :  { %v3955_v59 = vpop.f32.mrf.mxu3  ;;  %v14407_v39 = vpop.f32.mrf.mxu0 }
 0x589   :  { %v3956_v57 = vadd.f32 %v3955_v59, %v3852_v0  ;;  %v18969_v0 = vld [vmem:[#allocation39_spill] sm:$0xff]  ;;  %v18970_v59 = vld [vmem:[#allocation40_spill] sm:$0xff] }
 0x58a   :  { %v4085_v51 = vpop.f32.mrf.mxu1 }
 0x58b   :  { %v14409_v29 = vadd.f32 %v4085_v51, %v3982_v12  ;;  %v6367_v41 = vmax.f32 %v3956_v57, 0.0  ;;  %v18971_v12 = vld [vmem:[#allocation41_spill] sm:$0xff] }
 0x58e   :  { %v4179_v43 = vpop.f32.mrf.mxu2 }
 0x58f   :  { %v4180_v53 = vadd.f32 %v4179_v43, %v4076_v30 }
 0x590   :  { %v3957_v17 = vpop.f32.mrf.mxu3  ;;  %v14413_v32 = vpop.f32.mrf.mxu0 }
 0x591   :  { %v3958_v1 = vadd.f32 %v3957_v17, %v3854_v13  ;;  %v3987_v13 = vadd.f32 %v14330_v24, %v14355_v19  ;;  %v10353_v24 = vld [vmem:[%s18544_s1 + $0x8ec] sm:$0xf0] }
 0x592   :  { %v4088_v11 = vpop.f32.mrf.mxu1 }
 0x593   :  { %v6376_v10 = vmax.f32 %v3958_v1, 0.0  ;;  %v14415_v55 = vadd.f32 %v4088_v11, %v3985_v63  ;;  %4048 = vmatmul.bf16.gmra.mxu0 %v18968_v40  ;;  %4221 = vmatmul.bf16.gmra.mxu2 %v18969_v0  ;;  %v11230_v1 = vld [vmem:[%s18544_s1 + $0x68c] sm:$0xf] }
 0x595   :  { %4127 = vmatmul.bf16.gmra.mxu1 %v18970_v59  ;;  %4320 = vmatmul.bf16.gmra.mxu3 %v18971_v12  ;;  %v14421_v30 = vpack.c.bf16 %v6376_v10, %v6367_v41  ;;  %v10065_v41 = vld [vmem:[%s18544_s1 + $0x6ac] sm:$0xf0] }
 0x596   :  { %v4182_v51 = vpop.f32.mrf.mxu2  ;;  %v10068_v10 = vor.u32 %v11230_v1, %v10065_v41 }
 0x597   :  { %18972 = vst [vmem:[#allocation127_spill] sm:$0xff] %v14421_v30  ;;  %v4183_v36 = vadd.f32 %v4182_v51, %v4079_v21  ;;  %v11302_v21 = vld [vmem:[%s18544_s1 + $0x8cc] sm:$0xf]  ;;  %v3990_v30 = vadd.f32 %v14334_v6, %v14355_v19  ;;  %v9495_v6 = vld [vmem:[%s18544_s1 + $0x210] sm:$0xf] }
 0x598   :  { %v4281_v17 = vpop.f32.mrf.mxu3  ;;  %v14425_v43 = vpop.f32.mrf.mxu0  ;;  %v10356_v51 = vor.u32 %v11302_v21, %v10353_v24  ;;  %4584 = vmatpush.bf16.msra.mxu2 %v10068_v10 }
 0x599   :  { %v4282_v57 = vadd.f32 %v4281_v17, %v4178_v3  ;;  %v11158_v3 = vld [vmem:[%s18544_s1 + $0x44c] sm:$0xf]  ;;  %v9777_v17 = vld [vmem:[%s18544_s1 + $0x46c] sm:$0xf0] }
 0x59a   :  { %v4090_v63 = vpop.f32.mrf.mxu1  ;;  %4688 = vmatpush.bf16.msra.mxu3 %v10356_v51 }
 0x59b   :  { %v14427_v11 = vadd.f32 %v4090_v63, %v3987_v13  ;;  %v9780_v13 = vor.u32 %v11158_v3, %v9777_v17  ;;  %v6044_v21 = vmax.f32 %v4282_v57, 0.0  ;;  %v3992_v3 = vadd.f32 %v14344_v54, %v14355_v19 }
 0x59d   :  { %4480 = vmatpush.bf16.msrb.mxu1 %v9780_v13 }
 0x59e   :  { %v4184_v63 = vpop.f32.mrf.mxu2 }
 0x59f   :  { %v4185_v1 = vadd.f32 %v4184_v63, %v14385_v33  ;;  %v18974_v33 = vld [vmem:[#allocation44_spill] sm:$0xff] }
 0x5a0   :  { %v4283_v41 = vpop.f32.mrf.mxu3  ;;  %v14450_v59 = vpop.f32.mrf.mxu0 }
 0x5a1   :  { %v4284_v12 = vadd.f32 %v4283_v41, %v4180_v53  ;;  %v11091_v53 = vld [vmem:[%s18544_s1 + $0x230] sm:$0xf0] }
 0x5a2   :  { %v4093_v0 = vpop.f32.mrf.mxu1 }
 0x5a3   :  { %v6053_v24 = vmax.f32 %v4284_v12, 0.0  ;;  %v14452_v40 = vadd.f32 %v4093_v0, %v3990_v30  ;;  %4053 = vmatmul.bf16.gmra.mxu0 %v18777_v35  ;;  %4226 = vmatmul.bf16.gmra.mxu2 %v12215_v4  ;;  %v9496_v0 = vor.u32 %v11091_v53, %v9495_v6  ;;  %v3995_v6 = vadd.f32 %v14359_v38, %v14355_v19 }
 0x5a5   :  { %v14456_v10 = vpack.c.bf16 %v6053_v24, %v6044_v21  ;;  %4132 = vmatmul.bf16.gmra.mxu1 %v18779_v8  ;;  %4325 = vmatmul.bf16.gmra.mxu3 %v18974_v33 }
 0x5a6   :  { %v4187_v12 = vpop.f32.mrf.mxu2  ;;  %4792 = vmatpush.bf16.msra.mxu0 %v9496_v0 }
 0x5a7   :  { %18973 = vst [vmem:[#allocation128_spill] sm:$0xff] %v14456_v10  ;;  %v4188_v30 = vadd.f32 %v4187_v12, %v14397_v7 }
 0x5a8   :  { %v4286_v57 = vpop.f32.mrf.mxu3  ;;  %v14469_v17 = vpop.f32.mrf.mxu0 }
 0x5a9   :  { %v4287_v51 = vadd.f32 %v4286_v57, %v4183_v36  ;;  %v18975_v36 = vld [vmem:[#allocation11_spill] sm:$0xff] }
 0x5aa   :  { %v4095_v13 = vpop.f32.mrf.mxu1  ;;  %v18976_v57 = vld [vmem:[#allocation47_spill] sm:$0xff] }
 0x5ab   :  { %v14471_v63 = vadd.f32 %v4095_v13, %v3992_v3  ;;  %v6062_v12 = vmax.f32 %v4287_v51, 0.0  ;;  %v18977_v3 = vld [vmem:[#allocation48_spill] sm:$0xff]  ;;  %v18978_v13 = vld [vmem:[#allocation49_spill] sm:$0xff]  ;;  %v3997_v51 = vadd.f32 %v14369_v15, %v14355_v19 }
 0x5ae   :  { %v4189_v41 = vpop.f32.mrf.mxu2 }
 0x5af   :  { %v4190_v21 = vadd.f32 %v4189_v41, %v14409_v29 }
 0x5b0   :  { %v4288_v24 = vpop.f32.mrf.mxu3  ;;  %v14476_v7 = vpop.f32.mrf.mxu0 }
 0x5b1   :  { %v4289_v53 = vadd.f32 %v4288_v24, %v4185_v1 }
 0x5b2   :  { %v4098_v0 = vpop.f32.mrf.mxu1 }
 0x5b3   :  { %v6071_v10 = vmax.f32 %v4289_v53, 0.0  ;;  %v14478_v54 = vadd.f32 %v4098_v0, %v3995_v6  ;;  %4058 = vmatmul.bf16.gmra.mxu0 %v18975_v36  ;;  %4231 = vmatmul.bf16.gmra.mxu2 %v18976_v57 }
 0x5b5   :  { %4137 = vmatmul.bf16.gmra.mxu1 %v18977_v3  ;;  %4330 = vmatmul.bf16.gmra.mxu3 %v18978_v13  ;;  %v14484_v29 = vpack.c.bf16 %v6071_v10, %v6062_v12  ;;  %v4000_v10 = vadd.f32 %v14373_v44, %v14355_v19 }
 0x5b6   :  { %v4192_v41 = vpop.f32.mrf.mxu2 }
 0x5b7   :  { %18979 = vst [vmem:[#allocation129_spill] sm:$0xff] %v14484_v29  ;;  %v4193_v38 = vadd.f32 %v4192_v41, %v14415_v55 }
 0x5b8   :  { %v4291_v1 = vpop.f32.mrf.mxu3  ;;  %v14489_v6 = vpop.f32.mrf.mxu0 }
 0x5b9   :  { %v4292_v24 = vadd.f32 %v4291_v1, %v4188_v30  ;;  %v11221_v30 = vld [vmem:[%s18544_s1 + $0x644] sm:$0xf] }
 0x5ba   :  { %v4100_v53 = vpop.f32.mrf.mxu1  ;;  %v18981_v1 = vld [vmem:[#allocation2_spill] sm:$0xff] }
 0x5bb   :  { %v14491_v0 = vadd.f32 %v4100_v53, %v3997_v51  ;;  %v6080_v41 = vmax.f32 %v4292_v24, 0.0  ;;  %v18982_v51 = vld [vmem:[#allocation52_spill] sm:$0xff]  ;;  %v18983_v24 = vld [vmem:[#allocation53_spill] sm:$0xff] }
 0x5be   :  { %v4194_v57 = vpop.f32.mrf.mxu2 }
 0x5bf   :  { %v4195_v3 = vadd.f32 %v4194_v57, %v14427_v11  ;;  %v10029_v11 = vld [vmem:[%s18544_s1 + $0x664] sm:$0xf0] }
 0x5c0   :  { %v4293_v36 = vpop.f32.mrf.mxu3  ;;  %v14496_v29 = vpop.f32.mrf.mxu0  ;;  %v18980_v57 = vld [vmem:[#allocation51_spill] sm:$0xff]  ;;  %v10032_v44 = vor.u32 %v11221_v30, %v10029_v11 }
 0x5c1   :  { %v4294_v12 = vadd.f32 %v4293_v36, %v4190_v21  ;;  %v11293_v21 = vld [vmem:[%s18544_s1 + $0x884] sm:$0xf]  ;;  %v10317_v36 = vld [vmem:[%s18544_s1 + $0x8a4] sm:$0xf0] }
 0x5c2   :  { %v4103_v55 = vpop.f32.mrf.mxu1  ;;  %v10320_v53 = vor.u32 %v11293_v21, %v10317_v36  ;;  %4585 = vmatpush.bf16.msra.mxu2 %v10032_v44  ;;  %v4002_v21 = vadd.f32 %v14383_v25, %v14355_v19 }
 0x5c3   :  { %v6089_v13 = vmax.f32 %v4294_v12, 0.0  ;;  %v14498_v15 = vadd.f32 %v4103_v55, %v4000_v10  ;;  %4236 = vmatmul.bf16.gmra.mxu2 %v18980_v57  ;;  %4384 = vmatmul.bf16.vlgmr.msrb.gmra.mxu0 %v18981_v1  ;;  %v11149_v10 = vld [vmem:[%s18544_s1 + $0x404] sm:$0xf]  ;;  %v9741_v12 = vld [vmem:[%s18544_s1 + $0x424] sm:$0xf0] }
 0x5c4   :  { %v9744_v30 = vor.u32 %v11149_v10, %v9741_v12  ;;  %4689 = vmatpush.bf16.msra.mxu3 %v10320_v53 }
 0x5c5   :  { %4142 = vmatmul.bf16.gmra.mxu1 %v18982_v51  ;;  %4335 = vmatmul.bf16.gmra.mxu3 %v18983_v24  ;;  %v14522_v55 = vpack.c.bf16 %v6089_v13, %v6080_v41  ;;  %v9459_v13 = vld [vmem:[%s18544_s1 + $0x1c8] sm:$0xf]  ;;  %v11082_v41 = vld [vmem:[%s18544_s1 + $0x1e8] sm:$0xf0] }
 0x5c6   :  { %v4197_v11 = vpop.f32.mrf.mxu2  ;;  %4481 = vmatpush.bf16.msrb.mxu1 %v9744_v30 }
 0x5c7   :  { %18984 = vst [vmem:[#allocation130_spill] sm:$0xff] %v14522_v55  ;;  %v4198_v1 = vadd.f32 %v4197_v11, %v14452_v40  ;;  %v9460_v40 = vor.u32 %v11082_v41, %v9459_v13  ;;  %v11122_v55 = vld [vmem:[%s18544_s1 + $0x32c] sm:$0xf] }
 0x5c8   :  { %v4296_v51 = vpop.f32.mrf.mxu3  ;;  %v14527_v24 = vpop.f32.mrf.mxu0 }
 0x5c9   :  { %v4297_v36 = vadd.f32 %v4296_v51, %v4193_v38  ;;  %4793 = vmatpush.bf16.msra.mxu0 %v9460_v40  ;;  %v4005_v38 = vadd.f32 %v14395_v50, %v14355_v19 }
 0x5ca   :  { %v4105_v57 = vpop.f32.mrf.mxu1 }
 0x5cb   :  { %v14529_v33 = vadd.f32 %v4105_v57, %v4002_v21  ;;  %v6098_v12 = vmax.f32 %v4297_v36, 0.0  ;;  %v18985_v21 = vld [vmem:[#allocation57_spill] sm:$0xff]  ;;  %v4007_v36 = vadd.f32 %v14407_v39, %v14355_v19  ;;  %v11131_v39 = vld [vmem:[%s18544_s1 + $0x374] sm:$0xf] }
 0x5ce   :  { %v4199_v44 = vpop.f32.mrf.mxu2 }
 0x5cf   :  { %v4200_v53 = vadd.f32 %v4199_v44, %v14471_v63 }
 0x5d0   :  { %v4298_v25 = vpop.f32.mrf.mxu3  ;;  %v14540_v57 = vpop.f32.mrf.mxu0 }
 0x5d1   :  { %v4299_v51 = vadd.f32 %v4298_v25, %v4195_v3 }
 0x5d2   :  { %v4108_v10 = vpop.f32.mrf.mxu1 }
 0x5d3   :  { %v6107_v30 = vmax.f32 %v4299_v51, 0.0  ;;  %v14542_v11 = vadd.f32 %v4108_v10, %v4005_v38  ;;  %4241 = vmatmul.bf16.gmra.mxu2 %v18790_v20  ;;  %4389 = vmatmul.bf16.gmra.mxu0 %v18855_v18  ;;  %v11140_v38 = vld [vmem:[%s18544_s1 + $0x3bc] sm:$0xf]  ;;  %v9705_v51 = vld [vmem:[%s18544_s1 + $0x3dc] sm:$0xf0] }
 0x5d4   :  { %v9708_v10 = vor.u32 %v11140_v38, %v9705_v51 }
 0x5d5   :  { %4147 = vmatmul.bf16.gmra.mxu1 %v18920_v23  ;;  %4340 = vmatmul.bf16.gmra.mxu3 %v18985_v21  ;;  %v14548_v63 = vpack.c.bf16 %v6107_v30, %v6098_v12 }
 0x5d6   :  { %v4202_v13 = vpop.f32.mrf.mxu2  ;;  %4482 = vmatpush.bf16.msrb.mxu1 %v9708_v10 }
 0x5d7   :  { %18986 = vst [vmem:[#allocation57_spill] sm:$0xff] %v14548_v63  ;;  %v4203_v50 = vadd.f32 %v4202_v13, %v14478_v54 }
 0x5d8   :  { %v4301_v3 = vpop.f32.mrf.mxu3  ;;  %v14553_v40 = vpop.f32.mrf.mxu0 }
 0x5d9   :  { %v4302_v41 = vadd.f32 %v4301_v3, %v4198_v1  ;;  %v9669_v1 = vld [vmem:[%s18544_s1 + $0x394] sm:$0xf0]  ;;  %v4010_v3 = vadd.f32 %v14413_v32, %v14355_v19  ;;  %v18987_v32 = vld [vmem:[#allocation10_spill] sm:$0xff] }
 0x5da   :  { %v4110_v44 = vpop.f32.mrf.mxu1  ;;  %v9672_v13 = vor.u32 %v11131_v39, %v9669_v1  ;;  %v18989_v39 = vld [vmem:[#allocation60_spill] sm:$0xff]  ;;  %v9993_v1 = vld [vmem:[%s18544_s1 + $0x61c] sm:$0xf0] }
 0x5db   :  { %v14555_v25 = vadd.f32 %v4110_v44, %v4007_v36  ;;  %v6116_v51 = vmax.f32 %v4302_v41, 0.0  ;;  %v11212_v41 = vld [vmem:[%s18544_s1 + $0x5fc] sm:$0xf] }
 0x5dc   :  { %4483 = vmatpush.bf16.msrb.mxu1 %v9672_v13  ;;  %v9996_v13 = vor.u32 %v11212_v41, %v9993_v1 }
 0x5de   :  { %v4204_v54 = vpop.f32.mrf.mxu2  ;;  %4586 = vmatpush.bf16.msra.mxu2 %v9996_v13 }
 0x5df   :  { %v4205_v12 = vadd.f32 %v4204_v54, %v14491_v0  ;;  %v9633_v0 = vld [vmem:[%s18544_s1 + $0x34c] sm:$0xf0]  ;;  %v18988_v54 = vld [vmem:[#allocation59_spill] sm:$0xff] }
 0x5e0   :  { %v4303_v30 = vpop.f32.mrf.mxu3  ;;  %v14572_v44 = vpop.f32.mrf.mxu0 }
 0x5e1   :  { %v4304_v36 = vadd.f32 %v4303_v30, %v4200_v53  ;;  %v9636_v53 = vor.u32 %v11122_v55, %v9633_v0  ;;  %v11113_v55 = vld [vmem:[%s18544_s1 + $0x2e4] sm:$0xf] }
 0x5e2   :  { %v4113_v38 = vpop.f32.mrf.mxu1 }
 0x5e3   :  { %v6125_v10 = vmax.f32 %v4304_v36, 0.0  ;;  %v14574_v63 = vadd.f32 %v4113_v38, %v4010_v3  ;;  %4246 = vmatmul.bf16.gmra.mxu2 %v12417_v61  ;;  %4394 = vmatmul.bf16.gmra.mxu0 %v18987_v32  ;;  %v9597_v36 = vld [vmem:[%s18544_s1 + $0x304] sm:$0xf0]  ;;  %v9423_v32 = vld [vmem:[%s18544_s1 + $0x180] sm:$0xf] }
 0x5e4   :  { %4484 = vmatpush.bf16.msrb.mxu1 %v9636_v53 }
 0x5e5   :  { %4152 = vmatmul.bf16.gmra.mxu1 %v18988_v54  ;;  %4345 = vmatmul.bf16.gmra.mxu3 %v18989_v39  ;;  %v14592_v30 = vpack.c.bf16 %v6125_v10, %v6116_v51  ;;  %v9600_v39 = vor.u32 %v11113_v55, %v9597_v36  ;;  %v4012_v51 = vadd.f32 %v14425_v43, %v14355_v19  ;;  %v11104_v43 = vld [vmem:[%s18544_s1 + $0x29c] sm:$0xf]  ;;  %v11095_v55 = vld [vmem:[%s18544_s1 + $0x254] sm:$0xf] }
 0x5e6   :  { %v4207_v3 = vpop.f32.mrf.mxu2 }
 0x5e7   :  { %18990 = vst [vmem:[#allocation131_spill] sm:$0xff] %v14592_v30  ;;  %v4208_v38 = vadd.f32 %v4207_v3, %v14498_v15  ;;  %v11284_v30 = vld [vmem:[%s18544_s1 + $0x83c] sm:$0xf]  ;;  %v10281_v15 = vld [vmem:[%s18544_s1 + $0x85c] sm:$0xf0] }
 0x5e8   :  { %v4306_v0 = vpop.f32.mrf.mxu3  ;;  %v14603_v53 = vpop.f32.mrf.mxu0  ;;  %4485 = vmatpush.bf16.msrb.mxu1 %v9600_v39  ;;  %v10284_v13 = vor.u32 %v11284_v30, %v10281_v15  ;;  %v9525_v30 = vld [vmem:[%s18544_s1 + $0x274] sm:$0xf0] }
 0x5e9   :  { %v4307_v10 = vadd.f32 %v4306_v0, %v4203_v50  ;;  %v9561_v50 = vld [vmem:[%s18544_s1 + $0x2bc] sm:$0xf0] }
 0x5ea   :  { %v4115_v41 = vpop.f32.mrf.mxu1  ;;  %v9564_v39 = vor.u32 %v11104_v43, %v9561_v50  ;;  %4690 = vmatpush.bf16.msra.mxu3 %v10284_v13 }
 0x5eb   :  { %v14605_v1 = vadd.f32 %v4115_v41, %v4012_v51  ;;  %v9528_v51 = vor.u32 %v11095_v55, %v9525_v30  ;;  %v4015_v41 = vadd.f32 %v14450_v59, %v14355_v19  ;;  %v6134_v50 = vmax.f32 %v4307_v10, 0.0  ;;  %v18991_v59 = vld [vmem:[#allocation12_spill] sm:$0xff]  ;;  %v18992_v10 = vld [vmem:[#allocation63_spill] sm:$0xff] }
 0x5ec   :  { %4486 = vmatpush.bf16.msrb.mxu1 %v9564_v39 }
 0x5ee   :  { %v4209_v3 = vpop.f32.mrf.mxu2 }
 0x5ef   :  { %v4210_v36 = vadd.f32 %v4209_v3, %v14529_v33  ;;  %v11073_v33 = vld [vmem:[%s18544_s1 + $0x1a0] sm:$0xf0] }
 0x5f0   :  { %v4308_v0 = vpop.f32.mrf.mxu3  ;;  %v14628_v43 = vpop.f32.mrf.mxu0  ;;  %4487 = vmatpush.bf16.msrb.mxu1 %v9528_v51 }
 0x5f1   :  { %v4309_v15 = vadd.f32 %v4308_v0, %v4205_v12  ;;  %v9424_v12 = vor.u32 %v11073_v33, %v9423_v32 }
 0x5f2   :  { %v4118_v13 = vpop.f32.mrf.mxu1 }
 0x5f3   :  { %v6143_v39 = vmax.f32 %v4309_v15, 0.0  ;;  %v14630_v54 = vadd.f32 %v4118_v13, %v4015_v41  ;;  %4251 = vmatmul.bf16.gmra.mxu2 %v12491_v22  ;;  %4399 = vmatmul.bf16.gmra.mxu0 %v18991_v59  ;;  %v4017_v41 = vadd.f32 %v14469_v17, %v14355_v19  ;;  %v4020_v17 = vadd.f32 %v14476_v7, %v14355_v19 }
 0x5f4   :  { %4794 = vmatpush.bf16.msra.mxu0 %v9424_v12 }
 0x5f5   :  { %4157 = vmatmul.bf16.gmra.mxu1 %v18799_v49  ;;  %4350 = vmatmul.bf16.gmra.mxu3 %v18992_v10  ;;  %v14642_v3 = vpack.c.bf16 %v6143_v39, %v6134_v50  ;;  %v11203_v50 = vld [vmem:[%s18544_s1 + $0x5b4] sm:$0xf]  ;;  %v9957_v39 = vld [vmem:[%s18544_s1 + $0x5d4] sm:$0xf0]  ;;  %v11194_v10 = vld [vmem:[%s18544_s1 + $0x56c] sm:$0xf] }
 0x5f6   :  { %v4212_v55 = vpop.f32.mrf.mxu2  ;;  %v9960_v12 = vor.u32 %v11203_v50, %v9957_v39  ;;  %v11185_v50 = vld [vmem:[%s18544_s1 + $0x524] sm:$0xf]  ;;  %v9885_v39 = vld [vmem:[%s18544_s1 + $0x544] sm:$0xf0] }
 0x5f7   :  { %18993 = vst [vmem:[#allocation132_spill] sm:$0xff] %v14642_v3  ;;  %v4213_v30 = vadd.f32 %v4212_v55, %v14542_v11 }
 0x5f8   :  { %v4311_v0 = vpop.f32.mrf.mxu3  ;;  %v14647_v15 = vpop.f32.mrf.mxu0  ;;  %4587 = vmatpush.bf16.msra.mxu2 %v9960_v12 }
 0x5f9   :  { %v4312_v51 = vadd.f32 %v4311_v0, %v4208_v38 }
 0x5fa   :  { %v4120_v13 = vpop.f32.mrf.mxu1 }
 0x5fb   :  { %v14649_v59 = vadd.f32 %v4120_v13, %v4017_v41  ;;  %v6152_v41 = vmax.f32 %v4312_v51, 0.0 }
 0x5fe   :  { %v4214_v32 = vpop.f32.mrf.mxu2 }
 0x5ff   :  { %v4215_v11 = vadd.f32 %v4214_v32, %v14555_v25  ;;  %v9921_v25 = vld [vmem:[%s18544_s1 + $0x58c] sm:$0xf0] }
 0x600   :  { %v4313_v33 = vpop.f32.mrf.mxu3  ;;  %v14660_v55 = vpop.f32.mrf.mxu0  ;;  %v9924_v7 = vor.u32 %v11194_v10, %v9921_v25  ;;  %v9888_v10 = vor.u32 %v11185_v50, %v9885_v39  ;;  %v11176_v25 = vld [vmem:[%s18544_s1 + $0x4dc] sm:$0xf]  ;;  %v11167_v39 = vld [vmem:[%s18544_s1 + $0x494] sm:$0xf] }
 0x601   :  { %v4314_v38 = vadd.f32 %v4313_v33, %v4210_v36  ;;  %v18994_v36 = vld [vmem:[#allocation66_spill] sm:$0xff] }
 0x602   :  { %v4123_v0 = vpop.f32.mrf.mxu1  ;;  %4588 = vmatpush.bf16.msra.mxu2 %v9924_v7 }
 0x603   :  { %v6161_v13 = vmax.f32 %v4314_v38, 0.0  ;;  %v14662_v3 = vadd.f32 %v4123_v0, %v4020_v17  ;;  %4256 = vmatmul.bf16.gmra.mxu2 %v12541_v62  ;;  %4404 = vmatmul.bf16.gmra.mxu0 %v11830_v42  ;;  %v4022_v17 = vadd.f32 %v14489_v6, %v14355_v19  ;;  %v11275_v6 = vld [vmem:[%s18544_s1 + $0x7f4] sm:$0xf] }
 0x605   :  { %4162 = vmatmul.bf16.gmra.mxu1 %v12543_v5  ;;  %4355 = vmatmul.bf16.gmra.mxu3 %v18994_v36  ;;  %v14674_v51 = vpack.c.bf16 %v6161_v13, %v6152_v41  ;;  %v11266_v36 = vld [vmem:[%s18544_s1 + $0x7ac] sm:$0xf] }
 0x606   :  { %v4217_v32 = vpop.f32.mrf.mxu2  ;;  %4589 = vmatpush.bf16.msra.mxu2 %v9888_v10 }
 0x607   :  { %18995 = vst [vmem:[#allocation133_spill] sm:$0xff] %v14674_v51  ;;  %v4218_v33 = vadd.f32 %v4217_v32, %v14574_v63  ;;  %v9849_v63 = vld [vmem:[%s18544_s1 + $0x4fc] sm:$0xf0] }
 0x608   :  { %v4316_v12 = vpop.f32.mrf.mxu3  ;;  %v14685_v0 = vpop.f32.mrf.mxu0  ;;  %v9852_v7 = vor.u32 %v11176_v25, %v9849_v63  ;;  %v4025_v25 = vadd.f32 %v14496_v29, %v14355_v19 }
 0x609   :  { %v4317_v38 = vadd.f32 %v4316_v12, %v4213_v30  ;;  %v10245_v30 = vld [vmem:[%s18544_s1 + $0x814] sm:$0xf0] }
 0x60a   :  { %v4125_v41 = vpop.f32.mrf.mxu1  ;;  %v10248_v32 = vor.u32 %v11275_v6, %v10245_v30  ;;  %4590 = vmatpush.bf16.msra.mxu2 %v9852_v7  ;;  %v9813_v12 = vld [vmem:[%s18544_s1 + $0x4b4] sm:$0xf0] }
 0x60b   :  { %v14687_v13 = vadd.f32 %v4125_v41, %v4022_v17  ;;  %v9816_v41 = vor.u32 %v11167_v39, %v9813_v12  ;;  %v6170_v30 = vmax.f32 %v4317_v38, 0.0  ;;  %v9387_v38 = vld [vmem:[%s18544_s1 + $0x138] sm:$0xf]  ;;  %v11064_v39 = vld [vmem:[%s18544_s1 + $0x158] sm:$0xf0] }
 0x60c   :  { %4691 = vmatpush.bf16.msra.mxu3 %v10248_v32 }
 0x60e   :  { %v4219_v50 = vpop.f32.mrf.mxu2  ;;  %4591 = vmatpush.bf16.msra.mxu2 %v9816_v41 }
 0x60f   :  { %v4220_v10 = vadd.f32 %v4219_v50, %v14605_v1  ;;  %v10209_v1 = vld [vmem:[%s18544_s1 + $0x7cc] sm:$0xf0]  ;;  %v18997_v50 = vld [vmem:[#allocation5_spill] sm:$0xff] }
 0x610   :  { %v4318_v17 = vpop.f32.mrf.mxu3  ;;  %v14710_v6 = vpop.f32.mrf.mxu0  ;;  %v10212_v29 = vor.u32 %v11266_v36, %v10209_v1  ;;  %v11257_v36 = vld [vmem:[%s18544_s1 + $0x764] sm:$0xf] }
 0x611   :  { %v4319_v63 = vadd.f32 %v4318_v17, %v4215_v11  ;;  %v18996_v11 = vld [vmem:[#allocation69_spill] sm:$0xff]  ;;  %v9388_v17 = vor.u32 %v11064_v39, %v9387_v38 }
 0x612   :  { %v4128_v7 = vpop.f32.mrf.mxu1  ;;  %4692 = vmatpush.bf16.msra.mxu3 %v10212_v29 }
 0x613   :  { %v6179_v32 = vmax.f32 %v4319_v63, 0.0  ;;  %v14712_v51 = vadd.f32 %v4128_v7, %v4025_v25  ;;  %4261 = vmatmul.bf16.gmra.mxu2 %v12603_v2  ;;  %4409 = vmatmul.bf16.gmra.mxu0 %v11866_v56  ;;  %v10173_v25 = vld [vmem:[%s18544_s1 + $0x784] sm:$0xf0] }
 0x614   :  { %4795 = vmatpush.bf16.msra.mxu0 %v9388_v17  ;;  %v10176_v1 = vor.u32 %v11257_v36, %v10173_v25  ;;  %v19000_v56 = vld [vmem:[#allocation71_spill] sm:$0xff] }
 0x615   :  { %4360 = vmatmul.bf16.gmra.mxu3 %v18996_v11  ;;  %4488 = vmatmul.bf16.vlgmr.msrb.gmra.mxu1 %v18997_v50  ;;  %v14730_v12 = vpack.c.bf16 %v6179_v32, %v6170_v30  ;;  %v4027_v30 = vadd.f32 %v14527_v24, %v14355_v19  ;;  %v11239_v24 = vld [vmem:[%s18544_s1 + $0x6d4] sm:$0xf]  ;;  %v18999_v11 = vld [vmem:[#allocation18_spill] sm:$0xff] }
 0x616   :  { %v4222_v41 = vpop.f32.mrf.mxu2  ;;  %4693 = vmatpush.bf16.msra.mxu3 %v10176_v1  ;;  %v4030_v1 = vadd.f32 %v14540_v57, %v14355_v19 }
 0x617   :  { %18998 = vst [vmem:[#allocation134_spill] sm:$0xff] %v14730_v12  ;;  %v4223_v63 = vadd.f32 %v4222_v41, %v14630_v54  ;;  %v11248_v12 = vld [vmem:[%s18544_s1 + $0x71c] sm:$0xf]  ;;  %v10137_v54 = vld [vmem:[%s18544_s1 + $0x73c] sm:$0xf0] }
 0x618   :  { %v4321_v7 = vpop.f32.mrf.mxu3  ;;  %v14741_v29 = vpop.f32.mrf.mxu0  ;;  %v10140_v41 = vor.u32 %v11248_v12, %v10137_v54 }
 0x619   :  { %v4322_v32 = vadd.f32 %v4321_v7, %v4218_v33  ;;  %v10101_v33 = vld [vmem:[%s18544_s1 + $0x6f4] sm:$0xf0] }
 0x61a   :  { %v4130_v38 = vpop.f32.mrf.mxu1  ;;  %4694 = vmatpush.bf16.msra.mxu3 %v10140_v41  ;;  %v10104_v7 = vor.u32 %v11239_v24, %v10101_v33  ;;  %v4032_v33 = vadd.f32 %v14553_v40, %v14355_v19 }
 0x61b   :  { %v4131_v39 = vadd.f32 %v4130_v38, %v4027_v30  ;;  %v6188_v54 = vmax.f32 %v4322_v32, 0.0 }
 0x61e   :  { %v4224_v17 = vpop.f32.mrf.mxu2  ;;  %4695 = vmatpush.bf16.msra.mxu3 %v10104_v7 }
 0x61f   :  { %v4225_v36 = vadd.f32 %v4224_v17, %v14649_v59  ;;  %v19001_v59 = vld [vmem:[#allocation9_spill] sm:$0xff] }
 0x620   :  { %v4323_v25 = vpop.f32.mrf.mxu3  ;;  %v14758_v38 = vpop.f32.mrf.mxu0 }
 0x621   :  { %v4324_v30 = vadd.f32 %v4323_v25, %v4220_v10 }
 0x622   :  { %v4133_v12 = vpop.f32.mrf.mxu1 }
 0x623   :  { %v6197_v41 = vmax.f32 %v4324_v30, 0.0  ;;  %v4134_v50 = vadd.f32 %v4133_v12, %v4030_v1  ;;  %4266 = vmatmul.bf16.gmra.mxu2 %v12663_v48  ;;  %4414 = vmatmul.bf16.gmra.mxu0 %v18999_v11 }
 0x625   :  { %4365 = vmatmul.bf16.gmra.mxu3 %v19000_v56  ;;  %4493 = vmatmul.bf16.gmra.mxu1 %v19001_v59  ;;  %v14764_v17 = vpack.c.bf16 %v6197_v41, %v6188_v54  ;;  %v4035_v54 = vadd.f32 %v14572_v44, %v14355_v19 }
 0x626   :  { %v4227_v24 = vpop.f32.mrf.mxu2 }
 0x627   :  { %19002 = vst [vmem:[#allocation135_spill] sm:$0xff] %v14764_v17  ;;  %v4228_v57 = vadd.f32 %v4227_v24, %v14662_v3 }
 0x628   :  { %v4326_v10 = vpop.f32.mrf.mxu3  ;;  %v14769_v25 = vpop.f32.mrf.mxu0 }
 0x629   :  { %v4327_v32 = vadd.f32 %v4326_v10, %v4223_v63  ;;  %v4037_v63 = vadd.f32 %v14603_v53, %v14355_v19  ;;  %v4040_v53 = vadd.f32 %v14628_v43, %v14355_v19 }
 0x62a   :  { %v4135_v7 = vpop.f32.mrf.mxu1 }
 0x62b   :  { %v4136_v1 = vadd.f32 %v4135_v7, %v4032_v33  ;;  %v6206_v24 = vmax.f32 %v4327_v32, 0.0  ;;  %v9351_v7 = vld [vmem:[%s18544_s1 + $0xf0] sm:$0xf] }
 0x62e   :  { %v4229_v30 = vpop.f32.mrf.mxu2 }
 0x62f   :  { %v4230_v12 = vadd.f32 %v4229_v30, %v14687_v13 }
 0x630   :  { %v4328_v56 = vpop.f32.mrf.mxu3  ;;  %v14774_v17 = vpop.f32.mrf.mxu0 }
 0x631   :  { %v4329_v41 = vadd.f32 %v4328_v56, %v4225_v36 }
 0x632   :  { %v4138_v3 = vpop.f32.mrf.mxu1 }
 0x633   :  { %v6215_v59 = vmax.f32 %v4329_v41, 0.0  ;;  %v4139_v11 = vadd.f32 %v4138_v3, %v4035_v54  ;;  %4419 = vmatmul.bf16.gmra.mxu0 %v11944_v31  ;;  %4592 = vmatmul.bf16.vlgmr.msra.gmra.mxu2 %v11754_v14 }
 0x635   :  { %4370 = vmatmul.bf16.gmra.mxu3 %v12683_v34  ;;  %4498 = vmatmul.bf16.gmra.mxu1 %v11758_v16  ;;  %v14780_v40 = vpack.c.bf16 %v6215_v59, %v6206_v24  ;;  %v11055_v59 = vld [vmem:[%s18544_s1 + $0x110] sm:$0xf0] }
 0x636   :  { %v4232_v13 = vpop.f32.mrf.mxu2  ;;  %v9352_v30 = vor.u32 %v11055_v59, %v9351_v7 }
 0x637   :  { %19003 = vst [vmem:[#allocation136_spill] sm:$0xff] %v14780_v40  ;;  %v4233_v44 = vadd.f32 %v4232_v13, %v14712_v51 }
 0x638   :  { %v4331_v56 = vpop.f32.mrf.mxu3  ;;  %v14785_v10 = vpop.f32.mrf.mxu0  ;;  %4796 = vmatpush.bf16.msra.mxu0 %v9352_v30 }
 0x639   :  { %v4332_v36 = vadd.f32 %v4331_v56, %v4228_v57 }
 0x63a   :  { %v4140_v33 = vpop.f32.mrf.mxu1 }
 0x63b   :  { %v4141_v32 = vadd.f32 %v4140_v33, %v4037_v63  ;;  %v6224_v13 = vmax.f32 %v4332_v36, 0.0 }
 0x63e   :  { %v4234_v51 = vpop.f32.mrf.mxu2 }
 0x63f   :  { %v4235_v54 = vadd.f32 %v4234_v51, %v4131_v39 }
 0x640   :  { %v4333_v41 = vpop.f32.mrf.mxu3  ;;  %v14795_v3 = vpop.f32.mrf.mxu0 }
 0x641   :  { %v4334_v57 = vadd.f32 %v4333_v41, %v4230_v12  ;;  %v4042_v12 = vadd.f32 %v14647_v15, %v14355_v19 }
 0x642   :  { %v4143_v24 = vpop.f32.mrf.mxu1 }
 0x643   :  { %v6233_v56 = vmax.f32 %v4334_v57, 0.0  ;;  %v4144_v63 = vadd.f32 %v4143_v24, %v4040_v53  ;;  %4424 = vmatmul.bf16.gmra.mxu0 %v11991_v60  ;;  %4597 = vmatmul.bf16.gmra.mxu2 %v11790_v26  ;;  %v4045_v24 = vadd.f32 %v14660_v55, %v14355_v19 }
 0x645   :  { %4503 = vmatmul.bf16.gmra.mxu1 %v11792_v27  ;;  %4696 = vmatmul.bf16.vlgmr.msra.gmra.mxu3 %v11794_v28  ;;  %v14801_v39 = vpack.c.bf16 %v6233_v56, %v6224_v13 }
 0x646   :  { %v4237_v33 = vpop.f32.mrf.mxu2 }
 0x647   :  { %19004 = vst [vmem:[#allocation137_spill] sm:$0xff] %v14801_v39  ;;  %v4238_v7 = vadd.f32 %v4237_v33, %v4134_v50 }
 0x648   :  { %v4336_v43 = vpop.f32.mrf.mxu3  ;;  %v14805_v36 = vpop.f32.mrf.mxu0 }
 0x649   :  { %v4337_v59 = vadd.f32 %v4336_v43, %v4233_v44 }
 0x64a   :  { %v4145_v30 = vpop.f32.mrf.mxu1 }
 0x64b   :  { %v4146_v51 = vadd.f32 %v4145_v30, %v4042_v12  ;;  %v6242_v50 = vmax.f32 %v4337_v59, 0.0 }
 0x64e   :  { %v4239_v41 = vpop.f32.mrf.mxu2 }
 0x64f   :  { %v4240_v53 = vadd.f32 %v4239_v41, %v4136_v1 }
 0x650   :  { %v4338_v57 = vpop.f32.mrf.mxu3  ;;  %v14809_v13 = vpop.f32.mrf.mxu0 }
 0x651   :  { %v4339_v40 = vadd.f32 %v4338_v57, %v4235_v54  ;;  %v4047_v54 = vadd.f32 %v14685_v0, %v14355_v19  ;;  %v9315_v0 = vld [vmem:[%s18544_s1 + $0xa8] sm:$0xf] }
 0x652   :  { %v4148_v56 = vpop.f32.mrf.mxu1 }
 0x653   :  { %v6251_v33 = vmax.f32 %v4339_v40, 0.0  ;;  %v4149_v39 = vadd.f32 %v4148_v56, %v4045_v24  ;;  %4429 = vmatmul.bf16.gmra.mxu0 %v12047_v52  ;;  %4602 = vmatmul.bf16.gmra.mxu2 %v11832_v45  ;;  %v4050_v24 = vadd.f32 %v14710_v6, %v14355_v19 }
 0x655   :  { %4508 = vmatmul.bf16.gmra.mxu1 %v11834_v46  ;;  %4701 = vmatmul.bf16.gmra.mxu3 %v11836_v47  ;;  %v14815_v15 = vpack.c.bf16 %v6251_v33, %v6242_v50 }
 0x656   :  { %v4242_v1 = vpop.f32.mrf.mxu2 }
 0x657   :  { %19005 = vst [vmem:[#allocation138_spill] sm:$0xff] %v14815_v15  ;;  %v4243_v44 = vadd.f32 %v4242_v1, %v4139_v11 }
 0x658   :  { %v4341_v55 = vpop.f32.mrf.mxu3  ;;  %v14819_v12 = vpop.f32.mrf.mxu0 }
 0x659   :  { %v4342_v43 = vadd.f32 %v4341_v55, %v4238_v7  ;;  %v11046_v7 = vld [vmem:[%s18544_s1 + $0xc8] sm:$0xf0] }
 0x65a   :  { %v4150_v40 = vpop.f32.mrf.mxu1  ;;  %v19007_v55 = vld [vmem:[#allocation15_spill] sm:$0xff]  ;;  %v9316_v6 = vor.u32 %v11046_v7, %v9315_v0 }
 0x65b   :  { %v4151_v59 = vadd.f32 %v4150_v40, %v4047_v54  ;;  %v6260_v11 = vmax.f32 %v4342_v43, 0.0  ;;  %v19009_v54 = vld [vmem:[#allocation17_spill] sm:$0xff] }
 0x65c   :  { %4797 = vmatpush.bf16.msra.mxu0 %v9316_v6 }
 0x65e   :  { %v4244_v30 = vpop.f32.mrf.mxu2 }
 0x65f   :  { %v4245_v41 = vadd.f32 %v4244_v30, %v4141_v32  ;;  %v19006_v32 = vld [vmem:[#allocation32_spill] sm:$0xff] }
 0x660   :  { %v4343_v57 = vpop.f32.mrf.mxu3  ;;  %v14823_v50 = vpop.f32.mrf.mxu0 }
 0x661   :  { %v4344_v56 = vadd.f32 %v4343_v57, %v4240_v53  ;;  %v19008_v53 = vld [vmem:[#allocation16_spill] sm:$0xff] }
 0x662   :  { %v4153_v33 = vpop.f32.mrf.mxu1 }
 0x663   :  { %v6269_v1 = vmax.f32 %v4344_v56, 0.0  ;;  %v4154_v15 = vadd.f32 %v4153_v33, %v4050_v24  ;;  %4434 = vmatmul.bf16.gmra.mxu0 %v19006_v32  ;;  %4607 = vmatmul.bf16.gmra.mxu2 %v19007_v55  ;;  %v4052_v24 = vadd.f32 %v14741_v29, %v14355_v19  ;;  %v19011_v29 = vld [vmem:[#allocation19_spill] sm:$0xff] }
 0x665   :  { %4513 = vmatmul.bf16.gmra.mxu1 %v19008_v53  ;;  %4706 = vmatmul.bf16.gmra.mxu3 %v19009_v54  ;;  %v14835_v43 = vpack.c.bf16 %v6269_v1, %v6260_v11  ;;  %v4055_v54 = vadd.f32 %v14758_v38, %v14355_v19 }
 0x666   :  { %v4247_v40 = vpop.f32.mrf.mxu2 }
 0x667   :  { %19010 = vst [vmem:[#allocation16_spill] sm:$0xff] %v14835_v43  ;;  %v4248_v30 = vadd.f32 %v4247_v40, %v4144_v63 }
 0x668   :  { %v4346_v57 = vpop.f32.mrf.mxu3  ;;  %v14839_v33 = vpop.f32.mrf.mxu0 }
 0x669   :  { %v4347_v56 = vadd.f32 %v4346_v57, %v4243_v44  ;;  %v19012_v44 = vld [vmem:[#allocation20_spill] sm:$0xff] }
 0x66a   :  { %v4155_v32 = vpop.f32.mrf.mxu1 }
 0x66b   :  { %v4156_v47 = vadd.f32 %v4155_v32, %v4052_v24  ;;  %v6278_v63 = vmax.f32 %v4347_v56, 0.0  ;;  %v19013_v32 = vld [vmem:[#allocation21_spill] sm:$0xff] }
 0x66e   :  { %v4249_v55 = vpop.f32.mrf.mxu2 }
 0x66f   :  { %v4250_v0 = vadd.f32 %v4249_v55, %v4146_v51 }
 0x670   :  { %v4348_v7 = vpop.f32.mrf.mxu3  ;;  %v14843_v1 = vpop.f32.mrf.mxu0 }
 0x671   :  { %v4349_v11 = vadd.f32 %v4348_v7, %v4245_v41  ;;  %v4057_v41 = vadd.f32 %v14769_v25, %v14355_v19  ;;  %v19015_v25 = vld [vmem:[#allocation22_spill] sm:$0xff] }
 0x672   :  { %v4158_v6 = vpop.f32.mrf.mxu1 }
 0x673   :  { %v6287_v40 = vmax.f32 %v4349_v11, 0.0  ;;  %v4159_v43 = vadd.f32 %v4158_v6, %v4055_v54  ;;  %4439 = vmatmul.bf16.gmra.mxu0 %v18945_v37  ;;  %4612 = vmatmul.bf16.gmra.mxu2 %v19011_v29 }
 0x675   :  { %4518 = vmatmul.bf16.gmra.mxu1 %v19012_v44  ;;  %4711 = vmatmul.bf16.gmra.mxu3 %v19013_v32  ;;  %v14849_v51 = vpack.c.bf16 %v6287_v40, %v6278_v63  ;;  %v4060_v44 = vadd.f32 %v14774_v17, %v14355_v19 }
 0x676   :  { %v4252_v55 = vpop.f32.mrf.mxu2 }
 0x677   :  { %19014 = vst [vmem:[#allocation139_spill] sm:$0xff] %v14849_v51  ;;  %v4253_v57 = vadd.f32 %v4252_v55, %v4149_v39 }
 0x678   :  { %v4351_v38 = vpop.f32.mrf.mxu3  ;;  %v14853_v56 = vpop.f32.mrf.mxu0 }
 0x679   :  { %v4352_v24 = vadd.f32 %v4351_v38, %v4248_v30  ;;  %v19016_v30 = vld [vmem:[#allocation23_spill] sm:$0xff]  ;;  %v19017_v38 = vld [vmem:[#allocation24_spill] sm:$0xff] }
 0x67a   :  { %v4160_v54 = vpop.f32.mrf.mxu1 }
 0x67b   :  { %v4161_v7 = vadd.f32 %v4160_v54, %v4057_v41  ;;  %v6296_v39 = vmax.f32 %v4352_v24, 0.0 }
 0x67e   :  { %v4254_v11 = vpop.f32.mrf.mxu2 }
 0x67f   :  { %v4255_v6 = vadd.f32 %v4254_v11, %v4151_v59  ;;  %v9279_v11 = vld [vmem:[%s18544_s1 + $0x60] sm:$0xf] }
 0x680   :  { %v4353_v29 = vpop.f32.mrf.mxu3  ;;  %v14857_v63 = vpop.f32.mrf.mxu0 }
 0x681   :  { %v4354_v32 = vadd.f32 %v4353_v29, %v4250_v0  ;;  %v4062_v0 = vadd.f32 %v14785_v10, %v14355_v19 }
 0x682   :  { %v4163_v40 = vpop.f32.mrf.mxu1 }
 0x683   :  { %v6305_v55 = vmax.f32 %v4354_v32, 0.0  ;;  %v4164_v51 = vadd.f32 %v4163_v40, %v4060_v44  ;;  %4444 = vmatmul.bf16.gmra.mxu0 %v18884_v9  ;;  %4617 = vmatmul.bf16.gmra.mxu2 %v19015_v25  ;;  %v11037_v40 = vld [vmem:[%s18544_s1 + $0x80] sm:$0xf0] }
 0x685   :  { %4523 = vmatmul.bf16.gmra.mxu1 %v19016_v30  ;;  %4716 = vmatmul.bf16.gmra.mxu3 %v19017_v38  ;;  %v14863_v59 = vpack.c.bf16 %v6305_v55, %v6296_v39  ;;  %v9280_v39 = vor.u32 %v11037_v40, %v9279_v11  ;;  %v19019_v40 = vld [vmem:[#allocation46_spill] sm:$0xff]  ;;  %v19020_v30 = vld [vmem:[#allocation25_spill] sm:$0xff] }
 0x686   :  { %v4257_v41 = vpop.f32.mrf.mxu2 }
 0x687   :  { %19018 = vst [vmem:[#allocation140_spill] sm:$0xff] %v14863_v59  ;;  %v4258_v54 = vadd.f32 %v4257_v41, %v4154_v15  ;;  %v11403_v15 = vld [vmem:[%s18545_s2] sm:$0xff]  ;;  %4798 = vmatpush.bf16.msra.mxu0 %v9280_v39  ;;  %v19022_v39 = vld [vmem:[#allocation27_spill] sm:$0xff] }
 0x688   :  { %v4356_v17 = vpop.f32.mrf.mxu3  ;;  %v14867_v24 = vpop.f32.mrf.mxu0  ;;  %v14878_v55 = vperm.slane %v11403_v15, 5  ;;  %v19021_v15 = vld [vmem:[#allocation26_spill] sm:$0xff] }
 0x689   :  { %v4357_v29 = vadd.f32 %v4356_v17, %v4253_v57 }
 0x68a   :  { %v4165_v44 = vpop.f32.mrf.mxu1  ;;  %v4386_v41 = vadd.f32 %v14795_v3, %v14878_v55 }
 0x68b   :  { %v4166_v32 = vadd.f32 %v4165_v44, %v4062_v0  ;;  %v6314_v59 = vmax.f32 %v4357_v29, 0.0 }
 0x68e   :  { %v4259_v19 = vpop.f32.mrf.mxu2 }
 0x68f   :  { %v4260_v10 = vadd.f32 %v4259_v19, %v4156_v47 }
 0x690   :  { %v4358_v57 = vpop.f32.mrf.mxu3  ;;  %v14882_v0 = vpop.f32.mrf.mxu0 }
 0x691   :  { %v4359_v17 = vadd.f32 %v4358_v57, %v4255_v6  ;;  %v4388_v6 = vadd.f32 %v14805_v36, %v14878_v55  ;;  %v19024_v36 = vld [vmem:[#allocation28_spill] sm:$0xff] }
 0x692   :  { %v4489_v44 = vpop.f32.mrf.mxu1 }
 0x693   :  { %v6323_v38 = vmax.f32 %v4359_v17, 0.0  ;;  %v4490_v11 = vadd.f32 %v4489_v44, %v4386_v41  ;;  %4449 = vmatmul.bf16.gmra.mxu0 %v19019_v40  ;;  %4622 = vmatmul.bf16.gmra.mxu2 %v19020_v30 }
 0x695   :  { %4528 = vmatmul.bf16.gmra.mxu1 %v19021_v15  ;;  %4721 = vmatmul.bf16.gmra.mxu3 %v19022_v39  ;;  %v14888_v47 = vpack.c.bf16 %v6323_v38, %v6314_v59  ;;  %v4391_v15 = vadd.f32 %v14809_v13, %v14878_v55 }
 0x696   :  { %v4262_v19 = vpop.f32.mrf.mxu2 }
 0x697   :  { %19023 = vst [vmem:[#allocation141_spill] sm:$0xff] %v14888_v47  ;;  %v4263_v25 = vadd.f32 %v4262_v19, %v4159_v43 }
 0x698   :  { %v4361_v3 = vpop.f32.mrf.mxu3  ;;  %v14892_v29 = vpop.f32.mrf.mxu0 }
 0x699   :  { %v4362_v57 = vadd.f32 %v4361_v3, %v4258_v54  ;;  %v19025_v54 = vld [vmem:[#allocation29_spill] sm:$0xff]  ;;  %v19026_v3 = vld [vmem:[#allocation30_spill] sm:$0xff] }
 0x69a   :  { %v4491_v41 = vpop.f32.mrf.mxu1 }
 0x69b   :  { %v4492_v17 = vadd.f32 %v4491_v41, %v4388_v6  ;;  %v6332_v43 = vmax.f32 %v4362_v57, 0.0 }
 0x69e   :  { %v4264_v44 = vpop.f32.mrf.mxu2 }
 0x69f   :  { %v4265_v40 = vadd.f32 %v4264_v44, %v4161_v7  ;;  %v9243_v44 = vld [vmem:[%s18544_s1 + $0x18] sm:$0xf] }
 0x6a0   :  { %v4363_v30 = vpop.f32.mrf.mxu3  ;;  %v14896_v38 = vpop.f32.mrf.mxu0 }
 0x6a1   :  { %v4364_v39 = vadd.f32 %v4363_v30, %v4260_v10  ;;  %v4393_v30 = vadd.f32 %v14819_v12, %v14878_v55  ;;  %v4396_v12 = vadd.f32 %v14823_v50, %v14878_v55 }
 0x6a2   :  { %v4494_v59 = vpop.f32.mrf.mxu1 }
 0x6a3   :  { %v6341_v19 = vmax.f32 %v4364_v39, 0.0  ;;  %v4495_v47 = vadd.f32 %v4494_v59, %v4391_v15  ;;  %4454 = vmatmul.bf16.gmra.mxu0 %v18828_v58  ;;  %4627 = vmatmul.bf16.gmra.mxu2 %v19024_v36  ;;  %v11028_v59 = vld [vmem:[%s18544_s1 + $0x38] sm:$0xf0] }
 0x6a4   :  { %v19029_v36 = vld [vmem:[#allocation33_spill] sm:$0xff] }
 0x6a5   :  { %4533 = vmatmul.bf16.gmra.mxu1 %v19025_v54  ;;  %4726 = vmatmul.bf16.gmra.mxu3 %v19026_v3  ;;  %v14902_v7 = vpack.c.bf16 %v6341_v19, %v6332_v43  ;;  %v9244_v43 = vor.u32 %v11028_v59, %v9243_v44  ;;  %v19028_v54 = vld [vmem:[#allocation7_spill] sm:$0xff]  ;;  %v19030_v44 = vld [vmem:[#allocation34_spill] sm:$0xff] }
 0x6a6   :  { %v4267_v6 = vpop.f32.mrf.mxu2  ;;  %v19031_v59 = vld [vmem:[#allocation35_spill] sm:$0xff] }
 0x6a7   :  { %19027 = vst [vmem:[#allocation142_spill] sm:$0xff] %v14902_v7  ;;  %v4268_v41 = vadd.f32 %v4267_v6, %v4164_v51  ;;  %4799 = vmatpush.bf16.msra.mxu0 %v9244_v43 }
 0x6a8   :  { %v4366_v13 = vpop.f32.mrf.mxu3  ;;  %v14906_v57 = vpop.f32.mrf.mxu0 }
 0x6a9   :  { %v4367_v10 = vadd.f32 %v4366_v13, %v4263_v25 }
 0x6aa   :  { %v4496_v15 = vpop.f32.mrf.mxu1 }
 0x6ab   :  { %v14908_v39 = vadd.f32 %v4496_v15, %v4393_v30  ;;  %v6350_v15 = vmax.f32 %v4367_v10, 0.0 }
 0x6ae   :  { %v4269_v51 = vpop.f32.mrf.mxu2 }
 0x6af   :  { %v4270_v19 = vadd.f32 %v4269_v51, %v4166_v32  ;;  %v4398_v51 = vadd.f32 %v14839_v33, %v14878_v55  ;;  %v19033_v33 = vld [vmem:[#allocation4_spill] sm:$0xff] }
 0x6b0   :  { %v4368_v6 = vpop.f32.mrf.mxu3  ;;  %v14918_v13 = vpop.f32.mrf.mxu0 }
 0x6b1   :  { %v4369_v25 = vadd.f32 %v4368_v6, %v4265_v40 }
 0x6b2   :  { %v4499_v30 = vpop.f32.mrf.mxu1 }
 0x6b3   :  { %v6359_v7 = vmax.f32 %v4369_v25, 0.0  ;;  %v14920_v3 = vadd.f32 %v4499_v30, %v4396_v12  ;;  %4459 = vmatmul.bf16.gmra.mxu0 %v19028_v54  ;;  %4632 = vmatmul.bf16.gmra.mxu2 %v19029_v36 }
 0x6b5   :  { %4538 = vmatmul.bf16.gmra.mxu1 %v19030_v44  ;;  %4731 = vmatmul.bf16.gmra.mxu3 %v19031_v59  ;;  %v14926_v32 = vpack.c.bf16 %v6359_v7, %v6350_v15  ;;  %v4401_v59 = vadd.f32 %v14843_v1, %v14878_v55 }
 0x6b6   :  { %v4593_v43 = vpop.f32.mrf.mxu2 }
 0x6b7   :  { %19032 = vst [vmem:[#allocation143_spill] sm:$0xff] %v14926_v32  ;;  %v4594_v40 = vadd.f32 %v4593_v43, %v4490_v11 }
 0x6b8   :  { %v4371_v50 = vpop.f32.mrf.mxu3  ;;  %v14930_v6 = vpop.f32.mrf.mxu0 }
 0x6b9   :  { %v4372_v10 = vadd.f32 %v4371_v50, %v4268_v41  ;;  %v19034_v41 = vld [vmem:[#allocation39_spill] sm:$0xff]  ;;  %v19035_v50 = vld [vmem:[#allocation40_spill] sm:$0xff] }
 0x6ba   :  { %v4501_v12 = vpop.f32.mrf.mxu1 }
 0x6bb   :  { %v14932_v25 = vadd.f32 %v4501_v12, %v4398_v51  ;;  %v6368_v11 = vmax.f32 %v4372_v10, 0.0  ;;  %v19036_v51 = vld [vmem:[#allocation41_spill] sm:$0xff] }
 0x6be   :  { %v4595_v30 = vpop.f32.mrf.mxu2 }
 0x6bf   :  { %v4596_v54 = vadd.f32 %v4595_v30, %v4492_v17 }
 0x6c0   :  { %v4373_v36 = vpop.f32.mrf.mxu3  ;;  %v14936_v15 = vpop.f32.mrf.mxu0 }
 0x6c1   :  { %v4374_v7 = vadd.f32 %v4373_v36, %v4270_v19  ;;  %v4403_v19 = vadd.f32 %v14853_v56, %v14878_v55  ;;  %v11307_v56 = vld [vmem:[%s18544_s1 + $0x8f0] sm:$0xf0] }
 0x6c2   :  { %v4504_v32 = vpop.f32.mrf.mxu1 }
 0x6c3   :  { %v6377_v43 = vmax.f32 %v4374_v7, 0.0  ;;  %v14938_v44 = vadd.f32 %v4504_v32, %v4401_v59  ;;  %4464 = vmatmul.bf16.gmra.mxu0 %v19033_v33  ;;  %4637 = vmatmul.bf16.gmra.mxu2 %v19034_v41  ;;  %v10071_v7 = vld [vmem:[%s18544_s1 + $0x690] sm:$0xf] }
 0x6c5   :  { %4543 = vmatmul.bf16.gmra.mxu1 %v19035_v50  ;;  %4736 = vmatmul.bf16.gmra.mxu3 %v19036_v51  ;;  %v14944_v17 = vpack.c.bf16 %v6377_v43, %v6368_v11  ;;  %v11235_v11 = vld [vmem:[%s18544_s1 + $0x6b0] sm:$0xf0] }
 0x6c6   :  { %v4598_v12 = vpop.f32.mrf.mxu2  ;;  %v10072_v43 = vor.u32 %v11235_v11, %v10071_v7 }
 0x6c7   :  { %19037 = vst [vmem:[#allocation144_spill] sm:$0xff] %v14944_v17  ;;  %v4599_v1 = vadd.f32 %v4598_v12, %v4495_v47  ;;  %v10359_v47 = vld [vmem:[%s18544_s1 + $0x8d0] sm:$0xf]  ;;  %v4406_v17 = vadd.f32 %v14857_v63, %v14878_v55  ;;  %v11087_v63 = vld [vmem:[%s18544_s1 + $0x214] sm:$0xf] }
 0x6c8   :  { %v4697_v36 = vpop.f32.mrf.mxu3  ;;  %v14948_v30 = vpop.f32.mrf.mxu0  ;;  %v10360_v12 = vor.u32 %v11307_v56, %v10359_v47  ;;  %5000 = vmatpush.bf16.msrb.mxu2 %v10072_v43 }
 0x6c9   :  { %v4698_v10 = vadd.f32 %v4697_v36, %v4594_v40  ;;  %v9783_v40 = vld [vmem:[%s18544_s1 + $0x450] sm:$0xf]  ;;  %v11163_v36 = vld [vmem:[%s18544_s1 + $0x470] sm:$0xf0] }
 0x6ca   :  { %v4506_v59 = vpop.f32.mrf.mxu1  ;;  %5104 = vmatpush.bf16.msrb.mxu3 %v10360_v12 }
 0x6cb   :  { %v14950_v32 = vadd.f32 %v4506_v59, %v4403_v19  ;;  %v9784_v19 = vor.u32 %v11163_v36, %v9783_v40  ;;  %v6045_v47 = vmax.f32 %v4698_v10, 0.0  ;;  %v4408_v40 = vadd.f32 %v14867_v24, %v14878_v55 }
 0x6cd   :  { %4896 = vmatpush.bf16.msra.mxu1 %v9784_v19 }
 0x6ce   :  { %v4600_v59 = vpop.f32.mrf.mxu2 }
 0x6cf   :  { %v4601_v7 = vadd.f32 %v4600_v59, %v14908_v39  ;;  %v19039_v39 = vld [vmem:[#allocation44_spill] sm:$0xff] }
 0x6d0   :  { %v4699_v11 = vpop.f32.mrf.mxu3  ;;  %v14973_v50 = vpop.f32.mrf.mxu0 }
 0x6d1   :  { %v4700_v51 = vadd.f32 %v4699_v11, %v4596_v54  ;;  %v9497_v54 = vld [vmem:[%s18544_s1 + $0x234] sm:$0xf0] }
 0x6d2   :  { %v4509_v41 = vpop.f32.mrf.mxu1 }
 0x6d3   :  { %v6054_v56 = vmax.f32 %v4700_v51, 0.0  ;;  %v14975_v33 = vadd.f32 %v4509_v41, %v4406_v17  ;;  %4469 = vmatmul.bf16.gmra.mxu0 %v18777_v35  ;;  %4642 = vmatmul.bf16.gmra.mxu2 %v12215_v4  ;;  %v9500_v41 = vor.u32 %v11087_v63, %v9497_v54  ;;  %v4411_v63 = vadd.f32 %v14882_v0, %v14878_v55 }
 0x6d5   :  { %v14979_v43 = vpack.c.bf16 %v6054_v56, %v6045_v47  ;;  %4548 = vmatmul.bf16.gmra.mxu1 %v18779_v8  ;;  %4741 = vmatmul.bf16.gmra.mxu3 %v19039_v39 }
 0x6d6   :  { %v4603_v51 = vpop.f32.mrf.mxu2  ;;  %5208 = vmatpush.bf16.msrb.mxu0 %v9500_v41 }
 0x6d7   :  { %19038 = vst [vmem:[#allocation145_spill] sm:$0xff] %v14979_v43  ;;  %v4604_v17 = vadd.f32 %v4603_v51, %v14920_v3 }
 0x6d8   :  { %v4702_v10 = vpop.f32.mrf.mxu3  ;;  %v14992_v36 = vpop.f32.mrf.mxu0 }
 0x6d9   :  { %v4703_v12 = vadd.f32 %v4702_v10, %v4599_v1  ;;  %v19040_v1 = vld [vmem:[#allocation11_spill] sm:$0xff] }
 0x6da   :  { %v4511_v19 = vpop.f32.mrf.mxu1  ;;  %v19041_v10 = vld [vmem:[#allocation47_spill] sm:$0xff] }
 0x6db   :  { %v14994_v59 = vadd.f32 %v4511_v19, %v4408_v40  ;;  %v6063_v51 = vmax.f32 %v4703_v12, 0.0  ;;  %v19042_v40 = vld [vmem:[#allocation48_spill] sm:$0xff]  ;;  %v19043_v19 = vld [vmem:[#allocation49_spill] sm:$0xff]  ;;  %v4413_v12 = vadd.f32 %v14892_v29, %v14878_v55 }
 0x6de   :  { %v4605_v11 = vpop.f32.mrf.mxu2 }
 0x6df   :  { %v4606_v47 = vadd.f32 %v4605_v11, %v14932_v25 }
 0x6e0   :  { %v4704_v56 = vpop.f32.mrf.mxu3  ;;  %v14999_v3 = vpop.f32.mrf.mxu0 }
 0x6e1   :  { %v4705_v54 = vadd.f32 %v4704_v56, %v4601_v7 }
 0x6e2   :  { %v4514_v41 = vpop.f32.mrf.mxu1 }
 0x6e3   :  { %v6072_v43 = vmax.f32 %v4705_v54, 0.0  ;;  %v15001_v24 = vadd.f32 %v4514_v41, %v4411_v63  ;;  %4474 = vmatmul.bf16.gmra.mxu0 %v19040_v1  ;;  %4647 = vmatmul.bf16.gmra.mxu2 %v19041_v10 }
 0x6e5   :  { %4553 = vmatmul.bf16.gmra.mxu1 %v19042_v40  ;;  %4746 = vmatmul.bf16.gmra.mxu3 %v19043_v19  ;;  %v15007_v25 = vpack.c.bf16 %v6072_v43, %v6063_v51  ;;  %v4416_v43 = vadd.f32 %v14896_v38, %v14878_v55 }
 0x6e6   :  { %v4608_v11 = vpop.f32.mrf.mxu2 }
 0x6e7   :  { %19044 = vst [vmem:[#allocation146_spill] sm:$0xff] %v15007_v25  ;;  %v4609_v0 = vadd.f32 %v4608_v11, %v14938_v44 }
 0x6e8   :  { %v4707_v7 = vpop.f32.mrf.mxu3  ;;  %v15012_v63 = vpop.f32.mrf.mxu0 }
 0x6e9   :  { %v4708_v56 = vadd.f32 %v4707_v7, %v4604_v17  ;;  %v10035_v17 = vld [vmem:[%s18544_s1 + $0x648] sm:$0xf]  ;;  %v19046_v7 = vld [vmem:[#allocation2_spill] sm:$0xff] }
 0x6ea   :  { %v4516_v54 = vpop.f32.mrf.mxu1 }
 0x6eb   :  { %v15014_v41 = vadd.f32 %v4516_v54, %v4413_v12  ;;  %v6081_v11 = vmax.f32 %v4708_v56, 0.0  ;;  %v19047_v12 = vld [vmem:[#allocation52_spill] sm:$0xff]  ;;  %v19048_v56 = vld [vmem:[#allocation53_spill] sm:$0xff] }
 0x6ee   :  { %v4610_v10 = vpop.f32.mrf.mxu2 }
 0x6ef   :  { %v4611_v40 = vadd.f32 %v4610_v10, %v14950_v32  ;;  %v11226_v32 = vld [vmem:[%s18544_s1 + $0x668] sm:$0xf0] }
 0x6f0   :  { %v4709_v1 = vpop.f32.mrf.mxu3  ;;  %v15019_v25 = vpop.f32.mrf.mxu0  ;;  %v19045_v10 = vld [vmem:[#allocation51_spill] sm:$0xff]  ;;  %v10036_v38 = vor.u32 %v11226_v32, %v10035_v17 }
 0x6f1   :  { %v4710_v51 = vadd.f32 %v4709_v1, %v4606_v47  ;;  %v10323_v47 = vld [vmem:[%s18544_s1 + $0x888] sm:$0xf]  ;;  %v11298_v1 = vld [vmem:[%s18544_s1 + $0x8a8] sm:$0xf0] }
 0x6f2   :  { %v4519_v44 = vpop.f32.mrf.mxu1  ;;  %v10324_v54 = vor.u32 %v11298_v1, %v10323_v47  ;;  %5001 = vmatpush.bf16.msrb.mxu2 %v10036_v38  ;;  %v4418_v47 = vadd.f32 %v14906_v57, %v14878_v55 }
 0x6f3   :  { %v6090_v19 = vmax.f32 %v4710_v51, 0.0  ;;  %v15021_v29 = vadd.f32 %v4519_v44, %v4416_v43  ;;  %4652 = vmatmul.bf16.gmra.mxu2 %v19045_v10  ;;  %4800 = vmatmul.bf16.vlgmr.msra.gmra.mxu0 %v19046_v7  ;;  %v9747_v43 = vld [vmem:[%s18544_s1 + $0x408] sm:$0xf]  ;;  %v11154_v51 = vld [vmem:[%s18544_s1 + $0x428] sm:$0xf0] }
 0x6f4   :  { %v9748_v17 = vor.u32 %v11154_v51, %v9747_v43  ;;  %5105 = vmatpush.bf16.msrb.mxu3 %v10324_v54 }
 0x6f5   :  { %4558 = vmatmul.bf16.gmra.mxu1 %v19047_v12  ;;  %4751 = vmatmul.bf16.gmra.mxu3 %v19048_v56  ;;  %v15045_v44 = vpack.c.bf16 %v6090_v19, %v6081_v11  ;;  %v11078_v19 = vld [vmem:[%s18544_s1 + $0x1cc] sm:$0xf]  ;;  %v9461_v11 = vld [vmem:[%s18544_s1 + $0x1ec] sm:$0xf0] }
 0x6f6   :  { %v4613_v32 = vpop.f32.mrf.mxu2  ;;  %4897 = vmatpush.bf16.msra.mxu1 %v9748_v17 }
 0x6f7   :  { %19049 = vst [vmem:[#allocation147_spill] sm:$0xff] %v15045_v44  ;;  %v4614_v7 = vadd.f32 %v4613_v32, %v14975_v33  ;;  %v9464_v33 = vor.u32 %v11078_v19, %v9461_v11 }
 0x6f8   :  { %v4712_v12 = vpop.f32.mrf.mxu3  ;;  %v15050_v56 = vpop.f32.mrf.mxu0 }
 0x6f9   :  { %v4713_v1 = vadd.f32 %v4712_v12, %v4609_v0  ;;  %5209 = vmatpush.bf16.msrb.mxu0 %v9464_v33  ;;  %v4421_v0 = vadd.f32 %v14918_v13, %v14878_v55 }
 0x6fa   :  { %v4521_v10 = vpop.f32.mrf.mxu1 }
 0x6fb   :  { %v15052_v39 = vadd.f32 %v4521_v10, %v4418_v47  ;;  %v6099_v51 = vmax.f32 %v4713_v1, 0.0  ;;  %v4423_v1 = vadd.f32 %v14930_v6, %v14878_v55  ;;  %v9675_v6 = vld [vmem:[%s18544_s1 + $0x378] sm:$0xf] }
 0x6fe   :  { %v4615_v38 = vpop.f32.mrf.mxu2 }
 0x6ff   :  { %v4616_v54 = vadd.f32 %v4615_v38, %v14994_v59 }
 0x700   :  { %v4714_v57 = vpop.f32.mrf.mxu3  ;;  %v15063_v10 = vpop.f32.mrf.mxu0 }
 0x701   :  { %v4715_v12 = vadd.f32 %v4714_v57, %v4611_v40  ;;  %v9711_v57 = vld [vmem:[%s18544_s1 + $0x3c0] sm:$0xf] }
 0x702   :  { %v4524_v43 = vpop.f32.mrf.mxu1 }
 0x703   :  { %v6108_v17 = vmax.f32 %v4715_v12, 0.0  ;;  %v15065_v32 = vadd.f32 %v4524_v43, %v4421_v0  ;;  %4657 = vmatmul.bf16.gmra.mxu2 %v18790_v20  ;;  %4805 = vmatmul.bf16.gmra.mxu0 %v18855_v18  ;;  %v11145_v0 = vld [vmem:[%s18544_s1 + $0x3e0] sm:$0xf0] }
 0x704   :  { %v9712_v12 = vor.u32 %v11145_v0, %v9711_v57 }
 0x705   :  { %4563 = vmatmul.bf16.gmra.mxu1 %v18920_v23  ;;  %4756 = vmatmul.bf16.gmra.mxu3 %v18985_v21  ;;  %v15071_v59 = vpack.c.bf16 %v6108_v17, %v6099_v51 }
 0x706   :  { %v4618_v47 = vpop.f32.mrf.mxu2  ;;  %4898 = vmatpush.bf16.msra.mxu1 %v9712_v12 }
 0x707   :  { %19050 = vst [vmem:[#allocation148_spill] sm:$0xff] %v15071_v59  ;;  %v4619_v13 = vadd.f32 %v4618_v47, %v15001_v24  ;;  %v4426_v47 = vadd.f32 %v14936_v15, %v14878_v55  ;;  %v9639_v59 = vld [vmem:[%s18544_s1 + $0x330] sm:$0xf]  ;;  %v19051_v15 = vld [vmem:[#allocation10_spill] sm:$0xff] }
 0x708   :  { %v4717_v40 = vpop.f32.mrf.mxu3  ;;  %v15076_v11 = vpop.f32.mrf.mxu0 }
 0x709   :  { %v4718_v19 = vadd.f32 %v4717_v40, %v4614_v7  ;;  %v11136_v7 = vld [vmem:[%s18544_s1 + $0x398] sm:$0xf0] }
 0x70a   :  { %v4526_v33 = vpop.f32.mrf.mxu1  ;;  %v9676_v17 = vor.u32 %v11136_v7, %v9675_v6  ;;  %v19053_v6 = vld [vmem:[#allocation60_spill] sm:$0xff]  ;;  %v11217_v7 = vld [vmem:[%s18544_s1 + $0x620] sm:$0xf0] }
 0x70b   :  { %v15078_v38 = vadd.f32 %v4526_v33, %v4423_v1  ;;  %v6117_v57 = vmax.f32 %v4718_v19, 0.0  ;;  %v9999_v19 = vld [vmem:[%s18544_s1 + $0x600] sm:$0xf] }
 0x70c   :  { %4899 = vmatpush.bf16.msra.mxu1 %v9676_v17  ;;  %v10000_v17 = vor.u32 %v11217_v7, %v9999_v19 }
 0x70e   :  { %v4620_v24 = vpop.f32.mrf.mxu2  ;;  %5002 = vmatpush.bf16.msrb.mxu2 %v10000_v17 }
 0x70f   :  { %v4621_v43 = vadd.f32 %v4620_v24, %v15014_v41  ;;  %v11127_v41 = vld [vmem:[%s18544_s1 + $0x350] sm:$0xf0]  ;;  %v19052_v24 = vld [vmem:[#allocation59_spill] sm:$0xff] }
 0x710   :  { %v4719_v51 = vpop.f32.mrf.mxu3  ;;  %v15095_v1 = vpop.f32.mrf.mxu0 }
 0x711   :  { %v4720_v40 = vadd.f32 %v4719_v51, %v4616_v54  ;;  %v9640_v54 = vor.u32 %v11127_v41, %v9639_v59  ;;  %v9603_v59 = vld [vmem:[%s18544_s1 + $0x2e8] sm:$0xf] }
 0x712   :  { %v4529_v33 = vpop.f32.mrf.mxu1 }
 0x713   :  { %v6126_v0 = vmax.f32 %v4720_v40, 0.0  ;;  %v15097_v12 = vadd.f32 %v4529_v33, %v4426_v47  ;;  %4662 = vmatmul.bf16.gmra.mxu2 %v12417_v61  ;;  %4810 = vmatmul.bf16.gmra.mxu0 %v19051_v15  ;;  %v11118_v40 = vld [vmem:[%s18544_s1 + $0x308] sm:$0xf0] }
 0x714   :  { %4900 = vmatpush.bf16.msra.mxu1 %v9640_v54  ;;  %v9604_v44 = vor.u32 %v11118_v40, %v9603_v59  ;;  %v9531_v59 = vld [vmem:[%s18544_s1 + $0x258] sm:$0xf] }
 0x715   :  { %4568 = vmatmul.bf16.gmra.mxu1 %v19052_v24  ;;  %4761 = vmatmul.bf16.gmra.mxu3 %v19053_v6  ;;  %v15115_v51 = vpack.c.bf16 %v6126_v0, %v6117_v57  ;;  %v4428_v57 = vadd.f32 %v14948_v30, %v14878_v55  ;;  %v9567_v30 = vld [vmem:[%s18544_s1 + $0x2a0] sm:$0xf]  ;;  %v11069_v24 = vld [vmem:[%s18544_s1 + $0x184] sm:$0xf] }
 0x716   :  { %v4623_v47 = vpop.f32.mrf.mxu2 }
 0x717   :  { %19054 = vst [vmem:[#allocation10_spill] sm:$0xff] %v15115_v51  ;;  %v4624_v33 = vadd.f32 %v4623_v47, %v15021_v29  ;;  %v10287_v51 = vld [vmem:[%s18544_s1 + $0x840] sm:$0xf]  ;;  %v11289_v29 = vld [vmem:[%s18544_s1 + $0x860] sm:$0xf0] }
 0x718   :  { %v4722_v41 = vpop.f32.mrf.mxu3  ;;  %v15126_v54 = vpop.f32.mrf.mxu0  ;;  %4901 = vmatpush.bf16.msra.mxu1 %v9604_v44  ;;  %v10288_v17 = vor.u32 %v11289_v29, %v10287_v51  ;;  %v11100_v51 = vld [vmem:[%s18544_s1 + $0x278] sm:$0xf0] }
 0x719   :  { %v4723_v0 = vadd.f32 %v4722_v41, %v4619_v13  ;;  %v11109_v13 = vld [vmem:[%s18544_s1 + $0x2c0] sm:$0xf0] }
 0x71a   :  { %v4531_v19 = vpop.f32.mrf.mxu1  ;;  %v9568_v44 = vor.u32 %v11109_v13, %v9567_v30  ;;  %5106 = vmatpush.bf16.msrb.mxu3 %v10288_v17 }
 0x71b   :  { %v15128_v7 = vadd.f32 %v4531_v19, %v4428_v57  ;;  %v9532_v57 = vor.u32 %v11100_v51, %v9531_v59  ;;  %v4431_v19 = vadd.f32 %v14973_v50, %v14878_v55  ;;  %v6135_v13 = vmax.f32 %v4723_v0, 0.0  ;;  %v19055_v50 = vld [vmem:[#allocation12_spill] sm:$0xff]  ;;  %v19056_v0 = vld [vmem:[#allocation63_spill] sm:$0xff] }
 0x71c   :  { %4902 = vmatpush.bf16.msra.mxu1 %v9568_v44 }
 0x71e   :  { %v4625_v47 = vpop.f32.mrf.mxu2 }
 0x71f   :  { %v4626_v40 = vadd.f32 %v4625_v47, %v15052_v39  ;;  %v9425_v39 = vld [vmem:[%s18544_s1 + $0x1a4] sm:$0xf0] }
 0x720   :  { %v4724_v41 = vpop.f32.mrf.mxu3  ;;  %v15151_v30 = vpop.f32.mrf.mxu0  ;;  %4903 = vmatpush.bf16.msra.mxu1 %v9532_v57 }
 0x721   :  { %v4725_v29 = vadd.f32 %v4724_v41, %v4621_v43  ;;  %v9428_v43 = vor.u32 %v11069_v24, %v9425_v39 }
 0x722   :  { %v4534_v17 = vpop.f32.mrf.mxu1 }
 0x723   :  { %v6144_v44 = vmax.f32 %v4725_v29, 0.0  ;;  %v15153_v6 = vadd.f32 %v4534_v17, %v4431_v19  ;;  %4667 = vmatmul.bf16.gmra.mxu2 %v12491_v22  ;;  %4815 = vmatmul.bf16.gmra.mxu0 %v19055_v50  ;;  %v4433_v19 = vadd.f32 %v14992_v36, %v14878_v55  ;;  %v4436_v36 = vadd.f32 %v14999_v3, %v14878_v55 }
 0x724   :  { %5210 = vmatpush.bf16.msrb.mxu0 %v9428_v43 }
 0x725   :  { %4573 = vmatmul.bf16.gmra.mxu1 %v18799_v49  ;;  %4766 = vmatmul.bf16.gmra.mxu3 %v19056_v0  ;;  %v15165_v47 = vpack.c.bf16 %v6144_v44, %v6135_v13  ;;  %v9963_v13 = vld [vmem:[%s18544_s1 + $0x5b8] sm:$0xf]  ;;  %v11208_v44 = vld [vmem:[%s18544_s1 + $0x5d8] sm:$0xf0]  ;;  %v9927_v0 = vld [vmem:[%s18544_s1 + $0x570] sm:$0xf] }
 0x726   :  { %v4628_v59 = vpop.f32.mrf.mxu2  ;;  %v9964_v43 = vor.u32 %v11208_v44, %v9963_v13  ;;  %v9891_v13 = vld [vmem:[%s18544_s1 + $0x528] sm:$0xf]  ;;  %v11190_v44 = vld [vmem:[%s18544_s1 + $0x548] sm:$0xf0] }
 0x727   :  { %19057 = vst [vmem:[#allocation149_spill] sm:$0xff] %v15165_v47  ;;  %v4629_v51 = vadd.f32 %v4628_v59, %v15065_v32 }
 0x728   :  { %v4727_v41 = vpop.f32.mrf.mxu3  ;;  %v15170_v29 = vpop.f32.mrf.mxu0  ;;  %5003 = vmatpush.bf16.msrb.mxu2 %v9964_v43 }
 0x729   :  { %v4728_v57 = vadd.f32 %v4727_v41, %v4624_v33 }
 0x72a   :  { %v4536_v17 = vpop.f32.mrf.mxu1 }
 0x72b   :  { %v15172_v50 = vadd.f32 %v4536_v17, %v4433_v19  ;;  %v6153_v19 = vmax.f32 %v4728_v57, 0.0 }
 0x72e   :  { %v4630_v24 = vpop.f32.mrf.mxu2 }
 0x72f   :  { %v4631_v32 = vadd.f32 %v4630_v24, %v15078_v38  ;;  %v11199_v38 = vld [vmem:[%s18544_s1 + $0x590] sm:$0xf0] }
 0x730   :  { %v4729_v39 = vpop.f32.mrf.mxu3  ;;  %v15183_v59 = vpop.f32.mrf.mxu0  ;;  %v9928_v3 = vor.u32 %v11199_v38, %v9927_v0  ;;  %v9892_v0 = vor.u32 %v11190_v44, %v9891_v13  ;;  %v9855_v38 = vld [vmem:[%s18544_s1 + $0x4e0] sm:$0xf]  ;;  %v9819_v44 = vld [vmem:[%s18544_s1 + $0x498] sm:$0xf] }
 0x731   :  { %v4730_v33 = vadd.f32 %v4729_v39, %v4626_v40  ;;  %v19058_v40 = vld [vmem:[#allocation66_spill] sm:$0xff] }
 0x732   :  { %v4539_v41 = vpop.f32.mrf.mxu1  ;;  %5004 = vmatpush.bf16.msrb.mxu2 %v9928_v3 }
 0x733   :  { %v6162_v17 = vmax.f32 %v4730_v33, 0.0  ;;  %v15185_v47 = vadd.f32 %v4539_v41, %v4436_v36  ;;  %4672 = vmatmul.bf16.gmra.mxu2 %v12541_v62  ;;  %4820 = vmatmul.bf16.gmra.mxu0 %v11830_v42  ;;  %v4438_v36 = vadd.f32 %v15012_v63, %v14878_v55  ;;  %v10251_v63 = vld [vmem:[%s18544_s1 + $0x7f8] sm:$0xf] }
 0x735   :  { %4578 = vmatmul.bf16.gmra.mxu1 %v12543_v5  ;;  %4771 = vmatmul.bf16.gmra.mxu3 %v19058_v40  ;;  %v15197_v57 = vpack.c.bf16 %v6162_v17, %v6153_v19  ;;  %v10215_v40 = vld [vmem:[%s18544_s1 + $0x7b0] sm:$0xf] }
 0x736   :  { %v4633_v24 = vpop.f32.mrf.mxu2  ;;  %5005 = vmatpush.bf16.msrb.mxu2 %v9892_v0 }
 0x737   :  { %19059 = vst [vmem:[#allocation150_spill] sm:$0xff] %v15197_v57  ;;  %v4634_v39 = vadd.f32 %v4633_v24, %v15097_v12  ;;  %v11181_v12 = vld [vmem:[%s18544_s1 + $0x500] sm:$0xf0] }
 0x738   :  { %v4732_v43 = vpop.f32.mrf.mxu3  ;;  %v15208_v41 = vpop.f32.mrf.mxu0  ;;  %v9856_v3 = vor.u32 %v11181_v12, %v9855_v38  ;;  %v4441_v38 = vadd.f32 %v15019_v25, %v14878_v55  ;;  %v19060_v25 = vld [vmem:[#allocation14_spill] sm:$0xff] }
 0x739   :  { %v4733_v33 = vadd.f32 %v4732_v43, %v4629_v51  ;;  %v11280_v51 = vld [vmem:[%s18544_s1 + $0x818] sm:$0xf0] }
 0x73a   :  { %v4541_v19 = vpop.f32.mrf.mxu1  ;;  %v10252_v24 = vor.u32 %v11280_v51, %v10251_v63  ;;  %5006 = vmatpush.bf16.msrb.mxu2 %v9856_v3  ;;  %v11172_v43 = vld [vmem:[%s18544_s1 + $0x4b8] sm:$0xf0] }
 0x73b   :  { %v15210_v17 = vadd.f32 %v4541_v19, %v4438_v36  ;;  %v9820_v19 = vor.u32 %v11172_v43, %v9819_v44  ;;  %v6171_v51 = vmax.f32 %v4733_v33, 0.0  ;;  %v19062_v44 = vld [vmem:[#allocation5_spill] sm:$0xff]  ;;  %v9389_v43 = vld [vmem:[%s18544_s1 + $0x15c] sm:$0xf0] }
 0x73c   :  { %5107 = vmatpush.bf16.msrb.mxu3 %v10252_v24  ;;  %v11060_v33 = vld [vmem:[%s18544_s1 + $0x13c] sm:$0xf] }
 0x73e   :  { %v4635_v13 = vpop.f32.mrf.mxu2  ;;  %5007 = vmatpush.bf16.msrb.mxu2 %v9820_v19  ;;  %v9392_v19 = vor.u32 %v11060_v33, %v9389_v43 }
 0x73f   :  { %v4636_v0 = vadd.f32 %v4635_v13, %v15128_v7  ;;  %v11271_v7 = vld [vmem:[%s18544_s1 + $0x7d0] sm:$0xf0]  ;;  %v19061_v13 = vld [vmem:[#allocation69_spill] sm:$0xff] }
 0x740   :  { %v4734_v36 = vpop.f32.mrf.mxu3  ;;  %v15233_v63 = vpop.f32.mrf.mxu0  ;;  %5211 = vmatpush.bf16.msrb.mxu0 %v9392_v19 }
 0x741   :  { %v4735_v12 = vadd.f32 %v4734_v36, %v4631_v32  ;;  %v10216_v32 = vor.u32 %v11271_v7, %v10215_v40  ;;  %v10179_v40 = vld [vmem:[%s18544_s1 + $0x768] sm:$0xf] }
 0x742   :  { %v4544_v3 = vpop.f32.mrf.mxu1 }
 0x743   :  { %v6180_v24 = vmax.f32 %v4735_v12, 0.0  ;;  %v15235_v57 = vadd.f32 %v4544_v3, %v4441_v38  ;;  %4677 = vmatmul.bf16.gmra.mxu2 %v12603_v2  ;;  %4825 = vmatmul.bf16.gmra.mxu0 %v19060_v25  ;;  %v11262_v12 = vld [vmem:[%s18544_s1 + $0x788] sm:$0xf0]  ;;  %v19064_v25 = vld [vmem:[#allocation18_spill] sm:$0xff] }
 0x744   :  { %5108 = vmatpush.bf16.msrb.mxu3 %v10216_v32  ;;  %v19065_v2 = vld [vmem:[#allocation71_spill] sm:$0xff] }
 0x745   :  { %4776 = vmatmul.bf16.gmra.mxu3 %v19061_v13  ;;  %4904 = vmatmul.bf16.vlgmr.msra.gmra.mxu1 %v19062_v44  ;;  %v15253_v36 = vpack.c.bf16 %v6180_v24, %v6171_v51  ;;  %v10180_v44 = vor.u32 %v11262_v12, %v10179_v40  ;;  %v4443_v51 = vadd.f32 %v15050_v56, %v14878_v55  ;;  %v10107_v56 = vld [vmem:[%s18544_s1 + $0x6d8] sm:$0xf] }
 0x746   :  { %v4638_v38 = vpop.f32.mrf.mxu2 }
 0x747   :  { %19063 = vst [vmem:[#allocation151_spill] sm:$0xff] %v15253_v36  ;;  %v4639_v3 = vadd.f32 %v4638_v38, %v15153_v6  ;;  %v10143_v36 = vld [vmem:[%s18544_s1 + $0x720] sm:$0xf]  ;;  %v11253_v6 = vld [vmem:[%s18544_s1 + $0x740] sm:$0xf0] }
 0x748   :  { %v4737_v7 = vpop.f32.mrf.mxu3  ;;  %v15264_v32 = vpop.f32.mrf.mxu0  ;;  %5109 = vmatpush.bf16.msrb.mxu3 %v10180_v44  ;;  %v10144_v38 = vor.u32 %v11253_v6, %v10143_v36 }
 0x749   :  { %v4738_v24 = vadd.f32 %v4737_v7, %v4634_v39  ;;  %v11244_v39 = vld [vmem:[%s18544_s1 + $0x6f8] sm:$0xf0]  ;;  %v4446_v7 = vadd.f32 %v15063_v10, %v14878_v55 }
 0x74a   :  { %v4546_v33 = vpop.f32.mrf.mxu1  ;;  %v10108_v12 = vor.u32 %v11244_v39, %v10107_v56  ;;  %v4448_v39 = vadd.f32 %v15076_v11, %v14878_v55 }
 0x74b   :  { %v4547_v43 = vadd.f32 %v4546_v33, %v4443_v51  ;;  %v6189_v6 = vmax.f32 %v4738_v24, 0.0 }
 0x74c   :  { %5110 = vmatpush.bf16.msrb.mxu3 %v10144_v38 }
 0x74e   :  { %v4640_v19 = vpop.f32.mrf.mxu2 }
 0x74f   :  { %v4641_v44 = vadd.f32 %v4640_v19, %v15172_v50  ;;  %v19066_v50 = vld [vmem:[#allocation9_spill] sm:$0xff] }
 0x750   :  { %v4739_v40 = vpop.f32.mrf.mxu3  ;;  %v15281_v33 = vpop.f32.mrf.mxu0  ;;  %5111 = vmatpush.bf16.msrb.mxu3 %v10108_v12 }
 0x751   :  { %v4740_v51 = vadd.f32 %v4739_v40, %v4636_v0 }
 0x752   :  { %v4549_v36 = vpop.f32.mrf.mxu1 }
 0x753   :  { %v6198_v38 = vmax.f32 %v4740_v51, 0.0  ;;  %v4550_v13 = vadd.f32 %v4549_v36, %v4446_v7  ;;  %4682 = vmatmul.bf16.gmra.mxu2 %v12663_v48  ;;  %4830 = vmatmul.bf16.gmra.mxu0 %v19064_v25 }
 0x755   :  { %4781 = vmatmul.bf16.gmra.mxu3 %v19065_v2  ;;  %4909 = vmatmul.bf16.gmra.mxu1 %v19066_v50  ;;  %v15287_v19 = vpack.c.bf16 %v6198_v38, %v6189_v6  ;;  %v4451_v6 = vadd.f32 %v15095_v1, %v14878_v55 }
 0x756   :  { %v4643_v56 = vpop.f32.mrf.mxu2 }
 0x757   :  { %19067 = vst [vmem:[#allocation152_spill] sm:$0xff] %v15287_v19  ;;  %v4644_v10 = vadd.f32 %v4643_v56, %v15185_v47 }
 0x758   :  { %v4742_v0 = vpop.f32.mrf.mxu3  ;;  %v15292_v40 = vpop.f32.mrf.mxu0 }
 0x759   :  { %v4743_v24 = vadd.f32 %v4742_v0, %v4639_v3  ;;  %v4453_v3 = vadd.f32 %v15126_v54, %v14878_v55  ;;  %v4456_v54 = vadd.f32 %v15151_v30, %v14878_v55 }
 0x75a   :  { %v4551_v12 = vpop.f32.mrf.mxu1 }
 0x75b   :  { %v4552_v7 = vadd.f32 %v4551_v12, %v4448_v39  ;;  %v6207_v56 = vmax.f32 %v4743_v24, 0.0  ;;  %v11051_v12 = vld [vmem:[%s18544_s1 + $0xf4] sm:$0xf] }
 0x75e   :  { %v4645_v51 = vpop.f32.mrf.mxu2 }
 0x75f   :  { %v4646_v36 = vadd.f32 %v4645_v51, %v15210_v17 }
 0x760   :  { %v4744_v2 = vpop.f32.mrf.mxu3  ;;  %v15297_v19 = vpop.f32.mrf.mxu0 }
 0x761   :  { %v4745_v38 = vadd.f32 %v4744_v2, %v4641_v44 }
 0x762   :  { %v4554_v47 = vpop.f32.mrf.mxu1 }
 0x763   :  { %v6216_v50 = vmax.f32 %v4745_v38, 0.0  ;;  %v4555_v25 = vadd.f32 %v4554_v47, %v4451_v6  ;;  %4835 = vmatmul.bf16.gmra.mxu0 %v11944_v31  ;;  %5008 = vmatmul.bf16.vlgmr.msrb.gmra.mxu2 %v11754_v14 }
 0x765   :  { %4786 = vmatmul.bf16.gmra.mxu3 %v12683_v34  ;;  %4914 = vmatmul.bf16.gmra.mxu1 %v11758_v16  ;;  %v15303_v11 = vpack.c.bf16 %v6216_v50, %v6207_v56  ;;  %v9353_v50 = vld [vmem:[%s18544_s1 + $0x114] sm:$0xf0] }
 0x766   :  { %v4648_v17 = vpop.f32.mrf.mxu2  ;;  %v9356_v51 = vor.u32 %v11051_v12, %v9353_v50 }
 0x767   :  { %19068 = vst [vmem:[#allocation153_spill] sm:$0xff] %v15303_v11  ;;  %v4649_v1 = vadd.f32 %v4648_v17, %v15235_v57 }
 0x768   :  { %v4747_v2 = vpop.f32.mrf.mxu3  ;;  %v15308_v0 = vpop.f32.mrf.mxu0  ;;  %5212 = vmatpush.bf16.msrb.mxu0 %v9356_v51 }
 0x769   :  { %v4748_v44 = vadd.f32 %v4747_v2, %v4644_v10 }
 0x76a   :  { %v4556_v39 = vpop.f32.mrf.mxu1 }
 0x76b   :  { %v4557_v24 = vadd.f32 %v4556_v39, %v4453_v3  ;;  %v6225_v17 = vmax.f32 %v4748_v44, 0.0 }
 0x76e   :  { %v4650_v57 = vpop.f32.mrf.mxu2 }
 0x76f   :  { %v4651_v6 = vadd.f32 %v4650_v57, %v4547_v43 }
 0x770   :  { %v4749_v38 = vpop.f32.mrf.mxu3  ;;  %v15318_v47 = vpop.f32.mrf.mxu0 }
 0x771   :  { %v4750_v10 = vadd.f32 %v4749_v38, %v4646_v36  ;;  %v4458_v36 = vadd.f32 %v15170_v29, %v14878_v55  ;;  %v19070_v29 = vld [vmem:[#allocation13_spill] sm:$0xff] }
 0x772   :  { %v4559_v56 = vpop.f32.mrf.mxu1 }
 0x773   :  { %v6234_v2 = vmax.f32 %v4750_v10, 0.0  ;;  %v4560_v3 = vadd.f32 %v4559_v56, %v4456_v54  ;;  %4840 = vmatmul.bf16.gmra.mxu0 %v11991_v60  ;;  %5013 = vmatmul.bf16.gmra.mxu2 %v11790_v26  ;;  %v4461_v56 = vadd.f32 %v15183_v59, %v14878_v55 }
 0x775   :  { %4919 = vmatmul.bf16.gmra.mxu1 %v11792_v27  ;;  %5112 = vmatmul.bf16.vlgmr.msrb.gmra.mxu3 %v11794_v28  ;;  %v15324_v43 = vpack.c.bf16 %v6234_v2, %v6225_v17 }
 0x776   :  { %v4653_v39 = vpop.f32.mrf.mxu2 }
 0x777   :  { %19069 = vst [vmem:[#allocation154_spill] sm:$0xff] %v15324_v43  ;;  %v4654_v12 = vadd.f32 %v4653_v39, %v4550_v13 }
 0x778   :  { %v4752_v30 = vpop.f32.mrf.mxu3  ;;  %v15328_v44 = vpop.f32.mrf.mxu0 }
 0x779   :  { %v4753_v50 = vadd.f32 %v4752_v30, %v4649_v1 }
 0x77a   :  { %v4561_v51 = vpop.f32.mrf.mxu1 }
 0x77b   :  { %v4562_v57 = vadd.f32 %v4561_v51, %v4458_v36  ;;  %v6243_v13 = vmax.f32 %v4753_v50, 0.0 }
 0x77e   :  { %v4655_v38 = vpop.f32.mrf.mxu2 }
 0x77f   :  { %v4656_v54 = vadd.f32 %v4655_v38, %v4552_v7 }
 0x780   :  { %v4754_v10 = vpop.f32.mrf.mxu3  ;;  %v15332_v17 = vpop.f32.mrf.mxu0 }
 0x781   :  { %v4755_v11 = vadd.f32 %v4754_v10, %v4651_v6  ;;  %v4463_v6 = vadd.f32 %v15208_v41, %v14878_v55  ;;  %v11042_v41 = vld [vmem:[%s18544_s1 + $0xac] sm:$0xf] }
 0x782   :  { %v4564_v2 = vpop.f32.mrf.mxu1 }
 0x783   :  { %v6252_v39 = vmax.f32 %v4755_v11, 0.0  ;;  %v4565_v43 = vadd.f32 %v4564_v2, %v4461_v56  ;;  %4845 = vmatmul.bf16.gmra.mxu0 %v12047_v52  ;;  %5018 = vmatmul.bf16.gmra.mxu2 %v11832_v45  ;;  %v4466_v2 = vadd.f32 %v15233_v63, %v14878_v55 }
 0x785   :  { %4924 = vmatmul.bf16.gmra.mxu1 %v11834_v46  ;;  %5117 = vmatmul.bf16.gmra.mxu3 %v19070_v29  ;;  %v15338_v7 = vpack.c.bf16 %v6252_v39, %v6243_v13 }
 0x786   :  { %v4658_v1 = vpop.f32.mrf.mxu2 }
 0x787   :  { %19071 = vst [vmem:[#allocation155_spill] sm:$0xff] %v15338_v7  ;;  %v4659_v30 = vadd.f32 %v4658_v1, %v4555_v25 }
 0x788   :  { %v4757_v59 = vpop.f32.mrf.mxu3  ;;  %v15342_v50 = vpop.f32.mrf.mxu0 }
 0x789   :  { %v4758_v36 = vadd.f32 %v4757_v59, %v4654_v12  ;;  %v9317_v12 = vld [vmem:[%s18544_s1 + $0xcc] sm:$0xf0]  ;;  %v19073_v59 = vld [vmem:[#allocation15_spill] sm:$0xff] }
 0x78a   :  { %v4566_v11 = vpop.f32.mrf.mxu1  ;;  %v9320_v63 = vor.u32 %v11042_v41, %v9317_v12 }
 0x78b   :  { %v4567_v51 = vadd.f32 %v4566_v11, %v4463_v6  ;;  %v6261_v25 = vmax.f32 %v4758_v36, 0.0 }
 0x78c   :  { %5213 = vmatpush.bf16.msrb.mxu0 %v9320_v63 }
 0x78e   :  { %v4660_v38 = vpop.f32.mrf.mxu2 }
 0x78f   :  { %v4661_v10 = vadd.f32 %v4660_v38, %v4557_v24  ;;  %v19072_v24 = vld [vmem:[#allocation32_spill] sm:$0xff]  ;;  %v4468_v38 = vadd.f32 %v15264_v32, %v14878_v55  ;;  %v19076_v32 = vld [vmem:[#allocation19_spill] sm:$0xff] }
 0x790   :  { %v4759_v56 = vpop.f32.mrf.mxu3  ;;  %v15346_v13 = vpop.f32.mrf.mxu0 }
 0x791   :  { %v4760_v29 = vadd.f32 %v4759_v56, %v4656_v54  ;;  %v19074_v54 = vld [vmem:[#allocation17_spill] sm:$0xff] }
 0x792   :  { %v4569_v39 = vpop.f32.mrf.mxu1 }
 0x793   :  { %v6270_v1 = vmax.f32 %v4760_v29, 0.0  ;;  %v4570_v7 = vadd.f32 %v4569_v39, %v4466_v2  ;;  %4850 = vmatmul.bf16.gmra.mxu0 %v19072_v24  ;;  %5023 = vmatmul.bf16.gmra.mxu2 %v19073_v59 }
 0x795   :  { %4929 = vmatmul.bf16.gmra.mxu1 %v19008_v53  ;;  %5122 = vmatmul.bf16.gmra.mxu3 %v19074_v54  ;;  %v15358_v6 = vpack.c.bf16 %v6270_v1, %v6261_v25  ;;  %v4471_v54 = vadd.f32 %v15281_v33, %v14878_v55 }
 0x796   :  { %v4663_v29 = vpop.f32.mrf.mxu2 }
 0x797   :  { %19075 = vst [vmem:[#allocation156_spill] sm:$0xff] %v15358_v6  ;;  %v4664_v36 = vadd.f32 %v4663_v29, %v4560_v3 }
 0x798   :  { %v4762_v11 = vpop.f32.mrf.mxu3  ;;  %v15362_v2 = vpop.f32.mrf.mxu0 }
 0x799   :  { %v4763_v56 = vadd.f32 %v4762_v11, %v4659_v30  ;;  %v19077_v30 = vld [vmem:[#allocation20_spill] sm:$0xff]  ;;  %v19078_v11 = vld [vmem:[#allocation21_spill] sm:$0xff] }
 0x79a   :  { %v4571_v39 = vpop.f32.mrf.mxu1 }
 0x79b   :  { %v4572_v24 = vadd.f32 %v4571_v39, %v4468_v38  ;;  %v6279_v3 = vmax.f32 %v4763_v56, 0.0 }
 0x79e   :  { %v4665_v59 = vpop.f32.mrf.mxu2 }
 0x79f   :  { %v4666_v41 = vadd.f32 %v4665_v59, %v4562_v57 }
 0x7a0   :  { %v4764_v12 = vpop.f32.mrf.mxu3  ;;  %v15366_v1 = vpop.f32.mrf.mxu0 }
 0x7a1   :  { %v4765_v25 = vadd.f32 %v4764_v12, %v4661_v10  ;;  %v4473_v10 = vadd.f32 %v15292_v40, %v14878_v55  ;;  %v19080_v40 = vld [vmem:[#allocation22_spill] sm:$0xff] }
 0x7a2   :  { %v4574_v63 = vpop.f32.mrf.mxu1 }
 0x7a3   :  { %v6288_v29 = vmax.f32 %v4765_v25, 0.0  ;;  %v4575_v6 = vadd.f32 %v4574_v63, %v4471_v54  ;;  %4855 = vmatmul.bf16.gmra.mxu0 %v18945_v37  ;;  %5028 = vmatmul.bf16.gmra.mxu2 %v19076_v32 }
 0x7a5   :  { %4934 = vmatmul.bf16.gmra.mxu1 %v19077_v30  ;;  %5127 = vmatmul.bf16.gmra.mxu3 %v19078_v11  ;;  %v15372_v57 = vpack.c.bf16 %v6288_v29, %v6279_v3  ;;  %v4476_v30 = vadd.f32 %v15297_v19, %v14878_v55 }
 0x7a6   :  { %v4668_v59 = vpop.f32.mrf.mxu2 }
 0x7a7   :  { %19079 = vst [vmem:[#allocation157_spill] sm:$0xff] %v15372_v57  ;;  %v4669_v38 = vadd.f32 %v4668_v59, %v4565_v43 }
 0x7a8   :  { %v4767_v33 = vpop.f32.mrf.mxu3  ;;  %v15376_v56 = vpop.f32.mrf.mxu0 }
 0x7a9   :  { %v4768_v39 = vadd.f32 %v4767_v33, %v4664_v36  ;;  %v19081_v36 = vld [vmem:[#allocation23_spill] sm:$0xff]  ;;  %v19082_v33 = vld [vmem:[#allocation24_spill] sm:$0xff] }
 0x7aa   :  { %v4576_v54 = vpop.f32.mrf.mxu1 }
 0x7ab   :  { %v4577_v12 = vadd.f32 %v4576_v54, %v4473_v10  ;;  %v6297_v43 = vmax.f32 %v4768_v39, 0.0 }
 0x7ae   :  { %v4670_v25 = vpop.f32.mrf.mxu2 }
 0x7af   :  { %v4671_v63 = vadd.f32 %v4670_v25, %v4567_v51  ;;  %v11033_v25 = vld [vmem:[%s18544_s1 + $0x64] sm:$0xf] }
 0x7b0   :  { %v4769_v32 = vpop.f32.mrf.mxu3  ;;  %v15380_v3 = vpop.f32.mrf.mxu0 }
 0x7b1   :  { %v4770_v11 = vadd.f32 %v4769_v32, %v4666_v41  ;;  %v4478_v41 = vadd.f32 %v15308_v0, %v14878_v55 }
 0x7b2   :  { %v4579_v29 = vpop.f32.mrf.mxu1 }
 0x7b3   :  { %v6306_v59 = vmax.f32 %v4770_v11, 0.0  ;;  %v4580_v57 = vadd.f32 %v4579_v29, %v4476_v30  ;;  %4860 = vmatmul.bf16.gmra.mxu0 %v18884_v9  ;;  %5033 = vmatmul.bf16.gmra.mxu2 %v19080_v40  ;;  %v9281_v29 = vld [vmem:[%s18544_s1 + $0x84] sm:$0xf0] }
 0x7b5   :  { %4939 = vmatmul.bf16.gmra.mxu1 %v19081_v36  ;;  %5132 = vmatmul.bf16.gmra.mxu3 %v19082_v33  ;;  %v15386_v51 = vpack.c.bf16 %v6306_v59, %v6297_v43  ;;  %v9284_v43 = vor.u32 %v11033_v25, %v9281_v29  ;;  %v19084_v29 = vld [vmem:[#allocation46_spill] sm:$0xff]  ;;  %v19085_v36 = vld [vmem:[#allocation25_spill] sm:$0xff] }
 0x7b6   :  { %v4673_v10 = vpop.f32.mrf.mxu2 }
 0x7b7   :  { %19083 = vst [vmem:[#allocation158_spill] sm:$0xff] %v15386_v51  ;;  %v4674_v54 = vadd.f32 %v4673_v10, %v4570_v7  ;;  %v11404_v7 = vld [vmem:[%s18545_s2] sm:$0xff]  ;;  %5214 = vmatpush.bf16.msrb.mxu0 %v9284_v43  ;;  %v19087_v43 = vld [vmem:[#allocation27_spill] sm:$0xff] }
 0x7b8   :  { %v4772_v19 = vpop.f32.mrf.mxu3  ;;  %v15390_v39 = vpop.f32.mrf.mxu0  ;;  %v15401_v59 = vperm.slane %v11404_v7, 6  ;;  %v19086_v7 = vld [vmem:[#allocation26_spill] sm:$0xff] }
 0x7b9   :  { %v4773_v32 = vadd.f32 %v4772_v19, %v4669_v38 }
 0x7ba   :  { %v4581_v30 = vpop.f32.mrf.mxu1  ;;  %v4802_v10 = vadd.f32 %v15318_v47, %v15401_v59 }
 0x7bb   :  { %v4582_v11 = vadd.f32 %v4581_v30, %v4478_v41  ;;  %v6315_v51 = vmax.f32 %v4773_v32, 0.0 }
 0x7be   :  { %v4675_v55 = vpop.f32.mrf.mxu2 }
 0x7bf   :  { %v4676_v0 = vadd.f32 %v4675_v55, %v4572_v24 }
 0x7c0   :  { %v4774_v38 = vpop.f32.mrf.mxu3  ;;  %v15405_v41 = vpop.f32.mrf.mxu0 }
 0x7c1   :  { %v4775_v19 = vadd.f32 %v4774_v38, %v4671_v63  ;;  %v4804_v63 = vadd.f32 %v15328_v44, %v15401_v59  ;;  %v19089_v44 = vld [vmem:[#allocation28_spill] sm:$0xff] }
 0x7c2   :  { %v4905_v30 = vpop.f32.mrf.mxu1 }
 0x7c3   :  { %v6324_v33 = vmax.f32 %v4775_v19, 0.0  ;;  %v4906_v25 = vadd.f32 %v4905_v30, %v4802_v10  ;;  %4865 = vmatmul.bf16.gmra.mxu0 %v19084_v29  ;;  %5038 = vmatmul.bf16.gmra.mxu2 %v19085_v36 }
 0x7c5   :  { %4944 = vmatmul.bf16.gmra.mxu1 %v19086_v7  ;;  %5137 = vmatmul.bf16.gmra.mxu3 %v19087_v43  ;;  %v15411_v24 = vpack.c.bf16 %v6324_v33, %v6315_v51  ;;  %v4807_v7 = vadd.f32 %v15332_v17, %v15401_v59 }
 0x7c6   :  { %v4678_v55 = vpop.f32.mrf.mxu2 }
 0x7c7   :  { %19088 = vst [vmem:[#allocation159_spill] sm:$0xff] %v15411_v24  ;;  %v4679_v40 = vadd.f32 %v4678_v55, %v4575_v6 }
 0x7c8   :  { %v4777_v47 = vpop.f32.mrf.mxu3  ;;  %v15415_v32 = vpop.f32.mrf.mxu0 }
 0x7c9   :  { %v4778_v38 = vadd.f32 %v4777_v47, %v4674_v54  ;;  %v19090_v54 = vld [vmem:[#allocation29_spill] sm:$0xff]  ;;  %v19091_v47 = vld [vmem:[#allocation30_spill] sm:$0xff] }
 0x7ca   :  { %v4907_v10 = vpop.f32.mrf.mxu1 }
 0x7cb   :  { %v4908_v19 = vadd.f32 %v4907_v10, %v4804_v63  ;;  %v6333_v6 = vmax.f32 %v4778_v38, 0.0 }
 0x7ce   :  { %v4680_v30 = vpop.f32.mrf.mxu2 }
 0x7cf   :  { %v4681_v29 = vadd.f32 %v4680_v30, %v4577_v12  ;;  %v11024_v30 = vld [vmem:[%s18544_s1 + $0x1c] sm:$0xf] }
 0x7d0   :  { %v4779_v36 = vpop.f32.mrf.mxu3  ;;  %v15419_v33 = vpop.f32.mrf.mxu0 }
 0x7d1   :  { %v4780_v43 = vadd.f32 %v4779_v36, %v4676_v0  ;;  %v4809_v36 = vadd.f32 %v15342_v50, %v15401_v59  ;;  %v4812_v50 = vadd.f32 %v15346_v13, %v15401_v59 }
 0x7d2   :  { %v4910_v51 = vpop.f32.mrf.mxu1 }
 0x7d3   :  { %v6342_v55 = vmax.f32 %v4780_v43, 0.0  ;;  %v4911_v24 = vadd.f32 %v4910_v51, %v4807_v7  ;;  %4870 = vmatmul.bf16.gmra.mxu0 %v18828_v58  ;;  %5043 = vmatmul.bf16.gmra.mxu2 %v19089_v44  ;;  %v9245_v51 = vld [vmem:[%s18544_s1 + $0x3c] sm:$0xf0]  ;;  %v19094_v44 = vld [vmem:[#allocation33_spill] sm:$0xff] }
 0x7d5   :  { %4949 = vmatmul.bf16.gmra.mxu1 %v19090_v54  ;;  %5142 = vmatmul.bf16.gmra.mxu3 %v19091_v47  ;;  %v15425_v12 = vpack.c.bf16 %v6342_v55, %v6333_v6  ;;  %v9248_v6 = vor.u32 %v11024_v30, %v9245_v51  ;;  %v19093_v54 = vld [vmem:[#allocation7_spill] sm:$0xff]  ;;  %v19095_v30 = vld [vmem:[#allocation34_spill] sm:$0xff] }
 0x7d6   :  { %v4683_v63 = vpop.f32.mrf.mxu2  ;;  %v19096_v51 = vld [vmem:[#allocation35_spill] sm:$0xff] }
 0x7d7   :  { %19092 = vst [vmem:[#allocation160_spill] sm:$0xff] %v15425_v12  ;;  %v4684_v10 = vadd.f32 %v4683_v63, %v4580_v57  ;;  %5215 = vmatpush.bf16.msrb.mxu0 %v9248_v6 }
 0x7d8   :  { %v4782_v17 = vpop.f32.mrf.mxu3  ;;  %v15429_v38 = vpop.f32.mrf.mxu0 }
 0x7d9   :  { %v4783_v0 = vadd.f32 %v4782_v17, %v4679_v40 }
 0x7da   :  { %v4912_v7 = vpop.f32.mrf.mxu1 }
 0x7db   :  { %v15431_v43 = vadd.f32 %v4912_v7, %v4809_v36  ;;  %v6351_v7 = vmax.f32 %v4783_v0, 0.0 }
 0x7de   :  { %v4685_v57 = vpop.f32.mrf.mxu2 }
 0x7df   :  { %v4686_v55 = vadd.f32 %v4685_v57, %v4582_v11  ;;  %v4814_v57 = vadd.f32 %v15362_v2, %v15401_v59  ;;  %v19098_v2 = vld [vmem:[#allocation4_spill] sm:$0xff] }
 0x7e0   :  { %v4784_v63 = vpop.f32.mrf.mxu3  ;;  %v15441_v17 = vpop.f32.mrf.mxu0 }
 0x7e1   :  { %v4785_v40 = vadd.f32 %v4784_v63, %v4681_v29 }
 0x7e2   :  { %v4915_v36 = vpop.f32.mrf.mxu1 }
 0x7e3   :  { %v6360_v12 = vmax.f32 %v4785_v40, 0.0  ;;  %v15443_v47 = vadd.f32 %v4915_v36, %v4812_v50  ;;  %4875 = vmatmul.bf16.gmra.mxu0 %v19093_v54  ;;  %5048 = vmatmul.bf16.gmra.mxu2 %v19094_v44 }
 0x7e5   :  { %4954 = vmatmul.bf16.gmra.mxu1 %v19095_v30  ;;  %5147 = vmatmul.bf16.gmra.mxu3 %v19096_v51  ;;  %v15449_v11 = vpack.c.bf16 %v6360_v12, %v6351_v7  ;;  %v4817_v51 = vadd.f32 %v15366_v1, %v15401_v59 }
 0x7e6   :  { %v5009_v6 = vpop.f32.mrf.mxu2 }
 0x7e7   :  { %19097 = vst [vmem:[#allocation161_spill] sm:$0xff] %v15449_v11  ;;  %v5010_v29 = vadd.f32 %v5009_v6, %v4906_v25 }
 0x7e8   :  { %v4787_v13 = vpop.f32.mrf.mxu3  ;;  %v15453_v63 = vpop.f32.mrf.mxu0 }
 0x7e9   :  { %v4788_v0 = vadd.f32 %v4787_v13, %v4684_v10  ;;  %v19099_v10 = vld [vmem:[#allocation39_spill] sm:$0xff]  ;;  %v19100_v13 = vld [vmem:[#allocation40_spill] sm:$0xff] }
 0x7ea   :  { %v4917_v50 = vpop.f32.mrf.mxu1 }
 0x7eb   :  { %v15455_v40 = vadd.f32 %v4917_v50, %v4814_v57  ;;  %v6369_v25 = vmax.f32 %v4788_v0, 0.0  ;;  %v19101_v57 = vld [vmem:[#allocation41_spill] sm:$0xff] }
 0x7ee   :  { %v5011_v36 = vpop.f32.mrf.mxu2 }
 0x7ef   :  { %v5012_v54 = vadd.f32 %v5011_v36, %v4908_v19 }
 0x7f0   :  { %v4789_v44 = vpop.f32.mrf.mxu3  ;;  %v15459_v7 = vpop.f32.mrf.mxu0 }
 0x7f1   :  { %v4790_v12 = vadd.f32 %v4789_v44, %v4686_v55  ;;  %v4819_v55 = vadd.f32 %v15376_v56, %v15401_v59  ;;  %v10361_v56 = vld [vmem:[%s18544_s1 + $0x8f4] sm:$0xf0] }
 0x7f2   :  { %v4920_v11 = vpop.f32.mrf.mxu1 }
 0x7f3   :  { %v6378_v6 = vmax.f32 %v4790_v12, 0.0  ;;  %v15461_v30 = vadd.f32 %v4920_v11, %v4817_v51  ;;  %4880 = vmatmul.bf16.gmra.mxu0 %v19098_v2  ;;  %5053 = vmatmul.bf16.gmra.mxu2 %v19099_v10  ;;  %v11231_v12 = vld [vmem:[%s18544_s1 + $0x694] sm:$0xf] }
 0x7f5   :  { %4959 = vmatmul.bf16.gmra.mxu1 %v19100_v13  ;;  %5152 = vmatmul.bf16.gmra.mxu3 %v19101_v57  ;;  %v15467_v19 = vpack.c.bf16 %v6378_v6, %v6369_v25  ;;  %v10073_v25 = vld [vmem:[%s18544_s1 + $0x6b4] sm:$0xf0] }
 0x7f6   :  { %v5014_v50 = vpop.f32.mrf.mxu2  ;;  %v10076_v6 = vor.u32 %v11231_v12, %v10073_v25 }
 0x7f7   :  { %19102 = vst [vmem:[#allocation162_spill] sm:$0xff] %v15467_v19  ;;  %v5015_v1 = vadd.f32 %v5014_v50, %v4911_v24  ;;  %v11303_v24 = vld [vmem:[%s18544_s1 + $0x8d4] sm:$0xf]  ;;  %v4822_v19 = vadd.f32 %v15380_v3, %v15401_v59  ;;  %v9503_v3 = vld [vmem:[%s18544_s1 + $0x218] sm:$0xf] }
 0x7f8   :  { %v5113_v44 = vpop.f32.mrf.mxu3  ;;  %v15471_v36 = vpop.f32.mrf.mxu0  ;;  %v10364_v50 = vor.u32 %v11303_v24, %v10361_v56  ;;  %5416 = vmatpush.bf16.msra.mxu2 %v10076_v6 }
 0x7f9   :  { %v5114_v0 = vadd.f32 %v5113_v44, %v5010_v29  ;;  %v11159_v29 = vld [vmem:[%s18544_s1 + $0x454] sm:$0xf]  ;;  %v9785_v44 = vld [vmem:[%s18544_s1 + $0x474] sm:$0xf0] }
 0x7fa   :  { %v4922_v51 = vpop.f32.mrf.mxu1  ;;  %5520 = vmatpush.bf16.msra.mxu3 %v10364_v50 }
 0x7fb   :  { %v15473_v11 = vadd.f32 %v4922_v51, %v4819_v55  ;;  %v9788_v55 = vor.u32 %v11159_v29, %v9785_v44  ;;  %v6046_v24 = vmax.f32 %v5114_v0, 0.0  ;;  %v4824_v29 = vadd.f32 %v15390_v39, %v15401_v59 }
 0x7fd   :  { %5312 = vmatpush.bf16.msrb.mxu1 %v9788_v55 }
 0x7fe   :  { %v5016_v51 = vpop.f32.mrf.mxu2 }
 0x7ff   :  { %v5017_v12 = vadd.f32 %v5016_v51, %v15431_v43  ;;  %v19104_v43 = vld [vmem:[#allocation44_spill] sm:$0xff] }
 0x800   :  { %v5115_v25 = vpop.f32.mrf.mxu3  ;;  %v15496_v13 = vpop.f32.mrf.mxu0 }
 0x801   :  { %v5116_v57 = vadd.f32 %v5115_v25, %v5012_v54  ;;  %v11092_v54 = vld [vmem:[%s18544_s1 + $0x238] sm:$0xf0] }
 0x802   :  { %v4925_v10 = vpop.f32.mrf.mxu1 }
 0x803   :  { %v6055_v56 = vmax.f32 %v5116_v57, 0.0  ;;  %v15498_v2 = vadd.f32 %v4925_v10, %v4822_v19  ;;  %4885 = vmatmul.bf16.gmra.mxu0 %v18777_v35  ;;  %5058 = vmatmul.bf16.gmra.mxu2 %v12215_v4  ;;  %v9504_v10 = vor.u32 %v11092_v54, %v9503_v3  ;;  %v4827_v3 = vadd.f32 %v15405_v41, %v15401_v59 }
 0x805   :  { %v15502_v6 = vpack.c.bf16 %v6055_v56, %v6046_v24  ;;  %4964 = vmatmul.bf16.gmra.mxu1 %v18779_v8  ;;  %5157 = vmatmul.bf16.gmra.mxu3 %v19104_v43 }
 0x806   :  { %v5019_v57 = vpop.f32.mrf.mxu2  ;;  %5624 = vmatpush.bf16.msra.mxu0 %v9504_v10 }
 0x807   :  { %19103 = vst [vmem:[#allocation163_spill] sm:$0xff] %v15502_v6  ;;  %v5020_v19 = vadd.f32 %v5019_v57, %v15443_v47 }
 0x808   :  { %v5118_v0 = vpop.f32.mrf.mxu3  ;;  %v15515_v44 = vpop.f32.mrf.mxu0 }
 0x809   :  { %v5119_v50 = vadd.f32 %v5118_v0, %v5015_v1  ;;  %v19105_v1 = vld [vmem:[#allocation11_spill] sm:$0xff] }
 0x80a   :  { %v4927_v55 = vpop.f32.mrf.mxu1  ;;  %v19106_v0 = vld [vmem:[#allocation47_spill] sm:$0xff] }
 0x80b   :  { %v15517_v51 = vadd.f32 %v4927_v55, %v4824_v29  ;;  %v6064_v57 = vmax.f32 %v5119_v50, 0.0  ;;  %v19107_v29 = vld [vmem:[#allocation48_spill] sm:$0xff]  ;;  %v19108_v55 = vld [vmem:[#allocation49_spill] sm:$0xff]  ;;  %v4829_v50 = vadd.f32 %v15415_v32, %v15401_v59 }
 0x80e   :  { %v5021_v25 = vpop.f32.mrf.mxu2 }
 0x80f   :  { %v5022_v24 = vadd.f32 %v5021_v25, %v15455_v40 }
 0x810   :  { %v5120_v56 = vpop.f32.mrf.mxu3  ;;  %v15522_v47 = vpop.f32.mrf.mxu0 }
 0x811   :  { %v5121_v54 = vadd.f32 %v5120_v56, %v5017_v12 }
 0x812   :  { %v4930_v10 = vpop.f32.mrf.mxu1 }
 0x813   :  { %v6073_v6 = vmax.f32 %v5121_v54, 0.0  ;;  %v15524_v39 = vadd.f32 %v4930_v10, %v4827_v3  ;;  %4890 = vmatmul.bf16.gmra.mxu0 %v19105_v1  ;;  %5063 = vmatmul.bf16.gmra.mxu2 %v19106_v0 }
 0x815   :  { %4969 = vmatmul.bf16.gmra.mxu1 %v19107_v29  ;;  %5162 = vmatmul.bf16.gmra.mxu3 %v19108_v55  ;;  %v15530_v40 = vpack.c.bf16 %v6073_v6, %v6064_v57  ;;  %v4832_v6 = vadd.f32 %v15419_v33, %v15401_v59 }
 0x816   :  { %v5024_v25 = vpop.f32.mrf.mxu2 }
 0x817   :  { %19109 = vst [vmem:[#allocation164_spill] sm:$0xff] %v15530_v40  ;;  %v5025_v41 = vadd.f32 %v5024_v25, %v15461_v30 }
 0x818   :  { %v5123_v12 = vpop.f32.mrf.mxu3  ;;  %v15535_v3 = vpop.f32.mrf.mxu0 }
 0x819   :  { %v5124_v56 = vadd.f32 %v5123_v12, %v5020_v19  ;;  %v11222_v19 = vld [vmem:[%s18544_s1 + $0x64c] sm:$0xf]  ;;  %v19111_v12 = vld [vmem:[#allocation2_spill] sm:$0xff] }
 0x81a   :  { %v4932_v54 = vpop.f32.mrf.mxu1 }
 0x81b   :  { %v15537_v10 = vadd.f32 %v4932_v54, %v4829_v50  ;;  %v6082_v25 = vmax.f32 %v5124_v56, 0.0  ;;  %v19112_v50 = vld [vmem:[#allocation52_spill] sm:$0xff]  ;;  %v19113_v56 = vld [vmem:[#allocation53_spill] sm:$0xff] }
 0x81e   :  { %v5026_v0 = vpop.f32.mrf.mxu2 }
 0x81f   :  { %v5027_v29 = vadd.f32 %v5026_v0, %v15473_v11  ;;  %v10037_v11 = vld [vmem:[%s18544_s1 + $0x66c] sm:$0xf0]  ;;  %v19110_v0 = vld [vmem:[#allocation51_spill] sm:$0xff] }
 0x820   :  { %v5125_v1 = vpop.f32.mrf.mxu3  ;;  %v15542_v40 = vpop.f32.mrf.mxu0  ;;  %v10040_v33 = vor.u32 %v11222_v19, %v10037_v11 }
 0x821   :  { %v5126_v57 = vadd.f32 %v5125_v1, %v5022_v24  ;;  %v11294_v24 = vld [vmem:[%s18544_s1 + $0x88c] sm:$0xf]  ;;  %v10325_v1 = vld [vmem:[%s18544_s1 + $0x8ac] sm:$0xf0] }
 0x822   :  { %v4935_v30 = vpop.f32.mrf.mxu1  ;;  %v10328_v54 = vor.u32 %v11294_v24, %v10325_v1  ;;  %5417 = vmatpush.bf16.msra.mxu2 %v10040_v33  ;;  %v4834_v24 = vadd.f32 %v15429_v38, %v15401_v59 }
 0x823   :  { %v6091_v55 = vmax.f32 %v5126_v57, 0.0  ;;  %v15544_v32 = vadd.f32 %v4935_v30, %v4832_v6  ;;  %5068 = vmatmul.bf16.gmra.mxu2 %v19110_v0  ;;  %5216 = vmatmul.bf16.vlgmr.msrb.gmra.mxu0 %v19111_v12  ;;  %v11150_v6 = vld [vmem:[%s18544_s1 + $0x40c] sm:$0xf]  ;;  %v9749_v57 = vld [vmem:[%s18544_s1 + $0x42c] sm:$0xf0] }
 0x824   :  { %v9752_v19 = vor.u32 %v11150_v6, %v9749_v57  ;;  %5521 = vmatpush.bf16.msra.mxu3 %v10328_v54 }
 0x825   :  { %4974 = vmatmul.bf16.gmra.mxu1 %v19112_v50  ;;  %5167 = vmatmul.bf16.gmra.mxu3 %v19113_v56  ;;  %v15568_v30 = vpack.c.bf16 %v6091_v55, %v6082_v25  ;;  %v9467_v55 = vld [vmem:[%s18544_s1 + $0x1d0] sm:$0xf]  ;;  %v11083_v25 = vld [vmem:[%s18544_s1 + $0x1f0] sm:$0xf0] }
 0x826   :  { %v5029_v11 = vpop.f32.mrf.mxu2  ;;  %5313 = vmatpush.bf16.msrb.mxu1 %v9752_v19 }
 0x827   :  { %19114 = vst [vmem:[#allocation165_spill] sm:$0xff] %v15568_v30  ;;  %v5030_v12 = vadd.f32 %v5029_v11, %v15498_v2  ;;  %v9468_v2 = vor.u32 %v11083_v25, %v9467_v55 }
 0x828   :  { %v5128_v50 = vpop.f32.mrf.mxu3  ;;  %v15573_v56 = vpop.f32.mrf.mxu0 }
 0x829   :  { %v5129_v1 = vadd.f32 %v5128_v50, %v5025_v41  ;;  %5625 = vmatpush.bf16.msra.mxu0 %v9468_v2  ;;  %v4837_v41 = vadd.f32 %v15441_v17, %v15401_v59 }
 0x82a   :  { %v4937_v0 = vpop.f32.mrf.mxu1 }
 0x82b   :  { %v15575_v43 = vadd.f32 %v4937_v0, %v4834_v24  ;;  %v6100_v57 = vmax.f32 %v5129_v1, 0.0  ;;  %v4839_v1 = vadd.f32 %v15453_v63, %v15401_v59  ;;  %v11132_v63 = vld [vmem:[%s18544_s1 + $0x37c] sm:$0xf] }
 0x82e   :  { %v5031_v33 = vpop.f32.mrf.mxu2 }
 0x82f   :  { %v5032_v54 = vadd.f32 %v5031_v33, %v15517_v51 }
 0x830   :  { %v5130_v38 = vpop.f32.mrf.mxu3  ;;  %v15586_v0 = vpop.f32.mrf.mxu0 }
 0x831   :  { %v5131_v50 = vadd.f32 %v5130_v38, %v5027_v29  ;;  %v11141_v38 = vld [vmem:[%s18544_s1 + $0x3c4] sm:$0xf] }
 0x832   :  { %v4940_v6 = vpop.f32.mrf.mxu1 }
 0x833   :  { %v6109_v19 = vmax.f32 %v5131_v50, 0.0  ;;  %v15588_v11 = vadd.f32 %v4940_v6, %v4837_v41  ;;  %5073 = vmatmul.bf16.gmra.mxu2 %v18790_v20  ;;  %5221 = vmatmul.bf16.gmra.mxu0 %v18855_v18  ;;  %v9713_v41 = vld [vmem:[%s18544_s1 + $0x3e4] sm:$0xf0] }
 0x834   :  { %v9716_v50 = vor.u32 %v11141_v38, %v9713_v41 }
 0x835   :  { %4979 = vmatmul.bf16.gmra.mxu1 %v18920_v23  ;;  %5172 = vmatmul.bf16.gmra.mxu3 %v18985_v21  ;;  %v15594_v51 = vpack.c.bf16 %v6109_v19, %v6100_v57 }
 0x836   :  { %v5034_v24 = vpop.f32.mrf.mxu2  ;;  %5314 = vmatpush.bf16.msrb.mxu1 %v9716_v50 }
 0x837   :  { %19115 = vst [vmem:[#allocation166_spill] sm:$0xff] %v15594_v51  ;;  %v5035_v17 = vadd.f32 %v5034_v24, %v15524_v39  ;;  %v4842_v24 = vadd.f32 %v15459_v7, %v15401_v59  ;;  %v11123_v51 = vld [vmem:[%s18544_s1 + $0x334] sm:$0xf] }
 0x838   :  { %v5133_v29 = vpop.f32.mrf.mxu3  ;;  %v15599_v25 = vpop.f32.mrf.mxu0 }
 0x839   :  { %v5134_v55 = vadd.f32 %v5133_v29, %v5030_v12  ;;  %v9677_v12 = vld [vmem:[%s18544_s1 + $0x39c] sm:$0xf0] }
 0x83a   :  { %v4942_v2 = vpop.f32.mrf.mxu1  ;;  %v9680_v19 = vor.u32 %v11132_v63, %v9677_v12  ;;  %v10001_v63 = vld [vmem:[%s18544_s1 + $0x624] sm:$0xf0] }
 0x83b   :  { %v15601_v33 = vadd.f32 %v4942_v2, %v4839_v1  ;;  %v6118_v38 = vmax.f32 %v5134_v55, 0.0  ;;  %v11213_v55 = vld [vmem:[%s18544_s1 + $0x604] sm:$0xf] }
 0x83c   :  { %5315 = vmatpush.bf16.msrb.mxu1 %v9680_v19 }
 0x83e   :  { %v5036_v39 = vpop.f32.mrf.mxu2 }
 0x83f   :  { %v5037_v6 = vadd.f32 %v5036_v39, %v15537_v10  ;;  %v9641_v10 = vld [vmem:[%s18544_s1 + $0x354] sm:$0xf0]  ;;  %v19117_v39 = vld [vmem:[#allocation60_spill] sm:$0xff] }
 0x840   :  { %v5135_v57 = vpop.f32.mrf.mxu3  ;;  %v15618_v1 = vpop.f32.mrf.mxu0  ;;  %v9644_v7 = vor.u32 %v11123_v51, %v9641_v10  ;;  %v11114_v51 = vld [vmem:[%s18544_s1 + $0x2ec] sm:$0xf] }
 0x841   :  { %v5136_v29 = vadd.f32 %v5135_v57, %v5032_v54  ;;  %v19116_v54 = vld [vmem:[#allocation59_spill] sm:$0xff]  ;;  %v10004_v57 = vor.u32 %v11213_v55, %v10001_v63 }
 0x842   :  { %v4945_v2 = vpop.f32.mrf.mxu1  ;;  %5316 = vmatpush.bf16.msrb.mxu1 %v9644_v7 }
 0x843   :  { %v6127_v41 = vmax.f32 %v5136_v29, 0.0  ;;  %v15620_v50 = vadd.f32 %v4945_v2, %v4842_v24  ;;  %5078 = vmatmul.bf16.gmra.mxu2 %v12417_v61  ;;  %5226 = vmatmul.bf16.gmra.mxu0 %v19051_v15  ;;  %v9605_v24 = vld [vmem:[%s18544_s1 + $0x30c] sm:$0xf0] }
 0x844   :  { %5418 = vmatpush.bf16.msra.mxu2 %v10004_v57  ;;  %v9608_v10 = vor.u32 %v11114_v51, %v9605_v24  ;;  %v11096_v24 = vld [vmem:[%s18544_s1 + $0x25c] sm:$0xf] }
 0x845   :  { %4984 = vmatmul.bf16.gmra.mxu1 %v19116_v54  ;;  %5177 = vmatmul.bf16.gmra.mxu3 %v19117_v39  ;;  %v15638_v12 = vpack.c.bf16 %v6127_v41, %v6118_v38  ;;  %v4844_v38 = vadd.f32 %v15471_v36, %v15401_v59  ;;  %v11105_v36 = vld [vmem:[%s18544_s1 + $0x2a4] sm:$0xf]  ;;  %v9431_v39 = vld [vmem:[%s18544_s1 + $0x188] sm:$0xf] }
 0x846   :  { %v5039_v19 = vpop.f32.mrf.mxu2  ;;  %5317 = vmatpush.bf16.msrb.mxu1 %v9608_v10 }
 0x847   :  { %19118 = vst [vmem:[#allocation59_spill] sm:$0xff] %v15638_v12  ;;  %v5040_v29 = vadd.f32 %v5039_v19, %v15544_v32  ;;  %v11285_v12 = vld [vmem:[%s18544_s1 + $0x844] sm:$0xf]  ;;  %v10289_v32 = vld [vmem:[%s18544_s1 + $0x864] sm:$0xf0] }
 0x848   :  { %v5138_v2 = vpop.f32.mrf.mxu3  ;;  %v15649_v7 = vpop.f32.mrf.mxu0  ;;  %v10292_v57 = vor.u32 %v11285_v12, %v10289_v32  ;;  %v9533_v12 = vld [vmem:[%s18544_s1 + $0x27c] sm:$0xf0] }
 0x849   :  { %v5139_v41 = vadd.f32 %v5138_v2, %v5035_v17  ;;  %v9569_v17 = vld [vmem:[%s18544_s1 + $0x2c4] sm:$0xf0] }
 0x84a   :  { %v4947_v55 = vpop.f32.mrf.mxu1  ;;  %v9572_v19 = vor.u32 %v11105_v36, %v9569_v17  ;;  %5522 = vmatpush.bf16.msra.mxu3 %v10292_v57 }
 0x84b   :  { %v15651_v63 = vadd.f32 %v4947_v55, %v4844_v38  ;;  %v9536_v38 = vor.u32 %v11096_v24, %v9533_v12  ;;  %v4847_v55 = vadd.f32 %v15496_v13, %v15401_v59  ;;  %v6136_v17 = vmax.f32 %v5139_v41, 0.0  ;;  %v19119_v13 = vld [vmem:[#allocation12_spill] sm:$0xff]  ;;  %v19120_v41 = vld [vmem:[#allocation63_spill] sm:$0xff] }
 0x84c   :  { %5318 = vmatpush.bf16.msrb.mxu1 %v9572_v19 }
 0x84e   :  { %v5041_v51 = vpop.f32.mrf.mxu2 }
 0x84f   :  { %v5042_v2 = vadd.f32 %v5041_v51, %v15575_v43  ;;  %v11074_v43 = vld [vmem:[%s18544_s1 + $0x1a8] sm:$0xf0] }
 0x850   :  { %v5140_v10 = vpop.f32.mrf.mxu3  ;;  %v15674_v36 = vpop.f32.mrf.mxu0  ;;  %5319 = vmatpush.bf16.msrb.mxu1 %v9536_v38 }
 0x851   :  { %v5141_v32 = vadd.f32 %v5140_v10, %v5037_v6  ;;  %v9432_v6 = vor.u32 %v11074_v43, %v9431_v39 }
 0x852   :  { %v4950_v57 = vpop.f32.mrf.mxu1 }
 0x853   :  { %v6145_v19 = vmax.f32 %v5141_v32, 0.0  ;;  %v15676_v30 = vadd.f32 %v4950_v57, %v4847_v55  ;;  %5083 = vmatmul.bf16.gmra.mxu2 %v12491_v22  ;;  %5231 = vmatmul.bf16.gmra.mxu0 %v19119_v13  ;;  %v4849_v55 = vadd.f32 %v15515_v44, %v15401_v59  ;;  %v4852_v44 = vadd.f32 %v15522_v47, %v15401_v59 }
 0x854   :  { %5626 = vmatpush.bf16.msra.mxu0 %v9432_v6 }
 0x855   :  { %4989 = vmatmul.bf16.gmra.mxu1 %v18799_v49  ;;  %5182 = vmatmul.bf16.gmra.mxu3 %v19120_v41  ;;  %v15688_v51 = vpack.c.bf16 %v6145_v19, %v6136_v17  ;;  %v11204_v17 = vld [vmem:[%s18544_s1 + $0x5bc] sm:$0xf]  ;;  %v9965_v19 = vld [vmem:[%s18544_s1 + $0x5dc] sm:$0xf0]  ;;  %v11195_v41 = vld [vmem:[%s18544_s1 + $0x574] sm:$0xf] }
 0x856   :  { %v5044_v24 = vpop.f32.mrf.mxu2  ;;  %v9968_v6 = vor.u32 %v11204_v17, %v9965_v19  ;;  %v11186_v17 = vld [vmem:[%s18544_s1 + $0x52c] sm:$0xf]  ;;  %v9893_v19 = vld [vmem:[%s18544_s1 + $0x54c] sm:$0xf0] }
 0x857   :  { %19121 = vst [vmem:[#allocation167_spill] sm:$0xff] %v15688_v51  ;;  %v5045_v12 = vadd.f32 %v5044_v24, %v15588_v11 }
 0x858   :  { %v5143_v10 = vpop.f32.mrf.mxu3  ;;  %v15693_v32 = vpop.f32.mrf.mxu0  ;;  %5419 = vmatpush.bf16.msra.mxu2 %v9968_v6 }
 0x859   :  { %v5144_v38 = vadd.f32 %v5143_v10, %v5040_v29 }
 0x85a   :  { %v4952_v57 = vpop.f32.mrf.mxu1 }
 0x85b   :  { %v15695_v13 = vadd.f32 %v4952_v57, %v4849_v55  ;;  %v6154_v55 = vmax.f32 %v5144_v38, 0.0 }
 0x85e   :  { %v5046_v39 = vpop.f32.mrf.mxu2 }
 0x85f   :  { %v5047_v11 = vadd.f32 %v5046_v39, %v15601_v33  ;;  %v9929_v33 = vld [vmem:[%s18544_s1 + $0x594] sm:$0xf0] }
 0x860   :  { %v5145_v43 = vpop.f32.mrf.mxu3  ;;  %v15706_v24 = vpop.f32.mrf.mxu0  ;;  %v9932_v47 = vor.u32 %v11195_v41, %v9929_v33  ;;  %v9896_v41 = vor.u32 %v11186_v17, %v9893_v19  ;;  %v11177_v33 = vld [vmem:[%s18544_s1 + $0x4e4] sm:$0xf]  ;;  %v11168_v19 = vld [vmem:[%s18544_s1 + $0x49c] sm:$0xf] }
 0x861   :  { %v5146_v29 = vadd.f32 %v5145_v43, %v5042_v2  ;;  %v19122_v2 = vld [vmem:[#allocation66_spill] sm:$0xff] }
 0x862   :  { %v4955_v10 = vpop.f32.mrf.mxu1  ;;  %5420 = vmatpush.bf16.msra.mxu2 %v9932_v47 }
 0x863   :  { %v6163_v57 = vmax.f32 %v5146_v29, 0.0  ;;  %v15708_v51 = vadd.f32 %v4955_v10, %v4852_v44  ;;  %5088 = vmatmul.bf16.gmra.mxu2 %v12541_v62  ;;  %5236 = vmatmul.bf16.gmra.mxu0 %v11830_v42  ;;  %v4854_v44 = vadd.f32 %v15535_v3, %v15401_v59  ;;  %v11276_v3 = vld [vmem:[%s18544_s1 + $0x7fc] sm:$0xf] }
 0x865   :  { %4994 = vmatmul.bf16.gmra.mxu1 %v12543_v5  ;;  %5187 = vmatmul.bf16.gmra.mxu3 %v19122_v2  ;;  %v15720_v38 = vpack.c.bf16 %v6163_v57, %v6154_v55  ;;  %v11267_v2 = vld [vmem:[%s18544_s1 + $0x7b4] sm:$0xf]  ;;  %v19130_v5 = vld [vmem:[#allocation71_spill] sm:$0xff] }
 0x866   :  { %v5049_v39 = vpop.f32.mrf.mxu2  ;;  %5421 = vmatpush.bf16.msra.mxu2 %v9896_v41 }
 0x867   :  { %19123 = vst [vmem:[#allocation168_spill] sm:$0xff] %v15720_v38  ;;  %v5050_v43 = vadd.f32 %v5049_v39, %v15620_v50  ;;  %v9857_v50 = vld [vmem:[%s18544_s1 + $0x504] sm:$0xf0] }
 0x868   :  { %v5148_v6 = vpop.f32.mrf.mxu3  ;;  %v15731_v10 = vpop.f32.mrf.mxu0  ;;  %v9860_v47 = vor.u32 %v11177_v33, %v9857_v50  ;;  %v4857_v33 = vadd.f32 %v15542_v40, %v15401_v59  ;;  %v19125_v40 = vld [vmem:[#allocation14_spill] sm:$0xff] }
 0x869   :  { %v5149_v29 = vadd.f32 %v5148_v6, %v5045_v12  ;;  %v10253_v12 = vld [vmem:[%s18544_s1 + $0x81c] sm:$0xf0] }
 0x86a   :  { %v4957_v55 = vpop.f32.mrf.mxu1  ;;  %v10256_v39 = vor.u32 %v11276_v3, %v10253_v12  ;;  %5422 = vmatpush.bf16.msra.mxu2 %v9860_v47  ;;  %v9821_v6 = vld [vmem:[%s18544_s1 + $0x4bc] sm:$0xf0] }
 0x86b   :  { %v15733_v57 = vadd.f32 %v4957_v55, %v4854_v44  ;;  %v9824_v55 = vor.u32 %v11168_v19, %v9821_v6  ;;  %v6172_v12 = vmax.f32 %v5149_v29, 0.0  ;;  %v19126_v19 = vld [vmem:[#allocation69_spill] sm:$0xff]  ;;  %v9395_v29 = vld [vmem:[%s18544_s1 + $0x140] sm:$0xf] }
 0x86c   :  { %5523 = vmatpush.bf16.msra.mxu3 %v10256_v39  ;;  %v19127_v6 = vld [vmem:[#allocation5_spill] sm:$0xff] }
 0x86e   :  { %v5051_v17 = vpop.f32.mrf.mxu2  ;;  %5423 = vmatpush.bf16.msra.mxu2 %v9824_v55 }
 0x86f   :  { %v5052_v41 = vadd.f32 %v5051_v17, %v15651_v63  ;;  %v10217_v63 = vld [vmem:[%s18544_s1 + $0x7d4] sm:$0xf0]  ;;  %v19124_v17 = vld [vmem:[#allocation68_spill] sm:$0xff] }
 0x870   :  { %v5150_v44 = vpop.f32.mrf.mxu3  ;;  %v15756_v3 = vpop.f32.mrf.mxu0 }
 0x871   :  { %v5151_v50 = vadd.f32 %v5150_v44, %v5047_v11  ;;  %v10220_v11 = vor.u32 %v11267_v2, %v10217_v63  ;;  %v11065_v44 = vld [vmem:[%s18544_s1 + $0x160] sm:$0xf0]  ;;  %v11258_v2 = vld [vmem:[%s18544_s1 + $0x76c] sm:$0xf] }
 0x872   :  { %v4960_v47 = vpop.f32.mrf.mxu1 }
 0x873   :  { %v6181_v39 = vmax.f32 %v5151_v50, 0.0  ;;  %v15758_v38 = vadd.f32 %v4960_v47, %v4857_v33  ;;  %5093 = vmatmul.bf16.gmra.mxu2 %v19124_v17  ;;  %5241 = vmatmul.bf16.gmra.mxu0 %v19125_v40  ;;  %v9396_v33 = vor.u32 %v11065_v44, %v9395_v29  ;;  %v10181_v47 = vld [vmem:[%s18544_s1 + $0x78c] sm:$0xf0]  ;;  %v19129_v17 = vld [vmem:[#allocation18_spill] sm:$0xff] }
 0x874   :  { %5524 = vmatpush.bf16.msra.mxu3 %v10220_v11 }
 0x875   :  { %5192 = vmatmul.bf16.gmra.mxu3 %v19126_v19  ;;  %5320 = vmatmul.bf16.vlgmr.msrb.gmra.mxu1 %v19127_v6  ;;  %v15776_v55 = vpack.c.bf16 %v6181_v39, %v6172_v12  ;;  %v10184_v19 = vor.u32 %v11258_v2, %v10181_v47  ;;  %v4859_v12 = vadd.f32 %v15573_v56, %v15401_v59  ;;  %v11240_v56 = vld [vmem:[%s18544_s1 + $0x6dc] sm:$0xf] }
 0x876   :  { %v5054_v50 = vpop.f32.mrf.mxu2  ;;  %5627 = vmatpush.bf16.msra.mxu0 %v9396_v33  ;;  %v4862_v47 = vadd.f32 %v15586_v0, %v15401_v59 }
 0x877   :  { %19128 = vst [vmem:[#allocation169_spill] sm:$0xff] %v15776_v55  ;;  %v5055_v63 = vadd.f32 %v5054_v50, %v15676_v30  ;;  %v11249_v55 = vld [vmem:[%s18544_s1 + $0x724] sm:$0xf]  ;;  %v10145_v30 = vld [vmem:[%s18544_s1 + $0x744] sm:$0xf0] }
 0x878   :  { %v5153_v6 = vpop.f32.mrf.mxu3  ;;  %v15787_v11 = vpop.f32.mrf.mxu0  ;;  %5525 = vmatpush.bf16.msra.mxu3 %v10184_v19  ;;  %v10148_v50 = vor.u32 %v11249_v55, %v10145_v30 }
 0x879   :  { %v5154_v39 = vadd.f32 %v5153_v6, %v5050_v43  ;;  %v10109_v43 = vld [vmem:[%s18544_s1 + $0x6fc] sm:$0xf0] }
 0x87a   :  { %v4962_v29 = vpop.f32.mrf.mxu1  ;;  %v10112_v2 = vor.u32 %v11240_v56, %v10109_v43  ;;  %v4864_v43 = vadd.f32 %v15599_v25, %v15401_v59 }
 0x87b   :  { %v4963_v44 = vadd.f32 %v4962_v29, %v4859_v12  ;;  %v6190_v30 = vmax.f32 %v5154_v39, 0.0 }
 0x87c   :  { %5526 = vmatpush.bf16.msra.mxu3 %v10148_v50 }
 0x87e   :  { %v5056_v33 = vpop.f32.mrf.mxu2 }
 0x87f   :  { %v5057_v19 = vadd.f32 %v5056_v33, %v15695_v13  ;;  %v19131_v13 = vld [vmem:[#allocation9_spill] sm:$0xff] }
 0x880   :  { %v5155_v6 = vpop.f32.mrf.mxu3  ;;  %v15804_v29 = vpop.f32.mrf.mxu0  ;;  %5527 = vmatpush.bf16.msra.mxu3 %v10112_v2 }
 0x881   :  { %v5156_v12 = vadd.f32 %v5155_v6, %v5052_v41 }
 0x882   :  { %v4965_v55 = vpop.f32.mrf.mxu1 }
 0x883   :  { %v6199_v50 = vmax.f32 %v5156_v12, 0.0  ;;  %v4966_v40 = vadd.f32 %v4965_v55, %v4862_v47  ;;  %5098 = vmatmul.bf16.gmra.mxu2 %v12663_v48  ;;  %5246 = vmatmul.bf16.gmra.mxu0 %v19129_v17 }
 0x885   :  { %5197 = vmatmul.bf16.gmra.mxu3 %v19130_v5  ;;  %5325 = vmatmul.bf16.gmra.mxu1 %v19131_v13  ;;  %v15810_v33 = vpack.c.bf16 %v6199_v50, %v6190_v30  ;;  %v4867_v30 = vadd.f32 %v15618_v1, %v15401_v59 }
 0x886   :  { %v5059_v56 = vpop.f32.mrf.mxu2 }
 0x887   :  { %19132 = vst [vmem:[#allocation170_spill] sm:$0xff] %v15810_v33  ;;  %v5060_v0 = vadd.f32 %v5059_v56, %v15708_v51 }
 0x888   :  { %v5158_v41 = vpop.f32.mrf.mxu3  ;;  %v15815_v6 = vpop.f32.mrf.mxu0 }
 0x889   :  { %v5159_v39 = vadd.f32 %v5158_v41, %v5055_v63  ;;  %v4869_v63 = vadd.f32 %v15649_v7, %v15401_v59  ;;  %v4872_v7 = vadd.f32 %v15674_v36, %v15401_v59 }
 0x88a   :  { %v4967_v2 = vpop.f32.mrf.mxu1 }
 0x88b   :  { %v4968_v47 = vadd.f32 %v4967_v2, %v4864_v43  ;;  %v6208_v56 = vmax.f32 %v5159_v39, 0.0  ;;  %v9359_v2 = vld [vmem:[%s18544_s1 + $0xf8] sm:$0xf] }
 0x88e   :  { %v5061_v12 = vpop.f32.mrf.mxu2 }
 0x88f   :  { %v5062_v55 = vadd.f32 %v5061_v12, %v15733_v57 }
 0x890   :  { %v5160_v5 = vpop.f32.mrf.mxu3  ;;  %v15820_v33 = vpop.f32.mrf.mxu0 }
 0x891   :  { %v5161_v50 = vadd.f32 %v5160_v5, %v5057_v19 }
 0x892   :  { %v4970_v51 = vpop.f32.mrf.mxu1 }
 0x893   :  { %v6217_v13 = vmax.f32 %v5161_v50, 0.0  ;;  %v4971_v17 = vadd.f32 %v4970_v51, %v4867_v30  ;;  %5251 = vmatmul.bf16.gmra.mxu0 %v11944_v31  ;;  %5424 = vmatmul.bf16.vlgmr.msra.gmra.mxu2 %v11754_v14 }
 0x895   :  { %5202 = vmatmul.bf16.gmra.mxu3 %v12683_v34  ;;  %5330 = vmatmul.bf16.gmra.mxu1 %v11758_v16  ;;  %v15826_v25 = vpack.c.bf16 %v6217_v13, %v6208_v56  ;;  %v11056_v13 = vld [vmem:[%s18544_s1 + $0x118] sm:$0xf0] }
 0x896   :  { %v5064_v57 = vpop.f32.mrf.mxu2  ;;  %v9360_v12 = vor.u32 %v11056_v13, %v9359_v2 }
 0x897   :  { %19133 = vst [vmem:[#allocation171_spill] sm:$0xff] %v15826_v25  ;;  %v5065_v1 = vadd.f32 %v5064_v57, %v15758_v38 }
 0x898   :  { %v5163_v5 = vpop.f32.mrf.mxu3  ;;  %v15831_v41 = vpop.f32.mrf.mxu0  ;;  %5628 = vmatpush.bf16.msra.mxu0 %v9360_v12 }
 0x899   :  { %v5164_v19 = vadd.f32 %v5163_v5, %v5060_v0 }
 0x89a   :  { %v4972_v43 = vpop.f32.mrf.mxu1 }
 0x89b   :  { %v4973_v39 = vadd.f32 %v4972_v43, %v4869_v63  ;;  %v6226_v57 = vmax.f32 %v5164_v19, 0.0 }
 0x89e   :  { %v5066_v38 = vpop.f32.mrf.mxu2 }
 0x89f   :  { %v5067_v30 = vadd.f32 %v5066_v38, %v4963_v44 }
 0x8a0   :  { %v5165_v50 = vpop.f32.mrf.mxu3  ;;  %v15841_v51 = vpop.f32.mrf.mxu0 }
 0x8a1   :  { %v5166_v0 = vadd.f32 %v5165_v50, %v5062_v55  ;;  %v4874_v55 = vadd.f32 %v15693_v32, %v15401_v59  ;;  %v19135_v32 = vld [vmem:[#allocation13_spill] sm:$0xff] }
 0x8a2   :  { %v4975_v56 = vpop.f32.mrf.mxu1 }
 0x8a3   :  { %v6235_v5 = vmax.f32 %v5166_v0, 0.0  ;;  %v4976_v63 = vadd.f32 %v4975_v56, %v4872_v7  ;;  %5256 = vmatmul.bf16.gmra.mxu0 %v11991_v60  ;;  %5429 = vmatmul.bf16.gmra.mxu2 %v11790_v26  ;;  %v4877_v56 = vadd.f32 %v15706_v24, %v15401_v59 }
 0x8a5   :  { %5335 = vmatmul.bf16.gmra.mxu1 %v11792_v27  ;;  %5528 = vmatmul.bf16.vlgmr.msra.gmra.mxu3 %v11794_v28  ;;  %v15847_v44 = vpack.c.bf16 %v6235_v5, %v6226_v57 }
 0x8a6   :  { %v5069_v43 = vpop.f32.mrf.mxu2 }
 0x8a7   :  { %19134 = vst [vmem:[#allocation172_spill] sm:$0xff] %v15847_v44  ;;  %v5070_v2 = vadd.f32 %v5069_v43, %v4966_v40 }
 0x8a8   :  { %v5168_v36 = vpop.f32.mrf.mxu3  ;;  %v15851_v19 = vpop.f32.mrf.mxu0 }
 0x8a9   :  { %v5169_v13 = vadd.f32 %v5168_v36, %v5065_v1 }
 0x8aa   :  { %v4977_v12 = vpop.f32.mrf.mxu1 }
 0x8ab   :  { %v4978_v38 = vadd.f32 %v4977_v12, %v4874_v55  ;;  %v6244_v40 = vmax.f32 %v5169_v13, 0.0 }
 0x8ae   :  { %v5071_v50 = vpop.f32.mrf.mxu2 }
 0x8af   :  { %v5072_v7 = vadd.f32 %v5071_v50, %v4968_v47 }
 0x8b0   :  { %v5170_v0 = vpop.f32.mrf.mxu3  ;;  %v15855_v57 = vpop.f32.mrf.mxu0 }
 0x8b1   :  { %v5171_v25 = vadd.f32 %v5170_v0, %v5067_v30  ;;  %v4879_v30 = vadd.f32 %v15731_v10, %v15401_v59  ;;  %v9323_v10 = vld [vmem:[%s18544_s1 + $0xb0] sm:$0xf] }
 0x8b2   :  { %v4980_v5 = vpop.f32.mrf.mxu1 }
 0x8b3   :  { %v6253_v43 = vmax.f32 %v5171_v25, 0.0  ;;  %v4981_v44 = vadd.f32 %v4980_v5, %v4877_v56  ;;  %5261 = vmatmul.bf16.gmra.mxu0 %v12047_v52  ;;  %5434 = vmatmul.bf16.gmra.mxu2 %v11832_v45  ;;  %v4882_v5 = vadd.f32 %v15756_v3, %v15401_v59 }
 0x8b5   :  { %5340 = vmatmul.bf16.gmra.mxu1 %v11834_v46  ;;  %5533 = vmatmul.bf16.gmra.mxu3 %v19135_v32  ;;  %v15861_v47 = vpack.c.bf16 %v6253_v43, %v6244_v40 }
 0x8b6   :  { %v5074_v1 = vpop.f32.mrf.mxu2 }
 0x8b7   :  { %19136 = vst [vmem:[#allocation173_spill] sm:$0xff] %v15861_v47  ;;  %v5075_v36 = vadd.f32 %v5074_v1, %v4971_v17 }
 0x8b8   :  { %v5173_v24 = vpop.f32.mrf.mxu3  ;;  %v15865_v13 = vpop.f32.mrf.mxu0 }
 0x8b9   :  { %v5174_v55 = vadd.f32 %v5173_v24, %v5070_v2  ;;  %v11047_v2 = vld [vmem:[%s18544_s1 + $0xd0] sm:$0xf0]  ;;  %v19138_v24 = vld [vmem:[#allocation15_spill] sm:$0xff] }
 0x8ba   :  { %v4982_v25 = vpop.f32.mrf.mxu1  ;;  %v9324_v3 = vor.u32 %v11047_v2, %v9323_v10 }
 0x8bb   :  { %v4983_v12 = vadd.f32 %v4982_v25, %v4879_v30  ;;  %v6262_v17 = vmax.f32 %v5174_v55, 0.0 }
 0x8bc   :  { %5629 = vmatpush.bf16.msra.mxu0 %v9324_v3 }
 0x8be   :  { %v5076_v50 = vpop.f32.mrf.mxu2 }
 0x8bf   :  { %v5077_v0 = vadd.f32 %v5076_v50, %v4973_v39  ;;  %v19137_v39 = vld [vmem:[#allocation32_spill] sm:$0xff]  ;;  %v4884_v50 = vadd.f32 %v15787_v11, %v15401_v59  ;;  %v19141_v11 = vld [vmem:[#allocation19_spill] sm:$0xff] }
 0x8c0   :  { %v5175_v56 = vpop.f32.mrf.mxu3  ;;  %v15869_v40 = vpop.f32.mrf.mxu0 }
 0x8c1   :  { %v5176_v32 = vadd.f32 %v5175_v56, %v5072_v7  ;;  %v19139_v7 = vld [vmem:[#allocation17_spill] sm:$0xff] }
 0x8c2   :  { %v4985_v43 = vpop.f32.mrf.mxu1 }
 0x8c3   :  { %v6271_v1 = vmax.f32 %v5176_v32, 0.0  ;;  %v4986_v47 = vadd.f32 %v4985_v43, %v4882_v5  ;;  %5266 = vmatmul.bf16.gmra.mxu0 %v19137_v39  ;;  %5439 = vmatmul.bf16.gmra.mxu2 %v19138_v24 }
 0x8c5   :  { %5345 = vmatmul.bf16.gmra.mxu1 %v19008_v53  ;;  %5538 = vmatmul.bf16.gmra.mxu3 %v19139_v7  ;;  %v15881_v30 = vpack.c.bf16 %v6271_v1, %v6262_v17  ;;  %v4887_v7 = vadd.f32 %v15804_v29, %v15401_v59 }
 0x8c6   :  { %v5079_v32 = vpop.f32.mrf.mxu2 }
 0x8c7   :  { %19140 = vst [vmem:[#allocation174_spill] sm:$0xff] %v15881_v30  ;;  %v5080_v55 = vadd.f32 %v5079_v32, %v4976_v63 }
 0x8c8   :  { %v5178_v25 = vpop.f32.mrf.mxu3  ;;  %v15885_v5 = vpop.f32.mrf.mxu0 }
 0x8c9   :  { %v5179_v56 = vadd.f32 %v5178_v25, %v5075_v36  ;;  %v19142_v36 = vld [vmem:[#allocation20_spill] sm:$0xff]  ;;  %v19143_v25 = vld [vmem:[#allocation21_spill] sm:$0xff] }
 0x8ca   :  { %v4987_v43 = vpop.f32.mrf.mxu1 }
 0x8cb   :  { %v4988_v39 = vadd.f32 %v4987_v43, %v4884_v50  ;;  %v6280_v63 = vmax.f32 %v5179_v56, 0.0 }
 0x8ce   :  { %v5081_v24 = vpop.f32.mrf.mxu2 }
 0x8cf   :  { %v5082_v10 = vadd.f32 %v5081_v24, %v4978_v38 }
 0x8d0   :  { %v5180_v2 = vpop.f32.mrf.mxu3  ;;  %v15889_v1 = vpop.f32.mrf.mxu0 }
 0x8d1   :  { %v5181_v17 = vadd.f32 %v5180_v2, %v5077_v0  ;;  %v4889_v0 = vadd.f32 %v15815_v6, %v15401_v59  ;;  %v19145_v6 = vld [vmem:[#allocation22_spill] sm:$0xff] }
 0x8d2   :  { %v4990_v3 = vpop.f32.mrf.mxu1 }
 0x8d3   :  { %v6289_v32 = vmax.f32 %v5181_v17, 0.0  ;;  %v4991_v30 = vadd.f32 %v4990_v3, %v4887_v7  ;;  %5271 = vmatmul.bf16.gmra.mxu0 %v18945_v37  ;;  %5444 = vmatmul.bf16.gmra.mxu2 %v19141_v11 }
 0x8d5   :  { %5350 = vmatmul.bf16.gmra.mxu1 %v19142_v36  ;;  %5543 = vmatmul.bf16.gmra.mxu3 %v19143_v25  ;;  %v15895_v38 = vpack.c.bf16 %v6289_v32, %v6280_v63  ;;  %v4892_v36 = vadd.f32 %v15820_v33, %v15401_v59 }
 0x8d6   :  { %v5084_v24 = vpop.f32.mrf.mxu2 }
 0x8d7   :  { %19144 = vst [vmem:[#allocation175_spill] sm:$0xff] %v15895_v38  ;;  %v5085_v50 = vadd.f32 %v5084_v24, %v4981_v44 }
 0x8d8   :  { %v5183_v29 = vpop.f32.mrf.mxu3  ;;  %v15899_v56 = vpop.f32.mrf.mxu0 }
 0x8d9   :  { %v5184_v43 = vadd.f32 %v5183_v29, %v5080_v55  ;;  %v19146_v55 = vld [vmem:[#allocation23_spill] sm:$0xff]  ;;  %v19147_v29 = vld [vmem:[#allocation24_spill] sm:$0xff] }
 0x8da   :  { %v4992_v7 = vpop.f32.mrf.mxu1 }
 0x8db   :  { %v4993_v2 = vadd.f32 %v4992_v7, %v4889_v0  ;;  %v6298_v44 = vmax.f32 %v5184_v43, 0.0 }
 0x8de   :  { %v5086_v17 = vpop.f32.mrf.mxu2 }
 0x8df   :  { %v5087_v3 = vadd.f32 %v5086_v17, %v4983_v12  ;;  %v9287_v17 = vld [vmem:[%s18544_s1 + $0x68] sm:$0xf] }
 0x8e0   :  { %v5185_v11 = vpop.f32.mrf.mxu3  ;;  %v15903_v63 = vpop.f32.mrf.mxu0 }
 0x8e1   :  { %v5186_v25 = vadd.f32 %v5185_v11, %v5082_v10  ;;  %v4894_v10 = vadd.f32 %v15831_v41, %v15401_v59 }
 0x8e2   :  { %v4995_v32 = vpop.f32.mrf.mxu1 }
 0x8e3   :  { %v6307_v24 = vmax.f32 %v5186_v25, 0.0  ;;  %v4996_v38 = vadd.f32 %v4995_v32, %v4892_v36  ;;  %5276 = vmatmul.bf16.gmra.mxu0 %v18884_v9  ;;  %5449 = vmatmul.bf16.gmra.mxu2 %v19145_v6  ;;  %v11038_v32 = vld [vmem:[%s18544_s1 + $0x88] sm:$0xf0] }
 0x8e5   :  { %5355 = vmatmul.bf16.gmra.mxu1 %v19146_v55  ;;  %5548 = vmatmul.bf16.gmra.mxu3 %v19147_v29  ;;  %v15909_v12 = vpack.c.bf16 %v6307_v24, %v6298_v44  ;;  %v9288_v44 = vor.u32 %v11038_v32, %v9287_v17  ;;  %v19149_v32 = vld [vmem:[#allocation46_spill] sm:$0xff]  ;;  %v19150_v55 = vld [vmem:[#allocation25_spill] sm:$0xff] }
 0x8e6   :  { %v5089_v0 = vpop.f32.mrf.mxu2 }
 0x8e7   :  { %19148 = vst [vmem:[#allocation176_spill] sm:$0xff] %v15909_v12  ;;  %v5090_v7 = vadd.f32 %v5089_v0, %v4986_v47  ;;  %v11405_v47 = vld [vmem:[%s18545_s2] sm:$0xff]  ;;  %5630 = vmatpush.bf16.msra.mxu0 %v9288_v44  ;;  %v19152_v44 = vld [vmem:[#allocation27_spill] sm:$0xff] }
 0x8e8   :  { %v5188_v33 = vpop.f32.mrf.mxu3  ;;  %v15913_v43 = vpop.f32.mrf.mxu0  ;;  %v15924_v24 = vperm.slane %v11405_v47, 7  ;;  %v19151_v47 = vld [vmem:[#allocation26_spill] sm:$0xff] }
 0x8e9   :  { %v5189_v11 = vadd.f32 %v5188_v33, %v5085_v50 }
 0x8ea   :  { %v4997_v36 = vpop.f32.mrf.mxu1  ;;  %v5218_v0 = vadd.f32 %v15841_v51, %v15924_v24 }
 0x8eb   :  { %v4998_v25 = vadd.f32 %v4997_v36, %v4894_v10  ;;  %v6316_v12 = vmax.f32 %v5189_v11, 0.0 }
 0x8ee   :  { %v5091_v59 = vpop.f32.mrf.mxu2 }
 0x8ef   :  { %v5092_v41 = vadd.f32 %v5091_v59, %v4988_v39 }
 0x8f0   :  { %v5190_v50 = vpop.f32.mrf.mxu3  ;;  %v15928_v10 = vpop.f32.mrf.mxu0 }
 0x8f1   :  { %v5191_v33 = vadd.f32 %v5190_v50, %v5087_v3  ;;  %v5220_v3 = vadd.f32 %v15851_v19, %v15924_v24  ;;  %v19154_v19 = vld [vmem:[#allocation28_spill] sm:$0xff] }
 0x8f2   :  { %v5321_v36 = vpop.f32.mrf.mxu1 }
 0x8f3   :  { %v6325_v29 = vmax.f32 %v5191_v33, 0.0  ;;  %v5322_v17 = vadd.f32 %v5321_v36, %v5218_v0  ;;  %5281 = vmatmul.bf16.gmra.mxu0 %v19149_v32  ;;  %5454 = vmatmul.bf16.gmra.mxu2 %v19150_v55 }
 0x8f5   :  { %5360 = vmatmul.bf16.gmra.mxu1 %v19151_v47  ;;  %5553 = vmatmul.bf16.gmra.mxu3 %v19152_v44  ;;  %v15934_v39 = vpack.c.bf16 %v6325_v29, %v6316_v12  ;;  %v5223_v47 = vadd.f32 %v15855_v57, %v15924_v24 }
 0x8f6   :  { %v5094_v59 = vpop.f32.mrf.mxu2 }
 0x8f7   :  { %19153 = vst [vmem:[#allocation177_spill] sm:$0xff] %v15934_v39  ;;  %v5095_v6 = vadd.f32 %v5094_v59, %v4991_v30 }
 0x8f8   :  { %v5193_v51 = vpop.f32.mrf.mxu3  ;;  %v15938_v11 = vpop.f32.mrf.mxu0 }
 0x8f9   :  { %v5194_v50 = vadd.f32 %v5193_v51, %v5090_v7  ;;  %v19155_v7 = vld [vmem:[#allocation29_spill] sm:$0xff]  ;;  %v19156_v51 = vld [vmem:[#allocation30_spill] sm:$0xff] }
 0x8fa   :  { %v5323_v0 = vpop.f32.mrf.mxu1 }
 0x8fb   :  { %v5324_v33 = vadd.f32 %v5323_v0, %v5220_v3  ;;  %v6334_v30 = vmax.f32 %v5194_v50, 0.0 }
 0x8fe   :  { %v5096_v36 = vpop.f32.mrf.mxu2 }
 0x8ff   :  { %v5097_v32 = vadd.f32 %v5096_v36, %v4993_v2  ;;  %v9251_v36 = vld [vmem:[%s18544_s1 + $0x20] sm:$0xf] }
 0x900   :  { %v5195_v55 = vpop.f32.mrf.mxu3  ;;  %v15942_v29 = vpop.f32.mrf.mxu0 }
 0x901   :  { %v5196_v44 = vadd.f32 %v5195_v55, %v5092_v41  ;;  %v5225_v55 = vadd.f32 %v15865_v13, %v15924_v24  ;;  %v5228_v13 = vadd.f32 %v15869_v40, %v15924_v24 }
 0x902   :  { %v5326_v12 = vpop.f32.mrf.mxu1 }
 0x903   :  { %v6343_v59 = vmax.f32 %v5196_v44, 0.0  ;;  %v5327_v39 = vadd.f32 %v5326_v12, %v5223_v47  ;;  %5286 = vmatmul.bf16.gmra.mxu0 %v18828_v58  ;;  %5459 = vmatmul.bf16.gmra.mxu2 %v19154_v19  ;;  %v11029_v12 = vld [vmem:[%s18544_s1 + $0x40] sm:$0xf0]  ;;  %v19159_v19 = vld [vmem:[#allocation33_spill] sm:$0xff] }
 0x905   :  { %5365 = vmatmul.bf16.gmra.mxu1 %v19155_v7  ;;  %5558 = vmatmul.bf16.gmra.mxu3 %v19156_v51  ;;  %v15948_v2 = vpack.c.bf16 %v6343_v59, %v6334_v30  ;;  %v9252_v30 = vor.u32 %v11029_v12, %v9251_v36  ;;  %v19158_v7 = vld [vmem:[#allocation7_spill] sm:$0xff]  ;;  %v19160_v36 = vld [vmem:[#allocation34_spill] sm:$0xff] }
 0x906   :  { %v5099_v3 = vpop.f32.mrf.mxu2  ;;  %v19161_v12 = vld [vmem:[#allocation35_spill] sm:$0xff] }
 0x907   :  { %19157 = vst [vmem:[#allocation178_spill] sm:$0xff] %v15948_v2  ;;  %v5100_v0 = vadd.f32 %v5099_v3, %v4996_v38  ;;  %5631 = vmatpush.bf16.msra.mxu0 %v9252_v30 }
 0x908   :  { %v5198_v57 = vpop.f32.mrf.mxu3  ;;  %v15952_v50 = vpop.f32.mrf.mxu0 }
 0x909   :  { %v5199_v41 = vadd.f32 %v5198_v57, %v5095_v6 }
 0x90a   :  { %v5328_v47 = vpop.f32.mrf.mxu1 }
 0x90b   :  { %v15954_v44 = vadd.f32 %v5328_v47, %v5225_v55  ;;  %v6352_v47 = vmax.f32 %v5199_v41, 0.0 }
 0x90e   :  { %v5101_v38 = vpop.f32.mrf.mxu2 }
 0x90f   :  { %v5102_v59 = vadd.f32 %v5101_v38, %v4998_v25  ;;  %v5230_v38 = vadd.f32 %v15885_v5, %v15924_v24  ;;  %v19163_v5 = vld [vmem:[#allocation4_spill] sm:$0xff] }
 0x910   :  { %v5200_v3 = vpop.f32.mrf.mxu3  ;;  %v15964_v57 = vpop.f32.mrf.mxu0 }
 0x911   :  { %v5201_v6 = vadd.f32 %v5200_v3, %v5097_v32 }
 0x912   :  { %v5331_v55 = vpop.f32.mrf.mxu1 }
 0x913   :  { %v6361_v2 = vmax.f32 %v5201_v6, 0.0  ;;  %v15966_v51 = vadd.f32 %v5331_v55, %v5228_v13  ;;  %5291 = vmatmul.bf16.gmra.mxu0 %v19158_v7  ;;  %5464 = vmatmul.bf16.gmra.mxu2 %v19159_v19 }
 0x915   :  { %5370 = vmatmul.bf16.gmra.mxu1 %v19160_v36  ;;  %5563 = vmatmul.bf16.gmra.mxu3 %v19161_v12  ;;  %v15972_v25 = vpack.c.bf16 %v6361_v2, %v6352_v47  ;;  %v5233_v12 = vadd.f32 %v15889_v1, %v15924_v24 }
 0x916   :  { %v5425_v30 = vpop.f32.mrf.mxu2 }
 0x917   :  { %19162 = vst [vmem:[#allocation179_spill] sm:$0xff] %v15972_v25  ;;  %v5426_v32 = vadd.f32 %v5425_v30, %v5322_v17 }
 0x918   :  { %v5203_v40 = vpop.f32.mrf.mxu3  ;;  %v15976_v3 = vpop.f32.mrf.mxu0 }
 0x919   :  { %v5204_v41 = vadd.f32 %v5203_v40, %v5100_v0  ;;  %v19164_v0 = vld [vmem:[#allocation39_spill] sm:$0xff]  ;;  %v19165_v40 = vld [vmem:[#allocation40_spill] sm:$0xff] }
 0x91a   :  { %v5333_v13 = vpop.f32.mrf.mxu1 }
 0x91b   :  { %v15978_v6 = vadd.f32 %v5333_v13, %v5230_v38  ;;  %v6370_v17 = vmax.f32 %v5204_v41, 0.0  ;;  %v19166_v38 = vld [vmem:[#allocation41_spill] sm:$0xff] }
 0x91e   :  { %v5427_v55 = vpop.f32.mrf.mxu2 }
 0x91f   :  { %v5428_v7 = vadd.f32 %v5427_v55, %v5324_v33 }
 0x920   :  { %v5205_v19 = vpop.f32.mrf.mxu3  ;;  %v15982_v47 = vpop.f32.mrf.mxu0 }
 0x921   :  { %v5206_v2 = vadd.f32 %v5205_v19, %v5102_v59  ;;  %v5235_v59 = vadd.f32 %v15899_v56, %v15924_v24  ;;  %v11308_v56 = vld [vmem:[%s18544_s1 + $0x8f8] sm:$0xf0] }
 0x922   :  { %v5336_v25 = vpop.f32.mrf.mxu1 }
 0x923   :  { %v6379_v30 = vmax.f32 %v5206_v2, 0.0  ;;  %v15984_v36 = vadd.f32 %v5336_v25, %v5233_v12  ;;  %5296 = vmatmul.bf16.gmra.mxu0 %v19163_v5  ;;  %5469 = vmatmul.bf16.gmra.mxu2 %v19164_v0  ;;  %v10079_v2 = vld [vmem:[%s18544_s1 + $0x698] sm:$0xf] }
 0x925   :  { %5375 = vmatmul.bf16.gmra.mxu1 %v19165_v40  ;;  %5568 = vmatmul.bf16.gmra.mxu3 %v19166_v38  ;;  %v15990_v33 = vpack.c.bf16 %v6379_v30, %v6370_v17  ;;  %v11236_v17 = vld [vmem:[%s18544_s1 + $0x6b8] sm:$0xf0] }
 0x926   :  { %v5430_v13 = vpop.f32.mrf.mxu2  ;;  %v10080_v30 = vor.u32 %v11236_v17, %v10079_v2 }
 0x927   :  { %19167 = vst [vmem:[#allocation180_spill] sm:$0xff] %v15990_v33  ;;  %v5431_v1 = vadd.f32 %v5430_v13, %v5327_v39  ;;  %v10367_v39 = vld [vmem:[%s18544_s1 + $0x8d8] sm:$0xf]  ;;  %v5238_v33 = vadd.f32 %v15903_v63, %v15924_v24 }
 0x928   :  { %v5529_v19 = vpop.f32.mrf.mxu3  ;;  %v15994_v55 = vpop.f32.mrf.mxu0  ;;  %v10368_v13 = vor.u32 %v11308_v56, %v10367_v39  ;;  %5832 = vmatpush.bf16.msrb.mxu2 %v10080_v30  ;;  %v11316_v63 = vld [vmem:[%s18547_s3 + $0x38] sm:$0xff] }
 0x929   :  { %v5530_v41 = vadd.f32 %v5529_v19, %v5426_v32  ;;  %v9791_v32 = vld [vmem:[%s18544_s1 + $0x458] sm:$0xf]  ;;  %v11164_v19 = vld [vmem:[%s18544_s1 + $0x478] sm:$0xf0]  ;;  %7133 = vmatpush.bf16.msrb.mxu0 %v11316_v63 }
 0x92a   :  { %v5338_v12 = vpop.f32.mrf.mxu1  ;;  %5936 = vmatpush.bf16.msrb.mxu3 %v10368_v13 }
 0x92b   :  { %v15996_v25 = vadd.f32 %v5338_v12, %v5235_v59  ;;  %v9792_v59 = vor.u32 %v11164_v19, %v9791_v32  ;;  %v6047_v39 = vmax.f32 %v5530_v41, 0.0 }
 0x92d   :  { %5728 = vmatpush.bf16.msra.mxu1 %v9792_v59 }
 0x92e   :  { %v5432_v12 = vpop.f32.mrf.mxu2 }
 0x92f   :  { %v5433_v2 = vadd.f32 %v5432_v12, %v15954_v44  ;;  %v19169_v44 = vld [vmem:[#allocation44_spill] sm:$0xff] }
 0x930   :  { %v5531_v17 = vpop.f32.mrf.mxu3  ;;  %v16019_v40 = vpop.f32.mrf.mxu0 }
 0x931   :  { %v5532_v38 = vadd.f32 %v5531_v17, %v5428_v7 }
 0x932   :  { %v5341_v0 = vpop.f32.mrf.mxu1 }
 0x933   :  { %v6056_v56 = vmax.f32 %v5532_v38, 0.0  ;;  %v16021_v5 = vadd.f32 %v5341_v0, %v5238_v33  ;;  %5301 = vmatmul.bf16.gmra.mxu0 %v18777_v35  ;;  %5474 = vmatmul.bf16.gmra.mxu2 %v12215_v4  ;;  %v5240_v33 = vadd.f32 %v15913_v43, %v15924_v24  ;;  %v19170_v43 = vld [vmem:[#allocation11_spill] sm:$0xff] }
 0x935   :  { %v16025_v30 = vpack.c.bf16 %v6056_v56, %v6047_v39  ;;  %5380 = vmatmul.bf16.gmra.mxu1 %v18779_v8  ;;  %5573 = vmatmul.bf16.gmra.mxu3 %v19169_v44  ;;  %v5243_v39 = vadd.f32 %v15928_v10, %v15924_v24 }
 0x936   :  { %v5435_v7 = vpop.f32.mrf.mxu2 }
 0x937   :  { %19168 = vst [vmem:[#allocation181_spill] sm:$0xff] %v16025_v30  ;;  %v5436_v38 = vadd.f32 %v5435_v7, %v15966_v51 }
 0x938   :  { %v5534_v0 = vpop.f32.mrf.mxu3  ;;  %v16035_v32 = vpop.f32.mrf.mxu0 }
 0x939   :  { %v5535_v41 = vadd.f32 %v5534_v0, %v5431_v1  ;;  %v19171_v1 = vld [vmem:[#allocation47_spill] sm:$0xff]  ;;  %v19172_v0 = vld [vmem:[#allocation48_spill] sm:$0xff] }
 0x93a   :  { %v5343_v13 = vpop.f32.mrf.mxu1 }
 0x93b   :  { %v5344_v19 = vadd.f32 %v5343_v13, %v5240_v33  ;;  %v6065_v7 = vmax.f32 %v5535_v41, 0.0  ;;  %v19173_v33 = vld [vmem:[#allocation49_spill] sm:$0xff]  ;;  %v5245_v41 = vadd.f32 %v15938_v11, %v15924_v24 }
 0x93e   :  { %v5437_v59 = vpop.f32.mrf.mxu2 }
 0x93f   :  { %v5438_v12 = vadd.f32 %v5437_v59, %v15978_v6 }
 0x940   :  { %v5536_v17 = vpop.f32.mrf.mxu3  ;;  %v16040_v63 = vpop.f32.mrf.mxu0 }
 0x941   :  { %v5537_v56 = vadd.f32 %v5536_v17, %v5433_v2 }
 0x942   :  { %v5346_v51 = vpop.f32.mrf.mxu1 }
 0x943   :  { %v6074_v30 = vmax.f32 %v5537_v56, 0.0  ;;  %v16042_v44 = vadd.f32 %v5346_v51, %v5243_v39  ;;  %5306 = vmatmul.bf16.gmra.mxu0 %v19170_v43  ;;  %5479 = vmatmul.bf16.gmra.mxu2 %v19171_v1 }
 0x945   :  { %5385 = vmatmul.bf16.gmra.mxu1 %v19172_v0  ;;  %5578 = vmatmul.bf16.gmra.mxu3 %v19173_v33  ;;  %v16048_v6 = vpack.c.bf16 %v6074_v30, %v6065_v7  ;;  %v5248_v30 = vadd.f32 %v15942_v29, %v15924_v24 }
 0x946   :  { %v5440_v13 = vpop.f32.mrf.mxu2 }
 0x947   :  { %19174 = vst [vmem:[#allocation182_spill] sm:$0xff] %v16048_v6  ;;  %v5441_v10 = vadd.f32 %v5440_v13, %v15984_v36 }
 0x948   :  { %v5539_v2 = vpop.f32.mrf.mxu3  ;;  %v16053_v17 = vpop.f32.mrf.mxu0 }
 0x949   :  { %v5540_v59 = vadd.f32 %v5539_v2, %v5436_v38  ;;  %v10043_v38 = vld [vmem:[%s18544_s1 + $0x650] sm:$0xf]  ;;  %v19175_v2 = vld [vmem:[#allocation51_spill] sm:$0xff] }
 0x94a   :  { %v5348_v39 = vpop.f32.mrf.mxu1 }
 0x94b   :  { %v16055_v56 = vadd.f32 %v5348_v39, %v5245_v41  ;;  %v6083_v13 = vmax.f32 %v5540_v59, 0.0  ;;  %v19176_v41 = vld [vmem:[#allocation2_spill] sm:$0xff]  ;;  %v19177_v59 = vld [vmem:[#allocation52_spill] sm:$0xff]  ;;  %v19178_v39 = vld [vmem:[#allocation53_spill] sm:$0xff] }
 0x94e   :  { %v5442_v51 = vpop.f32.mrf.mxu2 }
 0x94f   :  { %v5443_v0 = vadd.f32 %v5442_v51, %v15996_v25  ;;  %v11227_v25 = vld [vmem:[%s18544_s1 + $0x670] sm:$0xf0] }
 0x950   :  { %v5541_v1 = vpop.f32.mrf.mxu3  ;;  %v16060_v6 = vpop.f32.mrf.mxu0  ;;  %v10044_v29 = vor.u32 %v11227_v25, %v10043_v38 }
 0x951   :  { %v5542_v7 = vadd.f32 %v5541_v1, %v5438_v12  ;;  %v10331_v12 = vld [vmem:[%s18544_s1 + $0x890] sm:$0xf]  ;;  %v11299_v1 = vld [vmem:[%s18544_s1 + $0x8b0] sm:$0xf0] }
 0x952   :  { %v5351_v36 = vpop.f32.mrf.mxu1  ;;  %v10332_v51 = vor.u32 %v11299_v1, %v10331_v12  ;;  %5833 = vmatpush.bf16.msrb.mxu2 %v10044_v29  ;;  %v5250_v12 = vadd.f32 %v15952_v50, %v15924_v24 }
 0x953   :  { %v6092_v33 = vmax.f32 %v5542_v7, 0.0  ;;  %v16062_v11 = vadd.f32 %v5351_v36, %v5248_v30  ;;  %5484 = vmatmul.bf16.gmra.mxu2 %v19175_v2  ;;  %5632 = vmatmul.bf16.vlgmr.msra.gmra.mxu0 %v19176_v41  ;;  %v9755_v30 = vld [vmem:[%s18544_s1 + $0x410] sm:$0xf]  ;;  %v11155_v7 = vld [vmem:[%s18544_s1 + $0x430] sm:$0xf0] }
 0x954   :  { %v9756_v38 = vor.u32 %v11155_v7, %v9755_v30  ;;  %5937 = vmatpush.bf16.msrb.mxu3 %v10332_v51 }
 0x955   :  { %5390 = vmatmul.bf16.gmra.mxu1 %v19177_v59  ;;  %5583 = vmatmul.bf16.gmra.mxu3 %v19178_v39  ;;  %v16086_v36 = vpack.c.bf16 %v6092_v33, %v6083_v13  ;;  %v11315_v33 = vld [vmem:[%s18547_s3 + $0x30] sm:$0xff] }
 0x956   :  { %v5445_v25 = vpop.f32.mrf.mxu2  ;;  %5729 = vmatpush.bf16.msra.mxu1 %v9756_v38  ;;  %7134 = vmatpush.bf16.msrb.mxu0 %v11315_v33 }
 0x957   :  { %19179 = vst [vmem:[#allocation2_spill] sm:$0xff] %v16086_v36  ;;  %v5446_v41 = vadd.f32 %v5445_v25, %v16021_v5  ;;  %v5253_v5 = vadd.f32 %v15964_v57, %v15924_v24  ;;  %v5255_v25 = vadd.f32 %v15976_v3, %v15924_v24  ;;  %v9683_v3 = vld [vmem:[%s18544_s1 + $0x380] sm:$0xf]  ;;  %v10223_v36 = vld [vmem:[%s18544_s1 + $0x7b8] sm:$0xf] }
 0x958   :  { %v5544_v59 = vpop.f32.mrf.mxu3  ;;  %v16091_v39 = vpop.f32.mrf.mxu0 }
 0x959   :  { %v5545_v1 = vadd.f32 %v5544_v59, %v5441_v10 }
 0x95a   :  { %v5353_v2 = vpop.f32.mrf.mxu1 }
 0x95b   :  { %v16093_v43 = vadd.f32 %v5353_v2, %v5250_v12  ;;  %v6101_v10 = vmax.f32 %v5545_v1, 0.0 }
 0x95e   :  { %v5447_v13 = vpop.f32.mrf.mxu2 }
 0x95f   :  { %v5448_v29 = vadd.f32 %v5447_v13, %v5344_v19 }
 0x960   :  { %v5546_v51 = vpop.f32.mrf.mxu3  ;;  %v16100_v7 = vpop.f32.mrf.mxu0 }
 0x961   :  { %v5547_v30 = vadd.f32 %v5546_v51, %v5443_v0  ;;  %v11146_v51 = vld [vmem:[%s18544_s1 + $0x3e8] sm:$0xf0] }
 0x962   :  { %v5356_v50 = vpop.f32.mrf.mxu1 }
 0x963   :  { %v6110_v59 = vmax.f32 %v5547_v30, 0.0  ;;  %v16102_v38 = vadd.f32 %v5356_v50, %v5253_v5  ;;  %5489 = vmatmul.bf16.gmra.mxu2 %v18790_v20  ;;  %5637 = vmatmul.bf16.gmra.mxu0 %v18855_v18  ;;  %v9719_v18 = vld [vmem:[%s18544_s1 + $0x3c8] sm:$0xf] }
 0x964   :  { %v9720_v5 = vor.u32 %v11146_v51, %v9719_v18 }
 0x965   :  { %5395 = vmatmul.bf16.gmra.mxu1 %v18920_v23  ;;  %5588 = vmatmul.bf16.gmra.mxu3 %v18985_v21  ;;  %v16108_v19 = vpack.c.bf16 %v6110_v59, %v6101_v10  ;;  %v5258_v59 = vadd.f32 %v15982_v47, %v15924_v24 }
 0x966   :  { %v5450_v2 = vpop.f32.mrf.mxu2  ;;  %5730 = vmatpush.bf16.msra.mxu1 %v9720_v5  ;;  %v9647_v5 = vld [vmem:[%s18544_s1 + $0x338] sm:$0xf] }
 0x967   :  { %19180 = vst [vmem:[#allocation183_spill] sm:$0xff] %v16108_v19  ;;  %v5451_v57 = vadd.f32 %v5450_v2, %v16042_v44  ;;  %v9935_v19 = vld [vmem:[%s18544_s1 + $0x578] sm:$0xf] }
 0x968   :  { %v5549_v0 = vpop.f32.mrf.mxu3  ;;  %v16113_v1 = vpop.f32.mrf.mxu0 }
 0x969   :  { %v5550_v12 = vadd.f32 %v5549_v0, %v5446_v41  ;;  %v11137_v41 = vld [vmem:[%s18544_s1 + $0x3a0] sm:$0xf0] }
 0x96a   :  { %v5358_v33 = vpop.f32.mrf.mxu1  ;;  %v9684_v10 = vor.u32 %v11137_v41, %v9683_v3 }
 0x96b   :  { %v16115_v13 = vadd.f32 %v5358_v33, %v5255_v25  ;;  %v6119_v33 = vmax.f32 %v5550_v12, 0.0  ;;  %v10007_v12 = vld [vmem:[%s18544_s1 + $0x608] sm:$0xf] }
 0x96c   :  { %5731 = vmatpush.bf16.msra.mxu1 %v9684_v10  ;;  %v11119_v10 = vld [vmem:[%s18544_s1 + $0x310] sm:$0xf0] }
 0x96e   :  { %v5452_v44 = vpop.f32.mrf.mxu2 }
 0x96f   :  { %v5453_v30 = vadd.f32 %v5452_v44, %v16055_v56  ;;  %v11128_v56 = vld [vmem:[%s18544_s1 + $0x358] sm:$0xf0]  ;;  %v11218_v44 = vld [vmem:[%s18544_s1 + $0x628] sm:$0xf0] }
 0x970   :  { %v5551_v50 = vpop.f32.mrf.mxu3  ;;  %v16132_v0 = vpop.f32.mrf.mxu0  ;;  %v9648_v47 = vor.u32 %v11128_v56, %v9647_v5  ;;  %v10008_v41 = vor.u32 %v11218_v44, %v10007_v12  ;;  %v10295_v12 = vld [vmem:[%s18544_s1 + $0x848] sm:$0xf] }
 0x971   :  { %v5552_v2 = vadd.f32 %v5551_v50, %v5448_v29  ;;  %v19181_v29 = vld [vmem:[#allocation60_spill] sm:$0xff] }
 0x972   :  { %v5361_v25 = vpop.f32.mrf.mxu1  ;;  %5732 = vmatpush.bf16.msra.mxu1 %v9648_v47  ;;  %5834 = vmatpush.bf16.msrb.mxu2 %v10008_v41 }
 0x973   :  { %v6128_v18 = vmax.f32 %v5552_v2, 0.0  ;;  %v16134_v51 = vadd.f32 %v5361_v25, %v5258_v59  ;;  %5494 = vmatmul.bf16.gmra.mxu2 %v12417_v61  ;;  %5642 = vmatmul.bf16.gmra.mxu0 %v19051_v15  ;;  %v9611_v15 = vld [vmem:[%s18544_s1 + $0x2f0] sm:$0xf] }
 0x974   :  { %v9612_v25 = vor.u32 %v11119_v10, %v9611_v15  ;;  %v9539_v15 = vld [vmem:[%s18544_s1 + $0x260] sm:$0xf]  ;;  %v11101_v10 = vld [vmem:[%s18544_s1 + $0x280] sm:$0xf0] }
 0x975   :  { %5400 = vmatmul.bf16.gmra.mxu1 %v19116_v54  ;;  %5593 = vmatmul.bf16.gmra.mxu3 %v19181_v29  ;;  %v16152_v3 = vpack.c.bf16 %v6128_v18, %v6119_v33  ;;  %v5260_v33 = vadd.f32 %v15994_v55, %v15924_v24  ;;  %v9575_v55 = vld [vmem:[%s18544_s1 + $0x2a8] sm:$0xf] }
 0x976   :  { %v5455_v50 = vpop.f32.mrf.mxu2  ;;  %5733 = vmatpush.bf16.msra.mxu1 %v9612_v25 }
 0x977   :  { %19182 = vst [vmem:[#allocation60_spill] sm:$0xff] %v16152_v3  ;;  %v5456_v59 = vadd.f32 %v5455_v50, %v16062_v11  ;;  %v11290_v11 = vld [vmem:[%s18544_s1 + $0x868] sm:$0xf0] }
 0x978   :  { %v5554_v2 = vpop.f32.mrf.mxu3  ;;  %v16163_v5 = vpop.f32.mrf.mxu0  ;;  %v10296_v44 = vor.u32 %v11290_v11, %v10295_v12  ;;  %v11314_v3 = vld [vmem:[%s18547_s3 + $0x28] sm:$0xff] }
 0x979   :  { %v5555_v18 = vadd.f32 %v5554_v2, %v5451_v57  ;;  %v11110_v57 = vld [vmem:[%s18544_s1 + $0x2c8] sm:$0xf0]  ;;  %7135 = vmatpush.bf16.msrb.mxu0 %v11314_v3  ;;  %v11209_v3 = vld [vmem:[%s18544_s1 + $0x5e0] sm:$0xf0] }
 0x97a   :  { %v5363_v56 = vpop.f32.mrf.mxu1  ;;  %v9576_v41 = vor.u32 %v11110_v57, %v9575_v55  ;;  %5938 = vmatpush.bf16.msrb.mxu3 %v10296_v44 }
 0x97b   :  { %v16165_v47 = vadd.f32 %v5363_v56, %v5260_v33  ;;  %v9540_v33 = vor.u32 %v11101_v10, %v9539_v15  ;;  %v5263_v56 = vadd.f32 %v16019_v40, %v15924_v24  ;;  %v6137_v55 = vmax.f32 %v5555_v18, 0.0  ;;  %v19184_v40 = vld [vmem:[#allocation63_spill] sm:$0xff] }
 0x97c   :  { %5734 = vmatpush.bf16.msra.mxu1 %v9576_v41  ;;  %v5265_v10 = vadd.f32 %v16035_v32, %v15924_v24  ;;  %v5268_v32 = vadd.f32 %v16040_v63, %v15924_v24 }
 0x97e   :  { %v5457_v50 = vpop.f32.mrf.mxu2 }
 0x97f   :  { %v5458_v2 = vadd.f32 %v5457_v50, %v16093_v43  ;;  %v19183_v43 = vld [vmem:[#allocation12_spill] sm:$0xff] }
 0x980   :  { %v5556_v25 = vpop.f32.mrf.mxu3  ;;  %v16188_v11 = vpop.f32.mrf.mxu0  ;;  %5735 = vmatpush.bf16.msra.mxu1 %v9540_v33 }
 0x981   :  { %v5557_v12 = vadd.f32 %v5556_v25, %v5453_v30 }
 0x982   :  { %v5366_v44 = vpop.f32.mrf.mxu1 }
 0x983   :  { %v6146_v57 = vmax.f32 %v5557_v12, 0.0  ;;  %v16190_v41 = vadd.f32 %v5366_v44, %v5263_v56  ;;  %5499 = vmatmul.bf16.gmra.mxu2 %v12491_v22  ;;  %5647 = vmatmul.bf16.gmra.mxu0 %v19183_v43 }
 0x985   :  { %5405 = vmatmul.bf16.gmra.mxu1 %v18799_v49  ;;  %5598 = vmatmul.bf16.gmra.mxu3 %v19184_v40  ;;  %v16199_v30 = vpack.c.bf16 %v6146_v57, %v6137_v55  ;;  %v9971_v55 = vld [vmem:[%s18544_s1 + $0x5c0] sm:$0xf] }
 0x986   :  { %v5460_v18 = vpop.f32.mrf.mxu2  ;;  %v9972_v43 = vor.u32 %v11209_v3, %v9971_v55  ;;  %v9899_v3 = vld [vmem:[%s18544_s1 + $0x530] sm:$0xf] }
 0x987   :  { %19185 = vst [vmem:[#allocation12_spill] sm:$0xff] %v16199_v30  ;;  %v5461_v50 = vadd.f32 %v5460_v18, %v16102_v38 }
 0x988   :  { %v5559_v15 = vpop.f32.mrf.mxu3  ;;  %v16204_v33 = vpop.f32.mrf.mxu0  ;;  %5835 = vmatpush.bf16.msrb.mxu2 %v9972_v43 }
 0x989   :  { %v5560_v25 = vadd.f32 %v5559_v15, %v5456_v59 }
 0x98a   :  { %v5368_v56 = vpop.f32.mrf.mxu1 }
 0x98b   :  { %v16206_v12 = vadd.f32 %v5368_v56, %v5265_v10  ;;  %v6155_v10 = vmax.f32 %v5560_v25, 0.0 }
 0x98e   :  { %v5462_v44 = vpop.f32.mrf.mxu2 }
 0x98f   :  { %v5463_v38 = vadd.f32 %v5462_v44, %v16115_v13  ;;  %v11200_v13 = vld [vmem:[%s18544_s1 + $0x598] sm:$0xf0]  ;;  %v19187_v44 = vld [vmem:[#allocation66_spill] sm:$0xff] }
 0x990   :  { %v5561_v57 = vpop.f32.mrf.mxu3  ;;  %v16217_v18 = vpop.f32.mrf.mxu0  ;;  %v9936_v63 = vor.u32 %v11200_v13, %v9935_v19  ;;  %v9863_v13 = vld [vmem:[%s18544_s1 + $0x4e8] sm:$0xf] }
 0x991   :  { %v5562_v59 = vadd.f32 %v5561_v57, %v5458_v2  ;;  %v19186_v2 = vld [vmem:[#allocation65_spill] sm:$0xff]  ;;  %v11191_v57 = vld [vmem:[%s18544_s1 + $0x550] sm:$0xf0] }
 0x992   :  { %v5371_v15 = vpop.f32.mrf.mxu1  ;;  %5836 = vmatpush.bf16.msrb.mxu2 %v9936_v63  ;;  %v9900_v19 = vor.u32 %v11191_v57, %v9899_v3  ;;  %v9827_v57 = vld [vmem:[%s18544_s1 + $0x4a0] sm:$0xf] }
 0x993   :  { %v6164_v56 = vmax.f32 %v5562_v59, 0.0  ;;  %v16219_v30 = vadd.f32 %v5371_v15, %v5268_v32  ;;  %5504 = vmatmul.bf16.gmra.mxu2 %v12541_v62  ;;  %5652 = vmatmul.bf16.gmra.mxu0 %v11830_v42  ;;  %v5270_v32 = vadd.f32 %v16053_v17, %v15924_v24  ;;  %v10259_v17 = vld [vmem:[%s18544_s1 + $0x800] sm:$0xf] }
 0x995   :  { %5410 = vmatmul.bf16.gmra.mxu1 %v19186_v2  ;;  %5603 = vmatmul.bf16.gmra.mxu3 %v19187_v44  ;;  %v16231_v25 = vpack.c.bf16 %v6164_v56, %v6155_v10  ;;  %v19195_v44 = vld [vmem:[#allocation71_spill] sm:$0xff] }
 0x996   :  { %v5465_v55 = vpop.f32.mrf.mxu2  ;;  %5837 = vmatpush.bf16.msrb.mxu2 %v9900_v19 }
 0x997   :  { %19188 = vst [vmem:[#allocation63_spill] sm:$0xff] %v16231_v25  ;;  %v5466_v43 = vadd.f32 %v5465_v55, %v16134_v51  ;;  %v11182_v51 = vld [vmem:[%s18544_s1 + $0x508] sm:$0xf0] }
 0x998   :  { %v5564_v42 = vpop.f32.mrf.mxu3  ;;  %v16242_v15 = vpop.f32.mrf.mxu0  ;;  %v9864_v63 = vor.u32 %v11182_v51, %v9863_v13  ;;  %v5273_v13 = vadd.f32 %v16060_v6, %v15924_v24  ;;  %v19190_v6 = vld [vmem:[#allocation14_spill] sm:$0xff] }
 0x999   :  { %v5565_v59 = vadd.f32 %v5564_v42, %v5461_v50  ;;  %v11281_v50 = vld [vmem:[%s18544_s1 + $0x820] sm:$0xf0] }
 0x99a   :  { %v5373_v10 = vpop.f32.mrf.mxu1  ;;  %v10260_v55 = vor.u32 %v11281_v50, %v10259_v17  ;;  %5838 = vmatpush.bf16.msrb.mxu2 %v9864_v63  ;;  %v11173_v42 = vld [vmem:[%s18544_s1 + $0x4c0] sm:$0xf0] }
 0x99b   :  { %v16244_v56 = vadd.f32 %v5373_v10, %v5270_v32  ;;  %v9828_v10 = vor.u32 %v11173_v42, %v9827_v57  ;;  %v6173_v50 = vmax.f32 %v5565_v59, 0.0  ;;  %v19191_v57 = vld [vmem:[#allocation69_spill] sm:$0xff]  ;;  %v11313_v59 = vld [vmem:[%s18547_s3 + $0x20] sm:$0xff] }
 0x99c   :  { %5939 = vmatpush.bf16.msrb.mxu3 %v10260_v55  ;;  %v19192_v42 = vld [vmem:[#allocation5_spill] sm:$0xff]  ;;  %7136 = vmatpush.bf16.msrb.mxu0 %v11313_v59  ;;  %v10151_v59 = vld [vmem:[%s18544_s1 + $0x728] sm:$0xf] }
 0x99e   :  { %v5467_v3 = vpop.f32.mrf.mxu2  ;;  %5839 = vmatpush.bf16.msrb.mxu2 %v9828_v10 }
 0x99f   :  { %v5468_v19 = vadd.f32 %v5467_v3, %v16165_v47  ;;  %v11272_v47 = vld [vmem:[%s18544_s1 + $0x7d8] sm:$0xf0]  ;;  %v19189_v3 = vld [vmem:[#allocation68_spill] sm:$0xff] }
 0x9a0   :  { %v5566_v32 = vpop.f32.mrf.mxu3  ;;  %v16267_v17 = vpop.f32.mrf.mxu0 }
 0x9a1   :  { %v5567_v51 = vadd.f32 %v5566_v32, %v5463_v38  ;;  %v10224_v38 = vor.u32 %v11272_v47, %v10223_v36  ;;  %v11263_v36 = vld [vmem:[%s18544_s1 + $0x790] sm:$0xf0] }
 0x9a2   :  { %v5376_v63 = vpop.f32.mrf.mxu1 }
 0x9a3   :  { %v6182_v55 = vmax.f32 %v5567_v51, 0.0  ;;  %v16269_v25 = vadd.f32 %v5376_v63, %v5273_v13  ;;  %5509 = vmatmul.bf16.gmra.mxu2 %v19189_v3  ;;  %5657 = vmatmul.bf16.gmra.mxu0 %v19190_v6  ;;  %v10187_v13 = vld [vmem:[%s18544_s1 + $0x770] sm:$0xf]  ;;  %v5275_v6 = vadd.f32 %v16091_v39, %v15924_v24  ;;  %v10115_v39 = vld [vmem:[%s18544_s1 + $0x6e0] sm:$0xf] }
 0x9a4   :  { %5940 = vmatpush.bf16.msrb.mxu3 %v10224_v38  ;;  %v10188_v47 = vor.u32 %v11263_v36, %v10187_v13  ;;  %v19194_v3 = vld [vmem:[#allocation18_spill] sm:$0xff] }
 0x9a5   :  { %5608 = vmatmul.bf16.gmra.mxu3 %v19191_v57  ;;  %5736 = vmatmul.bf16.vlgmr.msra.gmra.mxu1 %v19192_v42  ;;  %v16284_v32 = vpack.c.bf16 %v6182_v55, %v6173_v50 }
 0x9a6   :  { %v5470_v10 = vpop.f32.mrf.mxu2 }
 0x9a7   :  { %19193 = vst [vmem:[#allocation65_spill] sm:$0xff] %v16284_v32  ;;  %v5471_v51 = vadd.f32 %v5470_v10, %v16190_v41  ;;  %v11254_v32 = vld [vmem:[%s18544_s1 + $0x748] sm:$0xf0] }
 0x9a8   :  { %v5569_v63 = vpop.f32.mrf.mxu3  ;;  %v16295_v55 = vpop.f32.mrf.mxu0  ;;  %5941 = vmatpush.bf16.msrb.mxu3 %v10188_v47  ;;  %v10152_v41 = vor.u32 %v11254_v32, %v10151_v59  ;;  %v5278_v47 = vadd.f32 %v16100_v7, %v15924_v24 }
 0x9a9   :  { %v5570_v50 = vadd.f32 %v5569_v63, %v5466_v43  ;;  %v11245_v43 = vld [vmem:[%s18544_s1 + $0x700] sm:$0xf0] }
 0x9aa   :  { %v5378_v38 = vpop.f32.mrf.mxu1  ;;  %v10116_v63 = vor.u32 %v11245_v43, %v10115_v39  ;;  %v5280_v43 = vadd.f32 %v16113_v1, %v15924_v24 }
 0x9ab   :  { %v5379_v42 = vadd.f32 %v5378_v38, %v5275_v6  ;;  %v6191_v59 = vmax.f32 %v5570_v50, 0.0 }
 0x9ac   :  { %5942 = vmatpush.bf16.msrb.mxu3 %v10152_v41 }
 0x9ae   :  { %v5472_v10 = vpop.f32.mrf.mxu2 }
 0x9af   :  { %v5473_v13 = vadd.f32 %v5472_v10, %v16206_v12  ;;  %v19196_v12 = vld [vmem:[#allocation9_spill] sm:$0xff] }
 0x9b0   :  { %v5571_v36 = vpop.f32.mrf.mxu3  ;;  %v16312_v38 = vpop.f32.mrf.mxu0  ;;  %5943 = vmatpush.bf16.msrb.mxu3 %v10116_v63 }
 0x9b1   :  { %v5572_v6 = vadd.f32 %v5571_v36, %v5468_v19 }
 0x9b2   :  { %v5381_v32 = vpop.f32.mrf.mxu1 }
 0x9b3   :  { %v6200_v41 = vmax.f32 %v5572_v6, 0.0  ;;  %v5382_v57 = vadd.f32 %v5381_v32, %v5278_v47  ;;  %5514 = vmatmul.bf16.gmra.mxu2 %v12663_v48  ;;  %5662 = vmatmul.bf16.gmra.mxu0 %v19194_v3 }
 0x9b5   :  { %5613 = vmatmul.bf16.gmra.mxu3 %v19195_v44  ;;  %5741 = vmatmul.bf16.gmra.mxu1 %v19196_v12  ;;  %v16318_v10 = vpack.c.bf16 %v6200_v41, %v6191_v59  ;;  %v5283_v59 = vadd.f32 %v16132_v0, %v15924_v24 }
 0x9b6   :  { %v5475_v39 = vpop.f32.mrf.mxu2 }
 0x9b7   :  { %19197 = vst [vmem:[#allocation14_spill] sm:$0xff] %v16318_v10  ;;  %v5476_v7 = vadd.f32 %v5475_v39, %v16219_v30 }
 0x9b8   :  { %v5574_v19 = vpop.f32.mrf.mxu3  ;;  %v16323_v36 = vpop.f32.mrf.mxu0 }
 0x9b9   :  { %v5575_v50 = vadd.f32 %v5574_v19, %v5471_v51 }
 0x9ba   :  { %v5383_v63 = vpop.f32.mrf.mxu1 }
 0x9bb   :  { %v5384_v47 = vadd.f32 %v5383_v63, %v5280_v43  ;;  %v6209_v39 = vmax.f32 %v5575_v50, 0.0 }
 0x9be   :  { %v5477_v6 = vpop.f32.mrf.mxu2 }
 0x9bf   :  { %v5478_v3 = vadd.f32 %v5477_v6, %v16244_v56 }
 0x9c0   :  { %v5576_v32 = vpop.f32.mrf.mxu3  ;;  %v16328_v12 = vpop.f32.mrf.mxu0 }
 0x9c1   :  { %v5577_v41 = vadd.f32 %v5576_v32, %v5473_v13  ;;  %v5285_v13 = vadd.f32 %v16163_v5, %v15924_v24 }
 0x9c2   :  { %v5386_v30 = vpop.f32.mrf.mxu1 }
 0x9c3   :  { %v6218_v10 = vmax.f32 %v5577_v41, 0.0  ;;  %v5387_v44 = vadd.f32 %v5386_v30, %v5283_v59  ;;  %5667 = vmatmul.bf16.gmra.mxu0 %v11944_v31  ;;  %5840 = vmatmul.bf16.vlgmr.msrb.gmra.mxu2 %v11754_v14  ;;  %v11312_v14 = vld [vmem:[%s18547_s3 + $0x18] sm:$0xff] }
 0x9c4   :  { %7137 = vmatpush.bf16.msrb.mxu0 %v11312_v14 }
 0x9c5   :  { %5618 = vmatmul.bf16.gmra.mxu3 %v12683_v34  ;;  %5746 = vmatmul.bf16.gmra.mxu1 %v11758_v16  ;;  %v16334_v1 = vpack.c.bf16 %v6218_v10, %v6209_v39 }
 0x9c6   :  { %v5480_v56 = vpop.f32.mrf.mxu2 }
 0x9c7   :  { %v5481_v0 = vadd.f32 %v5480_v56, %v16269_v25  ;;  %v5288_v25 = vadd.f32 %v16188_v11, %v15924_v24 }
 0x9c8   :  { %v5579_v51 = vpop.f32.mrf.mxu3  ;;  %v16339_v43 = vpop.f32.mrf.mxu0 }
 0x9c9   :  { %v5580_v19 = vadd.f32 %v5579_v51, %v5476_v7 }
 0x9ca   :  { %v5388_v50 = vpop.f32.mrf.mxu1 }
 0x9cb   :  { %v5389_v31 = vadd.f32 %v5388_v50, %v5285_v13  ;;  %v6227_v7 = vmax.f32 %v5580_v19, 0.0 }
 0x9ce   :  { %v5482_v16 = vpop.f32.mrf.mxu2 }
 0x9cf   :  { %v5483_v10 = vadd.f32 %v5482_v16, %v5379_v42 }
 0x9d0   :  { %v5581_v63 = vpop.f32.mrf.mxu3  ;;  %v16346_v32 = vpop.f32.mrf.mxu0 }
 0x9d1   :  { %v5582_v6 = vadd.f32 %v5581_v63, %v5478_v3  ;;  %v5290_v3 = vadd.f32 %v16204_v33, %v15924_v24  ;;  %v19198_v33 = vld [vmem:[#allocation13_spill] sm:$0xff] }
 0x9d2   :  { %v5391_v5 = vpop.f32.mrf.mxu1 }
 0x9d3   :  { %v6236_v59 = vmax.f32 %v5582_v6, 0.0  ;;  %v5392_v41 = vadd.f32 %v5391_v5, %v5288_v25  ;;  %5672 = vmatmul.bf16.gmra.mxu0 %v11991_v60  ;;  %5845 = vmatmul.bf16.gmra.mxu2 %v11790_v26 }
 0x9d5   :  { %5751 = vmatmul.bf16.gmra.mxu1 %v11792_v27  ;;  %5944 = vmatmul.bf16.vlgmr.msrb.gmra.mxu3 %v11794_v28  ;;  %v16352_v42 = vpack.c.bf16 %v6236_v59, %v6227_v7  ;;  %v5293_v27 = vadd.f32 %v16217_v18, %v15924_v24 }
 0x9d6   :  { %v5485_v30 = vpop.f32.mrf.mxu2 }
 0x9d7   :  { %v5486_v39 = vadd.f32 %v5485_v30, %v5382_v57 }
 0x9d8   :  { %v5584_v11 = vpop.f32.mrf.mxu3  ;;  %v16356_v51 = vpop.f32.mrf.mxu0 }
 0x9d9   :  { %v5585_v56 = vadd.f32 %v5584_v11, %v5481_v0 }
 0x9da   :  { %v5393_v13 = vpop.f32.mrf.mxu1 }
 0x9db   :  { %v5394_v19 = vadd.f32 %v5393_v13, %v5290_v3  ;;  %v6245_v57 = vmax.f32 %v5585_v56, 0.0 }
 0x9de   :  { %v5487_v60 = vpop.f32.mrf.mxu2 }
 0x9df   :  { %v5488_v50 = vadd.f32 %v5487_v60, %v5384_v47 }
 0x9e0   :  { %v5586_v26 = vpop.f32.mrf.mxu3  ;;  %v16360_v14 = vpop.f32.mrf.mxu0 }
 0x9e1   :  { %v5587_v28 = vadd.f32 %v5586_v26, %v5483_v10  ;;  %v5295_v10 = vadd.f32 %v16242_v15, %v15924_v24  ;;  %v11311_v15 = vld [vmem:[%s18547_s3 + $0x10] sm:$0xff] }
 0x9e2   :  { %v5396_v16 = vpop.f32.mrf.mxu1  ;;  %7138 = vmatpush.bf16.msrb.mxu0 %v11311_v15 }
 0x9e3   :  { %v6254_v63 = vmax.f32 %v5587_v28, 0.0  ;;  %v5397_v25 = vadd.f32 %v5396_v16, %v5293_v27  ;;  %5677 = vmatmul.bf16.gmra.mxu0 %v12047_v52  ;;  %5850 = vmatmul.bf16.gmra.mxu2 %v11832_v45  ;;  %v19200_v27 = vld [vmem:[#allocation15_spill] sm:$0xff] }
 0x9e5   :  { %5756 = vmatmul.bf16.gmra.mxu1 %v11834_v46  ;;  %5949 = vmatmul.bf16.gmra.mxu3 %v19198_v33  ;;  %v16366_v47 = vpack.c.bf16 %v6254_v63, %v6245_v57  ;;  %v5298_v46 = vadd.f32 %v16267_v17, %v15924_v24  ;;  %v5300_v57 = vadd.f32 %v16295_v55, %v15924_v24  ;;  %v19202_v55 = vld [vmem:[#allocation19_spill] sm:$0xff] }
 0x9e6   :  { %v5490_v0 = vpop.f32.mrf.mxu2 }
 0x9e7   :  { %v5491_v6 = vadd.f32 %v5490_v0, %v5387_v44 }
 0x9e8   :  { %v5589_v18 = vpop.f32.mrf.mxu3  ;;  %v16370_v7 = vpop.f32.mrf.mxu0 }
 0x9e9   :  { %v5590_v5 = vadd.f32 %v5589_v18, %v5486_v39  ;;  %v19199_v39 = vld [vmem:[#allocation32_spill] sm:$0xff] }
 0x9ea   :  { %v5398_v59 = vpop.f32.mrf.mxu1 }
 0x9eb   :  { %v5399_v30 = vadd.f32 %v5398_v59, %v5295_v10  ;;  %v6263_v44 = vmax.f32 %v5590_v5, 0.0 }
 0x9ee   :  { %v5492_v52 = vpop.f32.mrf.mxu2 }
 0x9ef   :  { %v5493_v11 = vadd.f32 %v5492_v52, %v5389_v31  ;;  %v19201_v31 = vld [vmem:[#allocation17_spill] sm:$0xff] }
 0x9f0   :  { %v5591_v45 = vpop.f32.mrf.mxu3  ;;  %v16374_v56 = vpop.f32.mrf.mxu0 }
 0x9f1   :  { %v5592_v3 = vadd.f32 %v5591_v45, %v5488_v50 }
 0x9f2   :  { %v5401_v13 = vpop.f32.mrf.mxu1 }
 0x9f3   :  { %v6272_v60 = vmax.f32 %v5592_v3, 0.0  ;;  %v5402_v26 = vadd.f32 %v5401_v13, %v5298_v46  ;;  %5682 = vmatmul.bf16.gmra.mxu0 %v19199_v39  ;;  %5855 = vmatmul.bf16.gmra.mxu2 %v19200_v27 }
 0x9f5   :  { %5761 = vmatmul.bf16.gmra.mxu1 %v19008_v53  ;;  %5954 = vmatmul.bf16.gmra.mxu3 %v19201_v31  ;;  %v16383_v17 = vpack.c.bf16 %v6272_v60, %v6263_v44  ;;  %v5303_v53 = vadd.f32 %v16312_v38, %v15924_v24  ;;  %v19204_v44 = vld [vmem:[#allocation21_spill] sm:$0xff] }
 0x9f6   :  { %v5495_v50 = vpop.f32.mrf.mxu2 }
 0x9f7   :  { %v5496_v28 = vadd.f32 %v5495_v50, %v5392_v41 }
 0x9f8   :  { %v5594_v16 = vpop.f32.mrf.mxu3  ;;  %v16387_v33 = vpop.f32.mrf.mxu0 }
 0x9f9   :  { %v5595_v63 = vadd.f32 %v5594_v16, %v5491_v6  ;;  %v19203_v6 = vld [vmem:[#allocation20_spill] sm:$0xff] }
 0x9fa   :  { %v5403_v0 = vpop.f32.mrf.mxu1 }
 0x9fb   :  { %v5404_v18 = vadd.f32 %v5403_v0, %v5300_v57  ;;  %v6281_v41 = vmax.f32 %v5595_v63, 0.0  ;;  %v5308_v63 = vadd.f32 %v16328_v12, %v15924_v24 }
 0x9fe   :  { %v5497_v10 = vpop.f32.mrf.mxu2 }
 0x9ff   :  { %v5498_v5 = vadd.f32 %v5497_v10, %v5394_v19 }
 0xa00   :  { %v5596_v59 = vpop.f32.mrf.mxu3  ;;  %v16391_v45 = vpop.f32.mrf.mxu0 }
 0xa01   :  { %v5597_v52 = vadd.f32 %v5596_v59, %v5493_v11  ;;  %v5305_v11 = vadd.f32 %v16323_v36, %v15924_v24  ;;  %v19205_v36 = vld [vmem:[#allocation22_spill] sm:$0xff] }
 0xa02   :  { %v5406_v46 = vpop.f32.mrf.mxu1 }
 0xa03   :  { %v6290_v3 = vmax.f32 %v5597_v52, 0.0  ;;  %v5407_v13 = vadd.f32 %v5406_v46, %v5303_v53  ;;  %5687 = vmatmul.bf16.gmra.mxu0 %v18945_v37  ;;  %5860 = vmatmul.bf16.gmra.mxu2 %v19202_v55  ;;  %v19207_v46 = vld [vmem:[#allocation24_spill] sm:$0xff] }
 0xa05   :  { %5766 = vmatmul.bf16.gmra.mxu1 %v19203_v6  ;;  %5959 = vmatmul.bf16.gmra.mxu3 %v19204_v44  ;;  %v16397_v19 = vpack.c.bf16 %v6290_v3, %v6281_v41 }
 0xa06   :  { %v5500_v60 = vpop.f32.mrf.mxu2 }
 0xa07   :  { %v5501_v15 = vadd.f32 %v5500_v60, %v5397_v25 }
 0xa08   :  { %v5599_v38 = vpop.f32.mrf.mxu3  ;;  %v16401_v27 = vpop.f32.mrf.mxu0 }
 0xa09   :  { %v5600_v39 = vadd.f32 %v5599_v38, %v5496_v28  ;;  %v19206_v28 = vld [vmem:[#allocation23_spill] sm:$0xff] }
 0xa0a   :  { %v5408_v31 = vpop.f32.mrf.mxu1  ;;  %v16423_v38 = vld [vmem:[%s18545_s2 + $0x8] ss:$0 sm:$0xff] }
 0xa0b   :  { %v5409_v50 = vadd.f32 %v5408_v31, %v5305_v11  ;;  %v6299_v25 = vmax.f32 %v5600_v39, 0.0 }
 0xa0e   :  { %v5502_v37 = vpop.f32.mrf.mxu2 }
 0xa0f   :  { %v5503_v16 = vadd.f32 %v5502_v37, %v5399_v30 }
 0xa10   :  { %v5601_v57 = vpop.f32.mrf.mxu3  ;;  %v16405_v10 = vpop.f32.mrf.mxu0 }
 0xa11   :  { %v5602_v0 = vadd.f32 %v5601_v57, %v5498_v5  ;;  %v5310_v5 = vadd.f32 %v16339_v43, %v15924_v24  ;;  %v5634_v24 = vadd.f32 %v16423_v38, %v16346_v32 }
 0xa12   :  { %v5411_v59 = vpop.f32.mrf.mxu1 }
 0xa13   :  { %v6308_v53 = vmax.f32 %v5602_v0, 0.0  ;;  %v5412_v52 = vadd.f32 %v5411_v59, %v5308_v63  ;;  %5692 = vmatmul.bf16.gmra.mxu0 %v18884_v9  ;;  %5865 = vmatmul.bf16.gmra.mxu2 %v19205_v36  ;;  %v11310_v9 = vld [vmem:[%s18547_s3 + $0x8] sm:$0xff]  ;;  %v19208_v0 = vld [vmem:[#allocation46_spill] sm:$0xff]  ;;  %v19209_v59 = vld [vmem:[#allocation25_spill] sm:$0xff] }
 0xa14   :  { %7139 = vmatpush.bf16.msrb.mxu0 %v11310_v9 }
 0xa15   :  { %5771 = vmatmul.bf16.gmra.mxu1 %v19206_v28  ;;  %5964 = vmatmul.bf16.gmra.mxu3 %v19207_v46  ;;  %v16411_v30 = vpack.c.bf16 %v6308_v53, %v6299_v25  ;;  %v19210_v25 = vld [vmem:[#allocation26_spill] sm:$0xff]  ;;  %v19211_v53 = vld [vmem:[#allocation27_spill] sm:$0xff] }
 0xa16   :  { %v5505_v41 = vpop.f32.mrf.mxu2 }
 0xa17   :  { %v5506_v3 = vadd.f32 %v5505_v41, %v5402_v26 }
 0xa18   :  { %v5604_v12 = vpop.f32.mrf.mxu3  ;;  %v16415_v6 = vpop.f32.mrf.mxu0 }
 0xa19   :  { %v5605_v55 = vadd.f32 %v5604_v12, %v5501_v15 }
 0xa1a   :  { %v5413_v44 = vpop.f32.mrf.mxu1 }
 0xa1b   :  { %v5414_v60 = vadd.f32 %v5413_v44, %v5310_v5  ;;  %v6317_v37 = vmax.f32 %v5605_v55, 0.0 }
 0xa1e   :  { %v5507_v26 = vpop.f32.mrf.mxu2 }
 0xa1f   :  { %v5508_v11 = vadd.f32 %v5507_v26, %v5404_v18  ;;  %v5639_v26 = vadd.f32 %v16423_v38, %v16360_v14 }
 0xa20   :  { %v5606_v39 = vpop.f32.mrf.mxu3  ;;  %v16427_v15 = vpop.f32.mrf.mxu0 }
 0xa21   :  { %v5607_v43 = vadd.f32 %v5606_v39, %v5503_v16  ;;  %v5636_v16 = vadd.f32 %v16423_v38, %v16356_v51  ;;  %v19213_v51 = vld [vmem:[#allocation28_spill] sm:$0xff] }
 0xa22   :  { %v5737_v31 = vpop.f32.mrf.mxu1 }
 0xa23   :  { %v6326_v57 = vmax.f32 %v5607_v43, 0.0  ;;  %v5738_v63 = vadd.f32 %v5737_v31, %v5634_v24  ;;  %5697 = vmatmul.bf16.gmra.mxu0 %v19208_v0  ;;  %5870 = vmatmul.bf16.gmra.mxu2 %v19209_v59 }
 0xa25   :  { %5776 = vmatmul.bf16.gmra.mxu1 %v19210_v25  ;;  %5969 = vmatmul.bf16.gmra.mxu3 %v19211_v53  ;;  %v16433_v18 = vpack.c.bf16 %v6326_v57, %v6317_v37  ;;  %v19215_v57 = vld [vmem:[#allocation30_spill] sm:$0xff] }
 0xa26   :  { %v5510_v36 = vpop.f32.mrf.mxu2 }
 0xa27   :  { %19212 = vst [vmem:[#allocation5_spill] sm:$0xff] %v16433_v18  ;;  %v5511_v28 = vadd.f32 %v5510_v36, %v5407_v13 }
 0xa28   :  { %v5609_v32 = vpop.f32.mrf.mxu3  ;;  %v16437_v41 = vpop.f32.mrf.mxu0 }
 0xa29   :  { %v5610_v46 = vadd.f32 %v5609_v32, %v5506_v3  ;;  %v19214_v3 = vld [vmem:[#allocation29_spill] sm:$0xff] }
 0xa2a   :  { %v5739_v12 = vpop.f32.mrf.mxu1 }
 0xa2b   :  { %v5740_v5 = vadd.f32 %v5739_v12, %v5636_v16  ;;  %v6335_v13 = vmax.f32 %v5610_v46, 0.0 }
 0xa2e   :  { %v5512_v55 = vpop.f32.mrf.mxu2 }
 0xa2f   :  { %v5513_v44 = vadd.f32 %v5512_v55, %v5409_v50 }
 0xa30   :  { %v5611_v9 = vpop.f32.mrf.mxu3  ;;  %v16441_v24 = vpop.f32.mrf.mxu0 }
 0xa31   :  { %v5612_v39 = vadd.f32 %v5611_v9, %v5508_v11  ;;  %v5641_v11 = vadd.f32 %v16423_v38, %v16370_v7 }
 0xa32   :  { %v5742_v43 = vpop.f32.mrf.mxu1 }
 0xa33   :  { %v6344_v31 = vmax.f32 %v5612_v39, 0.0  ;;  %v5743_v37 = vadd.f32 %v5742_v43, %v5639_v26  ;;  %5702 = vmatmul.bf16.gmra.mxu0 %v18828_v58  ;;  %5875 = vmatmul.bf16.gmra.mxu2 %v19213_v51  ;;  %v11309_v58 = vld [vmem:[%s18547_s3] sm:$0xff]  ;;  %v19217_v43 = vld [vmem:[#allocation7_spill] sm:$0xff] }
 0xa34   :  { %7140 = vmatpush.bf16.msrb.mxu0 %v11309_v58  ;;  %v19220_v51 = vld [vmem:[#allocation35_spill] sm:$0xff] }
 0xa35   :  { %5781 = vmatmul.bf16.gmra.mxu1 %v19214_v3  ;;  %5974 = vmatmul.bf16.gmra.mxu3 %v19215_v57  ;;  %v16447_v50 = vpack.c.bf16 %v6344_v31, %v6335_v13  ;;  %v19218_v13 = vld [vmem:[#allocation33_spill] sm:$0xff]  ;;  %v19219_v31 = vld [vmem:[#allocation34_spill] sm:$0xff] }
 0xa36   :  { %v5515_v0 = vpop.f32.mrf.mxu2 }
 0xa37   :  { %19216 = vst [vmem:[#allocation18_spill] sm:$0xff] %v16447_v50  ;;  %v5516_v59 = vadd.f32 %v5515_v0, %v5412_v52  ;;  %v5644_v52 = vadd.f32 %v16423_v38, %v16374_v56  ;;  %v19338_v50 = vld [vmem:[#allocation134_spill] sm:$0xff] }
 0xa38   :  { %v5614_v14 = vpop.f32.mrf.mxu3  ;;  %v16451_v53 = vpop.f32.mrf.mxu0 }
 0xa39   :  { %v5615_v25 = vadd.f32 %v5614_v14, %v5511_v28 }
 0xa3a   :  { %v5744_v36 = vpop.f32.mrf.mxu1 }
 0xa3b   :  { %v5745_v32 = vadd.f32 %v5744_v36, %v5641_v11  ;;  %v6353_v28 = vmax.f32 %v5615_v25, 0.0 }
 0xa3e   :  { %v5517_v16 = vpop.f32.mrf.mxu2 }
 0xa3f   :  { %v5518_v46 = vadd.f32 %v5517_v16, %v5414_v60 }
 0xa40   :  { %v5616_v12 = vpop.f32.mrf.mxu3  ;;  %v16458_v9 = vpop.f32.mrf.mxu0 }
 0xa41   :  { %v5617_v55 = vadd.f32 %v5616_v12, %v5513_v44  ;;  %v5646_v44 = vadd.f32 %v16423_v38, %v16387_v33  ;;  %v5649_v12 = vadd.f32 %v16423_v38, %v16391_v45  ;;  %v19223_v33 = vld [vmem:[#allocation39_spill] sm:$0xff] }
 0xa42   :  { %v5747_v7 = vpop.f32.mrf.mxu1 }
 0xa43   :  { %v6362_v26 = vmax.f32 %v5617_v55, 0.0  ;;  %v5748_v39 = vadd.f32 %v5747_v7, %v5644_v52  ;;  %5707 = vmatmul.bf16.gmra.mxu0 %v19217_v43  ;;  %5880 = vmatmul.bf16.gmra.mxu2 %v19218_v13  ;;  %v19222_v43 = vld [vmem:[#allocation4_spill] sm:$0xff]  ;;  %v19225_v13 = vld [vmem:[#allocation41_spill] sm:$0xff] }
 0xa45   :  { %5786 = vmatmul.bf16.gmra.mxu1 %v19219_v31  ;;  %5979 = vmatmul.bf16.gmra.mxu3 %v19220_v51  ;;  %v16464_v60 = vpack.c.bf16 %v6362_v26, %v6353_v28 }
 0xa46   :  { %v5841_v3 = vpop.f32.mrf.mxu2 }
 0xa47   :  { %19221 = vst [vmem:[#allocation9_spill] sm:$0xff] %v16464_v60  ;;  %v5842_v56 = vadd.f32 %v5841_v3, %v5738_v63 }
 0xa48   :  { %v5619_v57 = vpop.f32.mrf.mxu3  ;;  %v16468_v14 = vpop.f32.mrf.mxu0 }
 0xa49   :  { %v5620_v0 = vadd.f32 %v5619_v57, %v5516_v59  ;;  %v19224_v59 = vld [vmem:[#allocation40_spill] sm:$0xff] }
 0xa4a   :  { %v5749_v11 = vpop.f32.mrf.mxu1 }
 0xa4b   :  { %v5750_v25 = vadd.f32 %v5749_v11, %v5646_v44  ;;  %v6371_v28 = vmax.f32 %v5620_v0, 0.0  ;;  %v11332_v11 = vld [vmem:[%s18547_s3 + $0xb8] sm:$0xff] }
 0xa4c   :  { %7341 = vmatpush.bf16.msra.mxu2 %v11332_v11 }
 0xa4e   :  { %v5843_v36 = vpop.f32.mrf.mxu2 }
 0xa4f   :  { %v5844_v16 = vadd.f32 %v5843_v36, %v5740_v5  ;;  %v11340_v36 = vld [vmem:[%s18547_s3 + $0xf8] sm:$0xff] }
 0xa50   :  { %v5621_v58 = vpop.f32.mrf.mxu3  ;;  %v16472_v55 = vpop.f32.mrf.mxu0  ;;  %7445 = vmatpush.bf16.msra.mxu3 %v11340_v36  ;;  %v5659_v36 = vadd.f32 %v16423_v38, %v16427_v15 }
 0xa51   :  { %v5622_v52 = vadd.f32 %v5621_v58, %v5518_v46  ;;  %v5651_v46 = vadd.f32 %v16423_v38, %v16401_v27 }
 0xa52   :  { %v5752_v7 = vpop.f32.mrf.mxu1 }
 0xa53   :  { %v6380_v63 = vmax.f32 %v5622_v52, 0.0  ;;  %v5753_v26 = vadd.f32 %v5752_v7, %v5649_v12  ;;  %5712 = vmatmul.bf16.gmra.mxu0 %v19222_v43  ;;  %5885 = vmatmul.bf16.gmra.mxu2 %v19223_v33  ;;  %v5654_v12 = vadd.f32 %v16423_v38, %v16405_v10  ;;  %v11348_v10 = vld [vmem:[%s18547_s3 + $0x138] sm:$0xff] }
 0xa54   :  { %7549 = vmatpush.bf16.msra.mxu0 %v11348_v10 }
 0xa55   :  { %5791 = vmatmul.bf16.gmra.mxu1 %v19224_v59  ;;  %5984 = vmatmul.bf16.gmra.mxu3 %v19225_v13  ;;  %v16478_v31 = vpack.c.bf16 %v6380_v63, %v6371_v28 }
 0xa56   :  { %v5846_v5 = vpop.f32.mrf.mxu2 }
 0xa57   :  { %19226 = vst [vmem:[#allocation13_spill] sm:$0xff] %v16478_v31  ;;  %v5847_v51 = vadd.f32 %v5846_v5, %v5743_v37  ;;  %v11324_v37 = vld [vmem:[%s18547_s3 + $0x78] sm:$0xff] }
 0xa58   :  { %v5945_v45 = vpop.f32.mrf.mxu3  ;;  %v16482_v57 = vpop.f32.mrf.mxu0  ;;  %7237 = vmatpush.bf16.msrb.mxu1 %v11324_v37 }
 0xa59   :  { %v5946_v3 = vadd.f32 %v5945_v45, %v5842_v56  ;;  %v5656_v45 = vadd.f32 %v16423_v38, %v16415_v6  ;;  %v19229_v6 = vld [vmem:[#allocation47_spill] sm:$0xff] }
 0xa5a   :  { %v5754_v44 = vpop.f32.mrf.mxu1 }
 0xa5b   :  { %v5755_v0 = vadd.f32 %v5754_v44, %v5651_v46  ;;  %v6048_v63 = vmax.f32 %v5946_v3, 0.0 }
 0xa5e   :  { %v5848_v27 = vpop.f32.mrf.mxu2 }
 0xa5f   :  { %v5849_v56 = vadd.f32 %v5848_v27, %v5745_v32  ;;  %v19227_v32 = vld [vmem:[#allocation44_spill] sm:$0xff] }
 0xa60   :  { %v5947_v58 = vpop.f32.mrf.mxu3  ;;  %v16495_v7 = vpop.f32.mrf.mxu0 }
 0xa61   :  { %v5948_v52 = vadd.f32 %v5947_v58, %v5844_v16 }
 0xa62   :  { %v5757_v28 = vpop.f32.mrf.mxu1 }
 0xa63   :  { %v6057_v43 = vmax.f32 %v5948_v52, 0.0  ;;  %v5758_v33 = vadd.f32 %v5757_v28, %v5654_v12  ;;  %5717 = vmatmul.bf16.gmra.mxu0 %v18777_v35  ;;  %5890 = vmatmul.bf16.gmra.mxu2 %v12215_v4  ;;  %v19228_v28 = vld [vmem:[#allocation11_spill] sm:$0xff] }
 0xa65   :  { %v16499_v59 = vpack.c.bf16 %v6057_v43, %v6048_v63  ;;  %5796 = vmatmul.bf16.gmra.mxu1 %v18779_v8  ;;  %5989 = vmatmul.bf16.gmra.mxu3 %v19227_v32  ;;  %v19231_v63 = vld [vmem:[#allocation49_spill] sm:$0xff] }
 0xa66   :  { %v5851_v16 = vpop.f32.mrf.mxu2 }
 0xa67   :  { %v5852_v13 = vadd.f32 %v5851_v16, %v5748_v39 }
 0xa68   :  { %v5950_v5 = vpop.f32.mrf.mxu3  ;;  %v16508_v46 = vpop.f32.mrf.mxu0 }
 0xa69   :  { %v5951_v35 = vadd.f32 %v5950_v5, %v5847_v51  ;;  %v19230_v51 = vld [vmem:[#allocation48_spill] sm:$0xff] }
 0xa6a   :  { %v5759_v4 = vpop.f32.mrf.mxu1 }
 0xa6b   :  { %v5760_v3 = vadd.f32 %v5759_v4, %v5656_v45  ;;  %v6066_v39 = vmax.f32 %v5951_v35, 0.0 }
 0xa6e   :  { %v5853_v44 = vpop.f32.mrf.mxu2 }
 0xa6f   :  { %v5854_v8 = vadd.f32 %v5853_v44, %v5750_v25 }
 0xa70   :  { %v5952_v11 = vpop.f32.mrf.mxu3  ;;  %v16512_v27 = vpop.f32.mrf.mxu0 }
 0xa71   :  { %v5953_v37 = vadd.f32 %v5952_v11, %v5849_v56  ;;  %v5661_v56 = vadd.f32 %v16423_v38, %v16437_v41  ;;  %v5664_v11 = vadd.f32 %v16423_v38, %v16441_v24  ;;  %v11331_v41 = vld [vmem:[%s18547_s3 + $0xb0] sm:$0xff] }
 0xa72   :  { %v5762_v58 = vpop.f32.mrf.mxu1  ;;  %v19234_v24 = vld [vmem:[#allocation52_spill] sm:$0xff]  ;;  %7342 = vmatpush.bf16.msra.mxu2 %v11331_v41 }
 0xa73   :  { %v6075_v12 = vmax.f32 %v5953_v37, 0.0  ;;  %v5763_v52 = vadd.f32 %v5762_v58, %v5659_v36  ;;  %5722 = vmatmul.bf16.gmra.mxu0 %v19228_v28  ;;  %5895 = vmatmul.bf16.gmra.mxu2 %v19229_v6  ;;  %v19233_v28 = vld [vmem:[#allocation45_spill] sm:$0xff]  ;;  %v11323_v6 = vld [vmem:[%s18547_s3 + $0x70] sm:$0xff] }
 0xa74   :  { %7238 = vmatpush.bf16.msrb.mxu1 %v11323_v6 }
 0xa75   :  { %5801 = vmatmul.bf16.gmra.mxu1 %v19230_v51  ;;  %5994 = vmatmul.bf16.gmra.mxu3 %v19231_v63  ;;  %v16518_v25 = vpack.c.bf16 %v6075_v12, %v6066_v39 }
 0xa76   :  { %v5856_v43 = vpop.f32.mrf.mxu2 }
 0xa77   :  { %v5857_v32 = vadd.f32 %v5856_v43, %v5753_v26 }
 0xa78   :  { %v5955_v15 = vpop.f32.mrf.mxu3  ;;  %v16522_v16 = vpop.f32.mrf.mxu0 }
 0xa79   :  { %v5956_v10 = vadd.f32 %v5955_v15, %v5852_v13  ;;  %v19232_v13 = vld [vmem:[#allocation51_spill] sm:$0xff] }
 0xa7a   :  { %v5764_v5 = vpop.f32.mrf.mxu1 }
 0xa7b   :  { %v5765_v45 = vadd.f32 %v5764_v5, %v5661_v56  ;;  %v6084_v26 = vmax.f32 %v5956_v10, 0.0  ;;  %v5666_v56 = vadd.f32 %v16423_v38, %v16451_v53 }
 0xa7e   :  { %v5858_v35 = vpop.f32.mrf.mxu2 }
 0xa7f   :  { %v5859_v4 = vadd.f32 %v5858_v35, %v5755_v0  ;;  %v11339_v0 = vld [vmem:[%s18547_s3 + $0xf0] sm:$0xff] }
 0xa80   :  { %v5957_v44 = vpop.f32.mrf.mxu3  ;;  %v16526_v37 = vpop.f32.mrf.mxu0  ;;  %7446 = vmatpush.bf16.msra.mxu3 %v11339_v0 }
 0xa81   :  { %v5958_v36 = vadd.f32 %v5957_v44, %v5854_v8  ;;  %v19235_v8 = vld [vmem:[#allocation53_spill] sm:$0xff] }
 0xa82   :  { %v5767_v58 = vpop.f32.mrf.mxu1 }
 0xa83   :  { %v6093_v39 = vmax.f32 %v5958_v36, 0.0  ;;  %v16528_v12 = vadd.f32 %v5767_v58, %v5664_v11  ;;  %5900 = vmatmul.bf16.gmra.mxu2 %v19232_v13  ;;  %7141 = vmatmul.bf16.vlgmr.msrb.gmra.mxu0 %v19233_v28  ;;  %v11347_v11 = vld [vmem:[%s18547_s3 + $0x130] sm:$0xff]  ;;  %v19236_v28 = vld [vmem:[#allocation50_spill] sm:$0xff] }
 0xa84   :  { %7550 = vmatpush.bf16.msra.mxu0 %v11347_v11 }
 0xa85   :  { %5806 = vmatmul.bf16.gmra.mxu1 %v19234_v24  ;;  %5999 = vmatmul.bf16.gmra.mxu3 %v19235_v8  ;;  %v16543_v51 = vpack.c.bf16 %v6093_v39, %v6084_v26  ;;  %v5671_v8 = vadd.f32 %v16423_v38, %v16468_v14  ;;  %v5674_v14 = vadd.f32 %v16423_v38, %v16472_v55  ;;  %v11330_v55 = vld [vmem:[%s18547_s3 + $0xa8] sm:$0xff] }
 0xa86   :  { %v5861_v63 = vpop.f32.mrf.mxu2  ;;  %7343 = vmatpush.bf16.msra.mxu2 %v11330_v55 }
 0xa87   :  { %v5862_v43 = vadd.f32 %v5861_v63, %v5758_v33  ;;  %v5669_v33 = vadd.f32 %v16423_v38, %v16458_v9 }
 0xa88   :  { %v5960_v15 = vpop.f32.mrf.mxu3  ;;  %v16547_v5 = vpop.f32.mrf.mxu0 }
 0xa89   :  { %v5961_v10 = vadd.f32 %v5960_v15, %v5857_v32 }
 0xa8a   :  { %v5769_v35 = vpop.f32.mrf.mxu1 }
 0xa8b   :  { %v16549_v44 = vadd.f32 %v5769_v35, %v5666_v56  ;;  %v6102_v32 = vmax.f32 %v5961_v10, 0.0 }
 0xa8e   :  { %v5863_v36 = vpop.f32.mrf.mxu2 }
 0xa8f   :  { %v5864_v58 = vadd.f32 %v5863_v36, %v5760_v3 }
 0xa90   :  { %v5962_v26 = vpop.f32.mrf.mxu3  ;;  %v16556_v41 = vpop.f32.mrf.mxu0 }
 0xa91   :  { %v5963_v39 = vadd.f32 %v5962_v26, %v5859_v4 }
 0xa92   :  { %v5772_v53 = vpop.f32.mrf.mxu1 }
 0xa93   :  { %v6111_v0 = vmax.f32 %v5963_v39, 0.0  ;;  %v16558_v13 = vadd.f32 %v5772_v53, %v5669_v33  ;;  %5905 = vmatmul.bf16.gmra.mxu2 %v18790_v20  ;;  %7146 = vmatmul.bf16.gmra.mxu0 %v19236_v28  ;;  %v11322_v20 = vld [vmem:[%s18547_s3 + $0x68] sm:$0xff]  ;;  %v11320_v39 = vld [vmem:[%s18547_s3 + $0x58] sm:$0xff] }
 0xa94   :  { %7239 = vmatpush.bf16.msrb.mxu1 %v11322_v20  ;;  %v5679_v20 = vadd.f32 %v16423_v38, %v16495_v7 }
 0xa95   :  { %5811 = vmatmul.bf16.gmra.mxu1 %v18920_v23  ;;  %6004 = vmatmul.bf16.gmra.mxu3 %v18985_v21  ;;  %v16564_v3 = vpack.c.bf16 %v6111_v0, %v6102_v32  ;;  %v11319_v0 = vld [vmem:[%s18547_s3 + $0x50] sm:$0xff] }
 0xa96   :  { %v5866_v24 = vpop.f32.mrf.mxu2 }
 0xa97   :  { %v5867_v9 = vadd.f32 %v5866_v24, %v5763_v52  ;;  %v11321_v52 = vld [vmem:[%s18547_s3 + $0x60] sm:$0xff] }
 0xa98   :  { %v5965_v4 = vpop.f32.mrf.mxu3  ;;  %v16568_v63 = vpop.f32.mrf.mxu0  ;;  %7240 = vmatpush.bf16.msrb.mxu1 %v11321_v52 }
 0xa99   :  { %v5966_v6 = vadd.f32 %v5965_v4, %v5862_v43 }
 0xa9a   :  { %v5774_v15 = vpop.f32.mrf.mxu1 }
 0xa9b   :  { %v16570_v56 = vadd.f32 %v5774_v15, %v5671_v8  ;;  %v6120_v36 = vmax.f32 %v5966_v6, 0.0  ;;  %v11338_v8 = vld [vmem:[%s18547_s3 + $0xe8] sm:$0xff]  ;;  %v11317_v15 = vld [vmem:[%s18547_s3 + $0x40] sm:$0xff] }
 0xa9c   :  { %7241 = vmatpush.bf16.msrb.mxu1 %v11320_v39  ;;  %7447 = vmatpush.bf16.msra.mxu3 %v11338_v8  ;;  %v5681_v39 = vadd.f32 %v16423_v38, %v16508_v46 }
 0xa9e   :  { %v5868_v23 = vpop.f32.mrf.mxu2 }
 0xa9f   :  { %v5869_v21 = vadd.f32 %v5868_v23, %v5765_v45  ;;  %v19237_v45 = vld [vmem:[#allocation54_spill] sm:$0xff] }
 0xaa0   :  { %v5967_v10 = vpop.f32.mrf.mxu3  ;;  %v16580_v35 = vpop.f32.mrf.mxu0  ;;  %7242 = vmatpush.bf16.msrb.mxu1 %v11319_v0 }
 0xaa1   :  { %v5968_v43 = vadd.f32 %v5967_v10, %v5864_v58 }
 0xaa2   :  { %v5777_v11 = vpop.f32.mrf.mxu1 }
 0xaa3   :  { %v6129_v26 = vmax.f32 %v5968_v43, 0.0  ;;  %v16582_v33 = vadd.f32 %v5777_v11, %v5674_v14  ;;  %5910 = vmatmul.bf16.gmra.mxu2 %v12417_v61  ;;  %7151 = vmatmul.bf16.gmra.mxu0 %v19237_v45 }
 0xaa5   :  { %5816 = vmatmul.bf16.gmra.mxu1 %v19116_v54  ;;  %6009 = vmatmul.bf16.gmra.mxu3 %v19181_v29  ;;  %v16594_v58 = vpack.c.bf16 %v6129_v26, %v6120_v36  ;;  %v5676_v54 = vadd.f32 %v16423_v38, %v16482_v57  ;;  %v19239_v36 = vld [vmem:[#allocation58_spill] sm:$0xff] }
 0xaa6   :  { %v5871_v53 = vpop.f32.mrf.mxu2 }
 0xaa7   :  { %19238 = vst [vmem:[#allocation32_spill] sm:$0xff] %v16594_v58  ;;  %v5872_v61 = vadd.f32 %v5871_v53, %v16528_v12  ;;  %v11318_v12 = vld [vmem:[%s18547_s3 + $0x48] sm:$0xff]  ;;  %v19347_v58 = vld [vmem:[#allocation165_spill] sm:$0xff] }
 0xaa8   :  { %v5970_v32 = vpop.f32.mrf.mxu3  ;;  %v16602_v28 = vpop.f32.mrf.mxu0  ;;  %7243 = vmatpush.bf16.msrb.mxu1 %v11318_v12 }
 0xaa9   :  { %v5971_v29 = vadd.f32 %v5970_v32, %v5867_v9 }
 0xaaa   :  { %v5779_v24 = vpop.f32.mrf.mxu1 }
 0xaab   :  { %v16604_v4 = vadd.f32 %v5779_v24, %v5676_v54  ;;  %v6138_v14 = vmax.f32 %v5971_v29, 0.0  ;;  %v11329_v54 = vld [vmem:[%s18547_s3 + $0xa0] sm:$0xff] }
 0xaac   :  { %7244 = vmatpush.bf16.msrb.mxu1 %v11317_v15  ;;  %7344 = vmatpush.bf16.msra.mxu2 %v11329_v54 }
 0xaae   :  { %v5873_v6 = vpop.f32.mrf.mxu2 }
 0xaaf   :  { %v5874_v57 = vadd.f32 %v5873_v6, %v16549_v44  ;;  %v11346_v44 = vld [vmem:[%s18547_s3 + $0x128] sm:$0xff]  ;;  %v11328_v6 = vld [vmem:[%s18547_s3 + $0x98] sm:$0xff] }
 0xab0   :  { %v5972_v9 = vpop.f32.mrf.mxu3  ;;  %v16618_v10 = vpop.f32.mrf.mxu0  ;;  %7551 = vmatpush.bf16.msra.mxu0 %v11346_v44  ;;  %7345 = vmatpush.bf16.msra.mxu2 %v11328_v6  ;;  %v11326_v44 = vld [vmem:[%s18547_s3 + $0x88] sm:$0xff] }
 0xab1   :  { %v5973_v23 = vadd.f32 %v5972_v9, %v5869_v21 }
 0xab2   :  { %v5782_v52 = vpop.f32.mrf.mxu1 }
 0xab3   :  { %v6147_v43 = vmax.f32 %v5973_v23, 0.0  ;;  %v16620_v11 = vadd.f32 %v5782_v52, %v5679_v20  ;;  %5915 = vmatmul.bf16.gmra.mxu2 %v12491_v22  ;;  %7156 = vmatmul.bf16.gmra.mxu0 %v19239_v36  ;;  %v5686_v23 = vadd.f32 %v16423_v38, %v16522_v16 }
 0xab5   :  { %5821 = vmatmul.bf16.gmra.mxu1 %v18799_v49  ;;  %6014 = vmatmul.bf16.gmra.mxu3 %v19184_v40  ;;  %v16629_v7 = vpack.c.bf16 %v6147_v43, %v6138_v14 }
 0xab6   :  { %v5876_v21 = vpop.f32.mrf.mxu2 }
 0xab7   :  { %19240 = vst [vmem:[#allocation15_spill] sm:$0xff] %v16629_v7  ;;  %v5877_v26 = vadd.f32 %v5876_v21, %v16558_v13  ;;  %v5684_v13 = vadd.f32 %v16423_v38, %v16512_v27  ;;  %v19242_v27 = vld [vmem:[#allocation66_spill] sm:$0xff]  ;;  %v19344_v7 = vld [vmem:[#allocation148_spill] sm:$0xff] }
 0xab8   :  { %v5975_v45 = vpop.f32.mrf.mxu3  ;;  %v16634_v53 = vpop.f32.mrf.mxu0 }
 0xab9   :  { %v5976_v55 = vadd.f32 %v5975_v45, %v5872_v61  ;;  %v5689_v45 = vadd.f32 %v16423_v38, %v16526_v37  ;;  %v19247_v37 = vld [vmem:[#allocation8_spill] sm:$0xff] }
 0xaba   :  { %v5784_v22 = vpop.f32.mrf.mxu1 }
 0xabb   :  { %v16636_v32 = vadd.f32 %v5784_v22, %v5681_v39  ;;  %v6156_v61 = vmax.f32 %v5976_v55, 0.0 }
 0xabe   :  { %v5878_v0 = vpop.f32.mrf.mxu2 }
 0xabf   :  { %v5879_v49 = vadd.f32 %v5878_v0, %v16570_v56  ;;  %v19241_v56 = vld [vmem:[#allocation61_spill] sm:$0xff] }
 0xac0   :  { %v5977_v40 = vpop.f32.mrf.mxu3  ;;  %v16644_v24 = vpop.f32.mrf.mxu0 }
 0xac1   :  { %v5978_v29 = vadd.f32 %v5977_v40, %v5874_v57 }
 0xac2   :  { %v5787_v46 = vpop.f32.mrf.mxu1 }
 0xac3   :  { %v6165_v8 = vmax.f32 %v5978_v29, 0.0  ;;  %v16646_v12 = vadd.f32 %v5787_v46, %v5684_v13  ;;  %5920 = vmatmul.bf16.gmra.mxu2 %v12541_v62  ;;  %7161 = vmatmul.bf16.gmra.mxu0 %v19241_v56  ;;  %v11327_v62 = vld [vmem:[%s18547_s3 + $0x90] sm:$0xff]  ;;  %v11336_v29 = vld [vmem:[%s18547_s3 + $0xd8] sm:$0xff] }
 0xac4   :  { %7346 = vmatpush.bf16.msra.mxu2 %v11327_v62  ;;  %v19244_v13 = vld [vmem:[#allocation68_spill] sm:$0xff]  ;;  %v19246_v46 = vld [vmem:[#allocation69_spill] sm:$0xff] }
 0xac5   :  { %5826 = vmatmul.bf16.gmra.mxu1 %v19186_v2  ;;  %6019 = vmatmul.bf16.gmra.mxu3 %v19242_v27  ;;  %v16655_v57 = vpack.c.bf16 %v6165_v8, %v6156_v61  ;;  %v11335_v27 = vld [vmem:[%s18547_s3 + $0xd0] sm:$0xff] }
 0xac6   :  { %v5881_v9 = vpop.f32.mrf.mxu2 }
 0xac7   :  { %19243 = vst [vmem:[#allocation17_spill] sm:$0xff] %v16655_v57  ;;  %v5882_v15 = vadd.f32 %v5881_v9, %v16582_v33  ;;  %v11337_v33 = vld [vmem:[%s18547_s3 + $0xe0] sm:$0xff]  ;;  %v5691_v9 = vadd.f32 %v16423_v38, %v16547_v5  ;;  %v5694_v5 = vadd.f32 %v16423_v38, %v16556_v41 }
 0xac8   :  { %v5980_v20 = vpop.f32.mrf.mxu3  ;;  %v16663_v14 = vpop.f32.mrf.mxu0  ;;  %7448 = vmatpush.bf16.msra.mxu3 %v11337_v33  ;;  %7347 = vmatpush.bf16.msra.mxu2 %v11326_v44 }
 0xac9   :  { %v5981_v52 = vadd.f32 %v5980_v20, %v5877_v26  ;;  %v11325_v26 = vld [vmem:[%s18547_s3 + $0x80] sm:$0xff] }
 0xaca   :  { %v5789_v2 = vpop.f32.mrf.mxu1 }
 0xacb   :  { %v16665_v43 = vadd.f32 %v5789_v2, %v5686_v23  ;;  %v6174_v0 = vmax.f32 %v5981_v52, 0.0  ;;  %v11334_v2 = vld [vmem:[%s18547_s3 + $0xc8] sm:$0xff] }
 0xacc   :  { %7348 = vmatpush.bf16.msra.mxu2 %v11325_v26  ;;  %7449 = vmatpush.bf16.msra.mxu3 %v11336_v29  ;;  %v5696_v29 = vadd.f32 %v16423_v38, %v16568_v63  ;;  %v19253_v63 = vld [vmem:[#allocation70_spill] sm:$0xff] }
 0xace   :  { %v5883_v36 = vpop.f32.mrf.mxu2 }
 0xacf   :  { %v5884_v16 = vadd.f32 %v5883_v36, %v16604_v4  ;;  %v19245_v4 = vld [vmem:[#allocation64_spill] sm:$0xff]  ;;  %v11333_v36 = vld [vmem:[%s18547_s3 + $0xc0] sm:$0xff] }
 0xad0   :  { %v5982_v21 = vpop.f32.mrf.mxu3  ;;  %v16679_v55 = vpop.f32.mrf.mxu0  ;;  %7450 = vmatpush.bf16.msra.mxu3 %v11335_v27 }
 0xad1   :  { %v5983_v39 = vadd.f32 %v5982_v21, %v5879_v49  ;;  %v11345_v49 = vld [vmem:[%s18547_s3 + $0x120] sm:$0xff] }
 0xad2   :  { %v5792_v22 = vpop.f32.mrf.mxu1  ;;  %7552 = vmatpush.bf16.msra.mxu0 %v11345_v49 }
 0xad3   :  { %v6183_v40 = vmax.f32 %v5983_v39, 0.0  ;;  %v16681_v54 = vadd.f32 %v5792_v22, %v5689_v45  ;;  %5925 = vmatmul.bf16.gmra.mxu2 %v19244_v13  ;;  %7166 = vmatmul.bf16.gmra.mxu0 %v19245_v4 }
 0xad4   :  { %7451 = vmatpush.bf16.msra.mxu3 %v11334_v2 }
 0xad5   :  { %6024 = vmatmul.bf16.gmra.mxu3 %v19246_v46  ;;  %7245 = vmatmul.bf16.vlgmr.msrb.gmra.mxu1 %v19247_v37  ;;  %v16693_v61 = vpack.c.bf16 %v6183_v40, %v6174_v0  ;;  %v19249_v0 = vld [vmem:[#allocation67_spill] sm:$0xff] }
 0xad6   :  { %v5886_v8 = vpop.f32.mrf.mxu2  ;;  %v19251_v40 = vld [vmem:[#allocation43_spill] sm:$0xff] }
 0xad7   :  { %19248 = vst [vmem:[#allocation19_spill] sm:$0xff] %v16693_v61  ;;  %v5887_v56 = vadd.f32 %v5886_v8, %v16620_v11 }
 0xad8   :  { %v5985_v6 = vpop.f32.mrf.mxu3  ;;  %v16701_v62 = vpop.f32.mrf.mxu0  ;;  %7452 = vmatpush.bf16.msra.mxu3 %v11333_v36  ;;  %v19255_v36 = vld [vmem:[#allocation80_spill] sm:$0xff] }
 0xad9   :  { %v5986_v20 = vadd.f32 %v5985_v6, %v5882_v15 }
 0xada   :  { %v5794_v23 = vpop.f32.mrf.mxu1 }
 0xadb   :  { %v5795_v52 = vadd.f32 %v5794_v23, %v5691_v9  ;;  %v6192_v45 = vmax.f32 %v5986_v20, 0.0  ;;  %v5699_v9 = vadd.f32 %v16423_v38, %v16580_v35 }
 0xade   :  { %v5888_v11 = vpop.f32.mrf.mxu2 }
 0xadf   :  { %v5889_v44 = vadd.f32 %v5888_v11, %v16636_v32  ;;  %v19250_v32 = vld [vmem:[#allocation71_spill] sm:$0xff] }
 0xae0   :  { %v5987_v33 = vpop.f32.mrf.mxu3  ;;  %v16712_v21 = vpop.f32.mrf.mxu0 }
 0xae1   :  { %v5988_v15 = vadd.f32 %v5987_v33, %v5884_v16 }
 0xae2   :  { %v5797_v26 = vpop.f32.mrf.mxu1 }
 0xae3   :  { %v6201_v39 = vmax.f32 %v5988_v15, 0.0  ;;  %v5798_v22 = vadd.f32 %v5797_v26, %v5694_v5  ;;  %5930 = vmatmul.bf16.gmra.mxu2 %v12663_v48  ;;  %7171 = vmatmul.bf16.gmra.mxu0 %v19249_v0  ;;  %v5701_v15 = vadd.f32 %v16423_v38, %v16602_v28 }
 0xae5   :  { %6029 = vmatmul.bf16.gmra.mxu3 %v19250_v32  ;;  %7250 = vmatmul.bf16.gmra.mxu1 %v19251_v40  ;;  %v16718_v13 = vpack.c.bf16 %v6201_v39, %v6192_v45 }
 0xae6   :  { %v5891_v4 = vpop.f32.mrf.mxu2 }
 0xae7   :  { %19252 = vst [vmem:[#allocation20_spill] sm:$0xff] %v16718_v13  ;;  %v5892_v41 = vadd.f32 %v5891_v4, %v16646_v12  ;;  %v11365_v13 = vld [vmem:[%s18547_s3 + $0x1c0] sm:$0xff] }
 0xae8   :  { %v5990_v16 = vpop.f32.mrf.mxu3  ;;  %v16723_v37 = vpop.f32.mrf.mxu0 }
 0xae9   :  { %v5991_v46 = vadd.f32 %v5990_v16, %v5887_v56  ;;  %v19254_v56 = vld [vmem:[#allocation94_spill] sm:$0xff] }
 0xaea   :  { %v5799_v49 = vpop.f32.mrf.mxu1 }
 0xaeb   :  { %v5800_v48 = vadd.f32 %v5799_v49, %v5696_v29  ;;  %v6210_v2 = vmax.f32 %v5991_v46, 0.0 }
 0xaee   :  { %v5893_v8 = vpop.f32.mrf.mxu2 }
 0xaef   :  { %v5894_v6 = vadd.f32 %v5893_v8, %v16665_v43  ;;  %v19257_v8 = vld [vmem:[#allocation72_spill] sm:$0xff] }
 0xaf0   :  { %v5992_v27 = vpop.f32.mrf.mxu3  ;;  %v16728_v23 = vpop.f32.mrf.mxu0 }
 0xaf1   :  { %v5993_v20 = vadd.f32 %v5992_v27, %v5889_v44  ;;  %v19258_v27 = vld [vmem:[#allocation95_spill] sm:$0xff] }
 0xaf2   :  { %v5802_v12 = vpop.f32.mrf.mxu1 }
 0xaf3   :  { %v6219_v11 = vmax.f32 %v5993_v20, 0.0  ;;  %v5803_v33 = vadd.f32 %v5802_v12, %v5699_v9  ;;  %7176 = vmatmul.bf16.gmra.mxu0 %v19253_v63  ;;  %7349 = vmatmul.bf16.vlgmr.msra.gmra.mxu2 %v19254_v56  ;;  %v19259_v9 = vld [vmem:[#allocation55_spill] sm:$0xff] }
 0xaf4   :  { %v19260_v20 = vld [vmem:[#allocation111_spill] sm:$0xff] }
 0xaf5   :  { %6034 = vmatmul.bf16.gmra.mxu3 %v12683_v34  ;;  %7255 = vmatmul.bf16.gmra.mxu1 %v19255_v36  ;;  %v16734_v43 = vpack.c.bf16 %v6219_v11, %v6210_v2  ;;  %v11344_v34 = vld [vmem:[%s18547_s3 + $0x118] sm:$0xff] }
 0xaf6   :  { %v5896_v5 = vpop.f32.mrf.mxu2  ;;  %7553 = vmatpush.bf16.msra.mxu0 %v11344_v34 }
 0xaf7   :  { %19256 = vst [vmem:[#allocation21_spill] sm:$0xff] %v16734_v43  ;;  %v5897_v35 = vadd.f32 %v5896_v5, %v16681_v54  ;;  %v5704_v54 = vadd.f32 %v16423_v38, %v16618_v10  ;;  %v19330_v43 = vld [vmem:[#allocation109_spill] sm:$0xff] }
 0xaf8   :  { %v5995_v44 = vpop.f32.mrf.mxu3  ;;  %v16739_v45 = vpop.f32.mrf.mxu0 }
 0xaf9   :  { %v5996_v26 = vadd.f32 %v5995_v44, %v5892_v41 }
 0xafa   :  { %v5804_v39 = vpop.f32.mrf.mxu1 }
 0xafb   :  { %v5805_v0 = vadd.f32 %v5804_v39, %v5701_v15  ;;  %v6228_v41 = vmax.f32 %v5996_v26, 0.0  ;;  %v5709_v26 = vadd.f32 %v16423_v38, %v16644_v24 }
 0xafe   :  { %v5898_v32 = vpop.f32.mrf.mxu2 }
 0xaff   :  { %v5899_v40 = vadd.f32 %v5898_v32, %v5795_v52 }
 0xb00   :  { %v5997_v4 = vpop.f32.mrf.mxu3  ;;  %v16746_v29 = vpop.f32.mrf.mxu0 }
 0xb01   :  { %v5998_v16 = vadd.f32 %v5997_v4, %v5894_v6  ;;  %v5706_v6 = vadd.f32 %v16423_v38, %v16634_v53  ;;  %v19263_v53 = vld [vmem:[#allocation96_spill] sm:$0xff] }
 0xb02   :  { %v5807_v28 = vpop.f32.mrf.mxu1 }
 0xb03   :  { %v6237_v46 = vmax.f32 %v5998_v16, 0.0  ;;  %v5808_v49 = vadd.f32 %v5807_v28, %v5704_v54  ;;  %7181 = vmatmul.bf16.gmra.mxu0 %v19257_v8  ;;  %7354 = vmatmul.bf16.gmra.mxu2 %v19258_v27  ;;  %v19262_v16 = vld [vmem:[#allocation73_spill] sm:$0xff]  ;;  %v19265_v28 = vld [vmem:[#allocation112_spill] sm:$0xff] }
 0xb05   :  { %7260 = vmatmul.bf16.gmra.mxu1 %v19259_v9  ;;  %7453 = vmatmul.bf16.vlgmr.msra.gmra.mxu3 %v19260_v20  ;;  %v16752_v52 = vpack.c.bf16 %v6237_v46, %v6228_v41 }
 0xb06   :  { %v5901_v12 = vpop.f32.mrf.mxu2 }
 0xb07   :  { %19261 = vst [vmem:[#allocation22_spill] sm:$0xff] %v16752_v52  ;;  %v5902_v2 = vadd.f32 %v5901_v12, %v5798_v22 }
 0xb08   :  { %v6000_v10 = vpop.f32.mrf.mxu3  ;;  %v16756_v63 = vpop.f32.mrf.mxu0 }
 0xb09   :  { %v6001_v11 = vadd.f32 %v6000_v10, %v5897_v35  ;;  %v19264_v35 = vld [vmem:[#allocation81_spill] sm:$0xff] }
 0xb0a   :  { %v5809_v56 = vpop.f32.mrf.mxu1 }
 0xb0b   :  { %v5810_v36 = vadd.f32 %v5809_v56, %v5706_v6  ;;  %v6246_v22 = vmax.f32 %v6001_v11, 0.0  ;;  %v5714_v11 = vadd.f32 %v16423_v38, %v16679_v55 }
 0xb0e   :  { %v5903_v5 = vpop.f32.mrf.mxu2 }
 0xb0f   :  { %v5904_v44 = vadd.f32 %v5903_v5, %v5800_v48 }
 0xb10   :  { %v6002_v15 = vpop.f32.mrf.mxu3  ;;  %v16760_v34 = vpop.f32.mrf.mxu0 }
 0xb11   :  { %v6003_v39 = vadd.f32 %v6002_v15, %v5899_v40  ;;  %v5711_v40 = vadd.f32 %v16423_v38, %v16663_v14  ;;  %v11343_v14 = vld [vmem:[%s18547_s3 + $0x110] sm:$0xff] }
 0xb12   :  { %v5812_v32 = vpop.f32.mrf.mxu1  ;;  %7554 = vmatpush.bf16.msra.mxu0 %v11343_v14  ;;  %v19275_v14 = vld [vmem:[#allocation56_spill] sm:$0xff] }
 0xb13   :  { %v6255_v4 = vmax.f32 %v6003_v39, 0.0  ;;  %v5813_v54 = vadd.f32 %v5812_v32, %v5709_v26  ;;  %7186 = vmatmul.bf16.gmra.mxu0 %v19262_v16  ;;  %7359 = vmatmul.bf16.gmra.mxu2 %v19263_v53  ;;  %v19268_v32 = vld [vmem:[#allocation6_spill] sm:$0xff]  ;;  %v5716_v53 = vadd.f32 %v16423_v38, %v16701_v62  ;;  %v19273_v62 = vld [vmem:[#allocation97_spill] sm:$0xff] }
 0xb15   :  { %7265 = vmatmul.bf16.gmra.mxu1 %v19264_v35  ;;  %7458 = vmatmul.bf16.gmra.mxu3 %v19265_v28  ;;  %v16766_v48 = vpack.c.bf16 %v6255_v4, %v6246_v22  ;;  %v19270_v22 = vld [vmem:[#allocation113_spill] sm:$0xff] }
 0xb16   :  { %v5906_v41 = vpop.f32.mrf.mxu2 }
 0xb17   :  { %19266 = vst [vmem:[#allocation23_spill] sm:$0xff] %v16766_v48  ;;  %v5907_v46 = vadd.f32 %v5906_v41, %v5803_v33 }
 0xb18   :  { %v6005_v24 = vpop.f32.mrf.mxu3  ;;  %v16770_v27 = vpop.f32.mrf.mxu0 }
 0xb19   :  { %v6006_v8 = vadd.f32 %v6005_v24, %v5902_v2  ;;  %v19267_v2 = vld [vmem:[#allocation74_spill] sm:$0xff] }
 0xb1a   :  { %v5814_v9 = vpop.f32.mrf.mxu1 }
 0xb1b   :  { %v5815_v20 = vadd.f32 %v5814_v9, %v5711_v40  ;;  %v6264_v33 = vmax.f32 %v6006_v8, 0.0 }
 0xb1e   :  { %v5908_v12 = vpop.f32.mrf.mxu2 }
 0xb1f   :  { %v5909_v10 = vadd.f32 %v5908_v12, %v5805_v0  ;;  %v19269_v0 = vld [vmem:[#allocation62_spill] sm:$0xff]  ;;  %v5719_v12 = vadd.f32 %v16423_v38, %v16712_v21 }
 0xb20   :  { %v6007_v6 = vpop.f32.mrf.mxu3  ;;  %v16774_v5 = vpop.f32.mrf.mxu0 }
 0xb21   :  { %v6008_v56 = vadd.f32 %v6007_v6, %v5904_v44 }
 0xb22   :  { %v5817_v15 = vpop.f32.mrf.mxu1 }
 0xb23   :  { %v6273_v26 = vmax.f32 %v6008_v56, 0.0  ;;  %v5818_v39 = vadd.f32 %v5817_v15, %v5714_v11  ;;  %7191 = vmatmul.bf16.gmra.mxu0 %v19267_v2  ;;  %7364 = vmatmul.bf16.gmra.mxu2 %v19268_v32 }
 0xb25   :  { %7270 = vmatmul.bf16.gmra.mxu1 %v19269_v0  ;;  %7463 = vmatmul.bf16.gmra.mxu3 %v19270_v22  ;;  %v16783_v55 = vpack.c.bf16 %v6273_v26, %v6264_v33  ;;  %v19272_v26 = vld [vmem:[#allocation75_spill] sm:$0xff] }
 0xb26   :  { %v5911_v44 = vpop.f32.mrf.mxu2 }
 0xb27   :  { %19271 = vst [vmem:[#allocation24_spill] sm:$0xff] %v16783_v55  ;;  %v5912_v4 = vadd.f32 %v5911_v44, %v5808_v49 }
 0xb28   :  { %v6010_v16 = vpop.f32.mrf.mxu3  ;;  %v16787_v28 = vpop.f32.mrf.mxu0 }
 0xb29   :  { %v6011_v35 = vadd.f32 %v6010_v16, %v5907_v46  ;;  %v19274_v46 = vld [vmem:[#allocation82_spill] sm:$0xff] }
 0xb2a   :  { %v5819_v41 = vpop.f32.mrf.mxu1 }
 0xb2b   :  { %v5820_v24 = vadd.f32 %v5819_v41, %v5716_v53  ;;  %v6282_v49 = vmax.f32 %v6011_v35, 0.0 }
 0xb2e   :  { %v5913_v40 = vpop.f32.mrf.mxu2 }
 0xb2f   :  { %v5914_v8 = vadd.f32 %v5913_v40, %v5810_v36  ;;  %v5724_v40 = vadd.f32 %v16423_v38, %v16728_v23 }
 0xb30   :  { %v6012_v9 = vpop.f32.mrf.mxu3  ;;  %v16791_v11 = vpop.f32.mrf.mxu0 }
 0xb31   :  { %v6013_v6 = vadd.f32 %v6012_v9, %v5909_v10  ;;  %v5721_v10 = vadd.f32 %v16423_v38, %v16723_v37  ;;  %v19278_v37 = vld [vmem:[#allocation98_spill] sm:$0xff] }
 0xb32   :  { %v5822_v56 = vpop.f32.mrf.mxu1 }
 0xb33   :  { %v6291_v15 = vmax.f32 %v6013_v6, 0.0  ;;  %v5823_v33 = vadd.f32 %v5822_v56, %v5719_v12  ;;  %7196 = vmatmul.bf16.gmra.mxu0 %v19272_v26  ;;  %7369 = vmatmul.bf16.gmra.mxu2 %v19273_v62  ;;  %v19280_v26 = vld [vmem:[#allocation114_spill] sm:$0xff] }
 0xb35   :  { %7275 = vmatmul.bf16.gmra.mxu1 %v19274_v46  ;;  %7468 = vmatmul.bf16.gmra.mxu3 %v19275_v14  ;;  %v16797_v36 = vpack.c.bf16 %v6291_v15, %v6282_v49  ;;  %v19277_v15 = vld [vmem:[#allocation76_spill] sm:$0xff] }
 0xb36   :  { %v5916_v2 = vpop.f32.mrf.mxu2 }
 0xb37   :  { %19276 = vst [vmem:[#allocation46_spill] sm:$0xff] %v16797_v36  ;;  %v5917_v32 = vadd.f32 %v5916_v2, %v5813_v54 }
 0xb38   :  { %v6015_v21 = vpop.f32.mrf.mxu3  ;;  %v16801_v22 = vpop.f32.mrf.mxu0 }
 0xb39   :  { %v6016_v0 = vadd.f32 %v6015_v21, %v5912_v4  ;;  %v19279_v4 = vld [vmem:[#allocation83_spill] sm:$0xff] }
 0xb3a   :  { %v5824_v44 = vpop.f32.mrf.mxu1 }
 0xb3b   :  { %v5825_v16 = vadd.f32 %v5824_v44, %v5721_v10  ;;  %v6300_v54 = vmax.f32 %v6016_v0, 0.0  ;;  %v11342_v0 = vld [vmem:[%s18547_s3 + $0x108] sm:$0xff]  ;;  %v16823_v44 = vld [vmem:[%s18548_s4] ss:$0 sm:$0xff] }
 0xb3c   :  { %7555 = vmatpush.bf16.msra.mxu0 %v11342_v0 }
 0xb3e   :  { %v5918_v53 = vpop.f32.mrf.mxu2 }
 0xb3f   :  { %v5919_v35 = vadd.f32 %v5918_v53, %v5815_v20 }
 0xb40   :  { %v6017_v41 = vpop.f32.mrf.mxu3  ;;  %v16805_v12 = vpop.f32.mrf.mxu0 }
 0xb41   :  { %v6018_v9 = vadd.f32 %v6017_v41, %v5914_v8  ;;  %v5726_v8 = vadd.f32 %v16423_v38, %v16739_v45  ;;  %v7143_v38 = vadd.f32 %v16823_v44, %v16746_v29 }
 0xb42   :  { %v5827_v6 = vpop.f32.mrf.mxu1 }
 0xb43   :  { %v6309_v56 = vmax.f32 %v6018_v9, 0.0  ;;  %v5828_v49 = vadd.f32 %v5827_v6, %v5724_v40  ;;  %7201 = vmatmul.bf16.gmra.mxu0 %v19277_v15  ;;  %7374 = vmatmul.bf16.gmra.mxu2 %v19278_v37  ;;  %v19283_v15 = vld [vmem:[#allocation99_spill] sm:$0xff]  ;;  %v19284_v37 = vld [vmem:[#allocation84_spill] sm:$0xff] }
 0xb45   :  { %7280 = vmatmul.bf16.gmra.mxu1 %v19279_v4  ;;  %7473 = vmatmul.bf16.gmra.mxu3 %v19280_v26  ;;  %v16811_v20 = vpack.c.bf16 %v6309_v56, %v6300_v54  ;;  %v19282_v56 = vld [vmem:[#allocation77_spill] sm:$0xff]  ;;  %v19285_v4 = vld [vmem:[#allocation115_spill] sm:$0xff] }
 0xb46   :  { %v5921_v62 = vpop.f32.mrf.mxu2 }
 0xb47   :  { %19281 = vst [vmem:[#allocation25_spill] sm:$0xff] %v16811_v20  ;;  %v5922_v46 = vadd.f32 %v5921_v62, %v5818_v39 }
 0xb48   :  { %v6020_v23 = vpop.f32.mrf.mxu3  ;;  %v16815_v2 = vpop.f32.mrf.mxu0 }
 0xb49   :  { %v6021_v14 = vadd.f32 %v6020_v23, %v5917_v32 }
 0xb4a   :  { %v5829_v21 = vpop.f32.mrf.mxu1 }
 0xb4b   :  { %v5830_v10 = vadd.f32 %v5829_v21, %v5726_v8  ;;  %v6318_v9 = vmax.f32 %v6021_v14, 0.0 }
 0xb4e   :  { %v5923_v39 = vpop.f32.mrf.mxu2 }
 0xb4f   :  { %v5924_v53 = vadd.f32 %v5923_v39, %v5820_v24 }
 0xb50   :  { %v6022_v41 = vpop.f32.mrf.mxu3  ;;  %v16827_v32 = vpop.f32.mrf.mxu0 }
 0xb51   :  { %v6023_v45 = vadd.f32 %v6022_v41, %v5919_v35  ;;  %v7145_v35 = vadd.f32 %v16823_v44, %v16756_v63  ;;  %v19288_v63 = vld [vmem:[#allocation100_spill] sm:$0xff] }
 0xb52   :  { %v7246_v40 = vpop.f32.mrf.mxu1 }
 0xb53   :  { %v6327_v6 = vmax.f32 %v6023_v45, 0.0  ;;  %v7247_v54 = vadd.f32 %v7246_v40, %v7143_v38  ;;  %7206 = vmatmul.bf16.gmra.mxu0 %v19282_v56  ;;  %7379 = vmatmul.bf16.gmra.mxu2 %v19283_v15  ;;  %v7148_v38 = vadd.f32 %v16823_v44, %v16760_v34  ;;  %v19287_v15 = vld [vmem:[#allocation31_spill] sm:$0xff] }
 0xb55   :  { %7285 = vmatmul.bf16.gmra.mxu1 %v19284_v37  ;;  %7478 = vmatmul.bf16.gmra.mxu3 %v19285_v4  ;;  %v16833_v24 = vpack.c.bf16 %v6327_v6, %v6318_v9  ;;  %v19290_v37 = vld [vmem:[#allocation116_spill] sm:$0xff] }
 0xb56   :  { %v5926_v26 = vpop.f32.mrf.mxu2 }
 0xb57   :  { %19286 = vst [vmem:[#allocation26_spill] sm:$0xff] %v16833_v24  ;;  %v5927_v62 = vadd.f32 %v5926_v26, %v5823_v33  ;;  %v19321_v24 = vld [vmem:[#allocation38_spill] sm:$0xff] }
 0xb58   :  { %v6025_v29 = vpop.f32.mrf.mxu3  ;;  %v16837_v8 = vpop.f32.mrf.mxu0 }
 0xb59   :  { %v6026_v23 = vadd.f32 %v6025_v29, %v5922_v46  ;;  %v19289_v46 = vld [vmem:[#allocation85_spill] sm:$0xff] }
 0xb5a   :  { %v7248_v14 = vpop.f32.mrf.mxu1 }
 0xb5b   :  { %v7249_v21 = vadd.f32 %v7248_v14, %v7145_v35  ;;  %v6336_v33 = vmax.f32 %v6026_v23, 0.0 }
 0xb5e   :  { %v5928_v0 = vpop.f32.mrf.mxu2 }
 0xb5f   :  { %v5929_v39 = vadd.f32 %v5928_v0, %v5825_v16  ;;  %v11341_v0 = vld [vmem:[%s18547_s3 + $0x100] sm:$0xff] }
 0xb60   :  { %v6027_v41 = vpop.f32.mrf.mxu3  ;;  %v16841_v40 = vpop.f32.mrf.mxu0  ;;  %7556 = vmatpush.bf16.msra.mxu0 %v11341_v0 }
 0xb61   :  { %v6028_v45 = vadd.f32 %v6027_v41, %v5924_v53  ;;  %v7150_v53 = vadd.f32 %v16823_v44, %v16770_v27 }
 0xb62   :  { %v7251_v9 = vpop.f32.mrf.mxu1 }
 0xb63   :  { %v6345_v6 = vmax.f32 %v6028_v45, 0.0  ;;  %v7252_v56 = vadd.f32 %v7251_v9, %v7148_v38  ;;  %7211 = vmatmul.bf16.gmra.mxu0 %v19287_v15  ;;  %7384 = vmatmul.bf16.gmra.mxu2 %v19288_v63  ;;  %v19292_v63 = vld [vmem:[#allocation36_spill] sm:$0xff] }
 0xb65   :  { %7290 = vmatmul.bf16.gmra.mxu1 %v19289_v46  ;;  %7483 = vmatmul.bf16.gmra.mxu3 %v19290_v37  ;;  %v16847_v16 = vpack.c.bf16 %v6345_v6, %v6336_v33  ;;  %v19293_v46 = vld [vmem:[#allocation101_spill] sm:$0xff]  ;;  %v19294_v37 = vld [vmem:[#allocation86_spill] sm:$0xff] }
 0xb66   :  { %v5931_v4 = vpop.f32.mrf.mxu2 }
 0xb67   :  { %19291 = vst [vmem:[#allocation27_spill] sm:$0xff] %v16847_v16  ;;  %v5932_v26 = vadd.f32 %v5931_v4, %v5828_v49  ;;  %v7153_v49 = vadd.f32 %v16823_v44, %v16774_v5  ;;  %v19295_v4 = vld [vmem:[#allocation117_spill] sm:$0xff] }
 0xb68   :  { %v6030_v34 = vpop.f32.mrf.mxu3  ;;  %v16851_v35 = vpop.f32.mrf.mxu0 }
 0xb69   :  { %v6031_v29 = vadd.f32 %v6030_v34, %v5927_v62 }
 0xb6a   :  { %v7253_v23 = vpop.f32.mrf.mxu1 }
 0xb6b   :  { %v7254_v14 = vadd.f32 %v7253_v23, %v7150_v53  ;;  %v6354_v62 = vmax.f32 %v6031_v29, 0.0 }
 0xb6e   :  { %v5933_v41 = vpop.f32.mrf.mxu2 }
 0xb6f   :  { %v5934_v38 = vadd.f32 %v5933_v41, %v5830_v10 }
 0xb70   :  { %v6032_v45 = vpop.f32.mrf.mxu3  ;;  %v16858_v33 = vpop.f32.mrf.mxu0 }
 0xb71   :  { %v6033_v9 = vadd.f32 %v6032_v45, %v5929_v39  ;;  %v7155_v39 = vadd.f32 %v16823_v44, %v16787_v28  ;;  %v19298_v28 = vld [vmem:[#allocation102_spill] sm:$0xff] }
 0xb72   :  { %v7256_v27 = vpop.f32.mrf.mxu1 }
 0xb73   :  { %v6363_v6 = vmax.f32 %v6033_v9, 0.0  ;;  %v7257_v15 = vadd.f32 %v7256_v27, %v7153_v49  ;;  %7216 = vmatmul.bf16.gmra.mxu0 %v19292_v63  ;;  %7389 = vmatmul.bf16.gmra.mxu2 %v19293_v46  ;;  %v7158_v27 = vadd.f32 %v16823_v44, %v16791_v11 }
 0xb75   :  { %7295 = vmatmul.bf16.gmra.mxu1 %v19294_v37  ;;  %7488 = vmatmul.bf16.gmra.mxu3 %v19295_v4  ;;  %v16864_v10 = vpack.c.bf16 %v6363_v6, %v6354_v62  ;;  %v19297_v4 = vld [vmem:[#allocation37_spill] sm:$0xff] }
 0xb76   :  { %v7350_v34 = vpop.f32.mrf.mxu2 }
 0xb77   :  { %19296 = vst [vmem:[#allocation28_spill] sm:$0xff] %v16864_v10  ;;  %v7351_v5 = vadd.f32 %v7350_v34, %v7247_v54  ;;  %v19300_v34 = vld [vmem:[#allocation118_spill] sm:$0xff] }
 0xb78   :  { %v6035_v53 = vpop.f32.mrf.mxu3  ;;  %v16868_v29 = vpop.f32.mrf.mxu0 }
 0xb79   :  { %v6036_v23 = vadd.f32 %v6035_v53, %v5932_v26  ;;  %v19299_v26 = vld [vmem:[#allocation87_spill] sm:$0xff] }
 0xb7a   :  { %v7258_v0 = vpop.f32.mrf.mxu1 }
 0xb7b   :  { %v7259_v41 = vadd.f32 %v7258_v0, %v7155_v39  ;;  %v6372_v46 = vmax.f32 %v6036_v23, 0.0 }
 0xb7e   :  { %v7352_v45 = vpop.f32.mrf.mxu2 }
 0xb7f   :  { %v7353_v9 = vadd.f32 %v7352_v45, %v7249_v21 }
 0xb80   :  { %v6037_v49 = vpop.f32.mrf.mxu3  ;;  %v16872_v62 = vpop.f32.mrf.mxu0 }
 0xb81   :  { %v6038_v63 = vadd.f32 %v6037_v49, %v5934_v38  ;;  %v7160_v38 = vadd.f32 %v16823_v44, %v16801_v22 }
 0xb82   :  { %v7261_v6 = vpop.f32.mrf.mxu1 }
 0xb83   :  { %v6381_v54 = vmax.f32 %v6038_v63, 0.0  ;;  %v7262_v37 = vadd.f32 %v7261_v6, %v7158_v27  ;;  %7221 = vmatmul.bf16.gmra.mxu0 %v19297_v4  ;;  %7394 = vmatmul.bf16.gmra.mxu2 %v19298_v28  ;;  %v11364_v27 = vld [vmem:[%s18547_s3 + $0x1b8] sm:$0xff] }
 0xb84   :  { %v11372_v63 = vld [vmem:[%s18547_s3 + $0x1f8] sm:$0xff]  ;;  %7757 = vmatpush.bf16.msrb.mxu2 %v11364_v27  ;;  %v7165_v27 = vadd.f32 %v16823_v44, %v16815_v2  ;;  %v19307_v2 = vld [vmem:[#allocation104_spill] sm:$0xff] }
 0xb85   :  { %7300 = vmatmul.bf16.gmra.mxu1 %v19299_v26  ;;  %7493 = vmatmul.bf16.gmra.mxu3 %v19300_v34  ;;  %v16878_v53 = vpack.c.bf16 %v6381_v54, %v6372_v46  ;;  %v7163_v46 = vadd.f32 %v16823_v44, %v16805_v12  ;;  %v19302_v34 = vld [vmem:[#allocation78_spill] sm:$0xff] }
 0xb86   :  { %v7355_v21 = vpop.f32.mrf.mxu2  ;;  %7861 = vmatpush.bf16.msrb.mxu3 %v11372_v63 }
 0xb87   :  { %19301 = vst [vmem:[#allocation29_spill] sm:$0xff] %v16878_v53  ;;  %v7356_v39 = vadd.f32 %v7355_v21, %v7252_v56  ;;  %v11356_v56 = vld [vmem:[%s18547_s3 + $0x178] sm:$0xff]  ;;  %v19303_v21 = vld [vmem:[#allocation103_spill] sm:$0xff] }
 0xb88   :  { %v7454_v11 = vpop.f32.mrf.mxu3  ;;  %v16884_v23 = vpop.f32.mrf.mxu0  ;;  %7653 = vmatpush.bf16.msra.mxu1 %v11356_v56 }
 0xb89   :  { %v16882_v0 = vadd.f32 %v7454_v11, %v7351_v5  ;;  %v19304_v11 = vld [vmem:[#allocation88_spill] sm:$0xff] }
 0xb8a   :  { %v7263_v45 = vpop.f32.mrf.mxu1 }
 0xb8b   :  { %v7264_v49 = vadd.f32 %v7263_v45, %v7160_v38  ;;  %v19305_v38 = vld [vmem:[#allocation119_spill] sm:$0xff] }
 0xb8e   :  { %v7357_v22 = vpop.f32.mrf.mxu2 }
 0xb8f   :  { %v7358_v5 = vadd.f32 %v7357_v22, %v7254_v14  ;;  %v11380_v14 = vld [vmem:[%s18547_s3 + $0x238] sm:$0xff] }
 0xb90   :  { %v7456_v6 = vpop.f32.mrf.mxu3  ;;  %v16899_v4 = vpop.f32.mrf.mxu0  ;;  %7965 = vmatpush.bf16.msrb.mxu0 %v11380_v14 }
 0xb91   :  { %v16897_v54 = vadd.f32 %v7456_v6, %v7353_v9 }
 0xb92   :  { %v7266_v28 = vpop.f32.mrf.mxu1 }
 0xb93   :  { %v7267_v26 = vadd.f32 %v7266_v28, %v7163_v46  ;;  %7226 = vmatmul.bf16.gmra.mxu0 %v19302_v34  ;;  %7399 = vmatmul.bf16.gmra.mxu2 %v19303_v21  ;;  %v7168_v21 = vadd.f32 %v16823_v44, %v16827_v32  ;;  %v7170_v32 = vadd.f32 %v16823_v44, %v16837_v8  ;;  %v11363_v8 = vld [vmem:[%s18547_s3 + $0x1b0] sm:$0xff] }
 0xb94   :  { %7758 = vmatpush.bf16.msrb.mxu2 %v11363_v8 }
 0xb95   :  { %7305 = vmatmul.bf16.gmra.mxu1 %v19304_v11  ;;  %7498 = vmatmul.bf16.gmra.mxu3 %v19305_v38 }
 0xb96   :  { %v7360_v45 = vpop.f32.mrf.mxu2 }
 0xb97   :  { %v7361_v12 = vadd.f32 %v7360_v45, %v7257_v15  ;;  %v19306_v45 = vld [vmem:[#allocation79_spill] sm:$0xff] }
 0xb98   :  { %v7459_v9 = vpop.f32.mrf.mxu3  ;;  %v16912_v56 = vpop.f32.mrf.mxu0 }
 0xb99   :  { %v16910_v63 = vadd.f32 %v7459_v9, %v7356_v39  ;;  %v19308_v39 = vld [vmem:[#allocation89_spill] sm:$0xff]  ;;  %v19309_v9 = vld [vmem:[#allocation120_spill] sm:$0xff]  ;;  %v7190_v55 = vadd.f32 %v16823_v44, %v16912_v56 }
 0xb9a   :  { %v7268_v22 = vpop.f32.mrf.mxu1 }
 0xb9b   :  { %v7269_v6 = vadd.f32 %v7268_v22, %v7165_v27 }
 0xb9e   :  { %v7362_v46 = vpop.f32.mrf.mxu2 }
 0xb9f   :  { %v7363_v28 = vadd.f32 %v7362_v46, %v7259_v41 }
 0xba0   :  { %v7461_v34 = vpop.f32.mrf.mxu3  ;;  %v16918_v38 = vpop.f32.mrf.mxu0 }
 0xba1   :  { %v16916_v11 = vadd.f32 %v7461_v34, %v7358_v5 }
 0xba2   :  { %v7271_v15 = vpop.f32.mrf.mxu1 }
 0xba3   :  { %v7272_v14 = vadd.f32 %v7271_v15, %v7168_v21  ;;  %7231 = vmatmul.bf16.gmra.mxu0 %v19306_v45  ;;  %7404 = vmatmul.bf16.gmra.mxu2 %v19307_v2  ;;  %v7173_v2 = vadd.f32 %v16823_v44, %v16841_v40  ;;  %v19312_v40 = vld [vmem:[#allocation90_spill] sm:$0xff] }
 0xba5   :  { %7310 = vmatmul.bf16.gmra.mxu1 %v19308_v39  ;;  %7503 = vmatmul.bf16.gmra.mxu3 %v19309_v9 }
 0xba6   :  { %v7365_v27 = vpop.f32.mrf.mxu2 }
 0xba7   :  { %v7366_v41 = vadd.f32 %v7365_v27, %v7262_v37  ;;  %v11371_v27 = vld [vmem:[%s18547_s3 + $0x1f0] sm:$0xff] }
 0xba8   :  { %v7464_v22 = vpop.f32.mrf.mxu3  ;;  %v16928_v46 = vpop.f32.mrf.mxu0  ;;  %7862 = vmatpush.bf16.msrb.mxu3 %v11371_v27 }
 0xba9   :  { %v16926_v5 = vadd.f32 %v7464_v22, %v7361_v12  ;;  %v19311_v22 = vld [vmem:[#allocation128_spill] sm:$0xff] }
 0xbaa   :  { %v7273_v34 = vpop.f32.mrf.mxu1 }
 0xbab   :  { %v7274_v21 = vadd.f32 %v7273_v34, %v7170_v32 }
 0xbae   :  { %v7367_v15 = vpop.f32.mrf.mxu2 }
 0xbaf   :  { %v7368_v45 = vadd.f32 %v7367_v15, %v7264_v49  ;;  %v19310_v49 = vld [vmem:[#allocation105_spill] sm:$0xff] }
 0xbb0   :  { %v7466_v53 = vpop.f32.mrf.mxu3  ;;  %v16934_v9 = vpop.f32.mrf.mxu0 }
 0xbb1   :  { %v16932_v39 = vadd.f32 %v7466_v53, %v7363_v28  ;;  %v19313_v53 = vld [vmem:[#allocation121_spill] sm:$0xff]  ;;  %v11355_v28 = vld [vmem:[%s18547_s3 + $0x170] sm:$0xff] }
 0xbb2   :  { %v7276_v37 = vpop.f32.mrf.mxu1  ;;  %7654 = vmatpush.bf16.msra.mxu1 %v11355_v28 }
 0xbb3   :  { %v7277_v12 = vadd.f32 %v7276_v37, %v7173_v2  ;;  %7409 = vmatmul.bf16.gmra.mxu2 %v19310_v49  ;;  %7557 = vmatmul.bf16.vlgmr.msra.gmra.mxu0 %v19311_v22  ;;  %v7175_v2 = vadd.f32 %v16823_v44, %v16851_v35 }
 0xbb5   :  { %7315 = vmatmul.bf16.gmra.mxu1 %v19312_v40  ;;  %7508 = vmatmul.bf16.gmra.mxu3 %v19313_v53  ;;  %v11379_v40 = vld [vmem:[%s18547_s3 + $0x230] sm:$0xff] }
 0xbb6   :  { %v7370_v32 = vpop.f32.mrf.mxu2  ;;  %7966 = vmatpush.bf16.msrb.mxu0 %v11379_v40  ;;  %v19317_v40 = vld [vmem:[#allocation122_spill] sm:$0xff] }
 0xbb7   :  { %v7371_v34 = vadd.f32 %v7370_v32, %v7267_v26  ;;  %v7178_v26 = vadd.f32 %v16823_v44, %v16858_v33  ;;  %v7180_v33 = vadd.f32 %v16823_v44, %v16868_v29 }
 0xbb8   :  { %v7469_v15 = vpop.f32.mrf.mxu3  ;;  %v16953_v37 = vpop.f32.mrf.mxu0 }
 0xbb9   :  { %v16951_v8 = vadd.f32 %v7469_v15, %v7366_v41  ;;  %v19314_v15 = vld [vmem:[#allocation106_spill] sm:$0xff] }
 0xbba   :  { %v7278_v49 = vpop.f32.mrf.mxu1 }
 0xbbb   :  { %v7279_v22 = vadd.f32 %v7278_v49, %v7175_v2  ;;  %v19315_v2 = vld [vmem:[#allocation129_spill] sm:$0xff]  ;;  %v19316_v49 = vld [vmem:[#allocation91_spill] sm:$0xff] }
 0xbbe   :  { %v7372_v53 = vpop.f32.mrf.mxu2 }
 0xbbf   :  { %v7373_v27 = vadd.f32 %v7372_v53, %v7269_v6 }
 0xbc0   :  { %v7471_v10 = vpop.f32.mrf.mxu3  ;;  %v16962_v35 = vpop.f32.mrf.mxu0 }
 0xbc1   :  { %v16960_v28 = vadd.f32 %v7471_v10, %v7368_v45 }
 0xbc2   :  { %v7281_v41 = vpop.f32.mrf.mxu1 }
 0xbc3   :  { %v16964_v32 = vadd.f32 %v7281_v41, %v7178_v26  ;;  %7414 = vmatmul.bf16.gmra.mxu2 %v19314_v15  ;;  %7562 = vmatmul.bf16.gmra.mxu0 %v19315_v2  ;;  %v11354_v15 = vld [vmem:[%s18547_s3 + $0x168] sm:$0xff] }
 0xbc4   :  { %7655 = vmatpush.bf16.msra.mxu1 %v11354_v15  ;;  %v19319_v15 = vld [vmem:[#allocation130_spill] sm:$0xff] }
 0xbc5   :  { %7320 = vmatmul.bf16.gmra.mxu1 %v19316_v49  ;;  %7513 = vmatmul.bf16.gmra.mxu3 %v19317_v40 }
 0xbc6   :  { %v7375_v6 = vpop.f32.mrf.mxu2 }
 0xbc7   :  { %v7376_v53 = vadd.f32 %v7375_v6, %v7272_v14  ;;  %v11353_v14 = vld [vmem:[%s18547_s3 + $0x160] sm:$0xff] }
 0xbc8   :  { %v7474_v16 = vpop.f32.mrf.mxu3  ;;  %v16974_v45 = vpop.f32.mrf.mxu0  ;;  %7656 = vmatpush.bf16.msra.mxu1 %v11353_v14 }
 0xbc9   :  { %v16972_v10 = vadd.f32 %v7474_v16, %v7371_v34  ;;  %v7183_v16 = vadd.f32 %v16823_v44, %v16872_v62  ;;  %v11362_v62 = vld [vmem:[%s18547_s3 + $0x1a8] sm:$0xff] }
 0xbca   :  { %v7283_v26 = vpop.f32.mrf.mxu1  ;;  %7759 = vmatpush.bf16.msrb.mxu2 %v11362_v62 }
 0xbcb   :  { %v7284_v41 = vadd.f32 %v7283_v26, %v7180_v33  ;;  %v19318_v26 = vld [vmem:[#allocation42_spill] sm:$0xff] }
 0xbce   :  { %v7377_v2 = vpop.f32.mrf.mxu2 }
 0xbcf   :  { %v7378_v49 = vadd.f32 %v7377_v2, %v7274_v21  ;;  %v11352_v21 = vld [vmem:[%s18547_s3 + $0x158] sm:$0xff]  ;;  %v19320_v2 = vld [vmem:[#allocation3_spill] sm:$0xff] }
 0xbd0   :  { %v7476_v40 = vpop.f32.mrf.mxu3  ;;  %v16986_v34 = vpop.f32.mrf.mxu0  ;;  %7657 = vmatpush.bf16.msra.mxu1 %v11352_v21 }
 0xbd1   :  { %v16984_v29 = vadd.f32 %v7476_v40, %v7373_v27 }
 0xbd2   :  { %v7286_v6 = vpop.f32.mrf.mxu1 }
 0xbd3   :  { %v16988_v33 = vadd.f32 %v7286_v6, %v7183_v16  ;;  %7419 = vmatmul.bf16.gmra.mxu2 %v19318_v26  ;;  %7567 = vmatmul.bf16.gmra.mxu0 %v19319_v15  ;;  %v11351_v16 = vld [vmem:[%s18547_s3 + $0x150] sm:$0xff]  ;;  %v7185_v6 = vadd.f32 %v16823_v44, %v16884_v23 }
 0xbd4   :  { %7658 = vmatpush.bf16.msra.mxu1 %v11351_v16 }
 0xbd5   :  { %7325 = vmatmul.bf16.gmra.mxu1 %v19320_v2  ;;  %7518 = vmatmul.bf16.gmra.mxu3 %v19321_v24  ;;  %v11370_v24 = vld [vmem:[%s18547_s3 + $0x1e8] sm:$0xff] }
 0xbd6   :  { %v7380_v27 = vpop.f32.mrf.mxu2  ;;  %7863 = vmatpush.bf16.msrb.mxu3 %v11370_v24 }
 0xbd7   :  { %v7381_v40 = vadd.f32 %v7380_v27, %v7277_v12  ;;  %v11350_v12 = vld [vmem:[%s18547_s3 + $0x148] sm:$0xff] }
 0xbd8   :  { %v7479_v14 = vpop.f32.mrf.mxu3  ;;  %v17007_v15 = vpop.f32.mrf.mxu0  ;;  %7659 = vmatpush.bf16.msra.mxu1 %v11350_v12  ;;  %v19323_v12 = vld [vmem:[#allocation57_spill] sm:$0xff] }
 0xbd9   :  { %v17005_v26 = vadd.f32 %v7479_v14, %v7376_v53  ;;  %v11349_v53 = vld [vmem:[%s18547_s3 + $0x140] sm:$0xff]  ;;  %v7188_v14 = vadd.f32 %v16823_v44, %v16899_v4  ;;  %v19325_v4 = vld [vmem:[#allocation123_spill] sm:$0xff] }
 0xbda   :  { %v7288_v21 = vpop.f32.mrf.mxu1 }
 0xbdb   :  { %v7289_v2 = vadd.f32 %v7288_v21, %v7185_v6  ;;  %v11378_v6 = vld [vmem:[%s18547_s3 + $0x228] sm:$0xff] }
 0xbdc   :  { %7660 = vmatpush.bf16.msra.mxu1 %v11349_v53  ;;  %7967 = vmatpush.bf16.msrb.mxu0 %v11378_v6 }
 0xbde   :  { %v7382_v62 = vpop.f32.mrf.mxu2 }
 0xbdf   :  { %v7383_v27 = vadd.f32 %v7382_v62, %v7279_v22  ;;  %v19322_v22 = vld [vmem:[#allocation107_spill] sm:$0xff]  ;;  %v19324_v62 = vld [vmem:[#allocation92_spill] sm:$0xff] }
 0xbe0   :  { %v7481_v23 = vpop.f32.mrf.mxu3  ;;  %v17022_v16 = vpop.f32.mrf.mxu0 }
 0xbe1   :  { %v17020_v20 = vadd.f32 %v7481_v23, %v7378_v49 }
 0xbe2   :  { %v7291_v24 = vpop.f32.mrf.mxu1 }
 0xbe3   :  { %v17027_v21 = vadd.f32 %v7291_v24, %v7188_v14  ;;  %7424 = vmatmul.bf16.gmra.mxu2 %v19322_v22  ;;  %7572 = vmatmul.bf16.gmra.mxu0 %v19323_v12 }
 0xbe5   :  { %7330 = vmatmul.bf16.gmra.mxu1 %v19324_v62  ;;  %7523 = vmatmul.bf16.gmra.mxu3 %v19325_v4  ;;  %v11361_v62 = vld [vmem:[%s18547_s3 + $0x1a0] sm:$0xff] }
 0xbe6   :  { %v7385_v49 = vpop.f32.mrf.mxu2  ;;  %7760 = vmatpush.bf16.msrb.mxu2 %v11361_v62  ;;  %v11359_v62 = vld [vmem:[%s18547_s3 + $0x190] sm:$0xff] }
 0xbe7   :  { %v7386_v23 = vadd.f32 %v7385_v49, %v16964_v32  ;;  %v7193_v32 = vadd.f32 %v16823_v44, %v16918_v38 }
 0xbe8   :  { %v7484_v36 = vpop.f32.mrf.mxu3  ;;  %v17038_v53 = vpop.f32.mrf.mxu0 }
 0xbe9   :  { %v17036_v48 = vadd.f32 %v7484_v36, %v7381_v40  ;;  %v19326_v40 = vld [vmem:[#allocation108_spill] sm:$0xff] }
 0xbea   :  { %v7293_v14 = vpop.f32.mrf.mxu1 }
 0xbeb   :  { %v7294_v6 = vadd.f32 %v7293_v14, %v7190_v55  ;;  %v19327_v55 = vld [vmem:[#allocation131_spill] sm:$0xff]  ;;  %v19328_v14 = vld [vmem:[#allocation93_spill] sm:$0xff] }
 0xbee   :  { %v7387_v24 = vpop.f32.mrf.mxu2 }
 0xbef   :  { %v7388_v22 = vadd.f32 %v7387_v24, %v7284_v41  ;;  %v11360_v41 = vld [vmem:[%s18547_s3 + $0x198] sm:$0xff]  ;;  %v19329_v24 = vld [vmem:[#allocation124_spill] sm:$0xff] }
 0xbf0   :  { %v7486_v12 = vpop.f32.mrf.mxu3  ;;  %v17047_v49 = vpop.f32.mrf.mxu0  ;;  %7761 = vmatpush.bf16.msrb.mxu2 %v11360_v41  ;;  %v11358_v41 = vld [vmem:[%s18547_s3 + $0x188] sm:$0xff] }
 0xbf1   :  { %v17045_v4 = vadd.f32 %v7486_v12, %v7383_v27 }
 0xbf2   :  { %v7296_v36 = vpop.f32.mrf.mxu1 }
 0xbf3   :  { %v17049_v56 = vadd.f32 %v7296_v36, %v7193_v32  ;;  %7429 = vmatmul.bf16.gmra.mxu2 %v19326_v40  ;;  %7577 = vmatmul.bf16.gmra.mxu0 %v19327_v55  ;;  %v7195_v32 = vadd.f32 %v16823_v44, %v16928_v46 }
 0xbf4   :  { %7762 = vmatpush.bf16.msrb.mxu2 %v11359_v62 }
 0xbf5   :  { %7335 = vmatmul.bf16.gmra.mxu1 %v19328_v14  ;;  %7528 = vmatmul.bf16.gmra.mxu3 %v19329_v24 }
 0xbf6   :  { %v7390_v38 = vpop.f32.mrf.mxu2 }
 0xbf7   :  { %v7391_v27 = vadd.f32 %v7390_v38, %v16988_v33  ;;  %v11369_v33 = vld [vmem:[%s18547_s3 + $0x1e0] sm:$0xff] }
 0xbf8   :  { %v7489_v12 = vpop.f32.mrf.mxu3  ;;  %v17066_v40 = vpop.f32.mrf.mxu0  ;;  %7864 = vmatpush.bf16.msrb.mxu3 %v11369_v33  ;;  %7763 = vmatpush.bf16.msrb.mxu2 %v11358_v41  ;;  %v19331_v41 = vld [vmem:[#allocation132_spill] sm:$0xff]  ;;  %v19332_v33 = vld [vmem:[#allocation125_spill] sm:$0xff] }
 0xbf9   :  { %v17064_v36 = vadd.f32 %v7489_v12, %v7386_v23  ;;  %v11357_v23 = vld [vmem:[%s18547_s3 + $0x180] sm:$0xff]  ;;  %v7198_v12 = vadd.f32 %v16823_v44, %v16934_v9 }
 0xbfa   :  { %v7298_v55 = vpop.f32.mrf.mxu1  ;;  %v11377_v9 = vld [vmem:[%s18547_s3 + $0x220] sm:$0xff] }
 0xbfb   :  { %v7299_v14 = vadd.f32 %v7298_v55, %v7195_v32  ;;  %7968 = vmatpush.bf16.msrb.mxu0 %v11377_v9 }
 0xbfc   :  { %7764 = vmatpush.bf16.msrb.mxu2 %v11357_v23  ;;  %v11367_v23 = vld [vmem:[%s18547_s3 + $0x1d0] sm:$0xff] }
 0xbfe   :  { %v7392_v24 = vpop.f32.mrf.mxu2 }
 0xbff   :  { %v7393_v38 = vadd.f32 %v7392_v24, %v7289_v2  ;;  %v11368_v2 = vld [vmem:[%s18547_s3 + $0x1d8] sm:$0xff] }
 0xc00   :  { %v7491_v46 = vpop.f32.mrf.mxu3  ;;  %v17081_v32 = vpop.f32.mrf.mxu0  ;;  %v19333_v24 = vld [vmem:[#allocation145_spill] sm:$0xff]  ;;  %7865 = vmatpush.bf16.msrb.mxu3 %v11368_v2  ;;  %v11366_v2 = vld [vmem:[%s18547_s3 + $0x1c8] sm:$0xff] }
 0xc01   :  { %v17079_v62 = vadd.f32 %v7491_v46, %v7388_v22 }
 0xc02   :  { %v7301_v55 = vpop.f32.mrf.mxu1 }
 0xc03   :  { %v7302_v52 = vadd.f32 %v7301_v55, %v7198_v12  ;;  %7434 = vmatmul.bf16.gmra.mxu2 %v19330_v43  ;;  %7582 = vmatmul.bf16.gmra.mxu0 %v19331_v41  ;;  %v7200_v12 = vadd.f32 %v16823_v44, %v16953_v37  ;;  %v7203_v37 = vadd.f32 %v16823_v44, %v16962_v35 }
 0xc04   :  { %7866 = vmatpush.bf16.msrb.mxu3 %v11367_v23  ;;  %v7205_v35 = vadd.f32 %v16823_v44, %v16974_v45  ;;  %v19340_v45 = vld [vmem:[#allocation127_spill] sm:$0xff] }
 0xc05   :  { %7533 = vmatmul.bf16.gmra.mxu3 %v19332_v33  ;;  %7661 = vmatmul.bf16.vlgmr.msra.gmra.mxu1 %v19333_v24 }
 0xc06   :  { %v7395_v22 = vpop.f32.mrf.mxu2 }
 0xc07   :  { %v7396_v46 = vadd.f32 %v7395_v22, %v17027_v21 }
 0xc08   :  { %v7494_v43 = vpop.f32.mrf.mxu3  ;;  %v17101_v41 = vpop.f32.mrf.mxu0  ;;  %7867 = vmatpush.bf16.msrb.mxu3 %v11366_v2  ;;  %v19335_v2 = vld [vmem:[#allocation133_spill] sm:$0xff] }
 0xc09   :  { %v17099_v55 = vadd.f32 %v7494_v43, %v7391_v27 }
 0xc0a   :  { %v7303_v33 = vpop.f32.mrf.mxu1 }
 0xc0b   :  { %v7304_v24 = vadd.f32 %v7303_v33, %v7200_v12  ;;  %v19334_v33 = vld [vmem:[#allocation110_spill] sm:$0xff] }
 0xc0c   :  { %7868 = vmatpush.bf16.msrb.mxu3 %v11365_v13 }
 0xc0e   :  { %v7397_v21 = vpop.f32.mrf.mxu2 }
 0xc0f   :  { %v7398_v9 = vadd.f32 %v7397_v21, %v7294_v6  ;;  %v19336_v6 = vld [vmem:[#allocation126_spill] sm:$0xff] }
 0xc10   :  { %v7496_v22 = vpop.f32.mrf.mxu3  ;;  %v17113_v43 = vpop.f32.mrf.mxu0  ;;  %v19337_v21 = vld [vmem:[#allocation146_spill] sm:$0xff] }
 0xc11   :  { %v17111_v27 = vadd.f32 %v7496_v22, %v7393_v38 }
 0xc12   :  { %v7306_v23 = vpop.f32.mrf.mxu1 }
 0xc13   :  { %v7307_v12 = vadd.f32 %v7306_v23, %v7203_v37  ;;  %7439 = vmatmul.bf16.gmra.mxu2 %v19334_v33  ;;  %7587 = vmatmul.bf16.gmra.mxu0 %v19335_v2 }
 0xc15   :  { %7538 = vmatmul.bf16.gmra.mxu3 %v19336_v6  ;;  %7666 = vmatmul.bf16.gmra.mxu1 %v19337_v21  ;;  %v7208_v6 = vadd.f32 %v16823_v44, %v16986_v34  ;;  %v7210_v34 = vadd.f32 %v16823_v44, %v17007_v15 }
 0xc16   :  { %v7400_v31 = vpop.f32.mrf.mxu2 }
 0xc17   :  { %v7401_v61 = vadd.f32 %v7400_v31, %v17049_v56 }
 0xc18   :  { %v7499_v60 = vpop.f32.mrf.mxu3  ;;  %v17124_v22 = vpop.f32.mrf.mxu0 }
 0xc19   :  { %v17122_v38 = vadd.f32 %v7499_v60, %v7396_v46  ;;  %v19339_v60 = vld [vmem:[#allocation163_spill] sm:$0xff] }
 0xc1a   :  { %v7308_v13 = vpop.f32.mrf.mxu1  ;;  %v19341_v46 = vld [vmem:[#allocation147_spill] sm:$0xff] }
 0xc1b   :  { %v7309_v37 = vadd.f32 %v7308_v13, %v7205_v35 }
 0xc1e   :  { %v7402_v23 = vpop.f32.mrf.mxu2 }
 0xc1f   :  { %v7403_v33 = vadd.f32 %v7402_v23, %v7299_v14 }
 0xc20   :  { %v7501_v2 = vpop.f32.mrf.mxu3  ;;  %v17130_v57 = vpop.f32.mrf.mxu0 }
 0xc21   :  { %v17128_v21 = vadd.f32 %v7501_v2, %v7398_v9 }
 0xc22   :  { %v7311_v31 = vpop.f32.mrf.mxu1 }
 0xc23   :  { %v7312_v56 = vadd.f32 %v7311_v31, %v7208_v6  ;;  %7592 = vmatmul.bf16.gmra.mxu0 %v19338_v50  ;;  %7765 = vmatmul.bf16.vlgmr.msrb.gmra.mxu2 %v19339_v60  ;;  %v11376_v50 = vld [vmem:[%s18547_s3 + $0x218] sm:$0xff] }
 0xc24   :  { %7969 = vmatpush.bf16.msrb.mxu0 %v11376_v50  ;;  %v19345_v50 = vld [vmem:[#allocation181_spill] sm:$0xff] }
 0xc25   :  { %7543 = vmatmul.bf16.gmra.mxu3 %v19340_v45  ;;  %7671 = vmatmul.bf16.gmra.mxu1 %v19341_v46 }
 0xc26   :  { %v7405_v35 = vpop.f32.mrf.mxu2 }
 0xc27   :  { %v7406_v14 = vadd.f32 %v7405_v35, %v7302_v52  ;;  %v7213_v52 = vadd.f32 %v16823_v44, %v17022_v16  ;;  %v7215_v16 = vadd.f32 %v16823_v44, %v17038_v53 }
 0xc28   :  { %v7504_v13 = vpop.f32.mrf.mxu3  ;;  %v17140_v23 = vpop.f32.mrf.mxu0 }
 0xc29   :  { %v17138_v9 = vadd.f32 %v7504_v13, %v7401_v61 }
 0xc2a   :  { %v7313_v2 = vpop.f32.mrf.mxu1 }
 0xc2b   :  { %v7314_v6 = vadd.f32 %v7313_v2, %v7210_v34  ;;  %v19342_v34 = vld [vmem:[#allocation135_spill] sm:$0xff]  ;;  %v19343_v2 = vld [vmem:[#allocation164_spill] sm:$0xff] }
 0xc2e   :  { %v7407_v31 = vpop.f32.mrf.mxu2 }
 0xc2f   :  { %v7408_v60 = vadd.f32 %v7407_v31, %v7304_v24 }
 0xc30   :  { %v7506_v45 = vpop.f32.mrf.mxu3  ;;  %v7558_v15 = vpop.f32.mrf.mxu0 }
 0xc31   :  { %v17147_v46 = vadd.f32 %v7506_v45, %v7403_v33  ;;  %v17150_v35 = vadd.f32 %v7558_v15, %v16882_v0 }
 0xc32   :  { %v7316_v61 = vpop.f32.mrf.mxu1 }
 0xc33   :  { %v7317_v13 = vadd.f32 %v7316_v61, %v7213_v52  ;;  %7597 = vmatmul.bf16.gmra.mxu0 %v19342_v34  ;;  %7770 = vmatmul.bf16.gmra.mxu2 %v19343_v2 }
 0xc35   :  { %7676 = vmatmul.bf16.gmra.mxu1 %v19344_v7  ;;  %7869 = vmatmul.bf16.vlgmr.msrb.gmra.mxu3 %v19345_v50  ;;  %v7218_v7 = vadd.f32 %v16823_v44, %v17047_v49  ;;  %v7220_v49 = vadd.f32 %v16823_v44, %v17066_v40 }
 0xc36   :  { %v7410_v24 = vpop.f32.mrf.mxu2 }
 0xc37   :  { %v7411_v31 = vadd.f32 %v7410_v24, %v7307_v12 }
 0xc38   :  { %v7509_v18 = vpop.f32.mrf.mxu3  ;;  %v7560_v45 = vpop.f32.mrf.mxu0 }
 0xc39   :  { %v17158_v33 = vadd.f32 %v7509_v18, %v7406_v14  ;;  %v17161_v52 = vadd.f32 %v7560_v45, %v16897_v54  ;;  %v19346_v14 = vld [vmem:[#allocation136_spill] sm:$0xff]  ;;  %v19348_v54 = vld [vmem:[#allocation10_spill] sm:$0xff] }
 0xc3a   :  { %v7318_v0 = vpop.f32.mrf.mxu1 }
 0xc3b   :  { %v7319_v15 = vadd.f32 %v7318_v0, %v7215_v16  ;;  %v19349_v16 = vld [vmem:[#allocation182_spill] sm:$0xff] }
 0xc3e   :  { %v7412_v61 = vpop.f32.mrf.mxu2 }
 0xc3f   :  { %v7413_v34 = vadd.f32 %v7412_v61, %v7309_v37 }
 0xc40   :  { %v7511_v2 = vpop.f32.mrf.mxu3  ;;  %v7563_v12 = vpop.f32.mrf.mxu0 }
 0xc41   :  { %v17165_v50 = vadd.f32 %v7511_v2, %v7408_v60  ;;  %v17168_v53 = vadd.f32 %v7563_v12, %v16910_v63 }
 0xc42   :  { %v7321_v24 = vpop.f32.mrf.mxu1 }
 0xc43   :  { %v7322_v18 = vadd.f32 %v7321_v24, %v7218_v7  ;;  %7602 = vmatmul.bf16.gmra.mxu0 %v19346_v14  ;;  %7775 = vmatmul.bf16.gmra.mxu2 %v19347_v58  ;;  %v7223_v14 = vadd.f32 %v16823_v44, %v17081_v32 }
 0xc45   :  { %7681 = vmatmul.bf16.gmra.mxu1 %v19348_v54  ;;  %7874 = vmatmul.bf16.gmra.mxu3 %v19349_v16 }
 0xc46   :  { %v7415_v37 = vpop.f32.mrf.mxu2 }
 0xc47   :  { %v7416_v45 = vadd.f32 %v7415_v37, %v7312_v56  ;;  %v19350_v37 = vld [vmem:[#allocation137_spill] sm:$0xff] }
 0xc48   :  { %v7514_v0 = vpop.f32.mrf.mxu3  ;;  %v7565_v61 = vpop.f32.mrf.mxu0 }
 0xc49   :  { %v17176_v60 = vadd.f32 %v7514_v0, %v7411_v31  ;;  %v17179_v2 = vadd.f32 %v7565_v61, %v16916_v11  ;;  %v11375_v11 = vld [vmem:[%s18547_s3 + $0x210] sm:$0xff]  ;;  %v19351_v0 = vld [vmem:[#allocation166_spill] sm:$0xff] }
 0xc4a   :  { %v7323_v63 = vpop.f32.mrf.mxu1  ;;  %7970 = vmatpush.bf16.msrb.mxu0 %v11375_v11  ;;  %v7228_v11 = vadd.f32 %v16823_v44, %v17113_v43  ;;  %v7230_v43 = vadd.f32 %v16823_v44, %v17124_v22 }
 0xc4b   :  { %v7324_v7 = vadd.f32 %v7323_v63, %v7220_v49  ;;  %v19353_v49 = vld [vmem:[#allocation2_spill] sm:$0xff] }
 0xc4e   :  { %v7417_v12 = vpop.f32.mrf.mxu2 }
 0xc4f   :  { %v7418_v58 = vadd.f32 %v7417_v12, %v7314_v6  ;;  %v19352_v6 = vld [vmem:[#allocation149_spill] sm:$0xff] }
 0xc50   :  { %v7516_v24 = vpop.f32.mrf.mxu3  ;;  %v7568_v56 = vpop.f32.mrf.mxu0 }
 0xc51   :  { %v17183_v54 = vadd.f32 %v7516_v24, %v7413_v34  ;;  %v17186_v40 = vadd.f32 %v7568_v56, %v16926_v5  ;;  %v7225_v5 = vadd.f32 %v16823_v44, %v17101_v41 }
 0xc52   :  { %v7326_v16 = vpop.f32.mrf.mxu1 }
 0xc53   :  { %v7327_v31 = vadd.f32 %v7326_v16, %v7223_v14  ;;  %7607 = vmatmul.bf16.gmra.mxu0 %v19350_v37  ;;  %7780 = vmatmul.bf16.gmra.mxu2 %v19351_v0 }
 0xc55   :  { %7686 = vmatmul.bf16.gmra.mxu1 %v19352_v6  ;;  %7879 = vmatmul.bf16.gmra.mxu3 %v19353_v49 }
 0xc56   :  { %v7420_v32 = vpop.f32.mrf.mxu2 }
 0xc57   :  { %v7421_v34 = vadd.f32 %v7420_v32, %v7317_v13  ;;  %v19354_v32 = vld [vmem:[#allocation138_spill] sm:$0xff] }
 0xc58   :  { %v7519_v61 = vpop.f32.mrf.mxu3  ;;  %v7570_v12 = vpop.f32.mrf.mxu0 }
 0xc59   :  { %v17197_v63 = vadd.f32 %v7519_v61, %v7416_v45  ;;  %v17200_v14 = vadd.f32 %v7570_v12, %v16932_v39  ;;  %v19355_v61 = vld [vmem:[#allocation59_spill] sm:$0xff]  ;;  %v19356_v39 = vld [vmem:[#allocation150_spill] sm:$0xff] }
 0xc5a   :  { %v7328_v24 = vpop.f32.mrf.mxu1 }
 0xc5b   :  { %v7329_v56 = vadd.f32 %v7328_v24, %v7225_v5  ;;  %v19357_v5 = vld [vmem:[#allocation183_spill] sm:$0xff] }
 0xc5e   :  { %v7422_v16 = vpop.f32.mrf.mxu2 }
 0xc5f   :  { %v7423_v37 = vadd.f32 %v7422_v16, %v7319_v15 }
 0xc60   :  { %v7521_v0 = vpop.f32.mrf.mxu3  ;;  %v7573_v13 = vpop.f32.mrf.mxu0 }
 0xc61   :  { %v17204_v6 = vadd.f32 %v7521_v0, %v7418_v58  ;;  %v17207_v41 = vadd.f32 %v7573_v13, %v16951_v8 }
 0xc62   :  { %v7331_v49 = vpop.f32.mrf.mxu1 }
 0xc63   :  { %v7332_v45 = vadd.f32 %v7331_v49, %v7228_v11  ;;  %7612 = vmatmul.bf16.gmra.mxu0 %v19354_v32  ;;  %7785 = vmatmul.bf16.gmra.mxu2 %v19355_v61  ;;  %v7233_v61 = vadd.f32 %v16823_v44, %v17130_v57  ;;  %v7235_v57 = vadd.f32 %v16823_v44, %v17140_v23 }
 0xc65   :  { %7691 = vmatmul.bf16.gmra.mxu1 %v19356_v39  ;;  %7884 = vmatmul.bf16.gmra.mxu3 %v19357_v5 }
 0xc66   :  { %v7425_v15 = vpop.f32.mrf.mxu2 }
 0xc67   :  { %v7426_v12 = vadd.f32 %v7425_v15, %v7322_v18  ;;  %v19358_v15 = vld [vmem:[#allocation16_spill] sm:$0xff] }
 0xc68   :  { %v7524_v24 = vpop.f32.mrf.mxu3  ;;  %v7575_v16 = vpop.f32.mrf.mxu0 }
 0xc69   :  { %v17215_v58 = vadd.f32 %v7524_v24, %v7421_v34  ;;  %v17218_v0 = vadd.f32 %v7575_v16, %v16960_v28  ;;  %v19359_v24 = vld [vmem:[#allocation167_spill] sm:$0xff] }
 0xc6a   :  { %v7333_v8 = vpop.f32.mrf.mxu1  ;;  %v19360_v28 = vld [vmem:[#allocation151_spill] sm:$0xff] }
 0xc6b   :  { %v7334_v11 = vadd.f32 %v7333_v8, %v7230_v43  ;;  %v19361_v43 = vld [vmem:[#allocation60_spill] sm:$0xff] }
 0xc6e   :  { %v7427_v13 = vpop.f32.mrf.mxu2 }
 0xc6f   :  { %v7428_v49 = vadd.f32 %v7427_v13, %v7324_v7 }
 0xc70   :  { %v7526_v32 = vpop.f32.mrf.mxu3  ;;  %v7578_v18 = vpop.f32.mrf.mxu0 }
 0xc71   :  { %v17222_v39 = vadd.f32 %v7526_v32, %v7423_v37  ;;  %v17225_v22 = vadd.f32 %v7578_v18, %v16972_v10  ;;  %v11374_v10 = vld [vmem:[%s18547_s3 + $0x208] sm:$0xff] }
 0xc72   :  { %v7336_v5 = vpop.f32.mrf.mxu1  ;;  %7971 = vmatpush.bf16.msrb.mxu0 %v11374_v10 }
 0xc73   :  { %v7337_v34 = vadd.f32 %v7336_v5, %v7233_v61  ;;  %7617 = vmatmul.bf16.gmra.mxu0 %v19358_v15  ;;  %7790 = vmatmul.bf16.gmra.mxu2 %v19359_v24 }
 0xc75   :  { %7696 = vmatmul.bf16.gmra.mxu1 %v19360_v28  ;;  %7889 = vmatmul.bf16.gmra.mxu3 %v19361_v43  ;;  %v19362_v43 = vld [vmem:[#allocation139_spill] sm:$0xff] }
 0xc76   :  { %v7430_v7 = vpop.f32.mrf.mxu2 }
 0xc77   :  { %v7431_v16 = vadd.f32 %v7430_v7, %v7327_v31  ;;  %v19363_v7 = vld [vmem:[#allocation168_spill] sm:$0xff] }
 0xc78   :  { %v7529_v8 = vpop.f32.mrf.mxu3  ;;  %v7580_v13 = vpop.f32.mrf.mxu0 }
 0xc79   :  { %v17233_v37 = vadd.f32 %v7529_v8, %v7426_v12  ;;  %v17239_v61 = vadd.f32 %v7580_v13, %v16984_v29  ;;  %v19364_v29 = vld [vmem:[#allocation152_spill] sm:$0xff] }
 0xc7a   :  { %v7338_v32 = vpop.f32.mrf.mxu1  ;;  %v19365_v8 = vld [vmem:[#allocation12_spill] sm:$0xff] }
 0xc7b   :  { %v7339_v18 = vadd.f32 %v7338_v32, %v7235_v57 }
 0xc7e   :  { %v7432_v5 = vpop.f32.mrf.mxu2 }
 0xc7f   :  { %v7433_v15 = vadd.f32 %v7432_v5, %v7329_v56 }
 0xc80   :  { %v7531_v31 = vpop.f32.mrf.mxu3  ;;  %v7583_v28 = vpop.f32.mrf.mxu0 }
 0xc81   :  { %v17241_v24 = vadd.f32 %v7531_v31, %v7428_v49  ;;  %v17244_v44 = vadd.f32 %v7583_v28, %v17005_v26 }
 0xc82   :  { %v7662_v23 = vpop.f32.mrf.mxu1 }
 0xc83   :  { %v7663_v12 = vadd.f32 %v7662_v23, %v17150_v35  ;;  %7622 = vmatmul.bf16.gmra.mxu0 %v19362_v43  ;;  %7795 = vmatmul.bf16.gmra.mxu2 %v19363_v7 }
 0xc85   :  { %7701 = vmatmul.bf16.gmra.mxu1 %v19364_v29  ;;  %7894 = vmatmul.bf16.gmra.mxu3 %v19365_v8  ;;  %v19366_v29 = vld [vmem:[#allocation140_spill] sm:$0xff]  ;;  %v19367_v8 = vld [vmem:[#allocation169_spill] sm:$0xff] }
 0xc86   :  { %v7435_v57 = vpop.f32.mrf.mxu2 }
 0xc87   :  { %v7436_v56 = vadd.f32 %v7435_v57, %v7332_v45  ;;  %v19369_v57 = vld [vmem:[#allocation63_spill] sm:$0xff] }
 0xc88   :  { %v7534_v13 = vpop.f32.mrf.mxu3  ;;  %v7585_v10 = vpop.f32.mrf.mxu0 }
 0xc89   :  { %v17251_v49 = vadd.f32 %v7534_v13, %v7431_v16  ;;  %v17254_v26 = vadd.f32 %v7585_v10, %v17020_v20  ;;  %v19368_v20 = vld [vmem:[#allocation153_spill] sm:$0xff] }
 0xc8a   :  { %v7664_v32 = vpop.f32.mrf.mxu1 }
 0xc8b   :  { %v7665_v35 = vadd.f32 %v7664_v32, %v17161_v52 }
 0xc8e   :  { %v7437_v5 = vpop.f32.mrf.mxu2 }
 0xc8f   :  { %v7438_v31 = vadd.f32 %v7437_v5, %v7334_v11  ;;  %v11373_v5 = vld [vmem:[%s18547_s3 + $0x200] sm:$0xff] }
 0xc90   :  { %v7536_v28 = vpop.f32.mrf.mxu3  ;;  %v7588_v43 = vpop.f32.mrf.mxu0  ;;  %7972 = vmatpush.bf16.msrb.mxu0 %v11373_v5 }
 0xc91   :  { %v17257_v23 = vadd.f32 %v7536_v28, %v7433_v15  ;;  %v17260_v7 = vadd.f32 %v7588_v43, %v17036_v48 }
 0xc92   :  { %v7667_v45 = vpop.f32.mrf.mxu1 }
 0xc93   :  { %v7668_v16 = vadd.f32 %v7667_v45, %v17168_v53  ;;  %7627 = vmatmul.bf16.gmra.mxu0 %v19366_v29  ;;  %7800 = vmatmul.bf16.gmra.mxu2 %v19367_v8 }
 0xc95   :  { %7706 = vmatmul.bf16.gmra.mxu1 %v19368_v20  ;;  %7899 = vmatmul.bf16.gmra.mxu3 %v19369_v57  ;;  %v19370_v20 = vld [vmem:[#allocation141_spill] sm:$0xff]  ;;  %v19372_v57 = vld [vmem:[#allocation154_spill] sm:$0xff] }
 0xc96   :  { %v7440_v52 = vpop.f32.mrf.mxu2 }
 0xc97   :  { %v7441_v11 = vadd.f32 %v7440_v52, %v7337_v34  ;;  %v19373_v52 = vld [vmem:[#allocation65_spill] sm:$0xff] }
 0xc98   :  { %v7539_v13 = vpop.f32.mrf.mxu3  ;;  %v7590_v10 = vpop.f32.mrf.mxu0 }
 0xc99   :  { %v17267_v15 = vadd.f32 %v7539_v13, %v7436_v56  ;;  %v17270_v48 = vadd.f32 %v7590_v10, %v17045_v4 }
 0xc9a   :  { %v7669_v32 = vpop.f32.mrf.mxu1 }
 0xc9b   :  { %v7670_v53 = vadd.f32 %v7669_v32, %v17179_v2  ;;  %v19371_v2 = vld [vmem:[#allocation170_spill] sm:$0xff] }
 0xc9e   :  { %v7442_v28 = vpop.f32.mrf.mxu2 }
 0xc9f   :  { %v7443_v43 = vadd.f32 %v7442_v28, %v7339_v18 }
 0xca0   :  { %v7541_v45 = vpop.f32.mrf.mxu3  ;;  %v7593_v34 = vpop.f32.mrf.mxu0 }
 0xca1   :  { %v17276_v29 = vadd.f32 %v7541_v45, %v7438_v31  ;;  %v17279_v56 = vadd.f32 %v7593_v34, %v17064_v36 }
 0xca2   :  { %v7672_v8 = vpop.f32.mrf.mxu1 }
 0xca3   :  { %v7673_v4 = vadd.f32 %v7672_v8, %v17186_v40  ;;  %7632 = vmatmul.bf16.gmra.mxu0 %v19370_v20  ;;  %7805 = vmatmul.bf16.gmra.mxu2 %v19371_v2 }
 0xca5   :  { %7711 = vmatmul.bf16.gmra.mxu1 %v19372_v57  ;;  %7904 = vmatmul.bf16.gmra.mxu3 %v19373_v52  ;;  %v19375_v52 = vld [vmem:[#allocation171_spill] sm:$0xff] }
 0xca6   :  { %v7766_v13 = vpop.f32.mrf.mxu2 }
 0xca7   :  { %v7767_v10 = vadd.f32 %v7766_v13, %v7663_v12  ;;  %v19377_v13 = vld [vmem:[#allocation14_spill] sm:$0xff] }
 0xca8   :  { %v7544_v18 = vpop.f32.mrf.mxu3  ;;  %v7595_v32 = vpop.f32.mrf.mxu0 }
 0xca9   :  { %v17286_v31 = vadd.f32 %v7544_v18, %v7441_v11  ;;  %v17289_v36 = vadd.f32 %v7595_v32, %v17079_v62  ;;  %v19374_v11 = vld [vmem:[#allocation142_spill] sm:$0xff]  ;;  %v19376_v62 = vld [vmem:[#allocation155_spill] sm:$0xff] }
 0xcaa   :  { %v7674_v5 = vpop.f32.mrf.mxu1 }
 0xcab   :  { %v7675_v40 = vadd.f32 %v7674_v5, %v17200_v14 }
 0xcae   :  { %v7768_v28 = vpop.f32.mrf.mxu2 }
 0xcaf   :  { %v7769_v34 = vadd.f32 %v7768_v28, %v7665_v35 }
 0xcb0   :  { %v7546_v45 = vpop.f32.mrf.mxu3  ;;  %v7598_v20 = vpop.f32.mrf.mxu0 }
 0xcb1   :  { %v17292_v8 = vadd.f32 %v7546_v45, %v7443_v43  ;;  %v17295_v2 = vadd.f32 %v7598_v20, %v17099_v55 }
 0xcb2   :  { %v7677_v57 = vpop.f32.mrf.mxu1 }
 0xcb3   :  { %v7678_v12 = vadd.f32 %v7677_v57, %v17207_v41  ;;  %7637 = vmatmul.bf16.gmra.mxu0 %v19374_v11  ;;  %7810 = vmatmul.bf16.gmra.mxu2 %v19375_v52 }
 0xcb5   :  { %7716 = vmatmul.bf16.gmra.mxu1 %v19376_v62  ;;  %7909 = vmatmul.bf16.gmra.mxu3 %v19377_v13  ;;  %v19378_v62 = vld [vmem:[#allocation143_spill] sm:$0xff]  ;;  %v19379_v13 = vld [vmem:[#allocation172_spill] sm:$0xff] }
 0xcb6   :  { %v7771_v14 = vpop.f32.mrf.mxu2 }
 0xcb7   :  { %v7772_v18 = vadd.f32 %v7771_v14, %v7668_v16 }
 0xcb8   :  { %v7870_v35 = vpop.f32.mrf.mxu3  ;;  %v7600_v32 = vpop.f32.mrf.mxu0 }
 0xcb9   :  { %v17302_v43 = vadd.f32 %v7870_v35, %v7767_v10  ;;  %v17305_v55 = vadd.f32 %v7600_v32, %v17111_v27  ;;  %v19380_v27 = vld [vmem:[#allocation156_spill] sm:$0xff] }
 0xcba   :  { %v7679_v5 = vpop.f32.mrf.mxu1 }
 0xcbb   :  { %v7680_v41 = vadd.f32 %v7679_v5, %v17218_v0 }
 0xcbe   :  { %v7773_v28 = vpop.f32.mrf.mxu2 }
 0xcbf   :  { %v7774_v45 = vadd.f32 %v7773_v28, %v7670_v53 }
 0xcc0   :  { %v7872_v20 = vpop.f32.mrf.mxu3  ;;  %v7603_v11 = vpop.f32.mrf.mxu0 }
 0xcc1   :  { %v17308_v57 = vadd.f32 %v7872_v20, %v7769_v34  ;;  %v17311_v52 = vadd.f32 %v7603_v11, %v17122_v38 }
 0xcc2   :  { %v7682_v16 = vpop.f32.mrf.mxu1 }
 0xcc3   :  { %v7683_v10 = vadd.f32 %v7682_v16, %v17225_v22  ;;  %7642 = vmatmul.bf16.gmra.mxu0 %v19378_v62  ;;  %7815 = vmatmul.bf16.gmra.mxu2 %v19379_v13  ;;  %v19381_v62 = vld [vmem:[#allocation144_spill] sm:$0xff]  ;;  %v19382_v13 = vld [vmem:[#allocation173_spill] sm:$0xff] }
 0xcc5   :  { %7721 = vmatmul.bf16.gmra.mxu1 %v19380_v27  ;;  %7914 = vmatmul.bf16.gmra.mxu3 %v16334_v1 }
 0xcc6   :  { %v7776_v0 = vpop.f32.mrf.mxu2 }
 0xcc7   :  { %v7777_v53 = vadd.f32 %v7776_v0, %v7673_v4 }
 0xcc8   :  { %v7875_v14 = vpop.f32.mrf.mxu3  ;;  %v7605_v35 = vpop.f32.mrf.mxu0 }
 0xcc9   :  { %v17318_v34 = vadd.f32 %v7875_v14, %v7772_v18  ;;  %v17321_v38 = vadd.f32 %v7605_v35, %v17128_v21  ;;  %v19383_v21 = vld [vmem:[#allocation157_spill] sm:$0xff] }
 0xcca   :  { %v7684_v32 = vpop.f32.mrf.mxu1 }
 0xccb   :  { %v7685_v22 = vadd.f32 %v7684_v32, %v17239_v61  ;;  %v8124_v61 = vld [vmem:[%s18549_s5 + $0x78] sm:$0xff] }
 0xccc   :  { %8125 = vmatpush.msrb.mxu1 %v8124_v61  ;;  %v10688_v32 = vld [vmem:[%s18549_s5 + $0x178] sm:$0xff] }
 0xccd   :  { %8209 = vmatpush.msra.mxu3 %v10688_v32  ;;  %v19386_v32 = vld [vmem:[#allocation175_spill] sm:$0xff] }
 0xcce   :  { %v7778_v5 = vpop.f32.mrf.mxu2 }
 0xccf   :  { %v7779_v28 = vadd.f32 %v7778_v5, %v7675_v40 }
 0xcd0   :  { %v7877_v20 = vpop.f32.mrf.mxu3  ;;  %v7608_v16 = vpop.f32.mrf.mxu0 }
 0xcd1   :  { %v17324_v11 = vadd.f32 %v7877_v20, %v7774_v45  ;;  %v17327_v1 = vadd.f32 %v7608_v16, %v17138_v9 }
 0xcd2   :  { %v7687_v4 = vpop.f32.mrf.mxu1 }
 0xcd3   :  { %v7688_v18 = vadd.f32 %v7687_v4, %v17244_v44  ;;  %7647 = vmatmul.bf16.gmra.mxu0 %v19381_v62  ;;  %7820 = vmatmul.bf16.gmra.mxu2 %v19382_v13  ;;  %v19384_v62 = vld [vmem:[#allocation174_spill] sm:$0xff] }
 0xcd4   :  { %v19385_v13 = vld [vmem:[#allocation158_spill] sm:$0xff] }
 0xcd5   :  { %7726 = vmatmul.bf16.gmra.mxu1 %v19383_v21  ;;  %7919 = vmatmul.bf16.gmra.mxu3 %v16352_v42  ;;  %v10672_v42 = vld [vmem:[%s18549_s5 + $0xf8] sm:$0xff] }
 0xcd6   :  { %v7781_v40 = vpop.f32.mrf.mxu2  ;;  %8167 = vmatpush.msra.mxu2 %v10672_v42 }
 0xcd7   :  { %v7782_v45 = vadd.f32 %v7781_v40, %v7678_v12 }
 0xcd8   :  { %v7880_v9 = vpop.f32.mrf.mxu3  ;;  %v7610_v0 = vpop.f32.mrf.mxu0 }
 0xcd9   :  { %v17337_v27 = vadd.f32 %v7880_v9, %v7777_v53  ;;  %v17340_v44 = vadd.f32 %v7610_v0, %v17147_v46 }
 0xcda   :  { %v7689_v14 = vpop.f32.mrf.mxu1 }
 0xcdb   :  { %v7690_v35 = vadd.f32 %v7689_v14, %v17254_v26 }
 0xcde   :  { %v7783_v12 = vpop.f32.mrf.mxu2 }
 0xcdf   :  { %v7784_v53 = vadd.f32 %v7783_v12, %v7680_v41 }
 0xce0   :  { %v7882_v5 = vpop.f32.mrf.mxu3  ;;  %v7613_v46 = vpop.f32.mrf.mxu0 }
 0xce1   :  { %v17349_v20 = vadd.f32 %v7882_v5, %v7779_v28  ;;  %v17352_v16 = vadd.f32 %v7613_v46, %v17158_v33 }
 0xce2   :  { %v7692_v26 = vpop.f32.mrf.mxu1 }
 0xce3   :  { %v7693_v4 = vadd.f32 %v7692_v26, %v17260_v7  ;;  %7825 = vmatmul.bf16.gmra.mxu2 %v19384_v62  ;;  %7973 = vmatmul.bf16.vlgmr.msrb.gmra.mxu0 %v16499_v59  ;;  %v8123_v59 = vld [vmem:[%s18549_s5 + $0x70] sm:$0xff]  ;;  %v8122_v62 = vld [vmem:[%s18549_s5 + $0x68] sm:$0xff] }
 0xce4   :  { %8126 = vmatpush.msrb.mxu1 %v8123_v59 }
 0xce5   :  { %7731 = vmatmul.bf16.gmra.mxu1 %v19385_v13  ;;  %7924 = vmatmul.bf16.gmra.mxu3 %v16366_v47 }
 0xce6   :  { %v7786_v21 = vpop.f32.mrf.mxu2  ;;  %8127 = vmatpush.msrb.mxu1 %v8122_v62 }
 0xce7   :  { %v7787_v41 = vadd.f32 %v7786_v21, %v7683_v10 }
 0xce8   :  { %v7885_v61 = vpop.f32.mrf.mxu3  ;;  %v7615_v40 = vpop.f32.mrf.mxu0 }
 0xce9   :  { %v17359_v28 = vadd.f32 %v7885_v61, %v7782_v45  ;;  %v17362_v33 = vadd.f32 %v7615_v40, %v17165_v50  ;;  %v10671_v45 = vld [vmem:[%s18549_s5 + $0xf0] sm:$0xff] }
 0xcea   :  { %v7694_v9 = vpop.f32.mrf.mxu1  ;;  %8168 = vmatpush.msra.mxu2 %v10671_v45  ;;  %v19389_v40 = vld [vmem:[#allocation160_spill] sm:$0xff] }
 0xceb   :  { %v7695_v7 = vadd.f32 %v7694_v9, %v17270_v48  ;;  %v10687_v48 = vld [vmem:[%s18549_s5 + $0x170] sm:$0xff] }
 0xcec   :  { %8210 = vmatpush.msra.mxu3 %v10687_v48 }
 0xcee   :  { %v7788_v0 = vpop.f32.mrf.mxu2 }
 0xcef   :  { %v7789_v14 = vadd.f32 %v7788_v0, %v7685_v22  ;;  %v19387_v22 = vld [vmem:[#allocation159_spill] sm:$0xff] }
 0xcf0   :  { %v7887_v47 = vpop.f32.mrf.mxu3  ;;  %v7618_v10 = vpop.f32.mrf.mxu0 }
 0xcf1   :  { %v17368_v42 = vadd.f32 %v7887_v47, %v7784_v53  ;;  %v17374_v50 = vadd.f32 %v7618_v10, %v17176_v60 }
 0xcf3   :  { %7830 = vmatmul.bf16.gmra.mxu2 %v19386_v32  ;;  %7978 = vmatmul.bf16.gmra.mxu0 %v16518_v25  ;;  %v8121_v32 = vld [vmem:[%s18549_s5 + $0x60] sm:$0xff] }
 0xcf4   :  { %8128 = vmatpush.msrb.mxu1 %v8121_v32  ;;  %v8115_v32 = vld [vmem:[%s18549_s5 + $0x30] sm:$0xff] }
 0xcf5   :  { %7736 = vmatmul.bf16.gmra.mxu1 %v19387_v22  ;;  %7929 = vmatmul.bf16.gmra.mxu3 %v16383_v17 }
 0xcf6   :  { %v7791_v12 = vpop.f32.mrf.mxu2 }
 0xcf7   :  { %v7792_v53 = vadd.f32 %v7791_v12, %v7688_v18 }
 0xcf8   :  { %v7890_v5 = vpop.f32.mrf.mxu3  ;;  %v7620_v60 = vpop.f32.mrf.mxu0 }
 0xcf9   :  { %v17383_v46 = vadd.f32 %v7890_v5, %v7787_v41  ;;  %v17386_v26 = vadd.f32 %v7620_v60, %v17183_v54  ;;  %v10670_v41 = vld [vmem:[%s18549_s5 + $0xe8] sm:$0xff]  ;;  %v19388_v54 = vld [vmem:[#allocation176_spill] sm:$0xff] }
 0xcfa   :  { %8169 = vmatpush.msra.mxu2 %v10670_v41  ;;  %v19394_v41 = vld [vmem:[#allocation162_spill] sm:$0xff] }
 0xcfe   :  { %v7793_v25 = vpop.f32.mrf.mxu2 }
 0xcff   :  { %v7794_v13 = vadd.f32 %v7793_v25, %v7690_v35  ;;  %v10686_v35 = vld [vmem:[%s18549_s5 + $0x168] sm:$0xff] }
 0xd00   :  { %v7892_v21 = vpop.f32.mrf.mxu3  ;;  %v7623_v17 = vpop.f32.mrf.mxu0  ;;  %8211 = vmatpush.msra.mxu3 %v10686_v35  ;;  %v10684_v35 = vld [vmem:[%s18549_s5 + $0x158] sm:$0xff] }
 0xd01   :  { %v17391_v61 = vadd.f32 %v7892_v21, %v7789_v14  ;;  %v17394_v18 = vadd.f32 %v7623_v17, %v17197_v63  ;;  %v19392_v21 = vld [vmem:[#allocation178_spill] sm:$0xff]  ;;  %v19393_v17 = vld [vmem:[#allocation32_spill] sm:$0xff] }
 0xd03   :  { %7835 = vmatmul.bf16.gmra.mxu2 %v19388_v54  ;;  %7983 = vmatmul.bf16.gmra.mxu0 %v16543_v51 }
 0xd05   :  { %7741 = vmatmul.bf16.gmra.mxu1 %v19389_v40  ;;  %7934 = vmatmul.bf16.gmra.mxu3 %v16397_v19  ;;  %v10668_v40 = vld [vmem:[%s18549_s5 + $0xd8] sm:$0xff] }
 0xd06   :  { %v7796_v63 = vpop.f32.mrf.mxu2 }
 0xd07   :  { %v7797_v9 = vadd.f32 %v7796_v63, %v7693_v4  ;;  %v19390_v4 = vld [vmem:[#allocation177_spill] sm:$0xff] }
 0xd08   :  { %v7895_v59 = vpop.f32.mrf.mxu3  ;;  %v7625_v14 = vpop.f32.mrf.mxu0 }
 0xd09   :  { %v17406_v0 = vadd.f32 %v7895_v59, %v7792_v53  ;;  %v17409_v47 = vadd.f32 %v7625_v14, %v17204_v6  ;;  %v19391_v6 = vld [vmem:[#allocation161_spill] sm:$0xff]  ;;  %v19396_v14 = vld [vmem:[#allocation179_spill] sm:$0xff] }
 0xd0e   :  { %v7798_v51 = vpop.f32.mrf.mxu2 }
 0xd0f   :  { %v7799_v10 = vadd.f32 %v7798_v51, %v7695_v7  ;;  %v10669_v7 = vld [vmem:[%s18549_s5 + $0xe0] sm:$0xff]  ;;  %v19397_v51 = vld [vmem:[#allocation15_spill] sm:$0xff] }
 0xd10   :  { %v7897_v45 = vpop.f32.mrf.mxu3  ;;  %v7628_v19 = vpop.f32.mrf.mxu0  ;;  %8170 = vmatpush.msra.mxu2 %v10669_v7  ;;  %v10667_v7 = vld [vmem:[%s18549_s5 + $0xd0] sm:$0xff] }
 0xd11   :  { %v17411_v48 = vadd.f32 %v7897_v45, %v7794_v13  ;;  %v17417_v22 = vadd.f32 %v7628_v19, %v17215_v58  ;;  %v10685_v58 = vld [vmem:[%s18549_s5 + $0x160] sm:$0xff]  ;;  %v8120_v13 = vld [vmem:[%s18549_s5 + $0x58] sm:$0xff] }
 0xd12   :  { %8212 = vmatpush.msra.mxu3 %v10685_v58  ;;  %8129 = vmatpush.msrb.mxu1 %v8120_v13  ;;  %v8117_v45 = vld [vmem:[%s18549_s5 + $0x40] sm:$0xff]  ;;  %v8110_v13 = vld [vmem:[%s18549_s5 + $0x8] sm:$0xff] }
 0xd13   :  { %7840 = vmatmul.bf16.gmra.mxu2 %v19390_v4  ;;  %7988 = vmatmul.bf16.gmra.mxu0 %v16564_v3 }
 0xd14   :  { %8171 = vmatpush.msra.mxu2 %v10668_v40  ;;  %8213 = vmatpush.msra.mxu3 %v10684_v35  ;;  %v10664_v40 = vld [vmem:[%s18549_s5 + $0xb8] sm:$0xff] }
 0xd15   :  { %7746 = vmatmul.bf16.gmra.mxu1 %v19391_v6  ;;  %7939 = vmatmul.bf16.gmra.mxu3 %v16411_v30  ;;  %v8114_v6 = vld [vmem:[%s18549_s5 + $0x28] sm:$0xff] }
 0xd16   :  { %8172 = vmatpush.msra.mxu2 %v10667_v7  ;;  %v19403_v7 = vld [vmem:[#allocation13_spill] sm:$0xff] }
 0xd18   :  { %v7900_v12 = vpop.f32.mrf.mxu3  ;;  %v7630_v5 = vpop.f32.mrf.mxu0 }
 0xd19   :  { %v17426_v53 = vadd.f32 %v7900_v12, %v7797_v9  ;;  %v17432_v60 = vadd.f32 %v7630_v5, %v17222_v39  ;;  %v19395_v39 = vld [vmem:[#allocation5_spill] sm:$0xff]  ;;  %v8119_v9 = vld [vmem:[%s18549_s5 + $0x50] sm:$0xff]  ;;  %v8113_v12 = vld [vmem:[%s18549_s5 + $0x20] sm:$0xff] }
 0xd1a   :  { %8130 = vmatpush.msrb.mxu1 %v8119_v9  ;;  %v10683_v5 = vld [vmem:[%s18549_s5 + $0x150] sm:$0xff] }
 0xd1b   :  { %8214 = vmatpush.msra.mxu3 %v10683_v5  ;;  %v10704_v5 = vld [vmem:[%s18549_s5 + $0x1f8] sm:$0xff] }
 0xd20   :  { %v7902_v3 = vpop.f32.mrf.mxu3  ;;  %v7633_v30 = vpop.f32.mrf.mxu0 }
 0xd21   :  { %v17434_v62 = vadd.f32 %v7902_v3, %v7799_v10  ;;  %v17437_v25 = vadd.f32 %v7633_v30, %v17233_v37  ;;  %v19398_v10 = vld [vmem:[#allocation18_spill] sm:$0xff]  ;;  %v8111_v3 = vld [vmem:[%s18549_s5 + $0x10] sm:$0xff] }
 0xd23   :  { %7845 = vmatmul.bf16.gmra.mxu2 %v19392_v21  ;;  %7993 = vmatmul.bf16.gmra.mxu0 %v19393_v17  ;;  %v10666_v21 = vld [vmem:[%s18549_s5 + $0xc8] sm:$0xff]  ;;  %v19399_v17 = vld [vmem:[#allocation180_spill] sm:$0xff] }
 0xd24   :  { %8173 = vmatpush.msra.mxu2 %v10666_v21  ;;  %v10678_v21 = vld [vmem:[%s18549_s5 + $0x128] sm:$0xff] }
 0xd25   :  { %7751 = vmatmul.bf16.gmra.mxu1 %v19394_v41  ;;  %7944 = vmatmul.bf16.gmra.mxu3 %v19395_v39  ;;  %v19400_v41 = vld [vmem:[#allocation17_spill] sm:$0xff]  ;;  %v8109_v39 = vld [vmem:[%s18549_s5] sm:$0xff] }
 0xd28   :  { %v7635_v54 = vpop.f32.mrf.mxu0 }
 0xd29   :  { %v17450_v37 = vadd.f32 %v7635_v54, %v17241_v24  ;;  %v8118_v24 = vld [vmem:[%s18549_s5 + $0x48] sm:$0xff]  ;;  %v19401_v54 = vld [vmem:[#allocation9_spill] sm:$0xff] }
 0xd2a   :  { %8131 = vmatpush.msrb.mxu1 %v8118_v24  ;;  %v10662_v24 = vld [vmem:[%s18549_s5 + $0xa8] sm:$0xff] }
 0xd2c   :  { %8132 = vmatpush.msrb.mxu1 %v8117_v45  ;;  %v10659_v45 = vld [vmem:[%s18549_s5 + $0x90] sm:$0xff] }
 0xd30   :  { %v7638_v63 = vpop.f32.mrf.mxu0 }
 0xd31   :  { %v17459_v59 = vadd.f32 %v7638_v63, %v17251_v49  ;;  %v8116_v49 = vld [vmem:[%s18549_s5 + $0x38] sm:$0xff]  ;;  %v10663_v63 = vld [vmem:[%s18549_s5 + $0xb0] sm:$0xff] }
 0xd32   :  { %8133 = vmatpush.msrb.mxu1 %v8116_v49 }
 0xd33   :  { %7850 = vmatmul.bf16.gmra.mxu2 %v19396_v14  ;;  %7998 = vmatmul.bf16.gmra.mxu0 %v19397_v51  ;;  %v10661_v14 = vld [vmem:[%s18549_s5 + $0xa0] sm:$0xff]  ;;  %v10660_v51 = vld [vmem:[%s18549_s5 + $0x98] sm:$0xff] }
 0xd34   :  { %8134 = vmatpush.msrb.mxu1 %v8115_v32  ;;  %v19402_v32 = vld [vmem:[#allocation19_spill] sm:$0xff] }
 0xd35   :  { %7949 = vmatmul.bf16.gmra.mxu3 %v19398_v10 }
 0xd36   :  { %8135 = vmatpush.msrb.mxu1 %v8114_v6  ;;  %v10681_v6 = vld [vmem:[%s18549_s5 + $0x140] sm:$0xff] }
 0xd38   :  { %v7640_v19 = vpop.f32.mrf.mxu0  ;;  %8136 = vmatpush.msrb.mxu1 %v8113_v12  ;;  %v10680_v12 = vld [vmem:[%s18549_s5 + $0x138] sm:$0xff] }
 0xd39   :  { %v17477_v4 = vadd.f32 %v7640_v19, %v17257_v23  ;;  %v8112_v23 = vld [vmem:[%s18549_s5 + $0x18] sm:$0xff]  ;;  %v10658_v19 = vld [vmem:[%s18549_s5 + $0x88] sm:$0xff] }
 0xd3a   :  { %8137 = vmatpush.msrb.mxu1 %v8112_v23 }
 0xd3c   :  { %8138 = vmatpush.msrb.mxu1 %v8111_v3  ;;  %v10703_v3 = vld [vmem:[%s18549_s5 + $0x1f0] sm:$0xff] }
 0xd3e   :  { %8139 = vmatpush.msrb.mxu1 %v8110_v13 }
 0xd40   :  { %v7643_v58 = vpop.f32.mrf.mxu0  ;;  %8140 = vmatpush.msrb.mxu1 %v8109_v39  ;;  %v10676_v39 = vld [vmem:[%s18549_s5 + $0x118] sm:$0xff] }
 0xd41   :  { %v17498_v30 = vadd.f32 %v7643_v58, %v17267_v15  ;;  %v10665_v15 = vld [vmem:[%s18549_s5 + $0xc0] sm:$0xff]  ;;  %v10679_v58 = vld [vmem:[%s18549_s5 + $0x130] sm:$0xff] }
 0xd42   :  { %8174 = vmatpush.msra.mxu2 %v10665_v15  ;;  %8251 = vmatpush.msra.mxu1 %v10704_v5  ;;  %v10694_v5 = vld [vmem:[%s18549_s5 + $0x1a8] sm:$0xff] }
 0xd43   :  { %7855 = vmatmul.bf16.gmra.mxu2 %v19399_v17  ;;  %8003 = vmatmul.bf16.gmra.mxu0 %v19400_v41  ;;  %v10702_v17 = vld [vmem:[%s18549_s5 + $0x1e8] sm:$0xff]  ;;  %v10677_v41 = vld [vmem:[%s18549_s5 + $0x120] sm:$0xff] }
 0xd44   :  { %8175 = vmatpush.msra.mxu2 %v10664_v40  ;;  %8252 = vmatpush.msra.mxu1 %v10703_v3  ;;  %v10675_v40 = vld [vmem:[%s18549_s5 + $0x110] sm:$0xff]  ;;  %v10693_v3 = vld [vmem:[%s18549_s5 + $0x1a0] sm:$0xff] }
 0xd45   :  { %7954 = vmatmul.bf16.gmra.mxu3 %v19401_v54  ;;  %v10700_v54 = vld [vmem:[%s18549_s5 + $0x1d8] sm:$0xff] }
 0xd46   :  { %8176 = vmatpush.msra.mxu2 %v10663_v63  ;;  %8253 = vmatpush.msra.mxu1 %v10702_v17  ;;  %v10692_v17 = vld [vmem:[%s18549_s5 + $0x198] sm:$0xff] }
 0xd48   :  { %v7645_v35 = vpop.f32.mrf.mxu0  ;;  %8177 = vmatpush.msra.mxu2 %v10662_v24  ;;  %v10674_v24 = vld [vmem:[%s18549_s5 + $0x108] sm:$0xff] }
 0xd49   :  { %v17522_v9 = vadd.f32 %v7645_v35, %v17276_v29  ;;  %v10682_v29 = vld [vmem:[%s18549_s5 + $0x148] sm:$0xff]  ;;  %v10699_v35 = vld [vmem:[%s18549_s5 + $0x1d0] sm:$0xff] }
 0xd4a   :  { %8178 = vmatpush.msra.mxu2 %v10661_v14  ;;  %8215 = vmatpush.msra.mxu3 %v10682_v29  ;;  %v10698_v14 = vld [vmem:[%s18549_s5 + $0x1c8] sm:$0xff]  ;;  %v19404_v29 = vld [vmem:[#allocation20_spill] sm:$0xff] }
 0xd4c   :  { %8179 = vmatpush.msra.mxu2 %v10660_v51  ;;  %8216 = vmatpush.msra.mxu3 %v10681_v6  ;;  %v17599_v51 = vpop.f32.mrf.mxu1 }
 0xd4e   :  { %8180 = vmatpush.msra.mxu2 %v10659_v45  ;;  %8217 = vmatpush.msra.mxu3 %v10680_v12  ;;  %v10697_v45 = vld [vmem:[%s18549_s5 + $0x1c0] sm:$0xff] }
 0xd50   :  { %v7648_v10 = vpop.f32.mrf.mxu0  ;;  %8181 = vmatpush.msra.mxu2 %v10658_v19  ;;  %8218 = vmatpush.msra.mxu3 %v10679_v58  ;;  %v10696_v19 = vld [vmem:[%s18549_s5 + $0x1b8] sm:$0xff] }
 0xd51   :  { %v17540_v49 = vadd.f32 %v7648_v10, %v17286_v31  ;;  %v10657_v31 = vld [vmem:[%s18549_s5 + $0x80] sm:$0xff] }
 0xd52   :  { %8182 = vmatpush.msra.mxu2 %v10657_v31  ;;  %8219 = vmatpush.msra.mxu3 %v10678_v21  ;;  %v10719_v31 = vld [vmem:[%s18549_s5 + $0x270] sm:$0xff] }
 0xd53   :  { %8008 = vmatmul.bf16.gmra.mxu0 %v19402_v32  ;;  %v10720_v32 = vld [vmem:[%s18549_s5 + $0x278] sm:$0xff] }
 0xd54   :  { %8220 = vmatpush.msra.mxu3 %v10677_v41  ;;  %8293 = vmatpush.msrb.mxu2 %v10720_v32  ;;  %v17633_v21 = vpop.f32.mrf.mxu1  ;;  %v10716_v41 = vld [vmem:[%s18549_s5 + $0x258] sm:$0xff]  ;;  %v10735_v32 = vld [vmem:[%s18549_s5 + $0x2f0] sm:$0xff] }
 0xd55   :  { %7959 = vmatmul.bf16.gmra.mxu3 %v19403_v7  ;;  %v10695_v7 = vld [vmem:[%s18549_s5 + $0x1b0] sm:$0xff] }
 0xd56   :  { %8221 = vmatpush.msra.mxu3 %v10676_v39  ;;  %8294 = vmatpush.msrb.mxu2 %v10719_v31  ;;  %v10691_v39 = vld [vmem:[%s18549_s5 + $0x190] sm:$0xff]  ;;  %v10734_v31 = vld [vmem:[%s18549_s5 + $0x2e8] sm:$0xff] }
 0xd58   :  { %v7650_v23 = vpop.f32.mrf.mxu0  ;;  %8222 = vmatpush.msra.mxu3 %v10675_v40  ;;  %v10690_v40 = vld [vmem:[%s18549_s5 + $0x188] sm:$0xff] }
 0xd59   :  { %v17566_v13 = vadd.f32 %v7650_v23, %v17292_v8  ;;  %v10701_v8 = vld [vmem:[%s18549_s5 + $0x1e0] sm:$0xff]  ;;  %v10718_v23 = vld [vmem:[%s18549_s5 + $0x268] sm:$0xff] }
 0xd5a   :  { %8254 = vmatpush.msra.mxu1 %v10701_v8  ;;  %8223 = vmatpush.msra.mxu3 %v10674_v24 }
 0xd5b   :  { %8295 = vmatpush.msrb.mxu2 %v10718_v23 }
 0xd5c   :  { %8255 = vmatpush.msra.mxu1 %v10700_v54  ;;  %v10715_v54 = vld [vmem:[%s18549_s5 + $0x250] sm:$0xff] }
 0xd5e   :  { %8256 = vmatpush.msra.mxu1 %v10699_v35  ;;  %v10714_v35 = vld [vmem:[%s18549_s5 + $0x248] sm:$0xff] }
 0xd60   :  { %v7974_v15 = vpop.f32.mrf.mxu0  ;;  %8257 = vmatpush.msra.mxu1 %v10698_v14  ;;  %v19405_v14 = vld [vmem:[#allocation21_spill] sm:$0xff] }
 0xd61   :  { %v7975_v63 = vadd.f32 %v7974_v15, %v17302_v43  ;;  %v10673_v43 = vld [vmem:[%s18549_s5 + $0x100] sm:$0xff] }
 0xd62   :  { %8224 = vmatpush.msra.mxu3 %v10673_v43  ;;  %8258 = vmatpush.msra.mxu1 %v10697_v45  ;;  %v10736_v43 = vld [vmem:[%s18549_s5 + $0x2f8] sm:$0xff] }
 0xd63   :  { %v8069_v10 = vmax.f32 %v7975_v63, 0.0  ;;  %8013 = vmatmul.bf16.gmra.mxu0 %v19404_v29  ;;  %v17654_v63 = vpop.f32.mrf.mxu2  ;;  %v10712_v29 = vld [vmem:[%s18549_s5 + $0x238] sm:$0xff] }
 0xd64   :  { %8259 = vmatpush.msra.mxu1 %v10696_v19  ;;  %8335 = vmatpush.msrb.mxu3 %v10736_v43  ;;  %v10711_v19 = vld [vmem:[%s18549_s5 + $0x230] sm:$0xff] }
 0xd65   :  { %8141 = vmatmul.f32.vlgmr.msrb.gmra.mxu1 %v8069_v10  ;;  %v10713_v10 = vld [vmem:[%s18549_s5 + $0x240] sm:$0xff]  ;;  %v10751_v43 = vld [vmem:[%s18549_s5 + $0x370] sm:$0xff] }
 0xd66   :  { %8260 = vmatpush.msra.mxu1 %v10695_v7  ;;  %8336 = vmatpush.msrb.mxu3 %v10735_v32  ;;  %v10710_v7 = vld [vmem:[%s18549_s5 + $0x228] sm:$0xff] }
 0xd67   :  { %v10750_v32 = vld [vmem:[%s18549_s5 + $0x368] sm:$0xff] }
 0xd68   :  { %v7976_v6 = vpop.f32.mrf.mxu0  ;;  %8261 = vmatpush.msra.mxu1 %v10694_v5  ;;  %8337 = vmatpush.msrb.mxu3 %v10734_v31  ;;  %v10709_v5 = vld [vmem:[%s18549_s5 + $0x220] sm:$0xff] }
 0xd69   :  { %v7977_v12 = vadd.f32 %v7976_v6, %v17308_v57  ;;  %v10717_v57 = vld [vmem:[%s18549_s5 + $0x260] sm:$0xff] }
 0xd6a   :  { %8296 = vmatpush.msrb.mxu2 %v10717_v57  ;;  %8262 = vmatpush.msra.mxu1 %v10693_v3  ;;  %v10732_v3 = vld [vmem:[%s18549_s5 + $0x2d8] sm:$0xff] }
 0xd6b   :  { %v8070_v58 = vmax.f32 %v7977_v12, 0.0  ;;  %v17688_v23 = vpop.f32.mrf.mxu2 }
 0xd6c   :  { %8297 = vmatpush.msrb.mxu2 %v10716_v41  ;;  %8263 = vmatpush.msra.mxu1 %v10692_v17  ;;  %v10707_v17 = vld [vmem:[%s18549_s5 + $0x210] sm:$0xff] }
 0xd6d   :  { %8144 = vmatmul.f32.gmra.mxu1 %v8070_v58  ;;  %v10708_v58 = vld [vmem:[%s18549_s5 + $0x218] sm:$0xff]  ;;  %v10731_v41 = vld [vmem:[%s18549_s5 + $0x2d0] sm:$0xff] }
 0xd6e   :  { %8298 = vmatpush.msrb.mxu2 %v10715_v54  ;;  %8264 = vmatpush.msra.mxu1 %v10691_v39  ;;  %v10706_v39 = vld [vmem:[%s18549_s5 + $0x208] sm:$0xff] }
 0xd6f   :  { %v10730_v54 = vld [vmem:[%s18549_s5 + $0x2c8] sm:$0xff] }
 0xd70   :  { %v7979_v8 = vpop.f32.mrf.mxu0  ;;  %8299 = vmatpush.msrb.mxu2 %v10714_v35  ;;  %8265 = vmatpush.msra.mxu1 %v10690_v40  ;;  %v19406_v35 = vld [vmem:[#allocation22_spill] sm:$0xff] }
 0xd71   :  { %v7980_v15 = vadd.f32 %v7979_v8, %v17318_v34  ;;  %v10689_v34 = vld [vmem:[%s18549_s5 + $0x180] sm:$0xff] }
 0xd72   :  { %8266 = vmatpush.msra.mxu1 %v10689_v34  ;;  %8300 = vmatpush.msrb.mxu2 %v10713_v10  ;;  %v10752_v34 = vld [vmem:[%s18549_s5 + $0x378] sm:$0xff] }
 0xd73   :  { %v8071_v24 = vmax.f32 %v7980_v15, 0.0  ;;  %8018 = vmatmul.bf16.gmra.mxu0 %v19405_v14  ;;  %v17709_v15 = vpop.f32.mrf.mxu3  ;;  %v10728_v14 = vld [vmem:[%s18549_s5 + $0x2b8] sm:$0xff] }
 0xd74   :  { %8301 = vmatpush.msrb.mxu2 %v10712_v29  ;;  %8377 = vmatpush.msrb.mxu1 %v10752_v34  ;;  %v10727_v29 = vld [vmem:[%s18549_s5 + $0x2b0] sm:$0xff] }
 0xd75   :  { %8183 = vmatmul.f32.vlgmr.msra.gmra.mxu2 %v8071_v24  ;;  %v10729_v24 = vld [vmem:[%s18549_s5 + $0x2c0] sm:$0xff]  ;;  %v10767_v34 = vld [vmem:[%s18549_s5 + $0x3f0] sm:$0xff] }
 0xd76   :  { %8302 = vmatpush.msrb.mxu2 %v10711_v19  ;;  %8378 = vmatpush.msrb.mxu1 %v10751_v43  ;;  %v10726_v19 = vld [vmem:[%s18549_s5 + $0x2a8] sm:$0xff] }
 0xd77   :  { %v10766_v43 = vld [vmem:[%s18549_s5 + $0x3e8] sm:$0xff] }
 0xd78   :  { %v7981_v45 = vpop.f32.mrf.mxu0  ;;  %8303 = vmatpush.msrb.mxu2 %v10710_v7  ;;  %8379 = vmatpush.msrb.mxu1 %v10750_v32  ;;  %v10725_v7 = vld [vmem:[%s18549_s5 + $0x2a0] sm:$0xff] }
 0xd79   :  { %v7982_v6 = vadd.f32 %v7981_v45, %v17324_v11  ;;  %v10733_v11 = vld [vmem:[%s18549_s5 + $0x2e0] sm:$0xff] }
 0xd7a   :  { %8338 = vmatpush.msrb.mxu3 %v10733_v11  ;;  %8304 = vmatpush.msrb.mxu2 %v10709_v5  ;;  %v10748_v5 = vld [vmem:[%s18549_s5 + $0x358] sm:$0xff] }
 0xd7b   :  { %v8072_v12 = vmax.f32 %v7982_v6, 0.0  ;;  %v17743_v31 = vpop.f32.mrf.mxu3 }
 0xd7c   :  { %8339 = vmatpush.msrb.mxu3 %v10732_v3  ;;  %8305 = vmatpush.msrb.mxu2 %v10708_v58  ;;  %v10723_v58 = vld [vmem:[%s18549_s5 + $0x290] sm:$0xff] }
 0xd7d   :  { %8186 = vmatmul.f32.gmra.mxu2 %v8072_v12  ;;  %v10724_v12 = vld [vmem:[%s18549_s5 + $0x298] sm:$0xff]  ;;  %v10747_v3 = vld [vmem:[%s18549_s5 + $0x350] sm:$0xff] }
 0xd7e   :  { %8340 = vmatpush.msrb.mxu3 %v10731_v41  ;;  %8306 = vmatpush.msrb.mxu2 %v10707_v17  ;;  %v10722_v17 = vld [vmem:[%s18549_s5 + $0x288] sm:$0xff] }
 0xd7f   :  { %v10746_v41 = vld [vmem:[%s18549_s5 + $0x348] sm:$0xff] }
 0xd80   :  { %v7984_v57 = vpop.f32.mrf.mxu0  ;;  %8341 = vmatpush.msrb.mxu3 %v10730_v54  ;;  %8307 = vmatpush.msrb.mxu2 %v10706_v39  ;;  %v19407_v54 = vld [vmem:[#allocation23_spill] sm:$0xff] }
 0xd81   :  { %v7985_v8 = vadd.f32 %v7984_v57, %v17337_v27  ;;  %v10705_v27 = vld [vmem:[%s18549_s5 + $0x200] sm:$0xff] }
 0xd82   :  { %8308 = vmatpush.msrb.mxu2 %v10705_v27  ;;  %8342 = vmatpush.msrb.mxu3 %v10729_v24  ;;  %v10768_v27 = vld [vmem:[%s18549_s5 + $0x3f8] sm:$0xff] }
 0xd83   :  { %v8073_v40 = vmax.f32 %v7985_v8, 0.0  ;;  %8023 = vmatmul.bf16.gmra.mxu0 %v19406_v35  ;;  %v17764_v8 = vpop.f32.mrf.mxu1  ;;  %v10744_v35 = vld [vmem:[%s18549_s5 + $0x338] sm:$0xff] }
 0xd84   :  { %8343 = vmatpush.msrb.mxu3 %v10728_v14  ;;  %8419 = vmatpush.msra.mxu2 %v10768_v27  ;;  %v10743_v14 = vld [vmem:[%s18549_s5 + $0x330] sm:$0xff] }
 0xd85   :  { %8225 = vmatmul.f32.vlgmr.msra.gmra.mxu3 %v8073_v40  ;;  %v10745_v40 = vld [vmem:[%s18549_s5 + $0x340] sm:$0xff]  ;;  %v10783_v27 = vld [vmem:[%s18549_s5 + $0x470] sm:$0xff] }
 0xd86   :  { %8344 = vmatpush.msrb.mxu3 %v10727_v29  ;;  %8420 = vmatpush.msra.mxu2 %v10767_v34  ;;  %v10742_v29 = vld [vmem:[%s18549_s5 + $0x328] sm:$0xff] }
 0xd87   :  { %v10782_v34 = vld [vmem:[%s18549_s5 + $0x468] sm:$0xff] }
 0xd88   :  { %v7986_v10 = vpop.f32.mrf.mxu0  ;;  %8345 = vmatpush.msrb.mxu3 %v10726_v19  ;;  %8421 = vmatpush.msra.mxu2 %v10766_v43  ;;  %v10741_v19 = vld [vmem:[%s18549_s5 + $0x320] sm:$0xff] }
 0xd89   :  { %v7987_v45 = vadd.f32 %v7986_v10, %v17349_v20  ;;  %v10749_v20 = vld [vmem:[%s18549_s5 + $0x360] sm:$0xff] }
 0xd8a   :  { %8380 = vmatpush.msrb.mxu1 %v10749_v20  ;;  %8346 = vmatpush.msrb.mxu3 %v10725_v7  ;;  %v10764_v7 = vld [vmem:[%s18549_s5 + $0x3d8] sm:$0xff] }
 0xd8b   :  { %v8074_v6 = vmax.f32 %v7987_v45, 0.0  ;;  %v17798_v32 = vpop.f32.mrf.mxu1 }
 0xd8c   :  { %8381 = vmatpush.msrb.mxu1 %v10748_v5  ;;  %8347 = vmatpush.msrb.mxu3 %v10724_v12  ;;  %v10739_v12 = vld [vmem:[%s18549_s5 + $0x310] sm:$0xff] }
 0xd8d   :  { %8228 = vmatmul.f32.gmra.mxu3 %v8074_v6  ;;  %v10740_v6 = vld [vmem:[%s18549_s5 + $0x318] sm:$0xff]  ;;  %v10763_v5 = vld [vmem:[%s18549_s5 + $0x3d0] sm:$0xff] }
 0xd8e   :  { %8382 = vmatpush.msrb.mxu1 %v10747_v3  ;;  %8348 = vmatpush.msrb.mxu3 %v10723_v58  ;;  %v10738_v58 = vld [vmem:[%s18549_s5 + $0x308] sm:$0xff] }
 0xd8f   :  { %v10762_v3 = vld [vmem:[%s18549_s5 + $0x3c8] sm:$0xff] }
 0xd90   :  { %v7989_v11 = vpop.f32.mrf.mxu0  ;;  %8383 = vmatpush.msrb.mxu1 %v10746_v41  ;;  %8349 = vmatpush.msrb.mxu3 %v10722_v17  ;;  %v19408_v41 = vld [vmem:[#allocation24_spill] sm:$0xff] }
 0xd91   :  { %v7990_v57 = vadd.f32 %v7989_v11, %v17359_v28  ;;  %v10721_v28 = vld [vmem:[%s18549_s5 + $0x280] sm:$0xff] }
 0xd92   :  { %8350 = vmatpush.msrb.mxu3 %v10721_v28  ;;  %8384 = vmatpush.msrb.mxu1 %v10745_v40  ;;  %v10784_v28 = vld [vmem:[%s18549_s5 + $0x478] sm:$0xff] }
 0xd93   :  { %v8075_v39 = vmax.f32 %v7990_v57, 0.0  ;;  %8028 = vmatmul.bf16.gmra.mxu0 %v19407_v54  ;;  %v17819_v57 = vpop.f32.mrf.mxu2  ;;  %v10760_v54 = vld [vmem:[%s18549_s5 + $0x3b8] sm:$0xff] }
 0xd94   :  { %8385 = vmatpush.msrb.mxu1 %v10744_v35  ;;  %8461 = vmatpush.msra.mxu3 %v10784_v28  ;;  %v10759_v35 = vld [vmem:[%s18549_s5 + $0x3b0] sm:$0xff] }
 0xd95   :  { %8267 = vmatmul.f32.vlgmr.msra.gmra.mxu1 %v8075_v39  ;;  %v10761_v39 = vld [vmem:[%s18549_s5 + $0x3c0] sm:$0xff]  ;;  %v10799_v28 = vld [vmem:[%s18549_s5 + $0x4f0] sm:$0xff] }
 0xd96   :  { %8386 = vmatpush.msrb.mxu1 %v10743_v14  ;;  %8462 = vmatpush.msra.mxu3 %v10783_v27  ;;  %v10758_v14 = vld [vmem:[%s18549_s5 + $0x3a8] sm:$0xff] }
 0xd97   :  { %v10798_v27 = vld [vmem:[%s18549_s5 + $0x4e8] sm:$0xff] }
 0xd98   :  { %v7991_v24 = vpop.f32.mrf.mxu0  ;;  %8387 = vmatpush.msrb.mxu1 %v10742_v29  ;;  %8463 = vmatpush.msra.mxu3 %v10782_v34  ;;  %v10757_v29 = vld [vmem:[%s18549_s5 + $0x3a0] sm:$0xff] }
 0xd99   :  { %v7992_v10 = vadd.f32 %v7991_v24, %v17368_v42  ;;  %v10765_v42 = vld [vmem:[%s18549_s5 + $0x3e0] sm:$0xff] }
 0xd9a   :  { %8422 = vmatpush.msra.mxu2 %v10765_v42  ;;  %8388 = vmatpush.msrb.mxu1 %v10741_v19  ;;  %v10780_v19 = vld [vmem:[%s18549_s5 + $0x458] sm:$0xff] }
 0xd9b   :  { %v8076_v45 = vmax.f32 %v7992_v10, 0.0  ;;  %v17853_v43 = vpop.f32.mrf.mxu2 }
 0xd9c   :  { %8423 = vmatpush.msra.mxu2 %v10764_v7  ;;  %8389 = vmatpush.msrb.mxu1 %v10740_v6  ;;  %v10755_v6 = vld [vmem:[%s18549_s5 + $0x390] sm:$0xff] }
 0xd9d   :  { %8270 = vmatmul.f32.gmra.mxu1 %v8076_v45  ;;  %v10756_v45 = vld [vmem:[%s18549_s5 + $0x398] sm:$0xff]  ;;  %v10779_v7 = vld [vmem:[%s18549_s5 + $0x450] sm:$0xff] }
 0xd9e   :  { %8424 = vmatpush.msra.mxu2 %v10763_v5  ;;  %8390 = vmatpush.msrb.mxu1 %v10739_v12  ;;  %v17868_v12 = vpop.f32.mrf.mxu3  ;;  %v10754_v5 = vld [vmem:[%s18549_s5 + $0x388] sm:$0xff] }
 0xda0   :  { %v7994_v20 = vpop.f32.mrf.mxu0  ;;  %8425 = vmatpush.msra.mxu2 %v10762_v3  ;;  %8391 = vmatpush.msrb.mxu1 %v10738_v58  ;;  %v19409_v3 = vld [vmem:[#allocation46_spill] sm:$0xff] }
 0xda1   :  { %v7995_v11 = vadd.f32 %v7994_v20, %v17383_v46  ;;  %v10737_v46 = vld [vmem:[%s18549_s5 + $0x300] sm:$0xff] }
 0xda2   :  { %8392 = vmatpush.msrb.mxu1 %v10737_v46  ;;  %8426 = vmatpush.msra.mxu2 %v10761_v39  ;;  %v10800_v46 = vld [vmem:[%s18549_s5 + $0x4f8] sm:$0xff] }
 0xda3   :  { %v8077_v17 = vmax.f32 %v7995_v11, 0.0  ;;  %8033 = vmatmul.bf16.gmra.mxu0 %v19408_v41  ;;  %v10778_v11 = vld [vmem:[%s18549_s5 + $0x448] sm:$0xff]  ;;  %v10776_v41 = vld [vmem:[%s18549_s5 + $0x438] sm:$0xff] }
 0xda4   :  { %8427 = vmatpush.msra.mxu2 %v10760_v54  ;;  %8503 = vmatpush.msra.mxu1 %v10800_v46  ;;  %v10775_v54 = vld [vmem:[%s18549_s5 + $0x430] sm:$0xff] }
 0xda5   :  { %8309 = vmatmul.f32.vlgmr.msrb.gmra.mxu2 %v8077_v17  ;;  %v10777_v17 = vld [vmem:[%s18549_s5 + $0x440] sm:$0xff] }
 0xda6   :  { %8428 = vmatpush.msra.mxu2 %v10759_v35  ;;  %8504 = vmatpush.msra.mxu1 %v10799_v28  ;;  %v10774_v35 = vld [vmem:[%s18549_s5 + $0x428] sm:$0xff]  ;;  %v17908_v34 = vpop.f32.mrf.mxu3 }
 0xda8   :  { %v7996_v40 = vpop.f32.mrf.mxu0  ;;  %8429 = vmatpush.msra.mxu2 %v10758_v14  ;;  %8505 = vmatpush.msra.mxu1 %v10798_v27  ;;  %v10773_v14 = vld [vmem:[%s18549_s5 + $0x420] sm:$0xff]  ;;  %v7698_v27 = vadd.f32 %v17599_v51, %v17279_v56  ;;  %v10788_v56 = vld [vmem:[%s18549_s5 + $0x498] sm:$0xff] }
 0xda9   :  { %v7997_v24 = vadd.f32 %v7996_v40, %v17391_v61  ;;  %v10781_v61 = vld [vmem:[%s18549_s5 + $0x460] sm:$0xff]  ;;  %v10812_v51 = vld [vmem:[%s18549_s5 + $0x558] sm:$0xff] }
 0xdaa   :  { %8464 = vmatpush.msra.mxu3 %v10781_v61  ;;  %8430 = vmatpush.msra.mxu2 %v10757_v29  ;;  %v10796_v29 = vld [vmem:[%s18549_s5 + $0x4d8] sm:$0xff] }
 0xdab   :  { %v8078_v10 = vmax.f32 %v7997_v24, 0.0 }
 0xdac   :  { %8465 = vmatpush.msra.mxu3 %v10780_v19  ;;  %8431 = vmatpush.msra.mxu2 %v10756_v45  ;;  %v10771_v45 = vld [vmem:[%s18549_s5 + $0x410] sm:$0xff] }
 0xdad   :  { %8312 = vmatmul.f32.gmra.mxu2 %v8078_v10  ;;  %v10772_v10 = vld [vmem:[%s18549_s5 + $0x418] sm:$0xff]  ;;  %v10795_v19 = vld [vmem:[%s18549_s5 + $0x4d0] sm:$0xff] }
 0xdae   :  { %8466 = vmatpush.msra.mxu3 %v10779_v7  ;;  %8432 = vmatpush.msra.mxu2 %v10755_v6  ;;  %v17923_v6 = vpop.f32.mrf.mxu1  ;;  %v10770_v7 = vld [vmem:[%s18549_s5 + $0x408] sm:$0xff] }
 0xdb0   :  { %v7999_v42 = vpop.f32.mrf.mxu0  ;;  %8467 = vmatpush.msra.mxu3 %v10778_v11  ;;  %8433 = vmatpush.msra.mxu2 %v10754_v5  ;;  %v19410_v11 = vld [vmem:[#allocation25_spill] sm:$0xff] }
 0xdb1   :  { %v8000_v20 = vadd.f32 %v7999_v42, %v17406_v0  ;;  %v10753_v0 = vld [vmem:[%s18549_s5 + $0x380] sm:$0xff] }
 0xdb2   :  { %8434 = vmatpush.msra.mxu2 %v10753_v0  ;;  %8468 = vmatpush.msra.mxu3 %v10777_v17  ;;  %v10792_v0 = vld [vmem:[%s18549_s5 + $0x4b8] sm:$0xff] }
 0xdb3   :  { %v8079_v58 = vmax.f32 %v8000_v20, 0.0  ;;  %8038 = vmatmul.bf16.gmra.mxu0 %v19409_v3  ;;  %v10794_v20 = vld [vmem:[%s18549_s5 + $0x4c8] sm:$0xff]  ;;  %v17938_v3 = vpop.f32.mrf.mxu2  ;;  %v10816_v17 = vld [vmem:[%s18549_s5 + $0x578] sm:$0xff] }
 0xdb4   :  { %8469 = vmatpush.msra.mxu3 %v10776_v41  ;;  %v17946_v41 = vpop.f32.mrf.mxu3  ;;  %8545 = vmatpush.msrb.mxu2 %v10816_v17 }
 0xdb5   :  { %8351 = vmatmul.f32.vlgmr.msrb.gmra.mxu3 %v8079_v58  ;;  %v10793_v58 = vld [vmem:[%s18549_s5 + $0x4c0] sm:$0xff] }
 0xdb6   :  { %8470 = vmatpush.msra.mxu3 %v10775_v54  ;;  %v10815_v54 = vld [vmem:[%s18549_s5 + $0x570] sm:$0xff] }
 0xdb7   :  { %8546 = vmatpush.msrb.mxu2 %v10815_v54 }
 0xdb8   :  { %v8001_v39 = vpop.f32.mrf.mxu0  ;;  %8471 = vmatpush.msra.mxu3 %v10774_v35  ;;  %v10814_v35 = vld [vmem:[%s18549_s5 + $0x568] sm:$0xff] }
 0xdb9   :  { %v8002_v40 = vadd.f32 %v8001_v39, %v17411_v48  ;;  %v10797_v48 = vld [vmem:[%s18549_s5 + $0x4e0] sm:$0xff]  ;;  %v10791_v39 = vld [vmem:[%s18549_s5 + $0x4b0] sm:$0xff]  ;;  %8547 = vmatpush.msrb.mxu2 %v10814_v35 }
 0xdba   :  { %8506 = vmatpush.msra.mxu1 %v10797_v48  ;;  %8472 = vmatpush.msra.mxu3 %v10773_v14  ;;  %v10789_v14 = vld [vmem:[%s18549_s5 + $0x4a0] sm:$0xff]  ;;  %v17969_v48 = vpop.f32.mrf.mxu1 }
 0xdbb   :  { %v8080_v24 = vmax.f32 %v8002_v40, 0.0  ;;  %v10790_v40 = vld [vmem:[%s18549_s5 + $0x4a8] sm:$0xff] }
 0xdbc   :  { %8507 = vmatpush.msra.mxu1 %v10796_v29  ;;  %8473 = vmatpush.msra.mxu3 %v10772_v10  ;;  %v7802_v10 = vadd.f32 %v17654_v63, %v7698_v27  ;;  %v17978_v29 = vpop.f32.mrf.mxu2  ;;  %v10787_v63 = vld [vmem:[%s18549_s5 + $0x490] sm:$0xff] }
 0xdbd   :  { %8354 = vmatmul.f32.gmra.mxu3 %v8080_v24 }
 0xdbe   :  { %8508 = vmatpush.msra.mxu1 %v10795_v19  ;;  %8474 = vmatpush.msra.mxu3 %v10771_v45  ;;  %v17981_v45 = vpop.f32.mrf.mxu3 }
 0xdc0   :  { %v8004_v61 = vpop.f32.mrf.mxu0  ;;  %8509 = vmatpush.msra.mxu1 %v10794_v20  ;;  %8475 = vmatpush.msra.mxu3 %v10770_v7  ;;  %v10810_v20 = vld [vmem:[%s18549_s5 + $0x548] sm:$0xff] }
 0xdc1   :  { %v8005_v42 = vadd.f32 %v8004_v61, %v17426_v53  ;;  %v10769_v53 = vld [vmem:[%s18549_s5 + $0x400] sm:$0xff]  ;;  %v7906_v61 = vadd.f32 %v17709_v15, %v7802_v10  ;;  %v10786_v15 = vld [vmem:[%s18549_s5 + $0x488] sm:$0xff] }
 0xdc2   :  { %8476 = vmatpush.msra.mxu3 %v10769_v53  ;;  %8510 = vmatpush.msra.mxu1 %v10793_v58  ;;  %v19411_v53 = vld [vmem:[#allocation26_spill] sm:$0xff] }
 0xdc3   :  { %v8081_v5 = vmax.f32 %v8005_v42, 0.0  ;;  %8043 = vmatmul.bf16.gmra.mxu0 %v19410_v11  ;;  %v10811_v42 = vld [vmem:[%s18549_s5 + $0x550] sm:$0xff]  ;;  %v10785_v58 = vld [vmem:[%s18549_s5 + $0x480] sm:$0xff] }
 0xdc4   :  { %8511 = vmatpush.msra.mxu1 %v10792_v0  ;;  %v10809_v0 = vld [vmem:[%s18549_s5 + $0x540] sm:$0xff]  ;;  %v18014_v54 = vpop.f32.mrf.mxu2 }
 0xdc5   :  { %8393 = vmatmul.f32.vlgmr.msrb.gmra.mxu1 %v8081_v5  ;;  %v7700_v5 = vadd.f32 %v17633_v21, %v17289_v36  ;;  %v10808_v36 = vld [vmem:[%s18549_s5 + $0x538] sm:$0xff]  ;;  %v10805_v10 = vld [vmem:[%s18549_s5 + $0x520] sm:$0xff] }
 0xdc6   :  { %8512 = vmatpush.msra.mxu1 %v10791_v39  ;;  %v10832_v21 = vld [vmem:[%s18549_s5 + $0x5f8] sm:$0xff]  ;;  %v18022_v27 = vpop.f32.mrf.mxu3 }
 0xdc7   :  { %v7804_v17 = vadd.f32 %v17688_v23, %v7700_v5  ;;  %8587 = vmatpush.msrb.mxu3 %v10832_v21  ;;  %v10807_v23 = vld [vmem:[%s18549_s5 + $0x530] sm:$0xff]  ;;  %v7705_v5 = vadd.f32 %v17798_v32, %v17305_v55  ;;  %v10824_v55 = vld [vmem:[%s18549_s5 + $0x5b8] sm:$0xff] }
 0xdc8   :  { %v8006_v46 = vpop.f32.mrf.mxu0  ;;  %8513 = vmatpush.msra.mxu1 %v10790_v40  ;;  %v10831_v40 = vld [vmem:[%s18549_s5 + $0x5f0] sm:$0xff]  ;;  %v10848_v32 = vld [vmem:[%s18549_s5 + $0x678] sm:$0xff] }
 0xdc9   :  { %v8007_v28 = vadd.f32 %v8006_v46, %v17434_v62  ;;  %v10813_v62 = vld [vmem:[%s18549_s5 + $0x560] sm:$0xff]  ;;  %v18011_v46 = vpop.f32.mrf.mxu1  ;;  %v7908_v39 = vadd.f32 %v17743_v31, %v7804_v17  ;;  %8588 = vmatpush.msrb.mxu3 %v10831_v40  ;;  %v10806_v31 = vld [vmem:[%s18549_s5 + $0x528] sm:$0xff] }
 0xdca   :  { %8548 = vmatpush.msrb.mxu2 %v10813_v62  ;;  %8514 = vmatpush.msra.mxu1 %v10789_v14  ;;  %v7703_v14 = vadd.f32 %v17764_v8, %v17295_v2  ;;  %v10828_v2 = vld [vmem:[%s18549_s5 + $0x5d8] sm:$0xff] }
 0xdcb   :  { %v8082_v24 = vmax.f32 %v8007_v28, 0.0 }
 0xdcc   :  { %8549 = vmatpush.msrb.mxu2 %v10812_v51  ;;  %8515 = vmatpush.msra.mxu1 %v10788_v56  ;;  %v10829_v56 = vld [vmem:[%s18549_s5 + $0x5e0] sm:$0xff]  ;;  %v7807_v51 = vadd.f32 %v17819_v57, %v7703_v14  ;;  %v10803_v57 = vld [vmem:[%s18549_s5 + $0x510] sm:$0xff] }
 0xdcd   :  { %8396 = vmatmul.f32.gmra.mxu1 %v8082_v24  ;;  %v10830_v24 = vld [vmem:[%s18549_s5 + $0x5e8] sm:$0xff]  ;;  %v10821_v14 = vld [vmem:[%s18549_s5 + $0x5a0] sm:$0xff] }
 0xdce   :  { %8550 = vmatpush.msrb.mxu2 %v10811_v42  ;;  %8516 = vmatpush.msra.mxu1 %v10787_v63  ;;  %v7911_v8 = vadd.f32 %v17868_v12, %v7807_v51  ;;  %v10827_v42 = vld [vmem:[%s18549_s5 + $0x5d0] sm:$0xff]  ;;  %v10802_v12 = vld [vmem:[%s18549_s5 + $0x508] sm:$0xff]  ;;  %v18071_v17 = vpop.f32.mrf.mxu3 }
 0xdcf   :  { %8589 = vmatpush.msrb.mxu3 %v10830_v24 }
 0xdd0   :  { %v8009_v19 = vpop.f32.mrf.mxu0  ;;  %8551 = vmatpush.msrb.mxu2 %v10810_v20  ;;  %8517 = vmatpush.msra.mxu1 %v10786_v15  ;;  %v18054_v15 = vpop.f32.mrf.mxu2  ;;  %v10826_v20 = vld [vmem:[%s18549_s5 + $0x5c8] sm:$0xff] }
 0xdd1   :  { %v8010_v7 = vadd.f32 %v8009_v19, %v7906_v61  ;;  %8590 = vmatpush.msrb.mxu3 %v10829_v56  ;;  %v10804_v61 = vld [vmem:[%s18549_s5 + $0x518] sm:$0xff]  ;;  %v18046_v19 = vpop.f32.mrf.mxu1 }
 0xdd2   :  { %8518 = vmatpush.msra.mxu1 %v10785_v58  ;;  %8552 = vmatpush.msrb.mxu2 %v10809_v0  ;;  %v10801_v58 = vld [vmem:[%s18549_s5 + $0x500] sm:$0xff] }
 0xdd3   :  { %v8083_v11 = vmax.f32 %v8010_v7, 0.0  ;;  %8048 = vmatmul.bf16.gmra.mxu0 %v19411_v53  ;;  %8591 = vmatpush.msrb.mxu3 %v10828_v2  ;;  %v19412_v53 = vld [vmem:[#allocation27_spill] sm:$0xff]  ;;  %v10825_v0 = vld [vmem:[%s18549_s5 + $0x5c0] sm:$0xff] }
 0xdd4   :  { %8553 = vmatpush.msrb.mxu2 %v10808_v36  ;;  %v7809_v36 = vadd.f32 %v17853_v43, %v7705_v5  ;;  %8629 = vmatpush.msrb.mxu1 %v10848_v32  ;;  %v10823_v43 = vld [vmem:[%s18549_s5 + $0x5b0] sm:$0xff]  ;;  %v10841_v5 = vld [vmem:[%s18549_s5 + $0x640] sm:$0xff] }
 0xdd5   :  { %8435 = vmatmul.f32.vlgmr.msra.gmra.mxu2 %v8083_v11  ;;  %8592 = vmatpush.msrb.mxu3 %v10827_v42  ;;  %v7710_v42 = vadd.f32 %v17969_v48, %v17321_v38  ;;  %v10840_v38 = vld [vmem:[%s18549_s5 + $0x638] sm:$0xff]  ;;  %v10863_v32 = vld [vmem:[%s18549_s5 + $0x6f0] sm:$0xff] }
 0xdd6   :  { %8554 = vmatpush.msrb.mxu2 %v10807_v23  ;;  %v7913_v21 = vadd.f32 %v17908_v34, %v7809_v36  ;;  %v10822_v34 = vld [vmem:[%s18549_s5 + $0x5a8] sm:$0xff]  ;;  %v18112_v51 = vpop.f32.mrf.mxu3  ;;  %v10864_v48 = vld [vmem:[%s18549_s5 + $0x6f8] sm:$0xff] }
 0xdd7   :  { %8593 = vmatpush.msrb.mxu3 %v10826_v20  ;;  %v10817_v20 = vld [vmem:[%s18549_s5 + $0x580] sm:$0xff] }
 0xdd8   :  { %v8011_v28 = vpop.f32.mrf.mxu0  ;;  %8555 = vmatpush.msrb.mxu2 %v10806_v31  ;;  %v7708_v31 = vadd.f32 %v17923_v6, %v17311_v52  ;;  %v10820_v52 = vld [vmem:[%s18549_s5 + $0x598] sm:$0xff] }
 0xdd9   :  { %v8012_v35 = vadd.f32 %v8011_v28, %v7908_v39  ;;  %8594 = vmatpush.msrb.mxu3 %v10825_v0  ;;  %v10847_v28 = vld [vmem:[%s18549_s5 + $0x670] sm:$0xff]  ;;  %v18087_v40 = vpop.f32.mrf.mxu1  ;;  %v10844_v6 = vld [vmem:[%s18549_s5 + $0x658] sm:$0xff] }
 0xdda   :  { %8556 = vmatpush.msrb.mxu2 %v10805_v10  ;;  %8630 = vmatpush.msrb.mxu1 %v10847_v28  ;;  %v18103_v10 = vpop.f32.mrf.mxu2  ;;  %v7812_v56 = vadd.f32 %v17938_v3, %v7708_v31  ;;  %v10819_v3 = vld [vmem:[%s18549_s5 + $0x590] sm:$0xff]  ;;  %v10836_v31 = vld [vmem:[%s18549_s5 + $0x618] sm:$0xff] }
 0xddb   :  { %v8084_v62 = vmax.f32 %v8012_v35, 0.0  ;;  %8595 = vmatpush.msrb.mxu3 %v10824_v55  ;;  %v10846_v35 = vld [vmem:[%s18549_s5 + $0x668] sm:$0xff] }
 0xddc   :  { %8557 = vmatpush.msrb.mxu2 %v10804_v61  ;;  %8631 = vmatpush.msrb.mxu1 %v10846_v35  ;;  %v7916_v61 = vadd.f32 %v17946_v41, %v7812_v56  ;;  %v10842_v41 = vld [vmem:[%s18549_s5 + $0x648] sm:$0xff]  ;;  %v10859_v56 = vld [vmem:[%s18549_s5 + $0x6d0] sm:$0xff] }
 0xddd   :  { %8438 = vmatmul.f32.gmra.mxu2 %v8084_v62  ;;  %8596 = vmatpush.msrb.mxu3 %v10823_v43  ;;  %v10845_v62 = vld [vmem:[%s18549_s5 + $0x660] sm:$0xff]  ;;  %v7713_v43 = vadd.f32 %v18011_v46, %v17327_v1  ;;  %v10860_v1 = vld [vmem:[%s18549_s5 + $0x6d8] sm:$0xff] }
 0xdde   :  { %8558 = vmatpush.msrb.mxu2 %v10803_v57  ;;  %8632 = vmatpush.msrb.mxu1 %v10845_v62  ;;  %v10818_v57 = vld [vmem:[%s18549_s5 + $0x588] sm:$0xff]  ;;  %v18148_v36 = vpop.f32.mrf.mxu3 }
 0xddf   :  { %8597 = vmatpush.msrb.mxu3 %v10822_v34  ;;  %v10861_v34 = vld [vmem:[%s18549_s5 + $0x6e0] sm:$0xff]  ;;  %v7817_v35 = vadd.f32 %v18014_v54, %v7713_v43  ;;  %v10835_v54 = vld [vmem:[%s18549_s5 + $0x610] sm:$0xff] }
 0xde0   :  { %v8014_v63 = vpop.f32.mrf.mxu0  ;;  %8559 = vmatpush.msrb.mxu2 %v10802_v12  ;;  %8633 = vmatpush.msrb.mxu1 %v10844_v6  ;;  %v19413_v12 = vld [vmem:[#allocation28_spill] sm:$0xff] }
 0xde1   :  { %v8015_v7 = vadd.f32 %v8014_v63, %v7911_v8  ;;  %8598 = vmatpush.msrb.mxu3 %v10821_v14  ;;  %v10843_v8 = vld [vmem:[%s18549_s5 + $0x650] sm:$0xff] }
 0xde2   :  { %8560 = vmatpush.msrb.mxu2 %v10801_v58  ;;  %8634 = vmatpush.msrb.mxu1 %v10843_v8  ;;  %v18145_v58 = vpop.f32.mrf.mxu2  ;;  %v19414_v8 = vld [vmem:[#allocation29_spill] sm:$0xff]  ;;  %v10875_v43 = vld [vmem:[%s18549_s5 + $0x750] sm:$0xff] }
 0xde3   :  { %v8085_v11 = vmax.f32 %v8015_v7, 0.0  ;;  %8053 = vmatmul.bf16.gmra.mxu0 %v19412_v53  ;;  %8599 = vmatpush.msrb.mxu3 %v10820_v52  ;;  %v7814_v53 = vadd.f32 %v17978_v29, %v7710_v42  ;;  %v10839_v29 = vld [vmem:[%s18549_s5 + $0x630] sm:$0xff] }
 0xde4   :  { %8635 = vmatpush.msrb.mxu1 %v10842_v41  ;;  %8671 = vmatpush.msra.mxu2 %v10864_v48  ;;  %v7718_v48 = vadd.f32 %v18087_v40, %v17352_v16  ;;  %v10852_v16 = vld [vmem:[%s18549_s5 + $0x698] sm:$0xff] }
 0xde5   :  { %8477 = vmatmul.f32.vlgmr.msra.gmra.mxu3 %v8085_v11  ;;  %v18136_v11 = vpop.f32.mrf.mxu1  ;;  %v7918_v0 = vadd.f32 %v17981_v45, %v7814_v53  ;;  %v10838_v45 = vld [vmem:[%s18549_s5 + $0x628] sm:$0xff]  ;;  %v10876_v40 = vld [vmem:[%s18549_s5 + $0x758] sm:$0xff] }
 0xde6   :  { %8600 = vmatpush.msrb.mxu3 %v10819_v3  ;;  %8636 = vmatpush.msrb.mxu1 %v10841_v5  ;;  %v18188_v6 = vpop.f32.mrf.mxu3 }
 0xde7   :  { %8672 = vmatpush.msra.mxu2 %v10863_v32 }
 0xde8   :  { %v8016_v39 = vpop.f32.mrf.mxu0  ;;  %8601 = vmatpush.msrb.mxu3 %v10818_v57  ;;  %8637 = vmatpush.msrb.mxu1 %v10840_v38  ;;  %v10857_v57 = vld [vmem:[%s18549_s5 + $0x6c0] sm:$0xff]  ;;  %v10878_v38 = vld [vmem:[%s18549_s5 + $0x768] sm:$0xff] }
 0xde9   :  { %v8017_v23 = vadd.f32 %v8016_v39, %v7913_v21  ;;  %v10862_v39 = vld [vmem:[%s18549_s5 + $0x6e8] sm:$0xff] }
 0xdea   :  { %8602 = vmatpush.msrb.mxu3 %v10817_v20  ;;  %8638 = vmatpush.msrb.mxu1 %v10839_v29  ;;  %v18180_v14 = vpop.f32.mrf.mxu2  ;;  %v10879_v20 = vld [vmem:[%s18549_s5 + $0x770] sm:$0xff]  ;;  %v10877_v29 = vld [vmem:[%s18549_s5 + $0x760] sm:$0xff] }
 0xdeb   :  { %v8086_v24 = vmax.f32 %v8017_v23, 0.0  ;;  %8673 = vmatpush.msra.mxu2 %v10862_v39  ;;  %v10837_v23 = vld [vmem:[%s18549_s5 + $0x620] sm:$0xff] }
 0xdec   :  { %8639 = vmatpush.msrb.mxu1 %v10838_v45 }
 0xded   :  { %8480 = vmatmul.f32.gmra.mxu3 %v8086_v24  ;;  %8674 = vmatpush.msra.mxu2 %v10861_v34  ;;  %v18177_v46 = vpop.f32.mrf.mxu1  ;;  %v7921_v24 = vadd.f32 %v18022_v27, %v7817_v35  ;;  %v10834_v27 = vld [vmem:[%s18549_s5 + $0x608] sm:$0xff]  ;;  %v7720_v35 = vadd.f32 %v18136_v11, %v17362_v33  ;;  %v10872_v33 = vld [vmem:[%s18549_s5 + $0x738] sm:$0xff] }
 0xdee   :  { %8640 = vmatpush.msrb.mxu1 %v10837_v23  ;;  %v18237_v32 = vpop.f32.mrf.mxu3  ;;  %v10874_v34 = vld [vmem:[%s18549_s5 + $0x748] sm:$0xff]  ;;  %v10896_v11 = vld [vmem:[%s18549_s5 + $0x7f8] sm:$0xff] }
 0xdef   :  { %8675 = vmatpush.msra.mxu2 %v10860_v1  ;;  %v10849_v1 = vld [vmem:[%s18549_s5 + $0x680] sm:$0xff] }
 0xdf0   :  { %v8019_v2 = vpop.f32.mrf.mxu0  ;;  %8641 = vmatpush.msrb.mxu1 %v10836_v31 }
 0xdf1   :  { %v8020_v63 = vadd.f32 %v8019_v2, %v7916_v61  ;;  %8676 = vmatpush.msra.mxu2 %v10859_v56  ;;  %v10858_v61 = vld [vmem:[%s18549_s5 + $0x6c8] sm:$0xff]  ;;  %v7715_v2 = vadd.f32 %v18046_v19, %v17340_v44  ;;  %v10856_v44 = vld [vmem:[%s18549_s5 + $0x6b8] sm:$0xff] }
 0xdf2   :  { %8642 = vmatpush.msrb.mxu1 %v10835_v54  ;;  %v10880_v19 = vld [vmem:[%s18549_s5 + $0x778] sm:$0xff]  ;;  %v18221_v53 = vpop.f32.mrf.mxu2  ;;  %v7824_v54 = vadd.f32 %v18145_v58, %v7720_v35  ;;  %v10871_v58 = vld [vmem:[%s18549_s5 + $0x730] sm:$0xff] }
 0xdf3   :  { %v8087_v7 = vmax.f32 %v8020_v63, 0.0  ;;  %8058 = vmatmul.bf16.gmra.mxu0 %v19413_v12  ;;  %8677 = vmatpush.msra.mxu2 %v10858_v61  ;;  %v10833_v63 = vld [vmem:[%s18549_s5 + $0x600] sm:$0xff]  ;;  %v7819_v41 = vadd.f32 %v18054_v15, %v7715_v2  ;;  %v10855_v15 = vld [vmem:[%s18549_s5 + $0x6b0] sm:$0xff] }
 0xdf4   :  { %8643 = vmatpush.msrb.mxu1 %v10834_v27  ;;  %8713 = vmatpush.msra.mxu3 %v10880_v19  ;;  %v10895_v61 = vld [vmem:[%s18549_s5 + $0x7f0] sm:$0xff] }
 0xdf5   :  { %8519 = vmatmul.f32.vlgmr.msra.gmra.mxu1 %v8087_v7  ;;  %8678 = vmatpush.msra.mxu2 %v10857_v57  ;;  %v7923_v42 = vadd.f32 %v18071_v17, %v7819_v41  ;;  %v18213_v7 = vpop.f32.mrf.mxu1  ;;  %v10854_v17 = vld [vmem:[%s18549_s5 + $0x6a8] sm:$0xff]  ;;  %v10869_v57 = vld [vmem:[%s18549_s5 + $0x720] sm:$0xff] }
 0xdf6   :  { %8644 = vmatpush.msrb.mxu1 %v10833_v63  ;;  %8714 = vmatpush.msra.mxu3 %v10879_v20  ;;  %v18278_v56 = vpop.f32.mrf.mxu3  ;;  %v10893_v41 = vld [vmem:[%s18549_s5 + $0x7e0] sm:$0xff] }
 0xdf7   :  { %8679 = vmatpush.msra.mxu2 %v10856_v44 }
 0xdf8   :  { %v8021_v55 = vpop.f32.mrf.mxu0  ;;  %8715 = vmatpush.msra.mxu3 %v10878_v38  ;;  %8755 = vmatpush.msra.mxu1 %v10896_v11  ;;  %v10890_v38 = vld [vmem:[%s18549_s5 + $0x7c8] sm:$0xff] }
 0xdf9   :  { %v8022_v21 = vadd.f32 %v8021_v55, %v7918_v0  ;;  %8680 = vmatpush.msra.mxu2 %v10855_v15  ;;  %v10853_v55 = vld [vmem:[%s18549_s5 + $0x6a0] sm:$0xff] }
 0xdfa   :  { %8716 = vmatpush.msra.mxu3 %v10877_v29  ;;  %8756 = vmatpush.msra.mxu1 %v10895_v61  ;;  %v10889_v29 = vld [vmem:[%s18549_s5 + $0x7c0] sm:$0xff]  ;;  %v10906_v61 = vld [vmem:[%s18549_s5 + $0x848] sm:$0xff] }
 0xdfb   :  { %v8088_v28 = vmax.f32 %v8022_v21, 0.0  ;;  %8681 = vmatpush.msra.mxu2 %v10854_v17  ;;  %v7822_v21 = vadd.f32 %v18103_v10, %v7718_v48  ;;  %v10851_v10 = vld [vmem:[%s18549_s5 + $0x690] sm:$0xff]  ;;  %v7725_v48 = vadd.f32 %v18213_v7, %v17386_v26  ;;  %v10912_v26 = vld [vmem:[%s18549_s5 + $0x878] sm:$0xff] }
 0xdfc   :  { %8717 = vmatpush.msra.mxu3 %v10876_v40 }
 0xdfd   :  { %8522 = vmatmul.f32.gmra.mxu1 %v8088_v28  ;;  %8682 = vmatpush.msra.mxu2 %v10853_v55  ;;  %v7926_v45 = vadd.f32 %v18112_v51, %v7822_v21  ;;  %v18253_v23 = vpop.f32.mrf.mxu1  ;;  %v10850_v51 = vld [vmem:[%s18549_s5 + $0x688] sm:$0xff]  ;;  %v10865_v55 = vld [vmem:[%s18549_s5 + $0x700] sm:$0xff]  ;;  %v7829_v21 = vadd.f32 %v18221_v53, %v7725_v48  ;;  %v10887_v53 = vld [vmem:[%s18549_s5 + $0x7b0] sm:$0xff] }
 0xdfe   :  { %8718 = vmatpush.msra.mxu3 %v10875_v43  ;;  %v18313_v15 = vpop.f32.mrf.mxu3 }
 0xdff   :  { %8683 = vmatpush.msra.mxu2 %v10852_v16  ;;  %v10888_v16 = vld [vmem:[%s18549_s5 + $0x7b8] sm:$0xff]  ;;  %v7933_v40 = vadd.f32 %v18237_v32, %v7829_v21  ;;  %v10886_v32 = vld [vmem:[%s18549_s5 + $0x7a8] sm:$0xff] }
 0xe00   :  { %v8024_v62 = vpop.f32.mrf.mxu0  ;;  %8719 = vmatpush.msra.mxu3 %v10874_v34  ;;  %v7728_v34 = vadd.f32 %v18253_v23, %v17394_v18  ;;  %v10908_v18 = vld [vmem:[%s18549_s5 + $0x858] sm:$0xff] }
 0xe01   :  { %v8025_v52 = vadd.f32 %v8024_v62, %v7921_v24  ;;  %8684 = vmatpush.msra.mxu2 %v10851_v10  ;;  %v10873_v24 = vld [vmem:[%s18549_s5 + $0x740] sm:$0xff]  ;;  %v18269_v62 = vpop.f32.mrf.mxu2  ;;  %v10911_v10 = vld [vmem:[%s18549_s5 + $0x870] sm:$0xff] }
 0xe02   :  { %8720 = vmatpush.msra.mxu3 %v10873_v24  ;;  %v7832_v24 = vadd.f32 %v18269_v62, %v7728_v34  ;;  %v10883_v62 = vld [vmem:[%s18549_s5 + $0x790] sm:$0xff] }
 0xe03   :  { %v8089_v3 = vmax.f32 %v8025_v52, 0.0  ;;  %8063 = vmatmul.bf16.gmra.mxu0 %v19414_v8  ;;  %8685 = vmatpush.msra.mxu2 %v10850_v51  ;;  %v7928_v52 = vadd.f32 %v18148_v36, %v7824_v54  ;;  %v10894_v36 = vld [vmem:[%s18549_s5 + $0x7e8] sm:$0xff]  ;;  %v7723_v8 = vadd.f32 %v18177_v46, %v17374_v50  ;;  %v10868_v50 = vld [vmem:[%s18549_s5 + $0x718] sm:$0xff] }
 0xe04   :  { %8721 = vmatpush.msra.mxu3 %v10872_v33  ;;  %8757 = vmatpush.msra.mxu1 %v10894_v36  ;;  %v10892_v46 = vld [vmem:[%s18549_s5 + $0x7d8] sm:$0xff]  ;;  %v10910_v51 = vld [vmem:[%s18549_s5 + $0x868] sm:$0xff]  ;;  %v7936_v23 = vadd.f32 %v18278_v56, %v7832_v24  ;;  %v10881_v36 = vld [vmem:[%s18549_s5 + $0x780] sm:$0xff] }
 0xe05   :  { %8561 = vmatmul.f32.vlgmr.msrb.gmra.mxu2 %v8089_v3  ;;  %v10870_v3 = vld [vmem:[%s18549_s5 + $0x728] sm:$0xff]  ;;  %v18301_v44 = vpop.f32.mrf.mxu1  ;;  %v7827_v19 = vadd.f32 %v18180_v14, %v7723_v8  ;;  %v10867_v14 = vld [vmem:[%s18549_s5 + $0x710] sm:$0xff]  ;;  %v10884_v54 = vld [vmem:[%s18549_s5 + $0x798] sm:$0xff] }
 0xe06   :  { %8686 = vmatpush.msra.mxu2 %v10849_v1  ;;  %8722 = vmatpush.msra.mxu3 %v10871_v58  ;;  %v10909_v1 = vld [vmem:[%s18549_s5 + $0x860] sm:$0xff]  ;;  %v10882_v56 = vld [vmem:[%s18549_s5 + $0x788] sm:$0xff]  ;;  %v10919_v24 = vld [vmem:[%s18549_s5 + $0x8b0] sm:$0xff] }
 0xe07   :  { %8758 = vmatpush.msra.mxu1 %v10893_v41  ;;  %v10905_v8 = vld [vmem:[%s18549_s5 + $0x840] sm:$0xff]  ;;  %v10904_v41 = vld [vmem:[%s18549_s5 + $0x838] sm:$0xff] }
 0xe08   :  { %v8026_v12 = vpop.f32.mrf.mxu0  ;;  %8723 = vmatpush.msra.mxu3 %v10870_v3  ;;  %8797 = vmatpush.msrb.mxu2 %v10912_v26  ;;  %v10923_v26 = vld [vmem:[%s18549_s5 + $0x8d0] sm:$0xff] }
 0xe09   :  { %v8027_v5 = vadd.f32 %v8026_v12, %v7923_v42  ;;  %v18310_v42 = vpop.f32.mrf.mxu2  ;;  %v7931_v12 = vadd.f32 %v18188_v6, %v7827_v19  ;;  %8759 = vmatpush.msra.mxu1 %v10892_v46  ;;  %v10866_v6 = vld [vmem:[%s18549_s5 + $0x708] sm:$0xff]  ;;  %v10927_v46 = vld [vmem:[%s18549_s5 + $0x8f0] sm:$0xff] }
 0xe0a   :  { %8724 = vmatpush.msra.mxu3 %v10869_v57  ;;  %8798 = vmatpush.msrb.mxu2 %v10911_v10  ;;  %v10897_v10 = vld [vmem:[%s18549_s5 + $0x800] sm:$0xff] }
 0xe0b   :  { %v8090_v0 = vmax.f32 %v8027_v5, 0.0  ;;  %v10891_v5 = vld [vmem:[%s18549_s5 + $0x7d0] sm:$0xff] }
 0xe0c   :  { %8725 = vmatpush.msra.mxu3 %v10868_v50  ;;  %8760 = vmatpush.msra.mxu1 %v10891_v5  ;;  %v10903_v50 = vld [vmem:[%s18549_s5 + $0x830] sm:$0xff] }
 0xe0d   :  { %8564 = vmatmul.f32.gmra.mxu2 %v8090_v0  ;;  %v18342_v7 = vpop.f32.mrf.mxu1 }
 0xe0e   :  { %8726 = vmatpush.msra.mxu3 %v10867_v14  ;;  %8761 = vmatpush.msra.mxu1 %v10890_v38  ;;  %v7733_v14 = vadd.f32 %v18342_v7, %v17417_v22  ;;  %v10900_v22 = vld [vmem:[%s18549_s5 + $0x818] sm:$0xff] }
 0xe0f   :  { %8799 = vmatpush.msrb.mxu2 %v10910_v51  ;;  %v10920_v51 = vld [vmem:[%s18549_s5 + $0x8b8] sm:$0xff] }
 0xe10   :  { %v8029_v39 = vpop.f32.mrf.mxu0  ;;  %8727 = vmatpush.msra.mxu3 %v10866_v6  ;;  %8762 = vmatpush.msra.mxu1 %v10889_v29  ;;  %v10925_v6 = vld [vmem:[%s18549_s5 + $0x8e0] sm:$0xff] }
 0xe11   :  { %v8030_v28 = vadd.f32 %v8029_v39, %v7926_v45  ;;  %v18345_v45 = vpop.f32.mrf.mxu2  ;;  %8800 = vmatpush.msrb.mxu2 %v10909_v1 }
 0xe12   :  { %8728 = vmatpush.msra.mxu3 %v10865_v55  ;;  %8763 = vmatpush.msra.mxu1 %v10888_v16  ;;  %v7837_v48 = vadd.f32 %v18345_v45, %v7733_v14  ;;  %v10899_v16 = vld [vmem:[%s18549_s5 + $0x810] sm:$0xff]  ;;  %v10922_v45 = vld [vmem:[%s18549_s5 + $0x8c8] sm:$0xff] }
 0xe13   :  { %v8091_v31 = vmax.f32 %v8030_v28, 0.0  ;;  %v18353_v28 = vpop.f32.mrf.mxu3  ;;  %8801 = vmatpush.msrb.mxu2 %v10908_v18 }
 0xe14   :  { %8764 = vmatpush.msra.mxu1 %v10887_v53  ;;  %v7941_v29 = vadd.f32 %v18353_v28, %v7837_v48 }
 0xe15   :  { %8603 = vmatmul.f32.vlgmr.msrb.gmra.mxu3 %v8091_v31  ;;  %v10885_v31 = vld [vmem:[%s18549_s5 + $0x7a0] sm:$0xff]  ;;  %v7734_v33 = vpop.f32.mrf.mxu1 }
 0xe16   :  { %8765 = vmatpush.msra.mxu1 %v10886_v32 }
 0xe18   :  { %v8031_v27 = vpop.f32.mrf.mxu0  ;;  %8766 = vmatpush.msra.mxu1 %v10885_v31 }
 0xe19   :  { %v8032_v2 = vadd.f32 %v8031_v27, %v7928_v52  ;;  %v10907_v52 = vld [vmem:[%s18549_s5 + $0x850] sm:$0xff]  ;;  %v7838_v58 = vpop.f32.mrf.mxu2 }
 0xe1a   :  { %8767 = vmatpush.msra.mxu1 %v10884_v54  ;;  %8802 = vmatpush.msrb.mxu2 %v10907_v52  ;;  %v10943_v54 = vld [vmem:[%s18549_s5 + $0x970] sm:$0xff]  ;;  %v10917_v52 = vld [vmem:[%s18549_s5 + $0x8a0] sm:$0xff] }
 0xe1b   :  { %v8092_v63 = vmax.f32 %v8032_v2, 0.0  ;;  %v7730_v2 = vadd.f32 %v18301_v44, %v17409_v47  ;;  %v10928_v47 = vld [vmem:[%s18549_s5 + $0x8f8] sm:$0xff] }
 0xe1c   :  { %8768 = vmatpush.msra.mxu1 %v10883_v62  ;;  %8803 = vmatpush.msrb.mxu2 %v10906_v61 }
 0xe1d   :  { %8606 = vmatmul.f32.gmra.mxu3 %v8092_v63  ;;  %v7942_v63 = vpop.f32.mrf.mxu3  ;;  %v7834_v57 = vadd.f32 %v18310_v42, %v7730_v2 }
 0xe1e   :  { %8769 = vmatpush.msra.mxu1 %v10882_v56  ;;  %8804 = vmatpush.msrb.mxu2 %v10905_v8  ;;  %v10916_v56 = vld [vmem:[%s18549_s5 + $0x898] sm:$0xff]  ;;  %v10915_v8 = vld [vmem:[%s18549_s5 + $0x890] sm:$0xff] }
 0xe1f   :  { %v7938_v44 = vadd.f32 %v18313_v15, %v7834_v57  ;;  %8839 = vmatpush.msrb.mxu3 %v10928_v47  ;;  %v10926_v15 = vld [vmem:[%s18549_s5 + $0x8e8] sm:$0xff] }
 0xe20   :  { %v8034_v20 = vpop.f32.mrf.mxu0  ;;  %8770 = vmatpush.msra.mxu1 %v10881_v36  ;;  %8805 = vmatpush.msrb.mxu2 %v10904_v41  ;;  %v10914_v47 = vld [vmem:[%s18549_s5 + $0x888] sm:$0xff] }
 0xe21   :  { %v8035_v17 = vadd.f32 %v8034_v20, %v7931_v12  ;;  %8840 = vmatpush.msrb.mxu3 %v10927_v46  ;;  %v7737_v12 = vpop.f32.mrf.mxu1  ;;  %v10902_v20 = vld [vmem:[%s18549_s5 + $0x828] sm:$0xff]  ;;  %v7841_v38 = vpop.f32.mrf.mxu2  ;;  %v10913_v46 = vld [vmem:[%s18549_s5 + $0x880] sm:$0xff] }
 0xe22   :  { %8806 = vmatpush.msrb.mxu2 %v10903_v50 }
 0xe23   :  { %v8093_v0 = vmax.f32 %v8035_v17, 0.0  ;;  %8841 = vmatpush.msrb.mxu3 %v10926_v15  ;;  %v10901_v17 = vld [vmem:[%s18549_s5 + $0x820] sm:$0xff] }
 0xe24   :  { %8807 = vmatpush.msrb.mxu2 %v10902_v20  ;;  %v10936_v20 = vld [vmem:[%s18549_s5 + $0x938] sm:$0xff] }
 0xe25   :  { %8645 = vmatmul.f32.vlgmr.msrb.gmra.mxu1 %v8093_v0  ;;  %8842 = vmatpush.msrb.mxu3 %v10925_v6  ;;  %v10924_v0 = vld [vmem:[%s18549_s5 + $0x8d8] sm:$0xff]  ;;  %v7945_v55 = vpop.f32.mrf.mxu3 }
 0xe26   :  { %8808 = vmatpush.msrb.mxu2 %v10901_v17 }
 0xe27   :  { %8843 = vmatpush.msrb.mxu3 %v10924_v0  ;;  %v10933_v0 = vld [vmem:[%s18549_s5 + $0x920] sm:$0xff] }
 0xe28   :  { %v8036_v39 = vpop.f32.mrf.mxu0  ;;  %8809 = vmatpush.msrb.mxu2 %v10900_v22 }
 0xe29   :  { %v8037_v43 = vadd.f32 %v8036_v39, %v7933_v40  ;;  %8844 = vmatpush.msrb.mxu3 %v10923_v26  ;;  %v10898_v40 = vld [vmem:[%s18549_s5 + $0x808] sm:$0xff]  ;;  %v7735_v39 = vadd.f32 %v7734_v33, %v17432_v60  ;;  %v7739_v28 = vpop.f32.mrf.mxu1  ;;  %v10944_v60 = vld [vmem:[%s18549_s5 + $0x978] sm:$0xff]  ;;  %v7843_v34 = vpop.f32.mrf.mxu2 }
 0xe2a   :  { %8810 = vmatpush.msrb.mxu2 %v10899_v16  ;;  %8881 = vmatpush.msrb.mxu1 %v10944_v60  ;;  %v10942_v33 = vld [vmem:[%s18549_s5 + $0x968] sm:$0xff] }
 0xe2b   :  { %v8094_v35 = vmax.f32 %v8037_v43, 0.0  ;;  %8845 = vmatpush.msrb.mxu3 %v10922_v45  ;;  %v10921_v43 = vld [vmem:[%s18549_s5 + $0x8c0] sm:$0xff]  ;;  %v7839_v32 = vadd.f32 %v7838_v58, %v7735_v39  ;;  %v10930_v45 = vld [vmem:[%s18549_s5 + $0x908] sm:$0xff] }
 0xe2c   :  { %8811 = vmatpush.msrb.mxu2 %v10898_v40  ;;  %8882 = vmatpush.msrb.mxu1 %v10943_v54 }
 0xe2d   :  { %8648 = vmatmul.f32.gmra.mxu1 %v8094_v35  ;;  %8846 = vmatpush.msrb.mxu3 %v10921_v43  ;;  %v7943_v35 = vadd.f32 %v7942_v63, %v7839_v32  ;;  %v7947_v31 = vpop.f32.mrf.mxu3  ;;  %v10939_v63 = vld [vmem:[%s18549_s5 + $0x950] sm:$0xff] }
 0xe2e   :  { %8812 = vmatpush.msrb.mxu2 %v10897_v10  ;;  %8883 = vmatpush.msrb.mxu1 %v10942_v33  ;;  %v10929_v10 = vld [vmem:[%s18549_s5 + $0x900] sm:$0xff] }
 0xe2f   :  { %8847 = vmatpush.msrb.mxu3 %v10920_v51 }
 0xe30   :  { %v8039_v11 = vpop.f32.mrf.mxu0 }
 0xe31   :  { %v8040_v27 = vadd.f32 %v8039_v11, %v7936_v23  ;;  %8848 = vmatpush.msrb.mxu3 %v10919_v24  ;;  %v10918_v23 = vld [vmem:[%s18549_s5 + $0x8a8] sm:$0xff]  ;;  %v7738_v11 = vadd.f32 %v7737_v12, %v17437_v25  ;;  %v10940_v25 = vld [vmem:[%s18549_s5 + $0x958] sm:$0xff]  ;;  %v7742_v61 = vpop.f32.mrf.mxu1 }
 0xe32   :  { %v7743_v48 = vadd.f32 %v7742_v61, %v17459_v59  ;;  %v10931_v59 = vld [vmem:[%s18549_s5 + $0x910] sm:$0xff] }
 0xe33   :  { %v8095_v3 = vmax.f32 %v8040_v27, 0.0  ;;  %v10941_v27 = vld [vmem:[%s18549_s5 + $0x960] sm:$0xff]  ;;  %8849 = vmatpush.msrb.mxu3 %v10918_v23  ;;  %v7842_v58 = vadd.f32 %v7841_v38, %v7738_v11  ;;  %v10934_v38 = vld [vmem:[%s18549_s5 + $0x928] sm:$0xff] }
 0xe34   :  { %8884 = vmatpush.msrb.mxu1 %v10941_v27 }
 0xe35   :  { %8687 = vmatmul.f32.vlgmr.msra.gmra.mxu2 %v8095_v3  ;;  %8850 = vmatpush.msrb.mxu3 %v10917_v52  ;;  %v7946_v2 = vadd.f32 %v7945_v55, %v7842_v58  ;;  %v7846_v3 = vpop.f32.mrf.mxu2  ;;  %v7950_v41 = vpop.f32.mrf.mxu3 }
 0xe36   :  { %8885 = vmatpush.msrb.mxu1 %v10940_v25 }
 0xe37   :  { %8851 = vmatpush.msrb.mxu3 %v10916_v56 }
 0xe38   :  { %v8041_v19 = vpop.f32.mrf.mxu0  ;;  %8886 = vmatpush.msrb.mxu1 %v10939_v63 }
 0xe39   :  { %v8042_v42 = vadd.f32 %v8041_v19, %v7938_v44  ;;  %8852 = vmatpush.msrb.mxu3 %v10915_v8  ;;  %v10938_v44 = vld [vmem:[%s18549_s5 + $0x948] sm:$0xff]  ;;  %v7740_v19 = vadd.f32 %v7739_v28, %v17450_v37  ;;  %v7744_v15 = vpop.f32.mrf.mxu1 }
 0xe3a   :  { %8887 = vmatpush.msrb.mxu1 %v10938_v44  ;;  %v7745_v39 = vadd.f32 %v7744_v15, %v17477_v4 }
 0xe3b   :  { %v8096_v5 = vmax.f32 %v8042_v42, 0.0  ;;  %v10937_v42 = vld [vmem:[%s18549_s5 + $0x940] sm:$0xff]  ;;  %8853 = vmatpush.msrb.mxu3 %v10914_v47  ;;  %v7844_v12 = vadd.f32 %v7843_v34, %v7740_v19 }
 0xe3c   :  { %8888 = vmatpush.msrb.mxu1 %v10937_v42 }
 0xe3d   :  { %8690 = vmatmul.f32.gmra.mxu2 %v8096_v5  ;;  %8854 = vmatpush.msrb.mxu3 %v10913_v46  ;;  %v7948_v37 = vadd.f32 %v7947_v31, %v7844_v12  ;;  %v10935_v5 = vld [vmem:[%s18549_s5 + $0x930] sm:$0xff]  ;;  %v7848_v6 = vpop.f32.mrf.mxu2  ;;  %v7952_v55 = vpop.f32.mrf.mxu3 }
 0xe3e   :  { %8889 = vmatpush.msrb.mxu1 %v10936_v20  ;;  %v7849_v28 = vadd.f32 %v7848_v6, %v7745_v39 }
 0xe40   :  { %v8044_v21 = vpop.f32.mrf.mxu0  ;;  %8890 = vmatpush.msrb.mxu1 %v10935_v5  ;;  %v7953_v51 = vadd.f32 %v7952_v55, %v7849_v28 }
 0xe41   :  { %v8045_v7 = vadd.f32 %v8044_v21, %v7941_v29  ;;  %v7847_v29 = vadd.f32 %v7846_v3, %v7743_v48  ;;  %v10932_v21 = vld [vmem:[%s18549_s5 + $0x918] sm:$0xff]  ;;  %v7747_v40 = vpop.f32.mrf.mxu1 }
 0xe42   :  { %8891 = vmatpush.msrb.mxu1 %v10934_v38 }
 0xe43   :  { %v8097_v53 = vmax.f32 %v8045_v7, 0.0  ;;  %v7951_v16 = vadd.f32 %v7950_v41, %v7847_v29 }
 0xe44   :  { %8892 = vmatpush.msrb.mxu1 %v10933_v0 }
 0xe45   :  { %8729 = vmatmul.f32.vlgmr.msra.gmra.mxu3 %v8097_v53  ;;  %v7851_v43 = vpop.f32.mrf.mxu2  ;;  %v7955_v32 = vpop.f32.mrf.mxu3 }
 0xe46   :  { %8893 = vmatpush.msrb.mxu1 %v10932_v21 }
 0xe48   :  { %v8046_v1 = vpop.f32.mrf.mxu0  ;;  %8894 = vmatpush.msrb.mxu1 %v10931_v59 }
 0xe49   :  { %v8047_v18 = vadd.f32 %v8046_v1, %v7943_v35  ;;  %v7748_v35 = vadd.f32 %v7747_v40, %v17498_v30  ;;  %v7749_v1 = vpop.f32.mrf.mxu1 }
 0xe4a   :  { %8895 = vmatpush.msrb.mxu1 %v10930_v45  ;;  %v7750_v11 = vadd.f32 %v7749_v1, %v17522_v9 }
 0xe4b   :  { %v8098_v62 = vmax.f32 %v8047_v18, 0.0  ;;  %v7852_v24 = vadd.f32 %v7851_v43, %v7748_v35 }
 0xe4c   :  { %8896 = vmatpush.msrb.mxu1 %v10929_v10 }
 0xe4d   :  { %8732 = vmatmul.f32.gmra.mxu3 %v8098_v62  ;;  %v7853_v4 = vpop.f32.mrf.mxu2  ;;  %v7956_v54 = vadd.f32 %v7955_v32, %v7852_v24  ;;  %v7957_v18 = vpop.f32.mrf.mxu3 }
 0xe4e   :  { %v7854_v52 = vadd.f32 %v7853_v4, %v7750_v11 }
 0xe50   :  { %v8049_v36 = vpop.f32.mrf.mxu0  ;;  %v7958_v58 = vadd.f32 %v7957_v18, %v7854_v52 }
 0xe51   :  { %v8050_v57 = vadd.f32 %v8049_v36, %v7946_v2  ;;  %v7752_v27 = vpop.f32.mrf.mxu1 }
 0xe52   :  { %v7753_v2 = vadd.f32 %v7752_v27, %v17540_v49 }
 0xe53   :  { %v8099_v50 = vmax.f32 %v8050_v57, 0.0 }
 0xe55   :  { %8771 = vmatmul.f32.vlgmr.msra.gmra.mxu1 %v8099_v50  ;;  %v7856_v56 = vpop.f32.mrf.mxu2  ;;  %v7960_v30 = vpop.f32.mrf.mxu3 }
 0xe56   :  { %v7857_v36 = vadd.f32 %v7856_v56, %v7753_v2 }
 0xe58   :  { %v8051_v14 = vpop.f32.mrf.mxu0  ;;  %v7961_v8 = vadd.f32 %v7960_v30, %v7857_v36 }
 0xe59   :  { %v8052_v17 = vadd.f32 %v8051_v14, %v7948_v37  ;;  %v7754_v63 = vpop.f32.mrf.mxu1 }
 0xe5a   :  { %v7755_v9 = vadd.f32 %v7754_v63, %v17566_v13 }
 0xe5b   :  { %v8100_v22 = vmax.f32 %v8052_v17, 0.0 }
 0xe5d   :  { %8774 = vmatmul.f32.gmra.mxu1 %v8100_v22  ;;  %v7858_v47 = vpop.f32.mrf.mxu2  ;;  %v7962_v19 = vpop.f32.mrf.mxu3 }
 0xe5e   :  { %v7859_v50 = vadd.f32 %v7858_v47, %v7755_v9 }
 0xe60   :  { %v8054_v26 = vpop.f32.mrf.mxu0  ;;  %v7963_v46 = vadd.f32 %v7962_v19, %v7859_v50 }
 0xe61   :  { %v8055_v7 = vadd.f32 %v8054_v26, %v7951_v16  ;;  %v8142_v49 = vpop.f32.mrf.mxu1 }
 0xe63   :  { %v8101_v53 = vmax.f32 %v8055_v7, 0.0 }
 0xe65   :  { %8813 = vmatmul.f32.vlgmr.msrb.gmra.mxu2 %v8101_v53  ;;  %v8184_v15 = vpop.f32.mrf.mxu2  ;;  %v8226_v14 = vpop.f32.mrf.mxu3  ;;  %v8107_v53 = vld [vmem:[%s18550_s6] sm:$0xff] }
 0xe66   :  { %v8148_v43 = vadd.f32 %v8142_v49, %v8107_v53 }
 0xe68   :  { %v8056_v60 = vpop.f32.mrf.mxu0  ;;  %v8190_v32 = vadd.f32 %v8184_v15, %v8148_v43 }
 0xe69   :  { %v8057_v34 = vadd.f32 %v8056_v60, %v7953_v51  ;;  %v8145_v37 = vpop.f32.mrf.mxu1 }
 0xe6a   :  { %v8232_v60 = vadd.f32 %v8226_v14, %v8190_v32 }
 0xe6b   :  { %v8102_v31 = vmax.f32 %v8057_v34, 0.0  ;;  %v8108_v34 = vld [vmem:[%s18550_s6 + $0x8] sm:$0xff] }
 0xe6d   :  { %8816 = vmatmul.f32.gmra.mxu2 %v8102_v31  ;;  %v8187_v17 = vpop.f32.mrf.mxu2  ;;  %v8229_v6 = vpop.f32.mrf.mxu3  ;;  %v8149_v31 = vadd.f32 %v8145_v37, %v8108_v34 }
 0xe70   :  { %v8059_v23 = vpop.f32.mrf.mxu0 }
 0xe71   :  { %v8060_v33 = vadd.f32 %v8059_v23, %v7956_v54  ;;  %v8268_v5 = vpop.f32.mrf.mxu1  ;;  %v8191_v54 = vadd.f32 %v8187_v17, %v8149_v31 }
 0xe72   :  { %v8274_v35 = vadd.f32 %v8268_v5, %v8232_v60 }
 0xe73   :  { %v8103_v62 = vmax.f32 %v8060_v33, 0.0  ;;  %v8233_v33 = vadd.f32 %v8229_v6, %v8191_v54 }
 0xe75   :  { %8855 = vmatmul.f32.vlgmr.msrb.gmra.mxu3 %v8103_v62  ;;  %v8310_v48 = vpop.f32.mrf.mxu2  ;;  %v8352_v22 = vpop.f32.mrf.mxu3 }
 0xe76   :  { %v8316_v1 = vadd.f32 %v8310_v48, %v8274_v35 }
 0xe78   :  { %v8061_v25 = vpop.f32.mrf.mxu0  ;;  %v8358_v18 = vadd.f32 %v8352_v22, %v8316_v1 }
 0xe79   :  { %v8062_v61 = vadd.f32 %v8061_v25, %v7958_v58  ;;  %v8271_v38 = vpop.f32.mrf.mxu1 }
 0xe7a   :  { %v8275_v62 = vadd.f32 %v8271_v38, %v8233_v33 }
 0xe7b   :  { %v8104_v3 = vmax.f32 %v8062_v61, 0.0 }
 0xe7d   :  { %8858 = vmatmul.f32.gmra.mxu3 %v8104_v3  ;;  %v8313_v0 = vpop.f32.mrf.mxu2  ;;  %v8355_v55 = vpop.f32.mrf.mxu3 }
 0xe7e   :  { %v8317_v27 = vadd.f32 %v8313_v0, %v8275_v62 }
 0xe80   :  { %v8064_v57 = vpop.f32.mrf.mxu0  ;;  %v8359_v25 = vadd.f32 %v8355_v55, %v8317_v27 }
 0xe81   :  { %v8065_v41 = vadd.f32 %v8064_v57, %v7961_v8  ;;  %v8394_v13 = vpop.f32.mrf.mxu1 }
 0xe82   :  { %v8400_v11 = vadd.f32 %v8394_v13, %v8358_v18 }
 0xe83   :  { %v8105_v44 = vmax.f32 %v8065_v41, 0.0 }
 0xe85   :  { %8897 = vmatmul.f32.vlgmr.msrb.gmra.mxu1 %v8105_v44  ;;  %v8436_v21 = vpop.f32.mrf.mxu2  ;;  %v8478_v16 = vpop.f32.mrf.mxu3 }
 0xe86   :  { %v8442_v52 = vadd.f32 %v8436_v21, %v8400_v11 }
 0xe88   :  { %v8066_v42 = vpop.f32.mrf.mxu0  ;;  %v8484_v58 = vadd.f32 %v8478_v16, %v8442_v52 }
 0xe89   :  { %v8067_v12 = vadd.f32 %v8066_v42, %v7963_v46  ;;  %v8397_v29 = vpop.f32.mrf.mxu1 }
 0xe8a   :  { %v8401_v2 = vadd.f32 %v8397_v29, %v8359_v25 }
 0xe8b   :  { %v8106_v20 = vmax.f32 %v8067_v12, 0.0 }
 0xe8d   :  { %8900 = vmatmul.f32.gmra.mxu1 %v8106_v20  ;;  %v8439_v59 = vpop.f32.mrf.mxu2  ;;  %v8481_v7 = vpop.f32.mrf.mxu3 }
 0xe8e   :  { %v8443_v8 = vadd.f32 %v8439_v59, %v8401_v2 }
 0xe90   :  { %v8485_v57 = vadd.f32 %v8481_v7, %v8443_v8 }
 0xe91   :  { %v8520_v26 = vpop.f32.mrf.mxu1 }
 0xe92   :  { %v8526_v61 = vadd.f32 %v8520_v26, %v8484_v58 }
 0xe95   :  { %v8562_v45 = vpop.f32.mrf.mxu2 }
 0xe96   :  { %v8568_v3 = vadd.f32 %v8562_v45, %v8526_v61 }
 0xe98   :  { %v8604_v39 = vpop.f32.mrf.mxu3 }
 0xe99   :  { %v8523_v40 = vpop.f32.mrf.mxu1  ;;  %v8610_v63 = vadd.f32 %v8604_v39, %v8568_v3 }
 0xe9a   :  { %v8527_v47 = vadd.f32 %v8523_v40, %v8485_v57 }
 0xe9d   :  { %v8565_v28 = vpop.f32.mrf.mxu2 }
 0xe9e   :  { %v8569_v50 = vadd.f32 %v8565_v28, %v8527_v47 }
 0xea0   :  { %v8607_v51 = vpop.f32.mrf.mxu3 }
 0xea1   :  { %v8611_v12 = vadd.f32 %v8607_v51, %v8569_v50 }
 0xea2   :  { %v8646_v10 = vpop.f32.mrf.mxu1 }
 0xea3   :  { %v8652_v41 = vadd.f32 %v8646_v10, %v8610_v63 }
 0xeaa   :  { %v8649_v24 = vpop.f32.mrf.mxu1 }
 0xeab   :  { %v8653_v49 = vadd.f32 %v8649_v24, %v8611_v12 }
 0xeb8   :  { %v8688_v4 = vpop.f32.mrf.mxu2 }
 0xeb9   :  { %v8694_v9 = vadd.f32 %v8688_v4, %v8652_v41 }
 0xec0   :  { %v8691_v30 = vpop.f32.mrf.mxu2 }
 0xec1   :  { %v8695_v15 = vadd.f32 %v8691_v30, %v8653_v49 }
 0xec8   :  { %v8730_v23 = vpop.f32.mrf.mxu3 }
 0xec9   :  { %v8736_v46 = vadd.f32 %v8730_v23, %v8694_v9 }
 0xed0   :  { %v8733_v36 = vpop.f32.mrf.mxu3 }
 0xed1   :  { %v8737_v17 = vadd.f32 %v8733_v36, %v8695_v15 }
 0xed2   :  { %v8772_v56 = vpop.f32.mrf.mxu1 }
 0xed3   :  { %v8778_v20 = vadd.f32 %v8772_v56, %v8736_v46 }
 0xeda   :  { %v8775_v44 = vpop.f32.mrf.mxu1 }
 0xedb   :  { %v8779_v48 = vadd.f32 %v8775_v44, %v8737_v17 }
 0xee8   :  { %v8814_v19 = vpop.f32.mrf.mxu2 }
 0xee9   :  { %v8820_v37 = vadd.f32 %v8814_v19, %v8778_v20 }
 0xef0   :  { %v8817_v38 = vpop.f32.mrf.mxu2 }
 0xef1   :  { %v8821_v13 = vadd.f32 %v8817_v38, %v8779_v48 }
 0xef8   :  { %v8856_v42 = vpop.f32.mrf.mxu3 }
 0xef9   :  { %v8862_v14 = vadd.f32 %v8856_v42, %v8820_v37 }
 0xf00   :  { %v8859_v22 = vpop.f32.mrf.mxu3 }
 0xf01   :  { %v8863_v0 = vadd.f32 %v8859_v22, %v8821_v13 }
 0xf02   :  { %v8898_v5 = vpop.f32.mrf.mxu1 }
 0xf03   :  { %v8904_v6 = vadd.f32 %v8898_v5, %v8862_v14 }
 0xf05   :  { %8907 = vst.msk [vmem:[%s18551_s7] sm:$0xff] %vm8906_vm0, %v8904_v6 }
 0xf0a   :  { %v8901_v55 = vpop.f32.mrf.mxu1 }
 0xf0b   :  { %v8905_v29 = vadd.f32 %v8901_v55, %v8863_v0 }
 0xf0d   :  { %8908 = vst.msk [vmem:[%s18551_s7 + $0x8] sm:$0xff] %vm8906_vm0, %v8905_v29 }

</bundles_post_ra>
